<compile_context>
chip_gen: v7x
topology: tpu7x:2x2x1
jax: 0.10.0
libtpu: 0.0.40
codegen_flags: <defaults>
</compile_context>

<pallas_src>
import functools

import jax
import jax.numpy as jnp
from jax.experimental import pallas as pl
from jax.experimental.pallas import tpu as pltpu

# Keep the VMEM request well under v7x's 64 MiB physical capacity; the tiled
# matmul blocks below are small enough for v5e/v6e/v7x alike.
_VMEM_LIMIT = 48 * 1024 * 1024

# Static network structure (never traced): (use_1x1conv, stride) per residual.
_BLOCK_CFG = {
    "b2": ((False, 1), (False, 1)),
    "b3": ((True, 2), (False, 1)),
    "b4": ((True, 2), (False, 1)),
    "b5": ((True, 2), (False, 1)),
}


def _round_up(x, m):
    return (x + m - 1) // m * m


# ----------------------------------------------------------------------------
# Pallas kernels
# ----------------------------------------------------------------------------
def _mm_kernel(a_ref, b_ref, bias_ref, o_ref, acc_ref, *, relu):
    """Tiled matmul with K-axis accumulation; epilogue = +bias (+ReLU)."""
    @pl.when(pl.program_id(2) == 0)
    def _():
        acc_ref[...] = jnp.zeros_like(acc_ref)

    acc_ref[...] += jnp.dot(a_ref[...], b_ref[...],
                            preferred_element_type=jnp.float32)

    @pl.when(pl.program_id(2) == pl.num_programs(2) - 1)
    def _():
        y = acc_ref[...] + bias_ref[...]
        if relu:
            y = jnp.maximum(y, 0.0)
        o_ref[...] = y


def _mm_res_kernel(a_ref, b_ref, bias_ref, res_ref, o_ref, acc_ref):
    """Tiled matmul; epilogue = +bias +residual, ReLU (second conv of a block)."""
    @pl.when(pl.program_id(2) == 0)
    def _():
        acc_ref[...] = jnp.zeros_like(acc_ref)

    acc_ref[...] += jnp.dot(a_ref[...], b_ref[...],
                            preferred_element_type=jnp.float32)

    @pl.when(pl.program_id(2) == pl.num_programs(2) - 1)
    def _():
        y = acc_ref[...] + bias_ref[...] + res_ref[...]
        o_ref[...] = jnp.maximum(y, 0.0)


def _max_reduce_kernel(x_ref, o_ref):
    # x: (KK, M, C) window-stacked patches -> max over the KK window positions.
    o_ref[...] = jnp.max(x_ref[...], axis=0)


def _avgpool_kernel(x_ref, o_ref, *, inv):
    # x: (N, HW, C) -> mean over the spatial (sublane) axis, channels on lanes.
    o_ref[...] = jnp.sum(x_ref[...], axis=1) * inv


# ----------------------------------------------------------------------------
# Pallas wrappers
# ----------------------------------------------------------------------------
def pallas_matmul_fused(a, b, bias, res=None, relu=True,
                        tm=256, tn=256, tk=512):
    """(M,K)@(K,N) in bf16 on the MXU, f32 accumulate, fused bias/res/ReLU."""
    M, K = a.shape
    _, N = b.shape
    tm = min(tm, _round_up(M, 8))
    tn = min(tn, _round_up(N, 128))
    tk = min(tk, _round_up(K, 128))
    Mp, Kp, Np = _round_up(M, tm), _round_up(K, tk), _round_up(N, tn)

    ap = jnp.pad(a, ((0, Mp - M), (0, Kp - K))).astype(jnp.bfloat16)
    bp = jnp.pad(b, ((0, Kp - K), (0, Np - N))).astype(jnp.bfloat16)
    biasp = jnp.pad(bias.reshape(1, N), ((0, 0), (0, Np - N)))

    in_specs = [
        pl.BlockSpec((tm, tk), lambda i, j, k: (i, k)),
        pl.BlockSpec((tk, tn), lambda i, j, k: (k, j)),
        pl.BlockSpec((1, tn), lambda i, j, k: (0, j)),
    ]
    args = [ap, bp, biasp]
    if res is None:
        kernel = functools.partial(_mm_kernel, relu=relu)
    else:
        resp = jnp.pad(res, ((0, Mp - M), (0, Np - N)))
        in_specs.append(pl.BlockSpec((tm, tn), lambda i, j, k: (i, j)))
        args.append(resp)
        kernel = _mm_res_kernel

    out = pl.pallas_call(
        kernel,
        out_shape=jax.ShapeDtypeStruct((Mp, Np), jnp.float32),
        grid=(Mp // tm, Np // tn, Kp // tk),
        in_specs=in_specs,
        out_specs=pl.BlockSpec((tm, tn), lambda i, j, k: (i, j)),
        scratch_shapes=[pltpu.VMEM((tm, tn), jnp.float32)],
        compiler_params=pltpu.CompilerParams(
            dimension_semantics=("parallel", "parallel", "arbitrary"),
            vmem_limit_bytes=_VMEM_LIMIT),
    )(*args)
    return out[:M, :N]


def pallas_max_reduce(stacked):
    KK, M, C = stacked.shape
    Mp, Cp = _round_up(M, 8), _round_up(C, 128)
    sp = jnp.pad(stacked, ((0, 0), (0, Mp - M), (0, Cp - C)),
                 constant_values=-jnp.inf)
    out = pl.pallas_call(
        _max_reduce_kernel,
        out_shape=jax.ShapeDtypeStruct((Mp, Cp), jnp.float32),
        grid=(1,),
        in_specs=[pl.BlockSpec((KK, Mp, Cp), lambda i: (0, 0, 0))],
        out_specs=pl.BlockSpec((Mp, Cp), lambda i: (0, 0)),
        compiler_params=pltpu.CompilerParams(vmem_limit_bytes=_VMEM_LIMIT),
    )(sp)
    return out[:M, :C]


def pallas_avgpool(x_nhwc):
    """AdaptiveAvgPool2d((1,1)) + Flatten without any NHWC relayout."""
    N, H, W, C = x_nhwc.shape
    hw = H * W
    x3 = x_nhwc.reshape(N, hw, C)
    HWp, Cp = _round_up(hw, 8), _round_up(C, 128)
    xp = jnp.pad(x3, ((0, 0), (0, HWp - hw), (0, Cp - C)))
    out = pl.pallas_call(
        functools.partial(_avgpool_kernel, inv=1.0 / hw),
        out_shape=jax.ShapeDtypeStruct((N, Cp), jnp.float32),
        grid=(1,),
        in_specs=[pl.BlockSpec((N, HWp, Cp), lambda i: (0, 0, 0))],
        out_specs=pl.BlockSpec((N, Cp), lambda i: (0, 0)),
        compiler_params=pltpu.CompilerParams(vmem_limit_bytes=_VMEM_LIMIT),
    )(xp)
    return out[:, :C]


# ----------------------------------------------------------------------------
# Conv / pooling glue (im2col in plain JAX, matmul + epilogue fused in Pallas)
# ----------------------------------------------------------------------------
def conv2d_fused(x_nhwc, w_oihw, bias, stride, pad, res_nhwc=None, relu=True):
    N, H, W, Cin = x_nhwc.shape
    Cout, _, kh, kw = w_oihw.shape
    Ho = (H + 2 * pad - kh) // stride + 1
    Wo = (W + 2 * pad - kw) // stride + 1
    xp = jnp.pad(x_nhwc, ((0, 0), (pad, pad), (pad, pad), (0, 0)))
    cols = []
    for i in range(kh):
        for j in range(kw):
            cols.append(
                xp[:, i: i + stride * (Ho - 1) + 1: stride,
                      j: j + stride * (Wo - 1) + 1: stride, :]
            )
    patches = jnp.stack(cols, axis=3)                       # (N,Ho,Wo,kh*kw,Cin)
    a = patches.reshape(N * Ho * Wo, kh * kw * Cin)
    wmat = jnp.transpose(w_oihw, (2, 3, 1, 0)).reshape(kh * kw * Cin, Cout)
    res2 = None if res_nhwc is None else res_nhwc.reshape(N * Ho * Wo, Cout)
    out = pallas_matmul_fused(a, wmat, bias, res=res2, relu=relu)
    return out.reshape(N, Ho, Wo, Cout)


def maxpool_3x3_s2_p1(x_nhwc):
    N, H, W, C = x_nhwc.shape
    k, s, pad = 3, 2, 1
    Ho = (H + 2 * pad - k) // s + 1
    Wo = (W + 2 * pad - k) // s + 1
    xp = jnp.pad(x_nhwc, ((0, 0), (pad, pad), (pad, pad), (0, 0)),
                 constant_values=-jnp.inf)
    cols = []
    for i in range(k):
        for j in range(k):
            cols.append(
                xp[:, i: i + s * (Ho - 1) + 1: s, j: j + s * (Wo - 1) + 1: s, :]
            )
    # TODO(synk): the 9-tap stack replicates the stem activation in HBM; an
    # in-kernel overlapping-window read would cut that traffic ~9x.
    stacked = jnp.stack(cols, axis=0).reshape(k * k, N * Ho * Wo, C)
    out = pallas_max_reduce(stacked)
    return out.reshape(N, Ho, Wo, C)


# ----------------------------------------------------------------------------
# Parameter initialization (PyTorch-like) + parameter prep (BN fold, head cat)
# ----------------------------------------------------------------------------
def init_params(key):
    keys = jax.random.split(key, 16)

    def conv_p(k, cin, cout, ks):
        w = jax.random.normal(k, (cout, cin, ks, ks), jnp.float32) * 0.05
        return {"w": w, "b": jnp.zeros((cout,), jnp.float32)}

    def bn_p(c):
        return {"gamma": jnp.ones((c,), jnp.float32),
                "beta": jnp.zeros((c,), jnp.float32),
                "mean": jnp.zeros((c,), jnp.float32),
                "var": jnp.ones((c,), jnp.float32)}

    def lin_p(k, cin, cout):
        w = jax.random.normal(k, (cout, cin), jnp.float32) * 0.05
        return {"w": w, "b": jnp.zeros((cout,), jnp.float32)}

    def res_p(k, cin, cout, use_1x1):
        k1, k2, k3 = jax.random.split(k, 3)
        p = {"conv1": conv_p(k1, cin, cout, 3), "bn1": bn_p(cout),
             "conv2": conv_p(k2, cout, cout, 3), "bn2": bn_p(cout)}
        if use_1x1:
            p["conv3"] = conv_p(k3, cin, cout, 1)
        return p

    return {
        "b1_conv": conv_p(keys[0], 3, 64, 7),
        "b1_bn": bn_p(64),
        "b2": [res_p(keys[1], 64, 64, False), res_p(keys[2], 64, 64, False)],
        "b3": [res_p(keys[3], 64, 128, True), res_p(keys[4], 128, 128, False)],
        "b4": [res_p(keys[5], 128, 256, True), res_p(keys[6], 256, 256, False)],
        "b5": [res_p(keys[7], 256, 512, True), res_p(keys[8], 512, 512, False)],
        "left": lin_p(keys[9], 512, 21),
        "top": lin_p(keys[10], 512, 21),
        "right": lin_p(keys[11], 512, 21),
        "bottom": lin_p(keys[12], 512, 21),
        "cls": lin_p(keys[13], 21, 2),
    }


def prepare_params(params, eps=1e-5):
    """Fold inference-mode BN into conv weights/bias, concat heads, pre-T linears."""
    def fold(conv, bn):
        scale = bn["gamma"] * jax.lax.rsqrt(bn["var"] + eps)     # (Cout,)
        shift = bn["beta"] - bn["mean"] * scale
        return {"w": conv["w"] * scale[:, None, None, None],
                "b": conv["b"] * scale + shift}

    p = {"stem": fold(params["b1_conv"], params["b1_bn"])}
    for name in ("b2", "b3", "b4", "b5"):
        blocks = []
        for blk, (use_1x1, _stride) in zip(params[name], _BLOCK_CFG[name]):
            nb = {"c1": fold(blk["conv1"], blk["bn1"]),
                  "c2": fold(blk["conv2"], blk["bn2"])}
            if use_1x1:
                nb["c3"] = {"w": blk["conv3"]["w"], "b": blk["conv3"]["b"]}
            blocks.append(nb)
        p[name] = blocks

    head_names = ("left", "top", "right", "bottom")
    p["heads_w"] = jnp.concatenate([params[h]["w"].T for h in head_names], axis=1)
    p["heads_b"] = jnp.concatenate([params[h]["b"] for h in head_names], axis=0)
    p["cls_w"] = params["cls"]["w"].T
    p["cls_b"] = params["cls"]["b"]
    return p


# ----------------------------------------------------------------------------
# Forward pass
# ----------------------------------------------------------------------------
def residual_forward(x, p, use_1x1, stride):
    # conv1 + folded BN1 + ReLU (single fused matmul call)
    y = conv2d_fused(x, p["c1"]["w"], p["c1"]["b"], stride=stride, pad=1,
                     relu=True)
    # shortcut (1x1 conv, no BN/ReLU) or identity
    if use_1x1:
        shortcut = conv2d_fused(x, p["c3"]["w"], p["c3"]["b"], stride=stride,
                                pad=0, relu=False)
    else:
        shortcut = x
    # conv2 + folded BN2 + residual add + ReLU, fused into the matmul epilogue
    return conv2d_fused(y, p["c2"]["w"], p["c2"]["b"], stride=1, pad=1,
                        res_nhwc=shortcut, relu=True)


def resnet_forward(p, x_nchw):
    # NCHW (PyTorch) -> NHWC (kernel layout)
    x = jnp.transpose(x_nchw, (0, 2, 3, 1)).astype(jnp.float32)

    # stem: 7x7/2 conv with folded BN + fused ReLU, then 3x3/2 maxpool
    y = conv2d_fused(x, p["stem"]["w"], p["stem"]["b"], stride=2, pad=3,
                     relu=True)
    y = maxpool_3x3_s2_p1(y)

    # residual stages (structure is static Python config, never traced)
    for name in ("b2", "b3", "b4", "b5"):
        for blk, (use_1x1, stride) in zip(p[name], _BLOCK_CFG[name]):
            y = residual_forward(y, blk, use_1x1, stride)

    # AdaptiveAvgPool2d((1,1)) + Flatten
    feat = pallas_avgpool(y)                                 # (N, 512)

    # four 512->21 heads fused into one (512, 84) matmul
    heads = pallas_matmul_fused(feat, p["heads_w"], p["heads_b"], relu=False)
    left = heads[:, 0:21]
    top = heads[:, 21:42]
    right = heads[:, 42:63]
    bottom = heads[:, 63:84]
    cls = pallas_matmul_fused(left, p["cls_w"], p["cls_b"], relu=False)
    return left, top, right, bottom, cls


if __name__ == "__main__":
    key = jax.random.PRNGKey(0)
    pkey, xkey = jax.random.split(key)
    params = prepare_params(init_params(pkey))
    x = jax.random.normal(xkey, (2, 3, 32, 32), jnp.float32)   # NCHW like PyTorch

    fwd = jax.jit(resnet_forward)
    outs = jax.block_until_ready(fwd(params, x))

    assert outs[0].shape == (2, 21)
    assert outs[1].shape == (2, 21)
    assert outs[2].shape == (2, 21)
    assert outs[3].shape == (2, 21)
    assert outs[4].shape == (2, 2)
    print("KERNEL_OK")
</pallas_src>

<mosaic_0001>
module attributes {stable_mosaic.version = 11 : i64} {
  func.func @_mm_kernel(%arg0: i32, %arg1: i32, %arg2: i32, %arg3: memref<256x256xbf16, #tpu.memory_space<vmem>>, %arg4: memref<256x128xbf16, #tpu.memory_space<vmem>>, %arg5: memref<1x128xf32, #tpu.memory_space<vmem>>, %arg6: memref<256x128xf32, #tpu.memory_space<vmem>>, %arg7: memref<256x128xf32, #tpu.memory_space<vmem>>) attributes {dimension_semantics = [#tpu.dimension_semantics<parallel>, #tpu.dimension_semantics<parallel>, #tpu.dimension_semantics<arbitrary>], iteration_bounds = array<i64: 2, 1, 1>, scalar_prefetch = 0 : i64, scratch_operands = 1 : i64, tpu.core_type = #tpu.core_type<tc>, window_params = [{transform_indices = @transform_0, window_bounds = array<i64: 256, 256>}, {transform_indices = @transform_1, window_bounds = array<i64: 256, 128>}, {transform_indices = @transform_2, window_bounds = array<i64: 1, 128>}, {transform_indices = @transform_3, window_bounds = array<i64: 256, 128>}]} {
    %c0_i32 = arith.constant 0 : i32
    %0 = arith.cmpi eq, %arg2, %c0_i32 : i32
    %1 = arith.extui %0 : i1 to i32
    %c0_i32_0 = arith.constant 0 : i32
    %2 = arith.cmpi ne, %1, %c0_i32_0 : i32
    scf.if %2 {
      %cst_10 = arith.constant 0.000000e+00 : f32
      %12 = vector.broadcast %cst_10 : f32 to vector<256x128xf32>
      %c0_11 = arith.constant 0 : index
      %c0_12 = arith.constant 0 : index
      %13 = vector.load %arg7[%c0_11, %c0_12] : memref<256x128xf32, #tpu.memory_space<vmem>>, vector<256x128xf32>
      tpu.vector_store %arg7[%c0_11, %c0_12], %12 {strides = array<i32>} : memref<256x128xf32, #tpu.memory_space<vmem>>, vector<256x128xf32>,
    } else {
    }
    %c0 = arith.constant 0 : index
    %c0_1 = arith.constant 0 : index
    %3 = vector.load %arg7[%c0, %c0_1] : memref<256x128xf32, #tpu.memory_space<vmem>>, vector<256x128xf32>
    %c0_2 = arith.constant 0 : index
    %c0_3 = arith.constant 0 : index
    %4 = vector.load %arg3[%c0_2, %c0_3] : memref<256x256xbf16, #tpu.memory_space<vmem>>, vector<256x256xbf16>
    %c0_4 = arith.constant 0 : index
    %c0_5 = arith.constant 0 : index
    %5 = vector.load %arg4[%c0_4, %c0_5] : memref<256x128xbf16, #tpu.memory_space<vmem>>, vector<256x128xbf16>
    %cst = arith.constant dense<0.000000e+00> : vector<256x128xf32>
    %6 = tpu.matmul %4, %5, %cst {dimension_numbers = #tpu.dot_dimension_numbers<[1], [0], [0], [1], [0, 0, 1, 1], [], []>} : vector<256x256xbf16>, vector<256x128xbf16>, vector<256x128xf32> -> vector<256x128xf32>
    %7 = arith.addf %3, %6 : vector<256x128xf32>
    %c0_6 = arith.constant 0 : index
    %c0_7 = arith.constant 0 : index
    %8 = vector.load %arg7[%c0_6, %c0_7] : memref<256x128xf32, #tpu.memory_space<vmem>>, vector<256x128xf32>
    tpu.vector_store %arg7[%c0_6, %c0_7], %7 {strides = array<i32>} : memref<256x128xf32, #tpu.memory_space<vmem>>, vector<256x128xf32>,
    %c0_i32_8 = arith.constant 0 : i32
    %9 = arith.cmpi eq, %arg2, %c0_i32_8 : i32
    %10 = arith.extui %9 : i1 to i32
    %c0_i32_9 = arith.constant 0 : i32
    %11 = arith.cmpi ne, %10, %c0_i32_9 : i32
    scf.if %11 {
      %c0_10 = arith.constant 0 : index
      %c0_11 = arith.constant 0 : index
      %12 = vector.load %arg7[%c0_10, %c0_11] : memref<256x128xf32, #tpu.memory_space<vmem>>, vector<256x128xf32>
      %c0_12 = arith.constant 0 : index
      %c0_13 = arith.constant 0 : index
      %13 = vector.load %arg5[%c0_12, %c0_13] : memref<1x128xf32, #tpu.memory_space<vmem>>, vector<1x128xf32>
      %14 = vector.broadcast %13 : vector<1x128xf32> to vector<256x128xf32>
      %15 = arith.addf %12, %14 : vector<256x128xf32>
      %cst_14 = arith.constant 0.000000e+00 : f32
      %16 = vector.broadcast %cst_14 : f32 to vector<256x128xf32>
      %17 = arith.maximumf %15, %16 : vector<256x128xf32>
      %c0_15 = arith.constant 0 : index
      %c0_16 = arith.constant 0 : index
      %18 = vector.load %arg6[%c0_15, %c0_16] : memref<256x128xf32, #tpu.memory_space<vmem>>, vector<256x128xf32>
      tpu.vector_store %arg6[%c0_15, %c0_16], %17 {strides = array<i32>} : memref<256x128xf32, #tpu.memory_space<vmem>>, vector<256x128xf32>,
    } else {
    }
    return
  }
  func.func @transform_0(%arg0: i32, %arg1: i32, %arg2: i32) -> (i32, i32) {
    %c0_i32 = arith.constant 0 : i32
    return %arg0, %arg2 : i32, i32
  }
  func.func @transform_1(%arg0: i32, %arg1: i32, %arg2: i32) -> (i32, i32) {
    %c0_i32 = arith.constant 0 : i32
    return %arg2, %arg1 : i32, i32
  }
  func.func @transform_2(%arg0: i32, %arg1: i32, %arg2: i32) -> (i32, i32) {
    %c0_i32 = arith.constant 0 : i32
    %c0_i32_0 = arith.constant 0 : i32
    return %c0_i32, %arg1 : i32, i32
  }
  func.func @transform_3(%arg0: i32, %arg1: i32, %arg2: i32) -> (i32, i32) {
    %c0_i32 = arith.constant 0 : i32
    return %arg0, %arg1 : i32, i32
  }
}

module attributes {stable_mosaic.version = 11 : i64} {
  func.func @_max_reduce_kernel(%arg0: i32, %arg1: memref<9x128x128xf32, #tpu.memory_space<vmem>>, %arg2: memref<128x128xf32, #tpu.memory_space<vmem>>) attributes {dimension_semantics = [#tpu.dimension_semantics<arbitrary>], iteration_bounds = array<i64: 1>, scalar_prefetch = 0 : i64, scratch_operands = 0 : i64, tpu.core_type = #tpu.core_type<tc>, window_params = [{pipeline_mode = #tpu.pipeline_mode<synchronous>, transform_indices = @transform_0, window_bounds = array<i64: 9, 128, 128>}, {pipeline_mode = #tpu.pipeline_mode<synchronous>, transform_indices = @transform_1, window_bounds = array<i64: 128, 128>}]} {
    %c0 = arith.constant 0 : index
    %c0_0 = arith.constant 0 : index
    %c0_1 = arith.constant 0 : index
    %0 = vector.load %arg1[%c0, %c0_0, %c0_1] : memref<9x128x128xf32, #tpu.memory_space<vmem>>, vector<9x128x128xf32>
    %cst = arith.constant dense<0xFF800000> : vector<128x128xf32>
    %1 = vector.multi_reduction <maximumf>, %0, %cst [0] : vector<9x128x128xf32> to vector<128x128xf32>
    %c0_2 = arith.constant 0 : index
    %c0_3 = arith.constant 0 : index
    %2 = vector.load %arg2[%c0_2, %c0_3] : memref<128x128xf32, #tpu.memory_space<vmem>>, vector<128x128xf32>
    tpu.vector_store %arg2[%c0_2, %c0_3], %1 {strides = array<i32>} : memref<128x128xf32, #tpu.memory_space<vmem>>, vector<128x128xf32>,
    return
  }
  func.func @transform_0(%arg0: i32) -> (i32, i32, i32) {
    %c0_i32 = arith.constant 0 : i32
    %c0_i32_0 = arith.constant 0 : i32
    %c0_i32_1 = arith.constant 0 : i32
    %c0_i32_2 = arith.constant 0 : i32
    return %c0_i32, %c0_i32_0, %c0_i32_1 : i32, i32, i32
  }
  func.func @transform_1(%arg0: i32) -> (i32, i32) {
    %c0_i32 = arith.constant 0 : i32
    %c0_i32_0 = arith.constant 0 : i32
    %c0_i32_1 = arith.constant 0 : i32
    return %c0_i32, %c0_i32_0 : i32, i32
  }
}

module attributes {stable_mosaic.version = 11 : i64} {
  func.func @_mm_kernel(%arg0: i32, %arg1: i32, %arg2: i32, %arg3: memref<128x512xbf16, #tpu.memory_space<vmem>>, %arg4: memref<512x128xbf16, #tpu.memory_space<vmem>>, %arg5: memref<1x128xf32, #tpu.memory_space<vmem>>, %arg6: memref<128x128xf32, #tpu.memory_space<vmem>>, %arg7: memref<128x128xf32, #tpu.memory_space<vmem>>) attributes {dimension_semantics = [#tpu.dimension_semantics<parallel>, #tpu.dimension_semantics<parallel>, #tpu.dimension_semantics<arbitrary>], iteration_bounds = array<i64: 1, 1, 2>, scalar_prefetch = 0 : i64, scratch_operands = 1 : i64, tpu.core_type = #tpu.core_type<tc>, window_params = [{transform_indices = @transform_0, window_bounds = array<i64: 128, 512>}, {transform_indices = @transform_1, window_bounds = array<i64: 512, 128>}, {transform_indices = @transform_2, window_bounds = array<i64: 1, 128>}, {transform_indices = @transform_3, window_bounds = array<i64: 128, 128>}]} {
    %c0_i32 = arith.constant 0 : i32
    %0 = arith.cmpi eq, %arg2, %c0_i32 : i32
    %1 = arith.extui %0 : i1 to i32
    %c0_i32_0 = arith.constant 0 : i32
    %2 = arith.cmpi ne, %1, %c0_i32_0 : i32
    scf.if %2 {
      %cst_9 = arith.constant 0.000000e+00 : f32
      %12 = vector.broadcast %cst_9 : f32 to vector<128x128xf32>
      %c0_10 = arith.constant 0 : index
      %c0_11 = arith.constant 0 : index
      %13 = vector.load %arg7[%c0_10, %c0_11] : memref<128x128xf32, #tpu.memory_space<vmem>>, vector<128x128xf32>
      tpu.vector_store %arg7[%c0_10, %c0_11], %12 {strides = array<i32>} : memref<128x128xf32, #tpu.memory_space<vmem>>, vector<128x128xf32>,
    } else {
    }
    %c0 = arith.constant 0 : index
    %c0_1 = arith.constant 0 : index
    %3 = vector.load %arg7[%c0, %c0_1] : memref<128x128xf32, #tpu.memory_space<vmem>>, vector<128x128xf32>
    %c0_2 = arith.constant 0 : index
    %c0_3 = arith.constant 0 : index
    %4 = vector.load %arg3[%c0_2, %c0_3] : memref<128x512xbf16, #tpu.memory_space<vmem>>, vector<128x512xbf16>
    %c0_4 = arith.constant 0 : index
    %c0_5 = arith.constant 0 : index
    %5 = vector.load %arg4[%c0_4, %c0_5] : memref<512x128xbf16, #tpu.memory_space<vmem>>, vector<512x128xbf16>
    %cst = arith.constant dense<0.000000e+00> : vector<128x128xf32>
    %6 = tpu.matmul %4, %5, %cst {dimension_numbers = #tpu.dot_dimension_numbers<[1], [0], [0], [1], [0, 0, 1, 1], [], []>} : vector<128x512xbf16>, vector<512x128xbf16>, vector<128x128xf32> -> vector<128x128xf32>
    %7 = arith.addf %3, %6 : vector<128x128xf32>
    %c0_6 = arith.constant 0 : index
    %c0_7 = arith.constant 0 : index
    %8 = vector.load %arg7[%c0_6, %c0_7] : memref<128x128xf32, #tpu.memory_space<vmem>>, vector<128x128xf32>
    tpu.vector_store %arg7[%c0_6, %c0_7], %7 {strides = array<i32>} : memref<128x128xf32, #tpu.memory_space<vmem>>, vector<128x128xf32>,
    %c1_i32 = arith.constant 1 : i32
    %9 = arith.cmpi eq, %arg2, %c1_i32 : i32
    %10 = arith.extui %9 : i1 to i32
    %c0_i32_8 = arith.constant 0 : i32
    %11 = arith.cmpi ne, %10, %c0_i32_8 : i32
    scf.if %11 {
      %c0_9 = arith.constant 0 : index
      %c0_10 = arith.constant 0 : index
      %12 = vector.load %arg7[%c0_9, %c0_10] : memref<128x128xf32, #tpu.memory_space<vmem>>, vector<128x128xf32>
      %c0_11 = arith.constant 0 : index
      %c0_12 = arith.constant 0 : index
      %13 = vector.load %arg5[%c0_11, %c0_12] : memref<1x128xf32, #tpu.memory_space<vmem>>, vector<1x128xf32>
      %14 = vector.broadcast %13 : vector<1x128xf32> to vector<128x128xf32>
      %15 = arith.addf %12, %14 : vector<128x128xf32>
      %cst_13 = arith.constant 0.000000e+00 : f32
      %16 = vector.broadcast %cst_13 : f32 to vector<128x128xf32>
      %17 = arith.maximumf %15, %16 : vector<128x128xf32>
      %c0_14 = arith.constant 0 : index
      %c0_15 = arith.constant 0 : index
      %18 = vector.load %arg6[%c0_14, %c0_15] : memref<128x128xf32, #tpu.memory_space<vmem>>, vector<128x128xf32>
      tpu.vector_store %arg6[%c0_14, %c0_15], %17 {strides = array<i32>} : memref<128x128xf32, #tpu.memory_space<vmem>>, vector<128x128xf32>,
    } else {
    }
    return
  }
  func.func @transform_0(%arg0: i32, %arg1: i32, %arg2: i32) -> (i32, i32) {
    %c0_i32 = arith.constant 0 : i32
    return %arg0, %arg2 : i32, i32
  }
  func.func @transform_1(%arg0: i32, %arg1: i32, %arg2: i32) -> (i32, i32) {
    %c0_i32 = arith.constant 0 : i32
    return %arg2, %arg1 : i32, i32
  }
  func.func @transform_2(%arg0: i32, %arg1: i32, %arg2: i32) -> (i32, i32) {
    %c0_i32 = arith.constant 0 : i32
    %c0_i32_0 = arith.constant 0 : i32
    return %c0_i32, %arg1 : i32, i32
  }
  func.func @transform_3(%arg0: i32, %arg1: i32, %arg2: i32) -> (i32, i32) {
    %c0_i32 = arith.constant 0 : i32
    return %arg0, %arg1 : i32, i32
  }
}

module attributes {stable_mosaic.version = 11 : i64} {
  func.func @_mm_res_kernel(%arg0: i32, %arg1: i32, %arg2: i32, %arg3: memref<128x512xbf16, #tpu.memory_space<vmem>>, %arg4: memref<512x128xbf16, #tpu.memory_space<vmem>>, %arg5: memref<1x128xf32, #tpu.memory_space<vmem>>, %arg6: memref<128x128xf32, #tpu.memory_space<vmem>>, %arg7: memref<128x128xf32, #tpu.memory_space<vmem>>, %arg8: memref<128x128xf32, #tpu.memory_space<vmem>>) attributes {dimension_semantics = [#tpu.dimension_semantics<parallel>, #tpu.dimension_semantics<parallel>, #tpu.dimension_semantics<arbitrary>], iteration_bounds = array<i64: 1, 1, 2>, scalar_prefetch = 0 : i64, scratch_operands = 1 : i64, tpu.core_type = #tpu.core_type<tc>, window_params = [{transform_indices = @transform_0, window_bounds = array<i64: 128, 512>}, {transform_indices = @transform_1, window_bounds = array<i64: 512, 128>}, {transform_indices = @transform_2, window_bounds = array<i64: 1, 128>}, {transform_indices = @transform_3, window_bounds = array<i64: 128, 128>}, {transform_indices = @transform_4, window_bounds = array<i64: 128, 128>}]} {
    %c0_i32 = arith.constant 0 : i32
    %0 = arith.cmpi eq, %arg2, %c0_i32 : i32
    %1 = arith.extui %0 : i1 to i32
    %c0_i32_0 = arith.constant 0 : i32
    %2 = arith.cmpi ne, %1, %c0_i32_0 : i32
    scf.if %2 {
      %cst_9 = arith.constant 0.000000e+00 : f32
      %12 = vector.broadcast %cst_9 : f32 to vector<128x128xf32>
      %c0_10 = arith.constant 0 : index
      %c0_11 = arith.constant 0 : index
      %13 = vector.load %arg8[%c0_10, %c0_11] : memref<128x128xf32, #tpu.memory_space<vmem>>, vector<128x128xf32>
      tpu.vector_store %arg8[%c0_10, %c0_11], %12 {strides = array<i32>} : memref<128x128xf32, #tpu.memory_space<vmem>>, vector<128x128xf32>,
    } else {
    }
    %c0 = arith.constant 0 : index
    %c0_1 = arith.constant 0 : index
    %3 = vector.load %arg8[%c0, %c0_1] : memref<128x128xf32, #tpu.memory_space<vmem>>, vector<128x128xf32>
    %c0_2 = arith.constant 0 : index
    %c0_3 = arith.constant 0 : index
    %4 = vector.load %arg3[%c0_2, %c0_3] : memref<128x512xbf16, #tpu.memory_space<vmem>>, vector<128x512xbf16>
    %c0_4 = arith.constant 0 : index
    %c0_5 = arith.constant 0 : index
    %5 = vector.load %arg4[%c0_4, %c0_5] : memref<512x128xbf16, #tpu.memory_space<vmem>>, vector<512x128xbf16>
    %cst = arith.constant dense<0.000000e+00> : vector<128x128xf32>
    %6 = tpu.matmul %4, %5, %cst {dimension_numbers = #tpu.dot_dimension_numbers<[1], [0], [0], [1], [0, 0, 1, 1], [], []>} : vector<128x512xbf16>, vector<512x128xbf16>, vector<128x128xf32> -> vector<128x128xf32>
    %7 = arith.addf %3, %6 : vector<128x128xf32>
    %c0_6 = arith.constant 0 : index
    %c0_7 = arith.constant 0 : index
    %8 = vector.load %arg8[%c0_6, %c0_7] : memref<128x128xf32, #tpu.memory_space<vmem>>, vector<128x128xf32>
    tpu.vector_store %arg8[%c0_6, %c0_7], %7 {strides = array<i32>} : memref<128x128xf32, #tpu.memory_space<vmem>>, vector<128x128xf32>,
    %c1_i32 = arith.constant 1 : i32
    %9 = arith.cmpi eq, %arg2, %c1_i32 : i32
    %10 = arith.extui %9 : i1 to i32
    %c0_i32_8 = arith.constant 0 : i32
    %11 = arith.cmpi ne, %10, %c0_i32_8 : i32
    scf.if %11 {
      %c0_9 = arith.constant 0 : index
      %c0_10 = arith.constant 0 : index
      %12 = vector.load %arg8[%c0_9, %c0_10] : memref<128x128xf32, #tpu.memory_space<vmem>>, vector<128x128xf32>
      %c0_11 = arith.constant 0 : index
      %c0_12 = arith.constant 0 : index
      %13 = vector.load %arg5[%c0_11, %c0_12] : memref<1x128xf32, #tpu.memory_space<vmem>>, vector<1x128xf32>
      %14 = vector.broadcast %13 : vector<1x128xf32> to vector<128x128xf32>
      %15 = arith.addf %12, %14 : vector<128x128xf32>
      %c0_13 = arith.constant 0 : index
      %c0_14 = arith.constant 0 : index
      %16 = vector.load %arg6[%c0_13, %c0_14] : memref<128x128xf32, #tpu.memory_space<vmem>>, vector<128x128xf32>
      %17 = arith.addf %15, %16 : vector<128x128xf32>
      %cst_15 = arith.constant 0.000000e+00 : f32
      %18 = vector.broadcast %cst_15 : f32 to vector<128x128xf32>
      %19 = arith.maximumf %17, %18 : vector<128x128xf32>
      %c0_16 = arith.constant 0 : index
      %c0_17 = arith.constant 0 : index
      %20 = vector.load %arg7[%c0_16, %c0_17] : memref<128x128xf32, #tpu.memory_space<vmem>>, vector<128x128xf32>
      tpu.vector_store %arg7[%c0_16, %c0_17], %19 {strides = array<i32>} : memref<128x128xf32, #tpu.memory_space<vmem>>, vector<128x128xf32>,
    } else {
    }
    return
  }
  func.func @transform_0(%arg0: i32, %arg1: i32, %arg2: i32) -> (i32, i32) {
    %c0_i32 = arith.constant 0 : i32
    return %arg0, %arg2 : i32, i32
  }
  func.func @transform_1(%arg0: i32, %arg1: i32, %arg2: i32) -> (i32, i32) {
    %c0_i32 = arith.constant 0 : i32
    return %arg2, %arg1 : i32, i32
  }
  func.func @transform_2(%arg0: i32, %arg1: i32, %arg2: i32) -> (i32, i32) {
    %c0_i32 = arith.constant 0 : i32
    %c0_i32_0 = arith.constant 0 : i32
    return %c0_i32, %arg1 : i32, i32
  }
  func.func @transform_3(%arg0: i32, %arg1: i32, %arg2: i32) -> (i32, i32) {
    %c0_i32 = arith.constant 0 : i32
    return %arg0, %arg1 : i32, i32
  }
  func.func @transform_4(%arg0: i32, %arg1: i32, %arg2: i32) -> (i32, i32) {
    %c0_i32 = arith.constant 0 : i32
    return %arg0, %arg1 : i32, i32
  }
}

module attributes {stable_mosaic.version = 11 : i64} {
  func.func @_mm_kernel(%arg0: i32, %arg1: i32, %arg2: i32, %arg3: memref<32x512xbf16, #tpu.memory_space<vmem>>, %arg4: memref<512x128xbf16, #tpu.memory_space<vmem>>, %arg5: memref<1x128xf32, #tpu.memory_space<vmem>>, %arg6: memref<32x128xf32, #tpu.memory_space<vmem>>, %arg7: memref<32x128xf32, #tpu.memory_space<vmem>>) attributes {dimension_semantics = [#tpu.dimension_semantics<parallel>, #tpu.dimension_semantics<parallel>, #tpu.dimension_semantics<arbitrary>], iteration_bounds = array<i64: 1, 1, 2>, scalar_prefetch = 0 : i64, scratch_operands = 1 : i64, tpu.core_type = #tpu.core_type<tc>, window_params = [{transform_indices = @transform_0, window_bounds = array<i64: 32, 512>}, {transform_indices = @transform_1, window_bounds = array<i64: 512, 128>}, {transform_indices = @transform_2, window_bounds = array<i64: 1, 128>}, {transform_indices = @transform_3, window_bounds = array<i64: 32, 128>}]} {
    %c0_i32 = arith.constant 0 : i32
    %0 = arith.cmpi eq, %arg2, %c0_i32 : i32
    %1 = arith.extui %0 : i1 to i32
    %c0_i32_0 = arith.constant 0 : i32
    %2 = arith.cmpi ne, %1, %c0_i32_0 : i32
    scf.if %2 {
      %cst_9 = arith.constant 0.000000e+00 : f32
      %12 = vector.broadcast %cst_9 : f32 to vector<32x128xf32>
      %c0_10 = arith.constant 0 : index
      %c0_11 = arith.constant 0 : index
      %13 = vector.load %arg7[%c0_10, %c0_11] : memref<32x128xf32, #tpu.memory_space<vmem>>, vector<32x128xf32>
      tpu.vector_store %arg7[%c0_10, %c0_11], %12 {strides = array<i32>} : memref<32x128xf32, #tpu.memory_space<vmem>>, vector<32x128xf32>,
    } else {
    }
    %c0 = arith.constant 0 : index
    %c0_1 = arith.constant 0 : index
    %3 = vector.load %arg7[%c0, %c0_1] : memref<32x128xf32, #tpu.memory_space<vmem>>, vector<32x128xf32>
    %c0_2 = arith.constant 0 : index
    %c0_3 = arith.constant 0 : index
    %4 = vector.load %arg3[%c0_2, %c0_3] : memref<32x512xbf16, #tpu.memory_space<vmem>>, vector<32x512xbf16>
    %c0_4 = arith.constant 0 : index
    %c0_5 = arith.constant 0 : index
    %5 = vector.load %arg4[%c0_4, %c0_5] : memref<512x128xbf16, #tpu.memory_space<vmem>>, vector<512x128xbf16>
    %cst = arith.constant dense<0.000000e+00> : vector<32x128xf32>
    %6 = tpu.matmul %4, %5, %cst {dimension_numbers = #tpu.dot_dimension_numbers<[1], [0], [0], [1], [0, 0, 1, 1], [], []>} : vector<32x512xbf16>, vector<512x128xbf16>, vector<32x128xf32> -> vector<32x128xf32>
    %7 = arith.addf %3, %6 : vector<32x128xf32>
    %c0_6 = arith.constant 0 : index
    %c0_7 = arith.constant 0 : index
    %8 = vector.load %arg7[%c0_6, %c0_7] : memref<32x128xf32, #tpu.memory_space<vmem>>, vector<32x128xf32>
    tpu.vector_store %arg7[%c0_6, %c0_7], %7 {strides = array<i32>} : memref<32x128xf32, #tpu.memory_space<vmem>>, vector<32x128xf32>,
    %c1_i32 = arith.constant 1 : i32
    %9 = arith.cmpi eq, %arg2, %c1_i32 : i32
    %10 = arith.extui %9 : i1 to i32
    %c0_i32_8 = arith.constant 0 : i32
    %11 = arith.cmpi ne, %10, %c0_i32_8 : i32
    scf.if %11 {
      %c0_9 = arith.constant 0 : index
      %c0_10 = arith.constant 0 : index
      %12 = vector.load %arg7[%c0_9, %c0_10] : memref<32x128xf32, #tpu.memory_space<vmem>>, vector<32x128xf32>
      %c0_11 = arith.constant 0 : index
      %c0_12 = arith.constant 0 : index
      %13 = vector.load %arg5[%c0_11, %c0_12] : memref<1x128xf32, #tpu.memory_space<vmem>>, vector<1x128xf32>
      %14 = vector.broadcast %13 : vector<1x128xf32> to vector<32x128xf32>
      %15 = arith.addf %12, %14 : vector<32x128xf32>
      %cst_13 = arith.constant 0.000000e+00 : f32
      %16 = vector.broadcast %cst_13 : f32 to vector<32x128xf32>
      %17 = arith.maximumf %15, %16 : vector<32x128xf32>
      %c0_14 = arith.constant 0 : index
      %c0_15 = arith.constant 0 : index
      %18 = vector.load %arg6[%c0_14, %c0_15] : memref<32x128xf32, #tpu.memory_space<vmem>>, vector<32x128xf32>
      tpu.vector_store %arg6[%c0_14, %c0_15], %17 {strides = array<i32>} : memref<32x128xf32, #tpu.memory_space<vmem>>, vector<32x128xf32>,
    } else {
    }
    return
  }
  func.func @transform_0(%arg0: i32, %arg1: i32, %arg2: i32) -> (i32, i32) {
    %c0_i32 = arith.constant 0 : i32
    return %arg0, %arg2 : i32, i32
  }
  func.func @transform_1(%arg0: i32, %arg1: i32, %arg2: i32) -> (i32, i32) {
    %c0_i32 = arith.constant 0 : i32
    return %arg2, %arg1 : i32, i32
  }
  func.func @transform_2(%arg0: i32, %arg1: i32, %arg2: i32) -> (i32, i32) {
    %c0_i32 = arith.constant 0 : i32
    %c0_i32_0 = arith.constant 0 : i32
    return %c0_i32, %arg1 : i32, i32
  }
  func.func @transform_3(%arg0: i32, %arg1: i32, %arg2: i32) -> (i32, i32) {
    %c0_i32 = arith.constant 0 : i32
    return %arg0, %arg1 : i32, i32
  }
}

module attributes {stable_mosaic.version = 11 : i64} {
  func.func @_mm_kernel(%arg0: i32, %arg1: i32, %arg2: i32, %arg3: memref<32x128xbf16, #tpu.memory_space<vmem>>, %arg4: memref<128x128xbf16, #tpu.memory_space<vmem>>, %arg5: memref<1x128xf32, #tpu.memory_space<vmem>>, %arg6: memref<32x128xf32, #tpu.memory_space<vmem>>, %arg7: memref<32x128xf32, #tpu.memory_space<vmem>>) attributes {dimension_semantics = [#tpu.dimension_semantics<parallel>, #tpu.dimension_semantics<parallel>, #tpu.dimension_semantics<arbitrary>], iteration_bounds = array<i64: 1, 1, 1>, scalar_prefetch = 0 : i64, scratch_operands = 1 : i64, tpu.core_type = #tpu.core_type<tc>, window_params = [{transform_indices = @transform_0, window_bounds = array<i64: 32, 128>}, {transform_indices = @transform_1, window_bounds = array<i64: 128, 128>}, {transform_indices = @transform_2, window_bounds = array<i64: 1, 128>}, {transform_indices = @transform_3, window_bounds = array<i64: 32, 128>}]} {
    %c0_i32 = arith.constant 0 : i32
    %0 = arith.cmpi eq, %arg2, %c0_i32 : i32
    %1 = arith.extui %0 : i1 to i32
    %c0_i32_0 = arith.constant 0 : i32
    %2 = arith.cmpi ne, %1, %c0_i32_0 : i32
    scf.if %2 {
      %cst_10 = arith.constant 0.000000e+00 : f32
      %12 = vector.broadcast %cst_10 : f32 to vector<32x128xf32>
      %c0_11 = arith.constant 0 : index
      %c0_12 = arith.constant 0 : index
      %13 = vector.load %arg7[%c0_11, %c0_12] : memref<32x128xf32, #tpu.memory_space<vmem>>, vector<32x128xf32>
      tpu.vector_store %arg7[%c0_11, %c0_12], %12 {strides = array<i32>} : memref<32x128xf32, #tpu.memory_space<vmem>>, vector<32x128xf32>,
    } else {
    }
    %c0 = arith.constant 0 : index
    %c0_1 = arith.constant 0 : index
    %3 = vector.load %arg7[%c0, %c0_1] : memref<32x128xf32, #tpu.memory_space<vmem>>, vector<32x128xf32>
    %c0_2 = arith.constant 0 : index
    %c0_3 = arith.constant 0 : index
    %4 = vector.load %arg3[%c0_2, %c0_3] : memref<32x128xbf16, #tpu.memory_space<vmem>>, vector<32x128xbf16>
    %c0_4 = arith.constant 0 : index
    %c0_5 = arith.constant 0 : index
    %5 = vector.load %arg4[%c0_4, %c0_5] : memref<128x128xbf16, #tpu.memory_space<vmem>>, vector<128x128xbf16>
    %cst = arith.constant dense<0.000000e+00> : vector<32x128xf32>
    %6 = tpu.matmul %4, %5, %cst {dimension_numbers = #tpu.dot_dimension_numbers<[1], [0], [0], [1], [0, 0, 1, 1], [], []>} : vector<32x128xbf16>, vector<128x128xbf16>, vector<32x128xf32> -> vector<32x128xf32>
    %7 = arith.addf %3, %6 : vector<32x128xf32>
    %c0_6 = arith.constant 0 : index
    %c0_7 = arith.constant 0 : index
    %8 = vector.load %arg7[%c0_6, %c0_7] : memref<32x128xf32, #tpu.memory_space<vmem>>, vector<32x128xf32>
    tpu.vector_store %arg7[%c0_6, %c0_7], %7 {strides = array<i32>} : memref<32x128xf32, #tpu.memory_space<vmem>>, vector<32x128xf32>,
    %c0_i32_8 = arith.constant 0 : i32
    %9 = arith.cmpi eq, %arg2, %c0_i32_8 : i32
    %10 = arith.extui %9 : i1 to i32
    %c0_i32_9 = arith.constant 0 : i32
    %11 = arith.cmpi ne, %10, %c0_i32_9 : i32
    scf.if %11 {
      %c0_10 = arith.constant 0 : index
      %c0_11 = arith.constant 0 : index
      %12 = vector.load %arg7[%c0_10, %c0_11] : memref<32x128xf32, #tpu.memory_space<vmem>>, vector<32x128xf32>
      %c0_12 = arith.constant 0 : index
      %c0_13 = arith.constant 0 : index
      %13 = vector.load %arg5[%c0_12, %c0_13] : memref<1x128xf32, #tpu.memory_space<vmem>>, vector<1x128xf32>
      %14 = vector.broadcast %13 : vector<1x128xf32> to vector<32x128xf32>
      %15 = arith.addf %12, %14 : vector<32x128xf32>
      %c0_14 = arith.constant 0 : index
      %c0_15 = arith.constant 0 : index
      %16 = vector.load %arg6[%c0_14, %c0_15] : memref<32x128xf32, #tpu.memory_space<vmem>>, vector<32x128xf32>
      tpu.vector_store %arg6[%c0_14, %c0_15], %15 {strides = array<i32>} : memref<32x128xf32, #tpu.memory_space<vmem>>, vector<32x128xf32>,
    } else {
    }
    return
  }
  func.func @transform_0(%arg0: i32, %arg1: i32, %arg2: i32) -> (i32, i32) {
    %c0_i32 = arith.constant 0 : i32
    return %arg0, %arg2 : i32, i32
  }
  func.func @transform_1(%arg0: i32, %arg1: i32, %arg2: i32) -> (i32, i32) {
    %c0_i32 = arith.constant 0 : i32
    return %arg2, %arg1 : i32, i32
  }
  func.func @transform_2(%arg0: i32, %arg1: i32, %arg2: i32) -> (i32, i32) {
    %c0_i32 = arith.constant 0 : i32
    %c0_i32_0 = arith.constant 0 : i32
    return %c0_i32, %arg1 : i32, i32
  }
  func.func @transform_3(%arg0: i32, %arg1: i32, %arg2: i32) -> (i32, i32) {
    %c0_i32 = arith.constant 0 : i32
    return %arg0, %arg1 : i32, i32
  }
}

module attributes {stable_mosaic.version = 11 : i64} {
  func.func @_mm_res_kernel(%arg0: i32, %arg1: i32, %arg2: i32, %arg3: memref<32x512xbf16, #tpu.memory_space<vmem>>, %arg4: memref<512x128xbf16, #tpu.memory_space<vmem>>, %arg5: memref<1x128xf32, #tpu.memory_space<vmem>>, %arg6: memref<32x128xf32, #tpu.memory_space<vmem>>, %arg7: memref<32x128xf32, #tpu.memory_space<vmem>>, %arg8: memref<32x128xf32, #tpu.memory_space<vmem>>) attributes {dimension_semantics = [#tpu.dimension_semantics<parallel>, #tpu.dimension_semantics<parallel>, #tpu.dimension_semantics<arbitrary>], iteration_bounds = array<i64: 1, 1, 3>, scalar_prefetch = 0 : i64, scratch_operands = 1 : i64, tpu.core_type = #tpu.core_type<tc>, window_params = [{transform_indices = @transform_0, window_bounds = array<i64: 32, 512>}, {transform_indices = @transform_1, window_bounds = array<i64: 512, 128>}, {transform_indices = @transform_2, window_bounds = array<i64: 1, 128>}, {transform_indices = @transform_3, window_bounds = array<i64: 32, 128>}, {transform_indices = @transform_4, window_bounds = array<i64: 32, 128>}]} {
    %c0_i32 = arith.constant 0 : i32
    %0 = arith.cmpi eq, %arg2, %c0_i32 : i32
    %1 = arith.extui %0 : i1 to i32
    %c0_i32_0 = arith.constant 0 : i32
    %2 = arith.cmpi ne, %1, %c0_i32_0 : i32
    scf.if %2 {
      %cst_9 = arith.constant 0.000000e+00 : f32
      %12 = vector.broadcast %cst_9 : f32 to vector<32x128xf32>
      %c0_10 = arith.constant 0 : index
      %c0_11 = arith.constant 0 : index
      %13 = vector.load %arg8[%c0_10, %c0_11] : memref<32x128xf32, #tpu.memory_space<vmem>>, vector<32x128xf32>
      tpu.vector_store %arg8[%c0_10, %c0_11], %12 {strides = array<i32>} : memref<32x128xf32, #tpu.memory_space<vmem>>, vector<32x128xf32>,
    } else {
    }
    %c0 = arith.constant 0 : index
    %c0_1 = arith.constant 0 : index
    %3 = vector.load %arg8[%c0, %c0_1] : memref<32x128xf32, #tpu.memory_space<vmem>>, vector<32x128xf32>
    %c0_2 = arith.constant 0 : index
    %c0_3 = arith.constant 0 : index
    %4 = vector.load %arg3[%c0_2, %c0_3] : memref<32x512xbf16, #tpu.memory_space<vmem>>, vector<32x512xbf16>
    %c0_4 = arith.constant 0 : index
    %c0_5 = arith.constant 0 : index
    %5 = vector.load %arg4[%c0_4, %c0_5] : memref<512x128xbf16, #tpu.memory_space<vmem>>, vector<512x128xbf16>
    %cst = arith.constant dense<0.000000e+00> : vector<32x128xf32>
    %6 = tpu.matmul %4, %5, %cst {dimension_numbers = #tpu.dot_dimension_numbers<[1], [0], [0], [1], [0, 0, 1, 1], [], []>} : vector<32x512xbf16>, vector<512x128xbf16>, vector<32x128xf32> -> vector<32x128xf32>
    %7 = arith.addf %3, %6 : vector<32x128xf32>
    %c0_6 = arith.constant 0 : index
    %c0_7 = arith.constant 0 : index
    %8 = vector.load %arg8[%c0_6, %c0_7] : memref<32x128xf32, #tpu.memory_space<vmem>>, vector<32x128xf32>
    tpu.vector_store %arg8[%c0_6, %c0_7], %7 {strides = array<i32>} : memref<32x128xf32, #tpu.memory_space<vmem>>, vector<32x128xf32>,
    %c2_i32 = arith.constant 2 : i32
    %9 = arith.cmpi eq, %arg2, %c2_i32 : i32
    %10 = arith.extui %9 : i1 to i32
    %c0_i32_8 = arith.constant 0 : i32
    %11 = arith.cmpi ne, %10, %c0_i32_8 : i32
    scf.if %11 {
      %c0_9 = arith.constant 0 : index
      %c0_10 = arith.constant 0 : index
      %12 = vector.load %arg8[%c0_9, %c0_10] : memref<32x128xf32, #tpu.memory_space<vmem>>, vector<32x128xf32>
      %c0_11 = arith.constant 0 : index
      %c0_12 = arith.constant 0 : index
      %13 = vector.load %arg5[%c0_11, %c0_12] : memref<1x128xf32, #tpu.memory_space<vmem>>, vector<1x128xf32>
      %14 = vector.broadcast %13 : vector<1x128xf32> to vector<32x128xf32>
      %15 = arith.addf %12, %14 : vector<32x128xf32>
      %c0_13 = arith.constant 0 : index
      %c0_14 = arith.constant 0 : index
      %16 = vector.load %arg6[%c0_13, %c0_14] : memref<32x128xf32, #tpu.memory_space<vmem>>, vector<32x128xf32>
      %17 = arith.addf %15, %16 : vector<32x128xf32>
      %cst_15 = arith.constant 0.000000e+00 : f32
      %18 = vector.broadcast %cst_15 : f32 to vector<32x128xf32>
      %19 = arith.maximumf %17, %18 : vector<32x128xf32>
      %c0_16 = arith.constant 0 : index
      %c0_17 = arith.constant 0 : index
      %20 = vector.load %arg7[%c0_16, %c0_17] : memref<32x128xf32, #tpu.memory_space<vmem>>, vector<32x128xf32>
      tpu.vector_store %arg7[%c0_16, %c0_17], %19 {strides = array<i32>} : memref<32x128xf32, #tpu.memory_space<vmem>>, vector<32x128xf32>,
    } else {
    }
    return
  }
  func.func @transform_0(%arg0: i32, %arg1: i32, %arg2: i32) -> (i32, i32) {
    %c0_i32 = arith.constant 0 : i32
    return %arg0, %arg2 : i32, i32
  }
  func.func @transform_1(%arg0: i32, %arg1: i32, %arg2: i32) -> (i32, i32) {
    %c0_i32 = arith.constant 0 : i32
    return %arg2, %arg1 : i32, i32
  }
  func.func @transform_2(%arg0: i32, %arg1: i32, %arg2: i32) -> (i32, i32) {
    %c0_i32 = arith.constant 0 : i32
    %c0_i32_0 = arith.constant 0 : i32
    return %c0_i32, %arg1 : i32, i32
  }
  func.func @transform_3(%arg0: i32, %arg1: i32, %arg2: i32) -> (i32, i32) {
    %c0_i32 = arith.constant 0 : i32
    return %arg0, %arg1 : i32, i32
  }
  func.func @transform_4(%arg0: i32, %arg1: i32, %arg2: i32) -> (i32, i32) {
    %c0_i32 = arith.constant 0 : i32
    return %arg0, %arg1 : i32, i32
  }
}

module attributes {stable_mosaic.version = 11 : i64} {
  func.func @_mm_kernel(%arg0: i32, %arg1: i32, %arg2: i32, %arg3: memref<32x512xbf16, #tpu.memory_space<vmem>>, %arg4: memref<512x128xbf16, #tpu.memory_space<vmem>>, %arg5: memref<1x128xf32, #tpu.memory_space<vmem>>, %arg6: memref<32x128xf32, #tpu.memory_space<vmem>>, %arg7: memref<32x128xf32, #tpu.memory_space<vmem>>) attributes {dimension_semantics = [#tpu.dimension_semantics<parallel>, #tpu.dimension_semantics<parallel>, #tpu.dimension_semantics<arbitrary>], iteration_bounds = array<i64: 1, 1, 3>, scalar_prefetch = 0 : i64, scratch_operands = 1 : i64, tpu.core_type = #tpu.core_type<tc>, window_params = [{transform_indices = @transform_0, window_bounds = array<i64: 32, 512>}, {transform_indices = @transform_1, window_bounds = array<i64: 512, 128>}, {transform_indices = @transform_2, window_bounds = array<i64: 1, 128>}, {transform_indices = @transform_3, window_bounds = array<i64: 32, 128>}]} {
    %c0_i32 = arith.constant 0 : i32
    %0 = arith.cmpi eq, %arg2, %c0_i32 : i32
    %1 = arith.extui %0 : i1 to i32
    %c0_i32_0 = arith.constant 0 : i32
    %2 = arith.cmpi ne, %1, %c0_i32_0 : i32
    scf.if %2 {
      %cst_9 = arith.constant 0.000000e+00 : f32
      %12 = vector.broadcast %cst_9 : f32 to vector<32x128xf32>
      %c0_10 = arith.constant 0 : index
      %c0_11 = arith.constant 0 : index
      %13 = vector.load %arg7[%c0_10, %c0_11] : memref<32x128xf32, #tpu.memory_space<vmem>>, vector<32x128xf32>
      tpu.vector_store %arg7[%c0_10, %c0_11], %12 {strides = array<i32>} : memref<32x128xf32, #tpu.memory_space<vmem>>, vector<32x128xf32>,
    } else {
    }
    %c0 = arith.constant 0 : index
    %c0_1 = arith.constant 0 : index
    %3 = vector.load %arg7[%c0, %c0_1] : memref<32x128xf32, #tpu.memory_space<vmem>>, vector<32x128xf32>
    %c0_2 = arith.constant 0 : index
    %c0_3 = arith.constant 0 : index
    %4 = vector.load %arg3[%c0_2, %c0_3] : memref<32x512xbf16, #tpu.memory_space<vmem>>, vector<32x512xbf16>
    %c0_4 = arith.constant 0 : index
    %c0_5 = arith.constant 0 : index
    %5 = vector.load %arg4[%c0_4, %c0_5] : memref<512x128xbf16, #tpu.memory_space<vmem>>, vector<512x128xbf16>
    %cst = arith.constant dense<0.000000e+00> : vector<32x128xf32>
    %6 = tpu.matmul %4, %5, %cst {dimension_numbers = #tpu.dot_dimension_numbers<[1], [0], [0], [1], [0, 0, 1, 1], [], []>} : vector<32x512xbf16>, vector<512x128xbf16>, vector<32x128xf32> -> vector<32x128xf32>
    %7 = arith.addf %3, %6 : vector<32x128xf32>
    %c0_6 = arith.constant 0 : index
    %c0_7 = arith.constant 0 : index
    %8 = vector.load %arg7[%c0_6, %c0_7] : memref<32x128xf32, #tpu.memory_space<vmem>>, vector<32x128xf32>
    tpu.vector_store %arg7[%c0_6, %c0_7], %7 {strides = array<i32>} : memref<32x128xf32, #tpu.memory_space<vmem>>, vector<32x128xf32>,
    %c2_i32 = arith.constant 2 : i32
    %9 = arith.cmpi eq, %arg2, %c2_i32 : i32
    %10 = arith.extui %9 : i1 to i32
    %c0_i32_8 = arith.constant 0 : i32
    %11 = arith.cmpi ne, %10, %c0_i32_8 : i32
    scf.if %11 {
      %c0_9 = arith.constant 0 : index
      %c0_10 = arith.constant 0 : index
      %12 = vector.load %arg7[%c0_9, %c0_10] : memref<32x128xf32, #tpu.memory_space<vmem>>, vector<32x128xf32>
      %c0_11 = arith.constant 0 : index
      %c0_12 = arith.constant 0 : index
      %13 = vector.load %arg5[%c0_11, %c0_12] : memref<1x128xf32, #tpu.memory_space<vmem>>, vector<1x128xf32>
      %14 = vector.broadcast %13 : vector<1x128xf32> to vector<32x128xf32>
      %15 = arith.addf %12, %14 : vector<32x128xf32>
      %cst_13 = arith.constant 0.000000e+00 : f32
      %16 = vector.broadcast %cst_13 : f32 to vector<32x128xf32>
      %17 = arith.maximumf %15, %16 : vector<32x128xf32>
      %c0_14 = arith.constant 0 : index
      %c0_15 = arith.constant 0 : index
      %18 = vector.load %arg6[%c0_14, %c0_15] : memref<32x128xf32, #tpu.memory_space<vmem>>, vector<32x128xf32>
      tpu.vector_store %arg6[%c0_14, %c0_15], %17 {strides = array<i32>} : memref<32x128xf32, #tpu.memory_space<vmem>>, vector<32x128xf32>,
    } else {
    }
    return
  }
  func.func @transform_0(%arg0: i32, %arg1: i32, %arg2: i32) -> (i32, i32) {
    %c0_i32 = arith.constant 0 : i32
    return %arg0, %arg2 : i32, i32
  }
  func.func @transform_1(%arg0: i32, %arg1: i32, %arg2: i32) -> (i32, i32) {
    %c0_i32 = arith.constant 0 : i32
    return %arg2, %arg1 : i32, i32
  }
  func.func @transform_2(%arg0: i32, %arg1: i32, %arg2: i32) -> (i32, i32) {
    %c0_i32 = arith.constant 0 : i32
    %c0_i32_0 = arith.constant 0 : i32
    return %c0_i32, %arg1 : i32, i32
  }
  func.func @transform_3(%arg0: i32, %arg1: i32, %arg2: i32) -> (i32, i32) {
    %c0_i32 = arith.constant 0 : i32
    return %arg0, %arg1 : i32, i32
  }
}

module attributes {stable_mosaic.version = 11 : i64} {
  func.func @_mm_kernel(%arg0: i32, %arg1: i32, %arg2: i32, %arg3: memref<8x512xbf16, #tpu.memory_space<vmem>>, %arg4: memref<512x256xbf16, #tpu.memory_space<vmem>>, %arg5: memref<1x256xf32, #tpu.memory_space<vmem>>, %arg6: memref<8x256xf32, #tpu.memory_space<vmem>>, %arg7: memref<8x256xf32, #tpu.memory_space<vmem>>) attributes {dimension_semantics = [#tpu.dimension_semantics<parallel>, #tpu.dimension_semantics<parallel>, #tpu.dimension_semantics<arbitrary>], iteration_bounds = array<i64: 1, 1, 3>, scalar_prefetch = 0 : i64, scratch_operands = 1 : i64, tpu.core_type = #tpu.core_type<tc>, window_params = [{transform_indices = @transform_0, window_bounds = array<i64: 8, 512>}, {transform_indices = @transform_1, window_bounds = array<i64: 512, 256>}, {transform_indices = @transform_2, window_bounds = array<i64: 1, 256>}, {transform_indices = @transform_3, window_bounds = array<i64: 8, 256>}]} {
    %c0_i32 = arith.constant 0 : i32
    %0 = arith.cmpi eq, %arg2, %c0_i32 : i32
    %1 = arith.extui %0 : i1 to i32
    %c0_i32_0 = arith.constant 0 : i32
    %2 = arith.cmpi ne, %1, %c0_i32_0 : i32
    scf.if %2 {
      %cst_9 = arith.constant 0.000000e+00 : f32
      %12 = vector.broadcast %cst_9 : f32 to vector<8x256xf32>
      %c0_10 = arith.constant 0 : index
      %c0_11 = arith.constant 0 : index
      %13 = vector.load %arg7[%c0_10, %c0_11] : memref<8x256xf32, #tpu.memory_space<vmem>>, vector<8x256xf32>
      tpu.vector_store %arg7[%c0_10, %c0_11], %12 {strides = array<i32>} : memref<8x256xf32, #tpu.memory_space<vmem>>, vector<8x256xf32>,
    } else {
    }
    %c0 = arith.constant 0 : index
    %c0_1 = arith.constant 0 : index
    %3 = vector.load %arg7[%c0, %c0_1] : memref<8x256xf32, #tpu.memory_space<vmem>>, vector<8x256xf32>
    %c0_2 = arith.constant 0 : index
    %c0_3 = arith.constant 0 : index
    %4 = vector.load %arg3[%c0_2, %c0_3] : memref<8x512xbf16, #tpu.memory_space<vmem>>, vector<8x512xbf16>
    %c0_4 = arith.constant 0 : index
    %c0_5 = arith.constant 0 : index
    %5 = vector.load %arg4[%c0_4, %c0_5] : memref<512x256xbf16, #tpu.memory_space<vmem>>, vector<512x256xbf16>
    %cst = arith.constant dense<0.000000e+00> : vector<8x256xf32>
    %6 = tpu.matmul %4, %5, %cst {dimension_numbers = #tpu.dot_dimension_numbers<[1], [0], [0], [1], [0, 0, 1, 1], [], []>} : vector<8x512xbf16>, vector<512x256xbf16>, vector<8x256xf32> -> vector<8x256xf32>
    %7 = arith.addf %3, %6 : vector<8x256xf32>
    %c0_6 = arith.constant 0 : index
    %c0_7 = arith.constant 0 : index
    %8 = vector.load %arg7[%c0_6, %c0_7] : memref<8x256xf32, #tpu.memory_space<vmem>>, vector<8x256xf32>
    tpu.vector_store %arg7[%c0_6, %c0_7], %7 {strides = array<i32>} : memref<8x256xf32, #tpu.memory_space<vmem>>, vector<8x256xf32>,
    %c2_i32 = arith.constant 2 : i32
    %9 = arith.cmpi eq, %arg2, %c2_i32 : i32
    %10 = arith.extui %9 : i1 to i32
    %c0_i32_8 = arith.constant 0 : i32
    %11 = arith.cmpi ne, %10, %c0_i32_8 : i32
    scf.if %11 {
      %c0_9 = arith.constant 0 : index
      %c0_10 = arith.constant 0 : index
      %12 = vector.load %arg7[%c0_9, %c0_10] : memref<8x256xf32, #tpu.memory_space<vmem>>, vector<8x256xf32>
      %c0_11 = arith.constant 0 : index
      %c0_12 = arith.constant 0 : index
      %13 = vector.load %arg5[%c0_11, %c0_12] : memref<1x256xf32, #tpu.memory_space<vmem>>, vector<1x256xf32>
      %14 = vector.broadcast %13 : vector<1x256xf32> to vector<8x256xf32>
      %15 = arith.addf %12, %14 : vector<8x256xf32>
      %cst_13 = arith.constant 0.000000e+00 : f32
      %16 = vector.broadcast %cst_13 : f32 to vector<8x256xf32>
      %17 = arith.maximumf %15, %16 : vector<8x256xf32>
      %c0_14 = arith.constant 0 : index
      %c0_15 = arith.constant 0 : index
      %18 = vector.load %arg6[%c0_14, %c0_15] : memref<8x256xf32, #tpu.memory_space<vmem>>, vector<8x256xf32>
      tpu.vector_store %arg6[%c0_14, %c0_15], %17 {strides = array<i32>} : memref<8x256xf32, #tpu.memory_space<vmem>>, vector<8x256xf32>,
    } else {
    }
    return
  }
  func.func @transform_0(%arg0: i32, %arg1: i32, %arg2: i32) -> (i32, i32) {
    %c0_i32 = arith.constant 0 : i32
    return %arg0, %arg2 : i32, i32
  }
  func.func @transform_1(%arg0: i32, %arg1: i32, %arg2: i32) -> (i32, i32) {
    %c0_i32 = arith.constant 0 : i32
    return %arg2, %arg1 : i32, i32
  }
  func.func @transform_2(%arg0: i32, %arg1: i32, %arg2: i32) -> (i32, i32) {
    %c0_i32 = arith.constant 0 : i32
    %c0_i32_0 = arith.constant 0 : i32
    return %c0_i32, %arg1 : i32, i32
  }
  func.func @transform_3(%arg0: i32, %arg1: i32, %arg2: i32) -> (i32, i32) {
    %c0_i32 = arith.constant 0 : i32
    return %arg0, %arg1 : i32, i32
  }
}

module attributes {stable_mosaic.version = 11 : i64} {
  func.func @_mm_kernel(%arg0: i32, %arg1: i32, %arg2: i32, %arg3: memref<8x128xbf16, #tpu.memory_space<vmem>>, %arg4: memref<128x256xbf16, #tpu.memory_space<vmem>>, %arg5: memref<1x256xf32, #tpu.memory_space<vmem>>, %arg6: memref<8x256xf32, #tpu.memory_space<vmem>>, %arg7: memref<8x256xf32, #tpu.memory_space<vmem>>) attributes {dimension_semantics = [#tpu.dimension_semantics<parallel>, #tpu.dimension_semantics<parallel>, #tpu.dimension_semantics<arbitrary>], iteration_bounds = array<i64: 1, 1, 1>, scalar_prefetch = 0 : i64, scratch_operands = 1 : i64, tpu.core_type = #tpu.core_type<tc>, window_params = [{transform_indices = @transform_0, window_bounds = array<i64: 8, 128>}, {transform_indices = @transform_1, window_bounds = array<i64: 128, 256>}, {transform_indices = @transform_2, window_bounds = array<i64: 1, 256>}, {transform_indices = @transform_3, window_bounds = array<i64: 8, 256>}]} {
    %c0_i32 = arith.constant 0 : i32
    %0 = arith.cmpi eq, %arg2, %c0_i32 : i32
    %1 = arith.extui %0 : i1 to i32
    %c0_i32_0 = arith.constant 0 : i32
    %2 = arith.cmpi ne, %1, %c0_i32_0 : i32
    scf.if %2 {
      %cst_10 = arith.constant 0.000000e+00 : f32
      %12 = vector.broadcast %cst_10 : f32 to vector<8x256xf32>
      %c0_11 = arith.constant 0 : index
      %c0_12 = arith.constant 0 : index
      %13 = vector.load %arg7[%c0_11, %c0_12] : memref<8x256xf32, #tpu.memory_space<vmem>>, vector<8x256xf32>
      tpu.vector_store %arg7[%c0_11, %c0_12], %12 {strides = array<i32>} : memref<8x256xf32, #tpu.memory_space<vmem>>, vector<8x256xf32>,
    } else {
    }
    %c0 = arith.constant 0 : index
    %c0_1 = arith.constant 0 : index
    %3 = vector.load %arg7[%c0, %c0_1] : memref<8x256xf32, #tpu.memory_space<vmem>>, vector<8x256xf32>
    %c0_2 = arith.constant 0 : index
    %c0_3 = arith.constant 0 : index
    %4 = vector.load %arg3[%c0_2, %c0_3] : memref<8x128xbf16, #tpu.memory_space<vmem>>, vector<8x128xbf16>
    %c0_4 = arith.constant 0 : index
    %c0_5 = arith.constant 0 : index
    %5 = vector.load %arg4[%c0_4, %c0_5] : memref<128x256xbf16, #tpu.memory_space<vmem>>, vector<128x256xbf16>
    %cst = arith.constant dense<0.000000e+00> : vector<8x256xf32>
    %6 = tpu.matmul %4, %5, %cst {dimension_numbers = #tpu.dot_dimension_numbers<[1], [0], [0], [1], [0, 0, 1, 1], [], []>} : vector<8x128xbf16>, vector<128x256xbf16>, vector<8x256xf32> -> vector<8x256xf32>
    %7 = arith.addf %3, %6 : vector<8x256xf32>
    %c0_6 = arith.constant 0 : index
    %c0_7 = arith.constant 0 : index
    %8 = vector.load %arg7[%c0_6, %c0_7] : memref<8x256xf32, #tpu.memory_space<vmem>>, vector<8x256xf32>
    tpu.vector_store %arg7[%c0_6, %c0_7], %7 {strides = array<i32>} : memref<8x256xf32, #tpu.memory_space<vmem>>, vector<8x256xf32>,
    %c0_i32_8 = arith.constant 0 : i32
    %9 = arith.cmpi eq, %arg2, %c0_i32_8 : i32
    %10 = arith.extui %9 : i1 to i32
    %c0_i32_9 = arith.constant 0 : i32
    %11 = arith.cmpi ne, %10, %c0_i32_9 : i32
    scf.if %11 {
      %c0_10 = arith.constant 0 : index
      %c0_11 = arith.constant 0 : index
      %12 = vector.load %arg7[%c0_10, %c0_11] : memref<8x256xf32, #tpu.memory_space<vmem>>, vector<8x256xf32>
      %c0_12 = arith.constant 0 : index
      %c0_13 = arith.constant 0 : index
      %13 = vector.load %arg5[%c0_12, %c0_13] : memref<1x256xf32, #tpu.memory_space<vmem>>, vector<1x256xf32>
      %14 = vector.broadcast %13 : vector<1x256xf32> to vector<8x256xf32>
      %15 = arith.addf %12, %14 : vector<8x256xf32>
      %c0_14 = arith.constant 0 : index
      %c0_15 = arith.constant 0 : index
      %16 = vector.load %arg6[%c0_14, %c0_15] : memref<8x256xf32, #tpu.memory_space<vmem>>, vector<8x256xf32>
      tpu.vector_store %arg6[%c0_14, %c0_15], %15 {strides = array<i32>} : memref<8x256xf32, #tpu.memory_space<vmem>>, vector<8x256xf32>,
    } else {
    }
    return
  }
  func.func @transform_0(%arg0: i32, %arg1: i32, %arg2: i32) -> (i32, i32) {
    %c0_i32 = arith.constant 0 : i32
    return %arg0, %arg2 : i32, i32
  }
  func.func @transform_1(%arg0: i32, %arg1: i32, %arg2: i32) -> (i32, i32) {
    %c0_i32 = arith.constant 0 : i32
    return %arg2, %arg1 : i32, i32
  }
  func.func @transform_2(%arg0: i32, %arg1: i32, %arg2: i32) -> (i32, i32) {
    %c0_i32 = arith.constant 0 : i32
    %c0_i32_0 = arith.constant 0 : i32
    return %c0_i32, %arg1 : i32, i32
  }
  func.func @transform_3(%arg0: i32, %arg1: i32, %arg2: i32) -> (i32, i32) {
    %c0_i32 = arith.constant 0 : i32
    return %arg0, %arg1 : i32, i32
  }
}

module attributes {stable_mosaic.version = 11 : i64} {
  func.func @_mm_res_kernel(%arg0: i32, %arg1: i32, %arg2: i32, %arg3: memref<8x512xbf16, #tpu.memory_space<vmem>>, %arg4: memref<512x256xbf16, #tpu.memory_space<vmem>>, %arg5: memref<1x256xf32, #tpu.memory_space<vmem>>, %arg6: memref<8x256xf32, #tpu.memory_space<vmem>>, %arg7: memref<8x256xf32, #tpu.memory_space<vmem>>, %arg8: memref<8x256xf32, #tpu.memory_space<vmem>>) attributes {dimension_semantics = [#tpu.dimension_semantics<parallel>, #tpu.dimension_semantics<parallel>, #tpu.dimension_semantics<arbitrary>], iteration_bounds = array<i64: 1, 1, 5>, scalar_prefetch = 0 : i64, scratch_operands = 1 : i64, tpu.core_type = #tpu.core_type<tc>, window_params = [{transform_indices = @transform_0, window_bounds = array<i64: 8, 512>}, {transform_indices = @transform_1, window_bounds = array<i64: 512, 256>}, {transform_indices = @transform_2, window_bounds = array<i64: 1, 256>}, {transform_indices = @transform_3, window_bounds = array<i64: 8, 256>}, {transform_indices = @transform_4, window_bounds = array<i64: 8, 256>}]} {
    %c0_i32 = arith.constant 0 : i32
    %0 = arith.cmpi eq, %arg2, %c0_i32 : i32
    %1 = arith.extui %0 : i1 to i32
    %c0_i32_0 = arith.constant 0 : i32
    %2 = arith.cmpi ne, %1, %c0_i32_0 : i32
    scf.if %2 {
      %cst_9 = arith.constant 0.000000e+00 : f32
      %12 = vector.broadcast %cst_9 : f32 to vector<8x256xf32>
      %c0_10 = arith.constant 0 : index
      %c0_11 = arith.constant 0 : index
      %13 = vector.load %arg8[%c0_10, %c0_11] : memref<8x256xf32, #tpu.memory_space<vmem>>, vector<8x256xf32>
      tpu.vector_store %arg8[%c0_10, %c0_11], %12 {strides = array<i32>} : memref<8x256xf32, #tpu.memory_space<vmem>>, vector<8x256xf32>,
    } else {
    }
    %c0 = arith.constant 0 : index
    %c0_1 = arith.constant 0 : index
    %3 = vector.load %arg8[%c0, %c0_1] : memref<8x256xf32, #tpu.memory_space<vmem>>, vector<8x256xf32>
    %c0_2 = arith.constant 0 : index
    %c0_3 = arith.constant 0 : index
    %4 = vector.load %arg3[%c0_2, %c0_3] : memref<8x512xbf16, #tpu.memory_space<vmem>>, vector<8x512xbf16>
    %c0_4 = arith.constant 0 : index
    %c0_5 = arith.constant 0 : index
    %5 = vector.load %arg4[%c0_4, %c0_5] : memref<512x256xbf16, #tpu.memory_space<vmem>>, vector<512x256xbf16>
    %cst = arith.constant dense<0.000000e+00> : vector<8x256xf32>
    %6 = tpu.matmul %4, %5, %cst {dimension_numbers = #tpu.dot_dimension_numbers<[1], [0], [0], [1], [0, 0, 1, 1], [], []>} : vector<8x512xbf16>, vector<512x256xbf16>, vector<8x256xf32> -> vector<8x256xf32>
    %7 = arith.addf %3, %6 : vector<8x256xf32>
    %c0_6 = arith.constant 0 : index
    %c0_7 = arith.constant 0 : index
    %8 = vector.load %arg8[%c0_6, %c0_7] : memref<8x256xf32, #tpu.memory_space<vmem>>, vector<8x256xf32>
    tpu.vector_store %arg8[%c0_6, %c0_7], %7 {strides = array<i32>} : memref<8x256xf32, #tpu.memory_space<vmem>>, vector<8x256xf32>,
    %c4_i32 = arith.constant 4 : i32
    %9 = arith.cmpi eq, %arg2, %c4_i32 : i32
    %10 = arith.extui %9 : i1 to i32
    %c0_i32_8 = arith.constant 0 : i32
    %11 = arith.cmpi ne, %10, %c0_i32_8 : i32
    scf.if %11 {
      %c0_9 = arith.constant 0 : index
      %c0_10 = arith.constant 0 : index
      %12 = vector.load %arg8[%c0_9, %c0_10] : memref<8x256xf32, #tpu.memory_space<vmem>>, vector<8x256xf32>
      %c0_11 = arith.constant 0 : index
      %c0_12 = arith.constant 0 : index
      %13 = vector.load %arg5[%c0_11, %c0_12] : memref<1x256xf32, #tpu.memory_space<vmem>>, vector<1x256xf32>
      %14 = vector.broadcast %13 : vector<1x256xf32> to vector<8x256xf32>
      %15 = arith.addf %12, %14 : vector<8x256xf32>
      %c0_13 = arith.constant 0 : index
      %c0_14 = arith.constant 0 : index
      %16 = vector.load %arg6[%c0_13, %c0_14] : memref<8x256xf32, #tpu.memory_space<vmem>>, vector<8x256xf32>
      %17 = arith.addf %15, %16 : vector<8x256xf32>
      %cst_15 = arith.constant 0.000000e+00 : f32
      %18 = vector.broadcast %cst_15 : f32 to vector<8x256xf32>
      %19 = arith.maximumf %17, %18 : vector<8x256xf32>
      %c0_16 = arith.constant 0 : index
      %c0_17 = arith.constant 0 : index
      %20 = vector.load %arg7[%c0_16, %c0_17] : memref<8x256xf32, #tpu.memory_space<vmem>>, vector<8x256xf32>
      tpu.vector_store %arg7[%c0_16, %c0_17], %19 {strides = array<i32>} : memref<8x256xf32, #tpu.memory_space<vmem>>, vector<8x256xf32>,
    } else {
    }
    return
  }
  func.func @transform_0(%arg0: i32, %arg1: i32, %arg2: i32) -> (i32, i32) {
    %c0_i32 = arith.constant 0 : i32
    return %arg0, %arg2 : i32, i32
  }
  func.func @transform_1(%arg0: i32, %arg1: i32, %arg2: i32) -> (i32, i32) {
    %c0_i32 = arith.constant 0 : i32
    return %arg2, %arg1 : i32, i32
  }
  func.func @transform_2(%arg0: i32, %arg1: i32, %arg2: i32) -> (i32, i32) {
    %c0_i32 = arith.constant 0 : i32
    %c0_i32_0 = arith.constant 0 : i32
    return %c0_i32, %arg1 : i32, i32
  }
  func.func @transform_3(%arg0: i32, %arg1: i32, %arg2: i32) -> (i32, i32) {
    %c0_i32 = arith.constant 0 : i32
    return %arg0, %arg1 : i32, i32
  }
  func.func @transform_4(%arg0: i32, %arg1: i32, %arg2: i32) -> (i32, i32) {
    %c0_i32 = arith.constant 0 : i32
    return %arg0, %arg1 : i32, i32
  }
}

module attributes {stable_mosaic.version = 11 : i64} {
  func.func @_mm_kernel(%arg0: i32, %arg1: i32, %arg2: i32, %arg3: memref<8x512xbf16, #tpu.memory_space<vmem>>, %arg4: memref<512x256xbf16, #tpu.memory_space<vmem>>, %arg5: memref<1x256xf32, #tpu.memory_space<vmem>>, %arg6: memref<8x256xf32, #tpu.memory_space<vmem>>, %arg7: memref<8x256xf32, #tpu.memory_space<vmem>>) attributes {dimension_semantics = [#tpu.dimension_semantics<parallel>, #tpu.dimension_semantics<parallel>, #tpu.dimension_semantics<arbitrary>], iteration_bounds = array<i64: 1, 1, 5>, scalar_prefetch = 0 : i64, scratch_operands = 1 : i64, tpu.core_type = #tpu.core_type<tc>, window_params = [{transform_indices = @transform_0, window_bounds = array<i64: 8, 512>}, {transform_indices = @transform_1, window_bounds = array<i64: 512, 256>}, {transform_indices = @transform_2, window_bounds = array<i64: 1, 256>}, {transform_indices = @transform_3, window_bounds = array<i64: 8, 256>}]} {
    %c0_i32 = arith.constant 0 : i32
    %0 = arith.cmpi eq, %arg2, %c0_i32 : i32
    %1 = arith.extui %0 : i1 to i32
    %c0_i32_0 = arith.constant 0 : i32
    %2 = arith.cmpi ne, %1, %c0_i32_0 : i32
    scf.if %2 {
      %cst_9 = arith.constant 0.000000e+00 : f32
      %12 = vector.broadcast %cst_9 : f32 to vector<8x256xf32>
      %c0_10 = arith.constant 0 : index
      %c0_11 = arith.constant 0 : index
      %13 = vector.load %arg7[%c0_10, %c0_11] : memref<8x256xf32, #tpu.memory_space<vmem>>, vector<8x256xf32>
      tpu.vector_store %arg7[%c0_10, %c0_11], %12 {strides = array<i32>} : memref<8x256xf32, #tpu.memory_space<vmem>>, vector<8x256xf32>,
    } else {
    }
    %c0 = arith.constant 0 : index
    %c0_1 = arith.constant 0 : index
    %3 = vector.load %arg7[%c0, %c0_1] : memref<8x256xf32, #tpu.memory_space<vmem>>, vector<8x256xf32>
    %c0_2 = arith.constant 0 : index
    %c0_3 = arith.constant 0 : index
    %4 = vector.load %arg3[%c0_2, %c0_3] : memref<8x512xbf16, #tpu.memory_space<vmem>>, vector<8x512xbf16>
    %c0_4 = arith.constant 0 : index
    %c0_5 = arith.constant 0 : index
    %5 = vector.load %arg4[%c0_4, %c0_5] : memref<512x256xbf16, #tpu.memory_space<vmem>>, vector<512x256xbf16>
    %cst = arith.constant dense<0.000000e+00> : vector<8x256xf32>
    %6 = tpu.matmul %4, %5, %cst {dimension_numbers = #tpu.dot_dimension_numbers<[1], [0], [0], [1], [0, 0, 1, 1], [], []>} : vector<8x512xbf16>, vector<512x256xbf16>, vector<8x256xf32> -> vector<8x256xf32>
    %7 = arith.addf %3, %6 : vector<8x256xf32>
    %c0_6 = arith.constant 0 : index
    %c0_7 = arith.constant 0 : index
    %8 = vector.load %arg7[%c0_6, %c0_7] : memref<8x256xf32, #tpu.memory_space<vmem>>, vector<8x256xf32>
    tpu.vector_store %arg7[%c0_6, %c0_7], %7 {strides = array<i32>} : memref<8x256xf32, #tpu.memory_space<vmem>>, vector<8x256xf32>,
    %c4_i32 = arith.constant 4 : i32
    %9 = arith.cmpi eq, %arg2, %c4_i32 : i32
    %10 = arith.extui %9 : i1 to i32
    %c0_i32_8 = arith.constant 0 : i32
    %11 = arith.cmpi ne, %10, %c0_i32_8 : i32
    scf.if %11 {
      %c0_9 = arith.constant 0 : index
      %c0_10 = arith.constant 0 : index
      %12 = vector.load %arg7[%c0_9, %c0_10] : memref<8x256xf32, #tpu.memory_space<vmem>>, vector<8x256xf32>
      %c0_11 = arith.constant 0 : index
      %c0_12 = arith.constant 0 : index
      %13 = vector.load %arg5[%c0_11, %c0_12] : memref<1x256xf32, #tpu.memory_space<vmem>>, vector<1x256xf32>
      %14 = vector.broadcast %13 : vector<1x256xf32> to vector<8x256xf32>
      %15 = arith.addf %12, %14 : vector<8x256xf32>
      %cst_13 = arith.constant 0.000000e+00 : f32
      %16 = vector.broadcast %cst_13 : f32 to vector<8x256xf32>
      %17 = arith.maximumf %15, %16 : vector<8x256xf32>
      %c0_14 = arith.constant 0 : index
      %c0_15 = arith.constant 0 : index
      %18 = vector.load %arg6[%c0_14, %c0_15] : memref<8x256xf32, #tpu.memory_space<vmem>>, vector<8x256xf32>
      tpu.vector_store %arg6[%c0_14, %c0_15], %17 {strides = array<i32>} : memref<8x256xf32, #tpu.memory_space<vmem>>, vector<8x256xf32>,
    } else {
    }
    return
  }
  func.func @transform_0(%arg0: i32, %arg1: i32, %arg2: i32) -> (i32, i32) {
    %c0_i32 = arith.constant 0 : i32
    return %arg0, %arg2 : i32, i32
  }
  func.func @transform_1(%arg0: i32, %arg1: i32, %arg2: i32) -> (i32, i32) {
    %c0_i32 = arith.constant 0 : i32
    return %arg2, %arg1 : i32, i32
  }
  func.func @transform_2(%arg0: i32, %arg1: i32, %arg2: i32) -> (i32, i32) {
    %c0_i32 = arith.constant 0 : i32
    %c0_i32_0 = arith.constant 0 : i32
    return %c0_i32, %arg1 : i32, i32
  }
  func.func @transform_3(%arg0: i32, %arg1: i32, %arg2: i32) -> (i32, i32) {
    %c0_i32 = arith.constant 0 : i32
    return %arg0, %arg1 : i32, i32
  }
}

module attributes {stable_mosaic.version = 11 : i64} {
  func.func @_mm_kernel(%arg0: i32, %arg1: i32, %arg2: i32, %arg3: memref<8x512xbf16, #tpu.memory_space<vmem>>, %arg4: memref<512x256xbf16, #tpu.memory_space<vmem>>, %arg5: memref<1x256xf32, #tpu.memory_space<vmem>>, %arg6: memref<8x256xf32, #tpu.memory_space<vmem>>, %arg7: memref<8x256xf32, #tpu.memory_space<vmem>>) attributes {dimension_semantics = [#tpu.dimension_semantics<parallel>, #tpu.dimension_semantics<parallel>, #tpu.dimension_semantics<arbitrary>], iteration_bounds = array<i64: 1, 2, 5>, scalar_prefetch = 0 : i64, scratch_operands = 1 : i64, tpu.core_type = #tpu.core_type<tc>, window_params = [{transform_indices = @transform_0, window_bounds = array<i64: 8, 512>}, {transform_indices = @transform_1, window_bounds = array<i64: 512, 256>}, {transform_indices = @transform_2, window_bounds = array<i64: 1, 256>}, {transform_indices = @transform_3, window_bounds = array<i64: 8, 256>}]} {
    %c0_i32 = arith.constant 0 : i32
    %0 = arith.cmpi eq, %arg2, %c0_i32 : i32
    %1 = arith.extui %0 : i1 to i32
    %c0_i32_0 = arith.constant 0 : i32
    %2 = arith.cmpi ne, %1, %c0_i32_0 : i32
    scf.if %2 {
      %cst_9 = arith.constant 0.000000e+00 : f32
      %12 = vector.broadcast %cst_9 : f32 to vector<8x256xf32>
      %c0_10 = arith.constant 0 : index
      %c0_11 = arith.constant 0 : index
      %13 = vector.load %arg7[%c0_10, %c0_11] : memref<8x256xf32, #tpu.memory_space<vmem>>, vector<8x256xf32>
      tpu.vector_store %arg7[%c0_10, %c0_11], %12 {strides = array<i32>} : memref<8x256xf32, #tpu.memory_space<vmem>>, vector<8x256xf32>,
    } else {
    }
    %c0 = arith.constant 0 : index
    %c0_1 = arith.constant 0 : index
    %3 = vector.load %arg7[%c0, %c0_1] : memref<8x256xf32, #tpu.memory_space<vmem>>, vector<8x256xf32>
    %c0_2 = arith.constant 0 : index
    %c0_3 = arith.constant 0 : index
    %4 = vector.load %arg3[%c0_2, %c0_3] : memref<8x512xbf16, #tpu.memory_space<vmem>>, vector<8x512xbf16>
    %c0_4 = arith.constant 0 : index
    %c0_5 = arith.constant 0 : index
    %5 = vector.load %arg4[%c0_4, %c0_5] : memref<512x256xbf16, #tpu.memory_space<vmem>>, vector<512x256xbf16>
    %cst = arith.constant dense<0.000000e+00> : vector<8x256xf32>
    %6 = tpu.matmul %4, %5, %cst {dimension_numbers = #tpu.dot_dimension_numbers<[1], [0], [0], [1], [0, 0, 1, 1], [], []>} : vector<8x512xbf16>, vector<512x256xbf16>, vector<8x256xf32> -> vector<8x256xf32>
    %7 = arith.addf %3, %6 : vector<8x256xf32>
    %c0_6 = arith.constant 0 : index
    %c0_7 = arith.constant 0 : index
    %8 = vector.load %arg7[%c0_6, %c0_7] : memref<8x256xf32, #tpu.memory_space<vmem>>, vector<8x256xf32>
    tpu.vector_store %arg7[%c0_6, %c0_7], %7 {strides = array<i32>} : memref<8x256xf32, #tpu.memory_space<vmem>>, vector<8x256xf32>,
    %c4_i32 = arith.constant 4 : i32
    %9 = arith.cmpi eq, %arg2, %c4_i32 : i32
    %10 = arith.extui %9 : i1 to i32
    %c0_i32_8 = arith.constant 0 : i32
    %11 = arith.cmpi ne, %10, %c0_i32_8 : i32
    scf.if %11 {
      %c0_9 = arith.constant 0 : index
      %c0_10 = arith.constant 0 : index
      %12 = vector.load %arg7[%c0_9, %c0_10] : memref<8x256xf32, #tpu.memory_space<vmem>>, vector<8x256xf32>
      %c0_11 = arith.constant 0 : index
      %c0_12 = arith.constant 0 : index
      %13 = vector.load %arg5[%c0_11, %c0_12] : memref<1x256xf32, #tpu.memory_space<vmem>>, vector<1x256xf32>
      %14 = vector.broadcast %13 : vector<1x256xf32> to vector<8x256xf32>
      %15 = arith.addf %12, %14 : vector<8x256xf32>
      %cst_13 = arith.constant 0.000000e+00 : f32
      %16 = vector.broadcast %cst_13 : f32 to vector<8x256xf32>
      %17 = arith.maximumf %15, %16 : vector<8x256xf32>
      %c0_14 = arith.constant 0 : index
      %c0_15 = arith.constant 0 : index
      %18 = vector.load %arg6[%c0_14, %c0_15] : memref<8x256xf32, #tpu.memory_space<vmem>>, vector<8x256xf32>
      tpu.vector_store %arg6[%c0_14, %c0_15], %17 {strides = array<i32>} : memref<8x256xf32, #tpu.memory_space<vmem>>, vector<8x256xf32>,
    } else {
    }
    return
  }
  func.func @transform_0(%arg0: i32, %arg1: i32, %arg2: i32) -> (i32, i32) {
    %c0_i32 = arith.constant 0 : i32
    return %arg0, %arg2 : i32, i32
  }
  func.func @transform_1(%arg0: i32, %arg1: i32, %arg2: i32) -> (i32, i32) {
    %c0_i32 = arith.constant 0 : i32
    return %arg2, %arg1 : i32, i32
  }
  func.func @transform_2(%arg0: i32, %arg1: i32, %arg2: i32) -> (i32, i32) {
    %c0_i32 = arith.constant 0 : i32
    %c0_i32_0 = arith.constant 0 : i32
    return %c0_i32, %arg1 : i32, i32
  }
  func.func @transform_3(%arg0: i32, %arg1: i32, %arg2: i32) -> (i32, i32) {
    %c0_i32 = arith.constant 0 : i32
    return %arg0, %arg1 : i32, i32
  }
}

module attributes {stable_mosaic.version = 11 : i64} {
  func.func @_mm_kernel(%arg0: i32, %arg1: i32, %arg2: i32, %arg3: memref<8x256xbf16, #tpu.memory_space<vmem>>, %arg4: memref<256x256xbf16, #tpu.memory_space<vmem>>, %arg5: memref<1x256xf32, #tpu.memory_space<vmem>>, %arg6: memref<8x256xf32, #tpu.memory_space<vmem>>, %arg7: memref<8x256xf32, #tpu.memory_space<vmem>>) attributes {dimension_semantics = [#tpu.dimension_semantics<parallel>, #tpu.dimension_semantics<parallel>, #tpu.dimension_semantics<arbitrary>], iteration_bounds = array<i64: 1, 2, 1>, scalar_prefetch = 0 : i64, scratch_operands = 1 : i64, tpu.core_type = #tpu.core_type<tc>, window_params = [{transform_indices = @transform_0, window_bounds = array<i64: 8, 256>}, {transform_indices = @transform_1, window_bounds = array<i64: 256, 256>}, {transform_indices = @transform_2, window_bounds = array<i64: 1, 256>}, {transform_indices = @transform_3, window_bounds = array<i64: 8, 256>}]} {
    %c0_i32 = arith.constant 0 : i32
    %0 = arith.cmpi eq, %arg2, %c0_i32 : i32
    %1 = arith.extui %0 : i1 to i32
    %c0_i32_0 = arith.constant 0 : i32
    %2 = arith.cmpi ne, %1, %c0_i32_0 : i32
    scf.if %2 {
      %cst_10 = arith.constant 0.000000e+00 : f32
      %12 = vector.broadcast %cst_10 : f32 to vector<8x256xf32>
      %c0_11 = arith.constant 0 : index
      %c0_12 = arith.constant 0 : index
      %13 = vector.load %arg7[%c0_11, %c0_12] : memref<8x256xf32, #tpu.memory_space<vmem>>, vector<8x256xf32>
      tpu.vector_store %arg7[%c0_11, %c0_12], %12 {strides = array<i32>} : memref<8x256xf32, #tpu.memory_space<vmem>>, vector<8x256xf32>,
    } else {
    }
    %c0 = arith.constant 0 : index
    %c0_1 = arith.constant 0 : index
    %3 = vector.load %arg7[%c0, %c0_1] : memref<8x256xf32, #tpu.memory_space<vmem>>, vector<8x256xf32>
    %c0_2 = arith.constant 0 : index
    %c0_3 = arith.constant 0 : index
    %4 = vector.load %arg3[%c0_2, %c0_3] : memref<8x256xbf16, #tpu.memory_space<vmem>>, vector<8x256xbf16>
    %c0_4 = arith.constant 0 : index
    %c0_5 = arith.constant 0 : index
    %5 = vector.load %arg4[%c0_4, %c0_5] : memref<256x256xbf16, #tpu.memory_space<vmem>>, vector<256x256xbf16>
    %cst = arith.constant dense<0.000000e+00> : vector<8x256xf32>
    %6 = tpu.matmul %4, %5, %cst {dimension_numbers = #tpu.dot_dimension_numbers<[1], [0], [0], [1], [0, 0, 1, 1], [], []>} : vector<8x256xbf16>, vector<256x256xbf16>, vector<8x256xf32> -> vector<8x256xf32>
    %7 = arith.addf %3, %6 : vector<8x256xf32>
    %c0_6 = arith.constant 0 : index
    %c0_7 = arith.constant 0 : index
    %8 = vector.load %arg7[%c0_6, %c0_7] : memref<8x256xf32, #tpu.memory_space<vmem>>, vector<8x256xf32>
    tpu.vector_store %arg7[%c0_6, %c0_7], %7 {strides = array<i32>} : memref<8x256xf32, #tpu.memory_space<vmem>>, vector<8x256xf32>,
    %c0_i32_8 = arith.constant 0 : i32
    %9 = arith.cmpi eq, %arg2, %c0_i32_8 : i32
    %10 = arith.extui %9 : i1 to i32
    %c0_i32_9 = arith.constant 0 : i32
    %11 = arith.cmpi ne, %10, %c0_i32_9 : i32
    scf.if %11 {
      %c0_10 = arith.constant 0 : index
      %c0_11 = arith.constant 0 : index
      %12 = vector.load %arg7[%c0_10, %c0_11] : memref<8x256xf32, #tpu.memory_space<vmem>>, vector<8x256xf32>
      %c0_12 = arith.constant 0 : index
      %c0_13 = arith.constant 0 : index
      %13 = vector.load %arg5[%c0_12, %c0_13] : memref<1x256xf32, #tpu.memory_space<vmem>>, vector<1x256xf32>
      %14 = vector.broadcast %13 : vector<1x256xf32> to vector<8x256xf32>
      %15 = arith.addf %12, %14 : vector<8x256xf32>
      %c0_14 = arith.constant 0 : index
      %c0_15 = arith.constant 0 : index
      %16 = vector.load %arg6[%c0_14, %c0_15] : memref<8x256xf32, #tpu.memory_space<vmem>>, vector<8x256xf32>
      tpu.vector_store %arg6[%c0_14, %c0_15], %15 {strides = array<i32>} : memref<8x256xf32, #tpu.memory_space<vmem>>, vector<8x256xf32>,
    } else {
    }
    return
  }
  func.func @transform_0(%arg0: i32, %arg1: i32, %arg2: i32) -> (i32, i32) {
    %c0_i32 = arith.constant 0 : i32
    return %arg0, %arg2 : i32, i32
  }
  func.func @transform_1(%arg0: i32, %arg1: i32, %arg2: i32) -> (i32, i32) {
    %c0_i32 = arith.constant 0 : i32
    return %arg2, %arg1 : i32, i32
  }
  func.func @transform_2(%arg0: i32, %arg1: i32, %arg2: i32) -> (i32, i32) {
    %c0_i32 = arith.constant 0 : i32
    %c0_i32_0 = arith.constant 0 : i32
    return %c0_i32, %arg1 : i32, i32
  }
  func.func @transform_3(%arg0: i32, %arg1: i32, %arg2: i32) -> (i32, i32) {
    %c0_i32 = arith.constant 0 : i32
    return %arg0, %arg1 : i32, i32
  }
}

module attributes {stable_mosaic.version = 11 : i64} {
  func.func @_mm_res_kernel(%arg0: i32, %arg1: i32, %arg2: i32, %arg3: memref<8x512xbf16, #tpu.memory_space<vmem>>, %arg4: memref<512x256xbf16, #tpu.memory_space<vmem>>, %arg5: memref<1x256xf32, #tpu.memory_space<vmem>>, %arg6: memref<8x256xf32, #tpu.memory_space<vmem>>, %arg7: memref<8x256xf32, #tpu.memory_space<vmem>>, %arg8: memref<8x256xf32, #tpu.memory_space<vmem>>) attributes {dimension_semantics = [#tpu.dimension_semantics<parallel>, #tpu.dimension_semantics<parallel>, #tpu.dimension_semantics<arbitrary>], iteration_bounds = array<i64: 1, 2, 9>, scalar_prefetch = 0 : i64, scratch_operands = 1 : i64, tpu.core_type = #tpu.core_type<tc>, window_params = [{transform_indices = @transform_0, window_bounds = array<i64: 8, 512>}, {transform_indices = @transform_1, window_bounds = array<i64: 512, 256>}, {transform_indices = @transform_2, window_bounds = array<i64: 1, 256>}, {transform_indices = @transform_3, window_bounds = array<i64: 8, 256>}, {transform_indices = @transform_4, window_bounds = array<i64: 8, 256>}]} {
    %c0_i32 = arith.constant 0 : i32
    %0 = arith.cmpi eq, %arg2, %c0_i32 : i32
    %1 = arith.extui %0 : i1 to i32
    %c0_i32_0 = arith.constant 0 : i32
    %2 = arith.cmpi ne, %1, %c0_i32_0 : i32
    scf.if %2 {
      %cst_9 = arith.constant 0.000000e+00 : f32
      %12 = vector.broadcast %cst_9 : f32 to vector<8x256xf32>
      %c0_10 = arith.constant 0 : index
      %c0_11 = arith.constant 0 : index
      %13 = vector.load %arg8[%c0_10, %c0_11] : memref<8x256xf32, #tpu.memory_space<vmem>>, vector<8x256xf32>
      tpu.vector_store %arg8[%c0_10, %c0_11], %12 {strides = array<i32>} : memref<8x256xf32, #tpu.memory_space<vmem>>, vector<8x256xf32>,
    } else {
    }
    %c0 = arith.constant 0 : index
    %c0_1 = arith.constant 0 : index
    %3 = vector.load %arg8[%c0, %c0_1] : memref<8x256xf32, #tpu.memory_space<vmem>>, vector<8x256xf32>
    %c0_2 = arith.constant 0 : index
    %c0_3 = arith.constant 0 : index
    %4 = vector.load %arg3[%c0_2, %c0_3] : memref<8x512xbf16, #tpu.memory_space<vmem>>, vector<8x512xbf16>
    %c0_4 = arith.constant 0 : index
    %c0_5 = arith.constant 0 : index
    %5 = vector.load %arg4[%c0_4, %c0_5] : memref<512x256xbf16, #tpu.memory_space<vmem>>, vector<512x256xbf16>
    %cst = arith.constant dense<0.000000e+00> : vector<8x256xf32>
    %6 = tpu.matmul %4, %5, %cst {dimension_numbers = #tpu.dot_dimension_numbers<[1], [0], [0], [1], [0, 0, 1, 1], [], []>} : vector<8x512xbf16>, vector<512x256xbf16>, vector<8x256xf32> -> vector<8x256xf32>
    %7 = arith.addf %3, %6 : vector<8x256xf32>
    %c0_6 = arith.constant 0 : index
    %c0_7 = arith.constant 0 : index
    %8 = vector.load %arg8[%c0_6, %c0_7] : memref<8x256xf32, #tpu.memory_space<vmem>>, vector<8x256xf32>
    tpu.vector_store %arg8[%c0_6, %c0_7], %7 {strides = array<i32>} : memref<8x256xf32, #tpu.memory_space<vmem>>, vector<8x256xf32>,
    %c8_i32 = arith.constant 8 : i32
    %9 = arith.cmpi eq, %arg2, %c8_i32 : i32
    %10 = arith.extui %9 : i1 to i32
    %c0_i32_8 = arith.constant 0 : i32
    %11 = arith.cmpi ne, %10, %c0_i32_8 : i32
    scf.if %11 {
      %c0_9 = arith.constant 0 : index
      %c0_10 = arith.constant 0 : index
      %12 = vector.load %arg8[%c0_9, %c0_10] : memref<8x256xf32, #tpu.memory_space<vmem>>, vector<8x256xf32>
      %c0_11 = arith.constant 0 : index
      %c0_12 = arith.constant 0 : index
      %13 = vector.load %arg5[%c0_11, %c0_12] : memref<1x256xf32, #tpu.memory_space<vmem>>, vector<1x256xf32>
      %14 = vector.broadcast %13 : vector<1x256xf32> to vector<8x256xf32>
      %15 = arith.addf %12, %14 : vector<8x256xf32>
      %c0_13 = arith.constant 0 : index
      %c0_14 = arith.constant 0 : index
      %16 = vector.load %arg6[%c0_13, %c0_14] : memref<8x256xf32, #tpu.memory_space<vmem>>, vector<8x256xf32>
      %17 = arith.addf %15, %16 : vector<8x256xf32>
      %cst_15 = arith.constant 0.000000e+00 : f32
      %18 = vector.broadcast %cst_15 : f32 to vector<8x256xf32>
      %19 = arith.maximumf %17, %18 : vector<8x256xf32>
      %c0_16 = arith.constant 0 : index
      %c0_17 = arith.constant 0 : index
      %20 = vector.load %arg7[%c0_16, %c0_17] : memref<8x256xf32, #tpu.memory_space<vmem>>, vector<8x256xf32>
      tpu.vector_store %arg7[%c0_16, %c0_17], %19 {strides = array<i32>} : memref<8x256xf32, #tpu.memory_space<vmem>>, vector<8x256xf32>,
    } else {
    }
    return
  }
  func.func @transform_0(%arg0: i32, %arg1: i32, %arg2: i32) -> (i32, i32) {
    %c0_i32 = arith.constant 0 : i32
    return %arg0, %arg2 : i32, i32
  }
  func.func @transform_1(%arg0: i32, %arg1: i32, %arg2: i32) -> (i32, i32) {
    %c0_i32 = arith.constant 0 : i32
    return %arg2, %arg1 : i32, i32
  }
  func.func @transform_2(%arg0: i32, %arg1: i32, %arg2: i32) -> (i32, i32) {
    %c0_i32 = arith.constant 0 : i32
    %c0_i32_0 = arith.constant 0 : i32
    return %c0_i32, %arg1 : i32, i32
  }
  func.func @transform_3(%arg0: i32, %arg1: i32, %arg2: i32) -> (i32, i32) {
    %c0_i32 = arith.constant 0 : i32
    return %arg0, %arg1 : i32, i32
  }
  func.func @transform_4(%arg0: i32, %arg1: i32, %arg2: i32) -> (i32, i32) {
    %c0_i32 = arith.constant 0 : i32
    return %arg0, %arg1 : i32, i32
  }
}

module attributes {stable_mosaic.version = 11 : i64} {
  func.func @_mm_kernel(%arg0: i32, %arg1: i32, %arg2: i32, %arg3: memref<8x512xbf16, #tpu.memory_space<vmem>>, %arg4: memref<512x256xbf16, #tpu.memory_space<vmem>>, %arg5: memref<1x256xf32, #tpu.memory_space<vmem>>, %arg6: memref<8x256xf32, #tpu.memory_space<vmem>>, %arg7: memref<8x256xf32, #tpu.memory_space<vmem>>) attributes {dimension_semantics = [#tpu.dimension_semantics<parallel>, #tpu.dimension_semantics<parallel>, #tpu.dimension_semantics<arbitrary>], iteration_bounds = array<i64: 1, 2, 9>, scalar_prefetch = 0 : i64, scratch_operands = 1 : i64, tpu.core_type = #tpu.core_type<tc>, window_params = [{transform_indices = @transform_0, window_bounds = array<i64: 8, 512>}, {transform_indices = @transform_1, window_bounds = array<i64: 512, 256>}, {transform_indices = @transform_2, window_bounds = array<i64: 1, 256>}, {transform_indices = @transform_3, window_bounds = array<i64: 8, 256>}]} {
    %c0_i32 = arith.constant 0 : i32
    %0 = arith.cmpi eq, %arg2, %c0_i32 : i32
    %1 = arith.extui %0 : i1 to i32
    %c0_i32_0 = arith.constant 0 : i32
    %2 = arith.cmpi ne, %1, %c0_i32_0 : i32
    scf.if %2 {
      %cst_9 = arith.constant 0.000000e+00 : f32
      %12 = vector.broadcast %cst_9 : f32 to vector<8x256xf32>
      %c0_10 = arith.constant 0 : index
      %c0_11 = arith.constant 0 : index
      %13 = vector.load %arg7[%c0_10, %c0_11] : memref<8x256xf32, #tpu.memory_space<vmem>>, vector<8x256xf32>
      tpu.vector_store %arg7[%c0_10, %c0_11], %12 {strides = array<i32>} : memref<8x256xf32, #tpu.memory_space<vmem>>, vector<8x256xf32>,
    } else {
    }
    %c0 = arith.constant 0 : index
    %c0_1 = arith.constant 0 : index
    %3 = vector.load %arg7[%c0, %c0_1] : memref<8x256xf32, #tpu.memory_space<vmem>>, vector<8x256xf32>
    %c0_2 = arith.constant 0 : index
    %c0_3 = arith.constant 0 : index
    %4 = vector.load %arg3[%c0_2, %c0_3] : memref<8x512xbf16, #tpu.memory_space<vmem>>, vector<8x512xbf16>
    %c0_4 = arith.constant 0 : index
    %c0_5 = arith.constant 0 : index
    %5 = vector.load %arg4[%c0_4, %c0_5] : memref<512x256xbf16, #tpu.memory_space<vmem>>, vector<512x256xbf16>
    %cst = arith.constant dense<0.000000e+00> : vector<8x256xf32>
    %6 = tpu.matmul %4, %5, %cst {dimension_numbers = #tpu.dot_dimension_numbers<[1], [0], [0], [1], [0, 0, 1, 1], [], []>} : vector<8x512xbf16>, vector<512x256xbf16>, vector<8x256xf32> -> vector<8x256xf32>
    %7 = arith.addf %3, %6 : vector<8x256xf32>
    %c0_6 = arith.constant 0 : index
    %c0_7 = arith.constant 0 : index
    %8 = vector.load %arg7[%c0_6, %c0_7] : memref<8x256xf32, #tpu.memory_space<vmem>>, vector<8x256xf32>
    tpu.vector_store %arg7[%c0_6, %c0_7], %7 {strides = array<i32>} : memref<8x256xf32, #tpu.memory_space<vmem>>, vector<8x256xf32>,
    %c8_i32 = arith.constant 8 : i32
    %9 = arith.cmpi eq, %arg2, %c8_i32 : i32
    %10 = arith.extui %9 : i1 to i32
    %c0_i32_8 = arith.constant 0 : i32
    %11 = arith.cmpi ne, %10, %c0_i32_8 : i32
    scf.if %11 {
      %c0_9 = arith.constant 0 : index
      %c0_10 = arith.constant 0 : index
      %12 = vector.load %arg7[%c0_9, %c0_10] : memref<8x256xf32, #tpu.memory_space<vmem>>, vector<8x256xf32>
      %c0_11 = arith.constant 0 : index
      %c0_12 = arith.constant 0 : index
      %13 = vector.load %arg5[%c0_11, %c0_12] : memref<1x256xf32, #tpu.memory_space<vmem>>, vector<1x256xf32>
      %14 = vector.broadcast %13 : vector<1x256xf32> to vector<8x256xf32>
      %15 = arith.addf %12, %14 : vector<8x256xf32>
      %cst_13 = arith.constant 0.000000e+00 : f32
      %16 = vector.broadcast %cst_13 : f32 to vector<8x256xf32>
      %17 = arith.maximumf %15, %16 : vector<8x256xf32>
      %c0_14 = arith.constant 0 : index
      %c0_15 = arith.constant 0 : index
      %18 = vector.load %arg6[%c0_14, %c0_15] : memref<8x256xf32, #tpu.memory_space<vmem>>, vector<8x256xf32>
      tpu.vector_store %arg6[%c0_14, %c0_15], %17 {strides = array<i32>} : memref<8x256xf32, #tpu.memory_space<vmem>>, vector<8x256xf32>,
    } else {
    }
    return
  }
  func.func @transform_0(%arg0: i32, %arg1: i32, %arg2: i32) -> (i32, i32) {
    %c0_i32 = arith.constant 0 : i32
    return %arg0, %arg2 : i32, i32
  }
  func.func @transform_1(%arg0: i32, %arg1: i32, %arg2: i32) -> (i32, i32) {
    %c0_i32 = arith.constant 0 : i32
    return %arg2, %arg1 : i32, i32
  }
  func.func @transform_2(%arg0: i32, %arg1: i32, %arg2: i32) -> (i32, i32) {
    %c0_i32 = arith.constant 0 : i32
    %c0_i32_0 = arith.constant 0 : i32
    return %c0_i32, %arg1 : i32, i32
  }
  func.func @transform_3(%arg0: i32, %arg1: i32, %arg2: i32) -> (i32, i32) {
    %c0_i32 = arith.constant 0 : i32
    return %arg0, %arg1 : i32, i32
  }
}

module attributes {stable_mosaic.version = 11 : i64} {
  func.func @_avgpool_kernel(%arg0: i32, %arg1: memref<2x8x512xf32, #tpu.memory_space<vmem>>, %arg2: memref<2x512xf32, #tpu.memory_space<vmem>>) attributes {dimension_semantics = [#tpu.dimension_semantics<arbitrary>], iteration_bounds = array<i64: 1>, scalar_prefetch = 0 : i64, scratch_operands = 0 : i64, tpu.core_type = #tpu.core_type<tc>, window_params = [{pipeline_mode = #tpu.pipeline_mode<synchronous>, transform_indices = @transform_0, window_bounds = array<i64: 2, 8, 512>}, {pipeline_mode = #tpu.pipeline_mode<synchronous>, transform_indices = @transform_1, window_bounds = array<i64: 2, 512>}]} {
    %c0 = arith.constant 0 : index
    %c0_0 = arith.constant 0 : index
    %c0_1 = arith.constant 0 : index
    %0 = vector.load %arg1[%c0, %c0_0, %c0_1] : memref<2x8x512xf32, #tpu.memory_space<vmem>>, vector<2x8x512xf32>
    %cst = arith.constant dense<0.000000e+00> : vector<2x512xf32>
    %1 = vector.multi_reduction <add>, %0, %cst [1] : vector<2x8x512xf32> to vector<2x512xf32>
    %cst_2 = arith.constant 1.000000e+00 : f32
    %2 = vector.broadcast %cst_2 : f32 to vector<2x512xf32>
    %3 = arith.mulf %1, %2 : vector<2x512xf32>
    %c0_3 = arith.constant 0 : index
    %c0_4 = arith.constant 0 : index
    %4 = vector.load %arg2[%c0_3, %c0_4] : memref<2x512xf32, #tpu.memory_space<vmem>>, vector<2x512xf32>
    tpu.vector_store %arg2[%c0_3, %c0_4], %3 {strides = array<i32>} : memref<2x512xf32, #tpu.memory_space<vmem>>, vector<2x512xf32>,
    return
  }
  func.func @transform_0(%arg0: i32) -> (i32, i32, i32) {
    %c0_i32 = arith.constant 0 : i32
    %c0_i32_0 = arith.constant 0 : i32
    %c0_i32_1 = arith.constant 0 : i32
    %c0_i32_2 = arith.constant 0 : i32
    return %c0_i32, %c0_i32_0, %c0_i32_1 : i32, i32, i32
  }
  func.func @transform_1(%arg0: i32) -> (i32, i32) {
    %c0_i32 = arith.constant 0 : i32
    %c0_i32_0 = arith.constant 0 : i32
    %c0_i32_1 = arith.constant 0 : i32
    return %c0_i32, %c0_i32_0 : i32, i32
  }
}

module attributes {stable_mosaic.version = 11 : i64} {
  func.func @_mm_kernel(%arg0: i32, %arg1: i32, %arg2: i32, %arg3: memref<8x512xbf16, #tpu.memory_space<vmem>>, %arg4: memref<512x128xbf16, #tpu.memory_space<vmem>>, %arg5: memref<1x128xf32, #tpu.memory_space<vmem>>, %arg6: memref<8x128xf32, #tpu.memory_space<vmem>>, %arg7: memref<8x128xf32, #tpu.memory_space<vmem>>) attributes {dimension_semantics = [#tpu.dimension_semantics<parallel>, #tpu.dimension_semantics<parallel>, #tpu.dimension_semantics<arbitrary>], iteration_bounds = array<i64: 1, 1, 1>, scalar_prefetch = 0 : i64, scratch_operands = 1 : i64, tpu.core_type = #tpu.core_type<tc>, window_params = [{transform_indices = @transform_0, window_bounds = array<i64: 8, 512>}, {transform_indices = @transform_1, window_bounds = array<i64: 512, 128>}, {transform_indices = @transform_2, window_bounds = array<i64: 1, 128>}, {transform_indices = @transform_3, window_bounds = array<i64: 8, 128>}]} {
    %c0_i32 = arith.constant 0 : i32
    %0 = arith.cmpi eq, %arg2, %c0_i32 : i32
    %1 = arith.extui %0 : i1 to i32
    %c0_i32_0 = arith.constant 0 : i32
    %2 = arith.cmpi ne, %1, %c0_i32_0 : i32
    scf.if %2 {
      %cst_10 = arith.constant 0.000000e+00 : f32
      %12 = vector.broadcast %cst_10 : f32 to vector<8x128xf32>
      %c0_11 = arith.constant 0 : index
      %c0_12 = arith.constant 0 : index
      %13 = vector.load %arg7[%c0_11, %c0_12] : memref<8x128xf32, #tpu.memory_space<vmem>>, vector<8x128xf32>
      tpu.vector_store %arg7[%c0_11, %c0_12], %12 {strides = array<i32>} : memref<8x128xf32, #tpu.memory_space<vmem>>, vector<8x128xf32>,
    } else {
    }
    %c0 = arith.constant 0 : index
    %c0_1 = arith.constant 0 : index
    %3 = vector.load %arg7[%c0, %c0_1] : memref<8x128xf32, #tpu.memory_space<vmem>>, vector<8x128xf32>
    %c0_2 = arith.constant 0 : index
    %c0_3 = arith.constant 0 : index
    %4 = vector.load %arg3[%c0_2, %c0_3] : memref<8x512xbf16, #tpu.memory_space<vmem>>, vector<8x512xbf16>
    %c0_4 = arith.constant 0 : index
    %c0_5 = arith.constant 0 : index
    %5 = vector.load %arg4[%c0_4, %c0_5] : memref<512x128xbf16, #tpu.memory_space<vmem>>, vector<512x128xbf16>
    %cst = arith.constant dense<0.000000e+00> : vector<8x128xf32>
    %6 = tpu.matmul %4, %5, %cst {dimension_numbers = #tpu.dot_dimension_numbers<[1], [0], [0], [1], [0, 0, 1, 1], [], []>} : vector<8x512xbf16>, vector<512x128xbf16>, vector<8x128xf32> -> vector<8x128xf32>
    %7 = arith.addf %3, %6 : vector<8x128xf32>
    %c0_6 = arith.constant 0 : index
    %c0_7 = arith.constant 0 : index
    %8 = vector.load %arg7[%c0_6, %c0_7] : memref<8x128xf32, #tpu.memory_space<vmem>>, vector<8x128xf32>
    tpu.vector_store %arg7[%c0_6, %c0_7], %7 {strides = array<i32>} : memref<8x128xf32, #tpu.memory_space<vmem>>, vector<8x128xf32>,
    %c0_i32_8 = arith.constant 0 : i32
    %9 = arith.cmpi eq, %arg2, %c0_i32_8 : i32
    %10 = arith.extui %9 : i1 to i32
    %c0_i32_9 = arith.constant 0 : i32
    %11 = arith.cmpi ne, %10, %c0_i32_9 : i32
    scf.if %11 {
      %c0_10 = arith.constant 0 : index
      %c0_11 = arith.constant 0 : index
      %12 = vector.load %arg7[%c0_10, %c0_11] : memref<8x128xf32, #tpu.memory_space<vmem>>, vector<8x128xf32>
      %c0_12 = arith.constant 0 : index
      %c0_13 = arith.constant 0 : index
      %13 = vector.load %arg5[%c0_12, %c0_13] : memref<1x128xf32, #tpu.memory_space<vmem>>, vector<1x128xf32>
      %14 = vector.broadcast %13 : vector<1x128xf32> to vector<8x128xf32>
      %15 = arith.addf %12, %14 : vector<8x128xf32>
      %c0_14 = arith.constant 0 : index
      %c0_15 = arith.constant 0 : index
      %16 = vector.load %arg6[%c0_14, %c0_15] : memref<8x128xf32, #tpu.memory_space<vmem>>, vector<8x128xf32>
      tpu.vector_store %arg6[%c0_14, %c0_15], %15 {strides = array<i32>} : memref<8x128xf32, #tpu.memory_space<vmem>>, vector<8x128xf32>,
    } else {
    }
    return
  }
  func.func @transform_0(%arg0: i32, %arg1: i32, %arg2: i32) -> (i32, i32) {
    %c0_i32 = arith.constant 0 : i32
    return %arg0, %arg2 : i32, i32
  }
  func.func @transform_1(%arg0: i32, %arg1: i32, %arg2: i32) -> (i32, i32) {
    %c0_i32 = arith.constant 0 : i32
    return %arg2, %arg1 : i32, i32
  }
  func.func @transform_2(%arg0: i32, %arg1: i32, %arg2: i32) -> (i32, i32) {
    %c0_i32 = arith.constant 0 : i32
    %c0_i32_0 = arith.constant 0 : i32
    return %c0_i32, %arg1 : i32, i32
  }
  func.func @transform_3(%arg0: i32, %arg1: i32, %arg2: i32) -> (i32, i32) {
    %c0_i32 = arith.constant 0 : i32
    return %arg0, %arg1 : i32, i32
  }
}

module attributes {stable_mosaic.version = 11 : i64} {
  func.func @_mm_kernel(%arg0: i32, %arg1: i32, %arg2: i32, %arg3: memref<8x128xbf16, #tpu.memory_space<vmem>>, %arg4: memref<128x128xbf16, #tpu.memory_space<vmem>>, %arg5: memref<1x128xf32, #tpu.memory_space<vmem>>, %arg6: memref<8x128xf32, #tpu.memory_space<vmem>>, %arg7: memref<8x128xf32, #tpu.memory_space<vmem>>) attributes {dimension_semantics = [#tpu.dimension_semantics<parallel>, #tpu.dimension_semantics<parallel>, #tpu.dimension_semantics<arbitrary>], iteration_bounds = array<i64: 1, 1, 1>, scalar_prefetch = 0 : i64, scratch_operands = 1 : i64, tpu.core_type = #tpu.core_type<tc>, window_params = [{transform_indices = @transform_0, window_bounds = array<i64: 8, 128>}, {transform_indices = @transform_1, window_bounds = array<i64: 128, 128>}, {transform_indices = @transform_2, window_bounds = array<i64: 1, 128>}, {transform_indices = @transform_3, window_bounds = array<i64: 8, 128>}]} {
    %c0_i32 = arith.constant 0 : i32
    %0 = arith.cmpi eq, %arg2, %c0_i32 : i32
    %1 = arith.extui %0 : i1 to i32
    %c0_i32_0 = arith.constant 0 : i32
    %2 = arith.cmpi ne, %1, %c0_i32_0 : i32
    scf.if %2 {
      %cst_10 = arith.constant 0.000000e+00 : f32
      %12 = vector.broadcast %cst_10 : f32 to vector<8x128xf32>
      %c0_11 = arith.constant 0 : index
      %c0_12 = arith.constant 0 : index
      %13 = vector.load %arg7[%c0_11, %c0_12] : memref<8x128xf32, #tpu.memory_space<vmem>>, vector<8x128xf32>
      tpu.vector_store %arg7[%c0_11, %c0_12], %12 {strides = array<i32>} : memref<8x128xf32, #tpu.memory_space<vmem>>, vector<8x128xf32>,
    } else {
    }
    %c0 = arith.constant 0 : index
    %c0_1 = arith.constant 0 : index
    %3 = vector.load %arg7[%c0, %c0_1] : memref<8x128xf32, #tpu.memory_space<vmem>>, vector<8x128xf32>
    %c0_2 = arith.constant 0 : index
    %c0_3 = arith.constant 0 : index
    %4 = vector.load %arg3[%c0_2, %c0_3] : memref<8x128xbf16, #tpu.memory_space<vmem>>, vector<8x128xbf16>
    %c0_4 = arith.constant 0 : index
    %c0_5 = arith.constant 0 : index
    %5 = vector.load %arg4[%c0_4, %c0_5] : memref<128x128xbf16, #tpu.memory_space<vmem>>, vector<128x128xbf16>
    %cst = arith.constant dense<0.000000e+00> : vector<8x128xf32>
    %6 = tpu.matmul %4, %5, %cst {dimension_numbers = #tpu.dot_dimension_numbers<[1], [0], [0], [1], [0, 0, 1, 1], [], []>} : vector<8x128xbf16>, vector<128x128xbf16>, vector<8x128xf32> -> vector<8x128xf32>
    %7 = arith.addf %3, %6 : vector<8x128xf32>
    %c0_6 = arith.constant 0 : index
    %c0_7 = arith.constant 0 : index
    %8 = vector.load %arg7[%c0_6, %c0_7] : memref<8x128xf32, #tpu.memory_space<vmem>>, vector<8x128xf32>
    tpu.vector_store %arg7[%c0_6, %c0_7], %7 {strides = array<i32>} : memref<8x128xf32, #tpu.memory_space<vmem>>, vector<8x128xf32>,
    %c0_i32_8 = arith.constant 0 : i32
    %9 = arith.cmpi eq, %arg2, %c0_i32_8 : i32
    %10 = arith.extui %9 : i1 to i32
    %c0_i32_9 = arith.constant 0 : i32
    %11 = arith.cmpi ne, %10, %c0_i32_9 : i32
    scf.if %11 {
      %c0_10 = arith.constant 0 : index
      %c0_11 = arith.constant 0 : index
      %12 = vector.load %arg7[%c0_10, %c0_11] : memref<8x128xf32, #tpu.memory_space<vmem>>, vector<8x128xf32>
      %c0_12 = arith.constant 0 : index
      %c0_13 = arith.constant 0 : index
      %13 = vector.load %arg5[%c0_12, %c0_13] : memref<1x128xf32, #tpu.memory_space<vmem>>, vector<1x128xf32>
      %14 = vector.broadcast %13 : vector<1x128xf32> to vector<8x128xf32>
      %15 = arith.addf %12, %14 : vector<8x128xf32>
      %c0_14 = arith.constant 0 : index
      %c0_15 = arith.constant 0 : index
      %16 = vector.load %arg6[%c0_14, %c0_15] : memref<8x128xf32, #tpu.memory_space<vmem>>, vector<8x128xf32>
      tpu.vector_store %arg6[%c0_14, %c0_15], %15 {strides = array<i32>} : memref<8x128xf32, #tpu.memory_space<vmem>>, vector<8x128xf32>,
    } else {
    }
    return
  }
  func.func @transform_0(%arg0: i32, %arg1: i32, %arg2: i32) -> (i32, i32) {
    %c0_i32 = arith.constant 0 : i32
    return %arg0, %arg2 : i32, i32
  }
  func.func @transform_1(%arg0: i32, %arg1: i32, %arg2: i32) -> (i32, i32) {
    %c0_i32 = arith.constant 0 : i32
    return %arg2, %arg1 : i32, i32
  }
  func.func @transform_2(%arg0: i32, %arg1: i32, %arg2: i32) -> (i32, i32) {
    %c0_i32 = arith.constant 0 : i32
    %c0_i32_0 = arith.constant 0 : i32
    return %c0_i32, %arg1 : i32, i32
  }
  func.func @transform_3(%arg0: i32, %arg1: i32, %arg2: i32) -> (i32, i32) {
    %c0_i32 = arith.constant 0 : i32
    return %arg0, %arg1 : i32, i32
  }
}

</mosaic_0001>

<bundles_post_ra>
// kernel: resnet_forward.24
= control target key start
LH: loop header
LB: loop body
LE: loop exit
PB: predicated region body
PF: predicated region fallthrough
CT: control target
= control target key end

     0   :  { %s1457_s12 = smov 0   ;;  %s1459_s13 = smov 0   ;;  %s1650_s0 = inlined_call_operand.vmem [shape: bf16[512,256], index: 0, kind: input, shape index: {}]   ;;  %s1651_s1 = inlined_call_operand.vmem [shape: bf16[256,128], index: 1, kind: input, shape index: {}]   ;;  %s1652_s2 = inlined_call_operand.vmem [shape: f32[1,128], index: 2, kind: input, shape index: {}]   ;;  %s1653_s3 = inlined_call_operand.vmem [shape: f32[512,128], index: 3, kind: output, shape index: {}]  }
   0x1   :  { %s1461_s14 = smov 0  }
   0x2 LB: > { %s32_s15 = sadd.s32 1, %s1431_s13  ;;  %p1139_p0 = scmp.ge.s32.totalorder %s1435_s14, 1  ;;  %s1435_s14 = sphi %s1461_s14, %s13_s14   ;;  %s1431_s13 = sphi %s1459_s13, %s1655_s13   ;;  %s1427_s12 = sphi %s1457_s12, %s1654_s12  }
   0x3   : > { %p34_p1 = scmp.ge.s32.totalorder %s32_s15, 2  ;;  %p191_p2 = scmp.lt.s32.totalorder %s1435_s14, 3 }
   0x5   : > { %s1657_s15 = smov (%p34_p1, %s32_s15), 0  ;;  %p192_p3 = pnand %p1139_p0, %p191_p2 }
   0x6   : > { %v1349_v0 = vld [vmem:[%s1651_s1 + $0x40] sm:$0xff] (!%p192_p3)   ;;  %s1140_s18 = sshll.u32 (!%p192_p3), %s1427_s12, 5  ;;  %v1351_v2 = vld [vmem:[%s1651_s1 + $0x48] sm:$0xff] (!%p192_p3)   ;;  %v1353_v4 = vld [vmem:[%s1651_s1 + $0x50] sm:$0xff] (!%p192_p3)  }
   0x7   : > { %195 = sbr.rel (%p192_p3) target bundleno = 317 (0x13d), region = 32  ;;  %v1350_v1 = vld [vmem:[%s1651_s1] sm:$0xff] (!%p192_p3)   ;;  %1197 = vmatprep.subr.bf16.mxu0 (!%p192_p3), %v1349_v0  ;;  %1309 = vmatprep.subr.bf16.mxu1 (!%p192_p3), %v1349_v0  ;;  %v1352_v3 = vld [vmem:[%s1651_s1 + $0x8] sm:$0xff] (!%p192_p3)   ;;  %p236_p4 = scmp.lt.s32.totalorder (!%p192_p3), %s1140_s18, 63  ;;  %v1354_v5 = vld [vmem:[%s1651_s1 + $0x10] sm:$0xff] (!%p192_p3)  }
   0x8   : > { %1198 = vmatpush3.bf16.msra.mxu0 (!%p192_p3), %v1350_v1  ;;  %1317 = vmatpush3.bf16.msra.mxu1 (!%p192_p3), %v1350_v1  ;;  %v1355_v6 = vld [vmem:[%s1651_s1 + $0x58] sm:$0xff] (!%p192_p3)   ;;  %v1357_v8 = vld [vmem:[%s1651_s1 + $0x60] sm:$0xff] (!%p192_p3)   ;;  %v1359_v10 = vld [vmem:[%s1651_s1 + $0x68] sm:$0xff] (!%p192_p3)  }
   0x9   : > { %1199 = vmatprep.subr.bf16.mxu0 (!%p192_p3), %v1351_v2  ;;  %1310 = vmatprep.subr.bf16.mxu1 (!%p192_p3), %v1351_v2  ;;  %v1356_v7 = vld [vmem:[%s1651_s1 + $0x18] sm:$0xff] (!%p192_p3)   ;;  %v1358_v9 = vld [vmem:[%s1651_s1 + $0x20] sm:$0xff] (!%p192_p3)   ;;  %v1360_v13 = vld [vmem:[%s1651_s1 + $0x28] sm:$0xff] (!%p192_p3)  }
   0xa   : > { %v1361_v14 = vld [vmem:[%s1651_s1 + $0x70] sm:$0xff] (!%p192_p3)   ;;  %v1363_v16 = vld [vmem:[%s1651_s1 + $0x78] sm:$0xff] (!%p192_p3)   ;;  %v1568_v51 = vld [vmem:[%s1652_s2] ss:$0 sm:$0xff] (!%p192_p3) }
   0xb   : > { %v1362_v15 = vld [vmem:[%s1651_s1 + $0x30] sm:$0xff] (!%p192_p3)   ;;  %v1364_v17 = vld [vmem:[%s1651_s1 + $0x38] sm:$0xff] (!%p192_p3)  }
   0xc   : > { %1200 = vmatpush3.bf16.msra.mxu0 (!%p192_p3), %v1352_v3  ;;  %1318 = vmatpush3.bf16.msra.mxu1 (!%p192_p3), %v1352_v3 }
   0xd   : > { %1201 = vmatprep.subr.bf16.mxu0 (!%p192_p3), %v1353_v4  ;;  %1311 = vmatprep.subr.bf16.mxu1 (!%p192_p3), %v1353_v4 }
   0xe   : > { %s1659_s18 = smov (!%p236_p4, %s1140_s18), 63 }
   0xf   : > { %s1196_s6 = sshll.u32 %s1659_s18, 3 }
  0x10   : > { %1202 = vmatpush3.bf16.msra.mxu0 %v1354_v5  ;;  %1319 = vmatpush3.bf16.msra.mxu1 %v1354_v5  ;;  %s1510_s11 = scalar_lea.vmem %s1650_s0, %s1196_s6  ;;  %s1577_s8 = scalar_lea.vmem %s1653_s3, %s1196_s6 }
  0x11   : > { %1203 = vmatprep.subr.bf16.mxu0 %v1355_v6  ;;  %1312 = vmatprep.subr.bf16.mxu1 %v1355_v6  ;;  %v1367_v11 = vld [vmem:[%s1510_s11 + $0x4] ss:$8 sps:$4 sm:$0xff]   ;;  %v1365_v18 = vld [vmem:[%s1510_s11] ss:$8 sps:$4 sm:$0xff]   ;;  %v1371_v20 = vld [vmem:[%s1510_s11 + $0x14] ss:$8 sps:$4 sm:$0xff]  }
  0x12   : > { %v1370_v12 = vld [vmem:[%s1510_s11 + $0x84] ss:$8 sps:$4 sm:$0xff]   ;;  %688 = vmatprep.mubr.bf16.mxu0 %v1367_v11  ;;  %v1368_v19 = vld [vmem:[%s1510_s11 + $0x80] ss:$8 sps:$4 sm:$0xff]   ;;  %v1373_v21 = vld [vmem:[%s1510_s11 + $0x94] ss:$8 sps:$4 sm:$0xff]  }
  0x13   : > { %752 = vmatprep.mubr.bf16.mxu1 %v1370_v12  ;;  %v1375_v22 = vld [vmem:[%s1510_s11 + $0x10] ss:$8 sps:$4 sm:$0xff]   ;;  %v1377_v24 = vld [vmem:[%s1510_s11 + $0x24] ss:$8 sps:$4 sm:$0xff]   ;;  %v1381_v26 = vld [vmem:[%s1510_s11 + $0x20] ss:$8 sps:$4 sm:$0xff]  }
  0x14   : > { %1204 = vmatpush3.bf16.msra.mxu0 %v1356_v7  ;;  %1320 = vmatpush3.bf16.msra.mxu1 %v1356_v7  ;;  %v1376_v23 = vld [vmem:[%s1510_s11 + $0x90] ss:$8 sps:$4 sm:$0xff]   ;;  %v1379_v25 = vld [vmem:[%s1510_s11 + $0xa4] ss:$8 sps:$4 sm:$0xff]   ;;  %v1382_v27 = vld [vmem:[%s1510_s11 + $0xa0] ss:$8 sps:$4 sm:$0xff]  }
  0x15   : > { %1205 = vmatprep.subr.bf16.mxu0 %v1357_v8  ;;  %1313 = vmatprep.subr.bf16.mxu1 %v1357_v8  ;;  %v1383_v28 = vld [vmem:[%s1510_s11 + $0x34] ss:$8 sps:$4 sm:$0xff]   ;;  %v1387_v30 = vld [vmem:[%s1510_s11 + $0x30] ss:$8 sps:$4 sm:$0xff]   ;;  %v1389_v32 = vld [vmem:[%s1510_s11 + $0x44] ss:$8 sps:$4 sm:$0xff]  }
  0x16   : > { %v1385_v29 = vld [vmem:[%s1510_s11 + $0xb4] ss:$8 sps:$4 sm:$0xff]   ;;  %v1388_v31 = vld [vmem:[%s1510_s11 + $0xb0] ss:$8 sps:$4 sm:$0xff]   ;;  %v1391_v33 = vld [vmem:[%s1510_s11 + $0xc4] ss:$8 sps:$4 sm:$0xff]  }
  0x17   : > { %v1393_v34 = vld [vmem:[%s1510_s11 + $0x40] ss:$8 sps:$4 sm:$0xff]   ;;  %v1395_v36 = vld [vmem:[%s1510_s11 + $0x54] ss:$8 sps:$4 sm:$0xff]   ;;  %v1399_v38 = vld [vmem:[%s1510_s11 + $0x50] ss:$8 sps:$4 sm:$0xff]  }
  0x18   : > { %1206 = vmatpush3.bf16.msra.mxu0 %v1358_v9  ;;  %1321 = vmatpush3.bf16.msra.mxu1 %v1358_v9  ;;  %v1394_v35 = vld [vmem:[%s1510_s11 + $0xc0] ss:$8 sps:$4 sm:$0xff]   ;;  %v1397_v37 = vld [vmem:[%s1510_s11 + $0xd4] ss:$8 sps:$4 sm:$0xff]   ;;  %v1400_v39 = vld [vmem:[%s1510_s11 + $0xd0] ss:$8 sps:$4 sm:$0xff]  }
  0x19   : > { %1207 = vmatprep.subr.bf16.mxu0 %v1359_v10  ;;  %1314 = vmatprep.subr.bf16.mxu1 %v1359_v10  ;;  %v1401_v40 = vld [vmem:[%s1510_s11 + $0x64] ss:$8 sps:$4 sm:$0xff]   ;;  %v1405_v42 = vld [vmem:[%s1510_s11 + $0x60] ss:$8 sps:$4 sm:$0xff]   ;;  %v1407_v44 = vld [vmem:[%s1510_s11 + $0x74] ss:$8 sps:$4 sm:$0xff]  }
  0x1a   : > { %v1403_v41 = vld [vmem:[%s1510_s11 + $0xe4] ss:$8 sps:$4 sm:$0xff]   ;;  %v1406_v43 = vld [vmem:[%s1510_s11 + $0xe0] ss:$8 sps:$4 sm:$0xff]   ;;  %v1409_v45 = vld [vmem:[%s1510_s11 + $0xf4] ss:$8 sps:$4 sm:$0xff]  }
  0x1b   : > { %v1411_v46 = vld [vmem:[%s1510_s11 + $0x70] ss:$8 sps:$4 sm:$0xff]  }
  0x1c   : > { %1208 = vmatpush3.bf16.msra.mxu0 %v1360_v13  ;;  %1322 = vmatpush3.bf16.msra.mxu1 %v1360_v13  ;;  %v1412_v47 = vld [vmem:[%s1510_s11 + $0xf0] ss:$8 sps:$4 sm:$0xff]  }
  0x1d   : > { %1209 = vmatprep.subr.bf16.mxu0 %v1361_v14  ;;  %1315 = vmatprep.subr.bf16.mxu1 %v1361_v14 }
  0x20   : > { %1210 = vmatpush3.bf16.msra.mxu0 %v1362_v15  ;;  %1323 = vmatpush3.bf16.msra.mxu1 %v1362_v15 }
  0x21   : > { %1211 = vmatprep.subr.bf16.mxu0 %v1363_v16  ;;  %1316 = vmatprep.subr.bf16.mxu1 %v1363_v16 }
  0x24   : > { %1212 = vmatpush3.bf16.msra.mxu0 %v1364_v17  ;;  %1324 = vmatpush3.bf16.msra.mxu1 %v1364_v17 }
  0x27   : > { %689 = vmatmul.mubr.bf16.vlgmr.msra.gmra.mrb[0].mxu0 %v1365_v18  ;;  %753 = vmatmul.mubr.bf16.vlgmr.msra.gmra.mrb[0].mxu1 %v1368_v19 }
  0x28   : > { %696 = vmatprep.mubr.bf16.mxu0 %v1371_v20  ;;  %760 = vmatprep.mubr.bf16.mxu1 %v1373_v21 }
  0x2f   : > { %697 = vmatmul.mubr.bf16.gmra.mrb[4].mxu0 %v1375_v22  ;;  %761 = vmatmul.mubr.bf16.gmra.mrb[4].mxu1 %v1376_v23 }
  0x30   : > { %704 = vmatprep.mubr.bf16.mxu0 %v1377_v24  ;;  %768 = vmatprep.mubr.bf16.mxu1 %v1379_v25 }
  0x37   : > { %705 = vmatmul.mubr.bf16.gmra.mrb[8].mxu0 %v1381_v26  ;;  %769 = vmatmul.mubr.bf16.gmra.mrb[8].mxu1 %v1382_v27 }
  0x38   : > { %712 = vmatprep.mubr.bf16.mxu0 %v1383_v28  ;;  %776 = vmatprep.mubr.bf16.mxu1 %v1385_v29 }
  0x3f   : > { %713 = vmatmul.mubr.bf16.gmra.mrb[12].mxu0 %v1387_v30  ;;  %777 = vmatmul.mubr.bf16.gmra.mrb[12].mxu1 %v1388_v31 }
  0x40   : > { %720 = vmatprep.mubr.bf16.mxu0 %v1389_v32  ;;  %784 = vmatprep.mubr.bf16.mxu1 %v1391_v33 }
  0x47   : > { %721 = vmatmul.mubr.bf16.gmra.mrb[16].mxu0 %v1393_v34  ;;  %785 = vmatmul.mubr.bf16.gmra.mrb[16].mxu1 %v1394_v35 }
  0x48   : > { %728 = vmatprep.mubr.bf16.mxu0 %v1395_v36  ;;  %792 = vmatprep.mubr.bf16.mxu1 %v1397_v37 }
  0x4f   : > { %729 = vmatmul.mubr.bf16.gmra.mrb[20].mxu0 %v1399_v38  ;;  %793 = vmatmul.mubr.bf16.gmra.mrb[20].mxu1 %v1400_v39 }
  0x50   : > { %736 = vmatprep.mubr.bf16.mxu0 %v1401_v40  ;;  %800 = vmatprep.mubr.bf16.mxu1 %v1403_v41 }
  0x57   : > { %737 = vmatmul.mubr.bf16.gmra.mrb[24].mxu0 %v1405_v42  ;;  %801 = vmatmul.mubr.bf16.gmra.mrb[24].mxu1 %v1406_v43 }
  0x58   : > { %744 = vmatprep.mubr.bf16.mxu0 %v1407_v44  ;;  %808 = vmatprep.mubr.bf16.mxu1 %v1409_v45 }
  0x5f   : > { %745 = vmatmul.mubr.bf16.gmra.mrb[28].mxu0 %v1411_v46  ;;  %809 = vmatmul.mubr.bf16.gmra.mrb[28].mxu1 %v1412_v47 }
  0xfa   : > { %v1213_v48 = vpop.f32.mrb[0].mxu0  ;;  %v1261_v49 = vpop.f32.mrb[0].mxu1 }
  0xfb   : > { %v1214_v50 = vpop.f32.mrb[1].mxu0  ;;  %v1262_v52 = vpop.f32.mrb[1].mxu1 }
  0xfc   : > { %v1215_v53 = vadd.f32 %v1214_v50, %v1213_v48  ;;  %v1263_v54 = vadd.f32 %v1262_v52, %v1261_v49  ;;  %v1216_v55 = vpop.f32.mrb[2].mxu0  ;;  %v1264_v56 = vpop.f32.mrb[2].mxu1 }
  0xfd   : > { %v1217_v57 = vpop.f32.mrb[3].mxu0  ;;  %v1265_v58 = vpop.f32.mrb[3].mxu1 }
  0xfe   : > { %v923_v59 = vadd.f32 %v1215_v53, %v1568_v51  ;;  %v939_v60 = vadd.f32 %v1263_v54, %v1568_v51  ;;  %v1218_v61 = vadd.f32 %v1217_v57, %v1216_v55  ;;  %v1266_v62 = vadd.f32 %v1265_v58, %v1264_v56 }
 0x100   : > { %v955_v63 = vmax.f32 %v923_v59, 0.0  ;;  %v971_v0 = vmax.f32 %v939_v60, 0.0  ;;  %v924_v1 = vadd.f32 %v1218_v61, %v1568_v51  ;;  %v940_v2 = vadd.f32 %v1266_v62, %v1568_v51 }
 0x102   : > { %987 = vst [vmem:[%s1577_s8] sm:$0xff] %v955_v63  ;;  %1003 = vst [vmem:[%s1577_s8 + $0x80] sm:$0xff] %v971_v0  ;;  %v956_v3 = vmax.f32 %v924_v1, 0.0  ;;  %v972_v4 = vmax.f32 %v940_v2, 0.0  ;;  %v1219_v5 = vpop.f32.mrb[4].mxu0  ;;  %v1267_v6 = vpop.f32.mrb[4].mxu1 }
 0x103   : > { %v1220_v7 = vpop.f32.mrb[5].mxu0  ;;  %v1268_v8 = vpop.f32.mrb[5].mxu1 }
 0x104   : > { %988 = vst [vmem:[%s1577_s8 + $0x8] sm:$0xff] %v956_v3  ;;  %1004 = vst [vmem:[%s1577_s8 + $0x88] sm:$0xff] %v972_v4  ;;  %v1221_v9 = vadd.f32 %v1220_v7, %v1219_v5  ;;  %v1269_v10 = vadd.f32 %v1268_v8, %v1267_v6  ;;  %v1222_v11 = vpop.f32.mrb[6].mxu0  ;;  %v1270_v12 = vpop.f32.mrb[6].mxu1 }
 0x105   : > { %v1223_v13 = vpop.f32.mrb[7].mxu0  ;;  %v1271_v14 = vpop.f32.mrb[7].mxu1 }
 0x106   : > { %v925_v15 = vadd.f32 %v1221_v9, %v1568_v51  ;;  %v941_v16 = vadd.f32 %v1269_v10, %v1568_v51  ;;  %v1224_v17 = vadd.f32 %v1223_v13, %v1222_v11  ;;  %v1272_v18 = vadd.f32 %v1271_v14, %v1270_v12 }
 0x108   : > { %v957_v19 = vmax.f32 %v925_v15, 0.0  ;;  %v973_v20 = vmax.f32 %v941_v16, 0.0  ;;  %v926_v21 = vadd.f32 %v1224_v17, %v1568_v51  ;;  %v942_v22 = vadd.f32 %v1272_v18, %v1568_v51 }
 0x10a   : > { %989 = vst [vmem:[%s1577_s8 + $0x10] sm:$0xff] %v957_v19  ;;  %1005 = vst [vmem:[%s1577_s8 + $0x90] sm:$0xff] %v973_v20  ;;  %v958_v23 = vmax.f32 %v926_v21, 0.0  ;;  %v974_v24 = vmax.f32 %v942_v22, 0.0  ;;  %v1225_v25 = vpop.f32.mrb[8].mxu0  ;;  %v1273_v26 = vpop.f32.mrb[8].mxu1 }
 0x10b   : > { %v1226_v27 = vpop.f32.mrb[9].mxu0  ;;  %v1274_v28 = vpop.f32.mrb[9].mxu1 }
 0x10c   : > { %990 = vst [vmem:[%s1577_s8 + $0x18] sm:$0xff] %v958_v23  ;;  %1006 = vst [vmem:[%s1577_s8 + $0x98] sm:$0xff] %v974_v24  ;;  %v1227_v29 = vadd.f32 %v1226_v27, %v1225_v25  ;;  %v1275_v30 = vadd.f32 %v1274_v28, %v1273_v26  ;;  %v1228_v31 = vpop.f32.mrb[10].mxu0  ;;  %v1276_v32 = vpop.f32.mrb[10].mxu1 }
 0x10d   : > { %v1229_v33 = vpop.f32.mrb[11].mxu0  ;;  %v1277_v34 = vpop.f32.mrb[11].mxu1 }
 0x10e   : > { %v927_v35 = vadd.f32 %v1227_v29, %v1568_v51  ;;  %v943_v36 = vadd.f32 %v1275_v30, %v1568_v51  ;;  %v1230_v37 = vadd.f32 %v1229_v33, %v1228_v31  ;;  %v1278_v38 = vadd.f32 %v1277_v34, %v1276_v32 }
 0x110   : > { %v959_v39 = vmax.f32 %v927_v35, 0.0  ;;  %v975_v40 = vmax.f32 %v943_v36, 0.0  ;;  %v928_v41 = vadd.f32 %v1230_v37, %v1568_v51  ;;  %v944_v42 = vadd.f32 %v1278_v38, %v1568_v51 }
 0x112   : > { %991 = vst [vmem:[%s1577_s8 + $0x20] sm:$0xff] %v959_v39  ;;  %1007 = vst [vmem:[%s1577_s8 + $0xa0] sm:$0xff] %v975_v40  ;;  %v960_v43 = vmax.f32 %v928_v41, 0.0  ;;  %v976_v44 = vmax.f32 %v944_v42, 0.0  ;;  %v1231_v45 = vpop.f32.mrb[12].mxu0  ;;  %v1279_v46 = vpop.f32.mrb[12].mxu1 }
 0x113   : > { %v1232_v47 = vpop.f32.mrb[13].mxu0  ;;  %v1280_v48 = vpop.f32.mrb[13].mxu1 }
 0x114   : > { %992 = vst [vmem:[%s1577_s8 + $0x28] sm:$0xff] %v960_v43  ;;  %1008 = vst [vmem:[%s1577_s8 + $0xa8] sm:$0xff] %v976_v44  ;;  %v1233_v49 = vadd.f32 %v1232_v47, %v1231_v45  ;;  %v1281_v50 = vadd.f32 %v1280_v48, %v1279_v46  ;;  %v1234_v52 = vpop.f32.mrb[14].mxu0  ;;  %v1282_v53 = vpop.f32.mrb[14].mxu1 }
 0x115   : > { %v1235_v54 = vpop.f32.mrb[15].mxu0  ;;  %v1283_v55 = vpop.f32.mrb[15].mxu1 }
 0x116   : > { %v929_v56 = vadd.f32 %v1233_v49, %v1568_v51  ;;  %v945_v57 = vadd.f32 %v1281_v50, %v1568_v51  ;;  %v1236_v58 = vadd.f32 %v1235_v54, %v1234_v52  ;;  %v1284_v59 = vadd.f32 %v1283_v55, %v1282_v53 }
 0x118   : > { %v961_v60 = vmax.f32 %v929_v56, 0.0  ;;  %v977_v61 = vmax.f32 %v945_v57, 0.0  ;;  %v930_v62 = vadd.f32 %v1236_v58, %v1568_v51  ;;  %v946_v63 = vadd.f32 %v1284_v59, %v1568_v51 }
 0x11a   : > { %993 = vst [vmem:[%s1577_s8 + $0x30] sm:$0xff] %v961_v60  ;;  %1009 = vst [vmem:[%s1577_s8 + $0xb0] sm:$0xff] %v977_v61  ;;  %v962_v0 = vmax.f32 %v930_v62, 0.0  ;;  %v978_v1 = vmax.f32 %v946_v63, 0.0  ;;  %v1237_v2 = vpop.f32.mrb[16].mxu0  ;;  %v1285_v3 = vpop.f32.mrb[16].mxu1 }
 0x11b   : > { %v1238_v4 = vpop.f32.mrb[17].mxu0  ;;  %v1286_v5 = vpop.f32.mrb[17].mxu1 }
 0x11c   : > { %994 = vst [vmem:[%s1577_s8 + $0x38] sm:$0xff] %v962_v0  ;;  %1010 = vst [vmem:[%s1577_s8 + $0xb8] sm:$0xff] %v978_v1  ;;  %v1239_v6 = vadd.f32 %v1238_v4, %v1237_v2  ;;  %v1287_v7 = vadd.f32 %v1286_v5, %v1285_v3  ;;  %v1240_v8 = vpop.f32.mrb[18].mxu0  ;;  %v1288_v9 = vpop.f32.mrb[18].mxu1 }
 0x11d   : > { %v1241_v10 = vpop.f32.mrb[19].mxu0  ;;  %v1289_v11 = vpop.f32.mrb[19].mxu1 }
 0x11e   : > { %v931_v12 = vadd.f32 %v1239_v6, %v1568_v51  ;;  %v947_v13 = vadd.f32 %v1287_v7, %v1568_v51  ;;  %v1242_v14 = vadd.f32 %v1241_v10, %v1240_v8  ;;  %v1290_v15 = vadd.f32 %v1289_v11, %v1288_v9 }
 0x120   : > { %v963_v16 = vmax.f32 %v931_v12, 0.0  ;;  %v979_v17 = vmax.f32 %v947_v13, 0.0  ;;  %v932_v18 = vadd.f32 %v1242_v14, %v1568_v51  ;;  %v948_v19 = vadd.f32 %v1290_v15, %v1568_v51 }
 0x122   : > { %995 = vst [vmem:[%s1577_s8 + $0x40] sm:$0xff] %v963_v16  ;;  %1011 = vst [vmem:[%s1577_s8 + $0xc0] sm:$0xff] %v979_v17  ;;  %v964_v20 = vmax.f32 %v932_v18, 0.0  ;;  %v980_v21 = vmax.f32 %v948_v19, 0.0  ;;  %v1243_v22 = vpop.f32.mrb[20].mxu0  ;;  %v1291_v23 = vpop.f32.mrb[20].mxu1 }
 0x123   : > { %v1244_v24 = vpop.f32.mrb[21].mxu0  ;;  %v1292_v25 = vpop.f32.mrb[21].mxu1 }
 0x124   : > { %996 = vst [vmem:[%s1577_s8 + $0x48] sm:$0xff] %v964_v20  ;;  %1012 = vst [vmem:[%s1577_s8 + $0xc8] sm:$0xff] %v980_v21  ;;  %v1245_v26 = vadd.f32 %v1244_v24, %v1243_v22  ;;  %v1293_v27 = vadd.f32 %v1292_v25, %v1291_v23  ;;  %v1246_v28 = vpop.f32.mrb[22].mxu0  ;;  %v1294_v29 = vpop.f32.mrb[22].mxu1 }
 0x125   : > { %v1247_v30 = vpop.f32.mrb[23].mxu0  ;;  %v1295_v31 = vpop.f32.mrb[23].mxu1 }
 0x126   : > { %v933_v32 = vadd.f32 %v1245_v26, %v1568_v51  ;;  %v949_v33 = vadd.f32 %v1293_v27, %v1568_v51  ;;  %v1248_v34 = vadd.f32 %v1247_v30, %v1246_v28  ;;  %v1296_v35 = vadd.f32 %v1295_v31, %v1294_v29 }
 0x128   : > { %v965_v36 = vmax.f32 %v933_v32, 0.0  ;;  %v981_v37 = vmax.f32 %v949_v33, 0.0  ;;  %v934_v38 = vadd.f32 %v1248_v34, %v1568_v51  ;;  %v950_v39 = vadd.f32 %v1296_v35, %v1568_v51 }
 0x12a   : > { %997 = vst [vmem:[%s1577_s8 + $0x50] sm:$0xff] %v965_v36  ;;  %1013 = vst [vmem:[%s1577_s8 + $0xd0] sm:$0xff] %v981_v37  ;;  %v966_v40 = vmax.f32 %v934_v38, 0.0  ;;  %v982_v41 = vmax.f32 %v950_v39, 0.0  ;;  %v1249_v42 = vpop.f32.mrb[24].mxu0  ;;  %v1297_v43 = vpop.f32.mrb[24].mxu1 }
 0x12b   : > { %v1250_v44 = vpop.f32.mrb[25].mxu0  ;;  %v1298_v45 = vpop.f32.mrb[25].mxu1 }
 0x12c   : > { %998 = vst [vmem:[%s1577_s8 + $0x58] sm:$0xff] %v966_v40  ;;  %1014 = vst [vmem:[%s1577_s8 + $0xd8] sm:$0xff] %v982_v41  ;;  %v1251_v46 = vadd.f32 %v1250_v44, %v1249_v42  ;;  %v1299_v47 = vadd.f32 %v1298_v45, %v1297_v43  ;;  %v1252_v48 = vpop.f32.mrb[26].mxu0  ;;  %v1300_v49 = vpop.f32.mrb[26].mxu1 }
 0x12d   : > { %v1253_v50 = vpop.f32.mrb[27].mxu0  ;;  %v1301_v52 = vpop.f32.mrb[27].mxu1 }
 0x12e   : > { %v935_v53 = vadd.f32 %v1251_v46, %v1568_v51  ;;  %v951_v54 = vadd.f32 %v1299_v47, %v1568_v51  ;;  %v1254_v55 = vadd.f32 %v1253_v50, %v1252_v48  ;;  %v1302_v56 = vadd.f32 %v1301_v52, %v1300_v49 }
 0x130   : > { %v967_v57 = vmax.f32 %v935_v53, 0.0  ;;  %v983_v58 = vmax.f32 %v951_v54, 0.0  ;;  %v936_v59 = vadd.f32 %v1254_v55, %v1568_v51  ;;  %v952_v60 = vadd.f32 %v1302_v56, %v1568_v51 }
 0x132   : > { %999 = vst [vmem:[%s1577_s8 + $0x60] sm:$0xff] %v967_v57  ;;  %1015 = vst [vmem:[%s1577_s8 + $0xe0] sm:$0xff] %v983_v58  ;;  %v968_v61 = vmax.f32 %v936_v59, 0.0  ;;  %v984_v62 = vmax.f32 %v952_v60, 0.0  ;;  %v1255_v63 = vpop.f32.mrb[28].mxu0  ;;  %v1303_v0 = vpop.f32.mrb[28].mxu1 }
 0x133   : > { %v1256_v1 = vpop.f32.mrb[29].mxu0  ;;  %v1304_v2 = vpop.f32.mrb[29].mxu1 }
 0x134   : > { %1000 = vst [vmem:[%s1577_s8 + $0x68] sm:$0xff] %v968_v61  ;;  %1016 = vst [vmem:[%s1577_s8 + $0xe8] sm:$0xff] %v984_v62  ;;  %v1257_v3 = vadd.f32 %v1256_v1, %v1255_v63  ;;  %v1305_v4 = vadd.f32 %v1304_v2, %v1303_v0  ;;  %v1258_v5 = vpop.f32.mrb[30].mxu0  ;;  %v1306_v6 = vpop.f32.mrb[30].mxu1 }
 0x135   : > { %v1259_v7 = vpop.f32.mrb[31].mxu0  ;;  %v1307_v8 = vpop.f32.mrb[31].mxu1 }
 0x136   : > { %v937_v9 = vadd.f32 %v1257_v3, %v1568_v51  ;;  %v953_v10 = vadd.f32 %v1305_v4, %v1568_v51  ;;  %v1260_v11 = vadd.f32 %v1259_v7, %v1258_v5  ;;  %v1308_v12 = vadd.f32 %v1307_v8, %v1306_v6 }
 0x138   : > { %v969_v13 = vmax.f32 %v937_v9, 0.0  ;;  %v985_v14 = vmax.f32 %v953_v10, 0.0  ;;  %v938_v15 = vadd.f32 %v1260_v11, %v1568_v51  ;;  %v954_v16 = vadd.f32 %v1308_v12, %v1568_v51 }
 0x13a   : > { %1001 = vst [vmem:[%s1577_s8 + $0x70] sm:$0xff] %v969_v13  ;;  %1017 = vst [vmem:[%s1577_s8 + $0xf0] sm:$0xff] %v985_v14  ;;  %v970_v17 = vmax.f32 %v938_v15, 0.0  ;;  %v986_v18 = vmax.f32 %v954_v16, 0.0 }
 0x13c   : > { %1002 = vst [vmem:[%s1577_s8 + $0x78] sm:$0xff] %v970_v17  ;;  %1018 = vst [vmem:[%s1577_s8 + $0xf8] sm:$0xff] %v986_v18 }
 0x13d PF: > { %s13_s14 = sadd.s32 1, %s1435_s14   ;;  %s1654_s12 = smov %s1431_s13 }
 0x13e   : > { %p10_p5 = scmp.ge.s32.totalorder %s13_s14, 4   ;;  %s1655_s13 = smov %s1657_s15 }
 0x140   :  { %12 = sbr.rel (!%p10_p5) target bundleno = 2 (0x2), region = 76 }

// kernel: resnet_forward.25
= control target key start
LH: loop header
LB: loop body
LE: loop exit
PB: predicated region body
PF: predicated region fallthrough
CT: control target
= control target key end

     0   :  { %s790_s0 = inlined_call_operand.vmem [shape: f32[9,128,128], index: 0, kind: input, shape index: {}]   ;;  %s791_s1 = inlined_call_operand.vmem [shape: f32[128,128], index: 1, kind: output, shape index: {}]  }
   0x1   :  { %v8_v0 = vld [vmem:[%s790_s0] sm:$0xff]  ;;  %v9_v6 = vld [vmem:[%s790_s0 + $0x8] sm:$0xff]  ;;  %v10_v15 = vld [vmem:[%s790_s0 + $0x10] sm:$0xff] }
   0x2   :  { %v24_v1 = vld [vmem:[%s790_s0 + $0x80] sm:$0xff]  ;;  %v25_v7 = vld [vmem:[%s790_s0 + $0x88] sm:$0xff]  ;;  %v26_v16 = vld [vmem:[%s790_s0 + $0x90] sm:$0xff] }
   0x3   :  { %v40_v2 = vld [vmem:[%s790_s0 + $0x100] sm:$0xff]  ;;  %v152_v3 = vmax.f32 %v8_v0, %v24_v1  ;;  %v41_v8 = vld [vmem:[%s790_s0 + $0x108] sm:$0xff]  ;;  %v160_v10 = vmax.f32 %v9_v6, %v25_v7  ;;  %v42_v17 = vld [vmem:[%s790_s0 + $0x110] sm:$0xff]  ;;  %v168_v20 = vmax.f32 %v10_v15, %v26_v16 }
   0x4   :  { %v56_v4 = vld [vmem:[%s790_s0 + $0x180] sm:$0xff]  ;;  %v57_v13 = vld [vmem:[%s790_s0 + $0x188] sm:$0xff]  ;;  %v58_v24 = vld [vmem:[%s790_s0 + $0x190] sm:$0xff] }
   0x5   :  { %v153_v5 = vmax.f32 %v152_v3, %v40_v2  ;;  %v72_v9 = vld [vmem:[%s790_s0 + $0x200] sm:$0xff]  ;;  %v161_v14 = vmax.f32 %v160_v10, %v41_v8  ;;  %v73_v19 = vld [vmem:[%s790_s0 + $0x208] sm:$0xff]  ;;  %v169_v26 = vmax.f32 %v168_v20, %v42_v17  ;;  %v11_v27 = vld [vmem:[%s790_s0 + $0x18] sm:$0xff] }
   0x6   :  { %v88_v11 = vld [vmem:[%s790_s0 + $0x280] sm:$0xff]  ;;  %v89_v22 = vld [vmem:[%s790_s0 + $0x288] sm:$0xff]  ;;  %v27_v28 = vld [vmem:[%s790_s0 + $0x98] sm:$0xff] }
   0x7   :  { %v154_v12 = vmax.f32 %v153_v5, %v56_v4  ;;  %v104_v21 = vld [vmem:[%s790_s0 + $0x300] sm:$0xff]  ;;  %v162_v23 = vmax.f32 %v161_v14, %v57_v13  ;;  %v43_v29 = vld [vmem:[%s790_s0 + $0x118] sm:$0xff]  ;;  %v74_v33 = vld [vmem:[%s790_s0 + $0x210] sm:$0xff]  ;;  %v176_v34 = vmax.f32 %v11_v27, %v27_v28  ;;  %v170_v38 = vmax.f32 %v169_v26, %v58_v24 }
   0x8   :  { %v120_v30 = vld [vmem:[%s790_s0 + $0x380] sm:$0xff]  ;;  %v105_v36 = vld [vmem:[%s790_s0 + $0x308] sm:$0xff]  ;;  %v90_v37 = vld [vmem:[%s790_s0 + $0x290] sm:$0xff] }
   0x9   :  { %v155_v18 = vmax.f32 %v154_v12, %v72_v9  ;;  %v136_v31 = vld [vmem:[%s790_s0 + $0x400] sm:$0xff]  ;;  %v163_v32 = vmax.f32 %v162_v23, %v73_v19  ;;  %v59_v39 = vld [vmem:[%s790_s0 + $0x198] sm:$0xff]  ;;  %v177_v41 = vmax.f32 %v176_v34, %v43_v29  ;;  %v121_v46 = vld [vmem:[%s790_s0 + $0x388] sm:$0xff]  ;;  %v171_v48 = vmax.f32 %v170_v38, %v74_v33 }
   0xa   :  { %v12_v42 = vld [vmem:[%s790_s0 + $0x20] sm:$0xff]  ;;  %v137_v47 = vld [vmem:[%s790_s0 + $0x408] sm:$0xff]  ;;  %v75_v49 = vld [vmem:[%s790_s0 + $0x218] sm:$0xff] }
   0xb   :  { %v156_v25 = vmax.f32 %v155_v18, %v88_v11  ;;  %v164_v40 = vmax.f32 %v163_v32, %v89_v22  ;;  %v28_v43 = vld [vmem:[%s790_s0 + $0xa0] sm:$0xff]  ;;  %v106_v52 = vld [vmem:[%s790_s0 + $0x310] sm:$0xff]  ;;  %v91_v53 = vld [vmem:[%s790_s0 + $0x298] sm:$0xff]  ;;  %v178_v54 = vmax.f32 %v177_v41, %v59_v39  ;;  %v172_v57 = vmax.f32 %v171_v48, %v90_v37 }
   0xc   :  { %v44_v44 = vld [vmem:[%s790_s0 + $0x120] sm:$0xff]  ;;  %v184_v50 = vmax.f32 %v12_v42, %v28_v43  ;;  %v13_v59 = vld [vmem:[%s790_s0 + $0x28] sm:$0xff]  ;;  %v122_v63 = vld [vmem:[%s790_s0 + $0x390] sm:$0xff] }
   0xd   :  { %v157_v35 = vmax.f32 %v156_v25, %v104_v21  ;;  %v165_v51 = vmax.f32 %v164_v40, %v105_v36  ;;  %v60_v55 = vld [vmem:[%s790_s0 + $0x1a0] sm:$0xff]  ;;  %v29_v60 = vld [vmem:[%s790_s0 + $0xa8] sm:$0xff]  ;;  %v138_v0 = vld [vmem:[%s790_s0 + $0x410] sm:$0xff]  ;;  %v179_v1 = vmax.f32 %v178_v54, %v75_v49  ;;  %v173_v4 = vmax.f32 %v172_v57, %v106_v52 }
   0xe   :  { %v185_v58 = vmax.f32 %v184_v50, %v44_v44  ;;  %v45_v61 = vld [vmem:[%s790_s0 + $0x128] sm:$0xff]  ;;  %v76_v2 = vld [vmem:[%s790_s0 + $0x220] sm:$0xff]  ;;  %v192_v3 = vmax.f32 %v13_v59, %v29_v60  ;;  %v107_v5 = vld [vmem:[%s790_s0 + $0x318] sm:$0xff] }
   0xf   :  { %v158_v45 = vmax.f32 %v157_v35, %v120_v30  ;;  %v166_v62 = vmax.f32 %v165_v51, %v121_v46  ;;  %v92_v6 = vld [vmem:[%s790_s0 + $0x2a0] sm:$0xff]  ;;  %v61_v8 = vld [vmem:[%s790_s0 + $0x1a8] sm:$0xff]  ;;  %v180_v10 = vmax.f32 %v179_v1, %v91_v53  ;;  %v14_v12 = vld [vmem:[%s790_s0 + $0x30] sm:$0xff]  ;;  %v174_v15 = vmax.f32 %v173_v4, %v122_v63 }
  0x10   :  { %v186_v7 = vmax.f32 %v185_v58, %v60_v55  ;;  %v193_v11 = vmax.f32 %v192_v3, %v45_v61  ;;  %v30_v13 = vld [vmem:[%s790_s0 + $0xb0] sm:$0xff]  ;;  %v123_v16 = vld [vmem:[%s790_s0 + $0x398] sm:$0xff]  ;;  %v77_v19 = vld [vmem:[%s790_s0 + $0x228] sm:$0xff] }
  0x11   :  { %v159_v56 = vmax.f32 %v158_v45, %v136_v31  ;;  %v167_v9 = vmax.f32 %v166_v62, %v137_v47  ;;  %v46_v14 = vld [vmem:[%s790_s0 + $0x130] sm:$0xff]  ;;  %v139_v17 = vld [vmem:[%s790_s0 + $0x418] sm:$0xff]  ;;  %v200_v20 = vmax.f32 %v14_v12, %v30_v13  ;;  %v181_v21 = vmax.f32 %v180_v10, %v107_v5  ;;  %v108_v22 = vld [vmem:[%s790_s0 + $0x320] sm:$0xff] }
  0x12   :  { %v187_v18 = vmax.f32 %v186_v7, %v76_v2  ;;  %v93_v23 = vld [vmem:[%s790_s0 + $0x2a8] sm:$0xff]  ;;  %v194_v24 = vmax.f32 %v193_v11, %v61_v8  ;;  %v62_v25 = vld [vmem:[%s790_s0 + $0x1b0] sm:$0xff]  ;;  %v175_v26 = vmax.f32 %v174_v15, %v138_v0  ;;  %v15_v29 = vld [vmem:[%s790_s0 + $0x38] sm:$0xff] }
  0x13   :  { %280 = vst [vmem:[%s791_s1] sm:$0xff] %v159_v56  ;;  %281 = vst [vmem:[%s791_s1 + $0x8] sm:$0xff] %v167_v9  ;;  %v201_v28 = vmax.f32 %v200_v20, %v46_v14  ;;  %v31_v30 = vld [vmem:[%s790_s0 + $0xb8] sm:$0xff]  ;;  %v182_v32 = vmax.f32 %v181_v21, %v123_v16  ;;  %v124_v33 = vld [vmem:[%s790_s0 + $0x3a0] sm:$0xff] }
  0x14   :  { %v188_v27 = vmax.f32 %v187_v18, %v92_v6  ;;  %v47_v31 = vld [vmem:[%s790_s0 + $0x138] sm:$0xff]  ;;  %v140_v34 = vld [vmem:[%s790_s0 + $0x420] sm:$0xff]  ;;  %v195_v35 = vmax.f32 %v194_v24, %v77_v19  ;;  %v78_v36 = vld [vmem:[%s790_s0 + $0x230] sm:$0xff]  ;;  %v208_v37 = vmax.f32 %v15_v29, %v31_v30  ;;  %282 = vst [vmem:[%s791_s1 + $0x10] sm:$0xff] %v175_v26 }
  0x15   :  { %v109_v39 = vld [vmem:[%s790_s0 + $0x328] sm:$0xff]  ;;  %v94_v40 = vld [vmem:[%s790_s0 + $0x2b0] sm:$0xff]  ;;  %v202_v41 = vmax.f32 %v201_v28, %v62_v25  ;;  %v63_v42 = vld [vmem:[%s790_s0 + $0x1b8] sm:$0xff]  ;;  %v183_v43 = vmax.f32 %v182_v32, %v139_v17 }
  0x16   :  { %v189_v38 = vmax.f32 %v188_v27, %v108_v22  ;;  %v196_v44 = vmax.f32 %v195_v35, %v93_v23  ;;  %v209_v45 = vmax.f32 %v208_v37, %v47_v31  ;;  %v16_v46 = vld [vmem:[%s790_s0 + $0x40] sm:$0xff]  ;;  %v125_v50 = vld [vmem:[%s790_s0 + $0x3a8] sm:$0xff]  ;;  %v79_v53 = vld [vmem:[%s790_s0 + $0x238] sm:$0xff] }
  0x17   :  { %v32_v47 = vld [vmem:[%s790_s0 + $0xc0] sm:$0xff]  ;;  %v141_v51 = vld [vmem:[%s790_s0 + $0x428] sm:$0xff]  ;;  %v203_v52 = vmax.f32 %v202_v41, %v78_v36  ;;  %283 = vst [vmem:[%s791_s1 + $0x18] sm:$0xff] %v183_v43  ;;  %v110_v56 = vld [vmem:[%s790_s0 + $0x330] sm:$0xff] }
  0x18   :  { %v48_v48 = vld [vmem:[%s790_s0 + $0x140] sm:$0xff]  ;;  %v190_v49 = vmax.f32 %v189_v38, %v124_v33  ;;  %v216_v54 = vmax.f32 %v16_v46, %v32_v47  ;;  %v197_v55 = vmax.f32 %v196_v44, %v109_v39  ;;  %v95_v57 = vld [vmem:[%s790_s0 + $0x2b8] sm:$0xff]  ;;  %v210_v58 = vmax.f32 %v209_v45, %v63_v42  ;;  %v17_v63 = vld [vmem:[%s790_s0 + $0x48] sm:$0xff] }
  0x19   :  { %v64_v59 = vld [vmem:[%s790_s0 + $0x1c0] sm:$0xff]  ;;  %v204_v61 = vmax.f32 %v203_v52, %v94_v40  ;;  %v33_v0 = vld [vmem:[%s790_s0 + $0xc8] sm:$0xff]  ;;  %v126_v3 = vld [vmem:[%s790_s0 + $0x3b0] sm:$0xff] }
  0x1a   :  { %v191_v60 = vmax.f32 %v190_v49, %v140_v34  ;;  %v217_v62 = vmax.f32 %v216_v54, %v48_v48  ;;  %v49_v1 = vld [vmem:[%s790_s0 + $0x148] sm:$0xff]  ;;  %v198_v2 = vmax.f32 %v197_v55, %v125_v50  ;;  %v142_v4 = vld [vmem:[%s790_s0 + $0x430] sm:$0xff]  ;;  %v211_v5 = vmax.f32 %v210_v58, %v79_v53  ;;  %v80_v6 = vld [vmem:[%s790_s0 + $0x240] sm:$0xff] }
  0x1b   :  { %v224_v7 = vmax.f32 %v17_v63, %v33_v0  ;;  %v205_v8 = vmax.f32 %v204_v61, %v110_v56  ;;  %v111_v9 = vld [vmem:[%s790_s0 + $0x338] sm:$0xff]  ;;  %v96_v10 = vld [vmem:[%s790_s0 + $0x2c0] sm:$0xff]  ;;  %v65_v12 = vld [vmem:[%s790_s0 + $0x1c8] sm:$0xff] }
  0x1c   :  { %284 = vst [vmem:[%s791_s1 + $0x20] sm:$0xff] %v191_v60  ;;  %v218_v11 = vmax.f32 %v217_v62, %v64_v59  ;;  %v199_v13 = vmax.f32 %v198_v2, %v141_v51  ;;  %v212_v14 = vmax.f32 %v211_v5, %v95_v57  ;;  %v18_v16 = vld [vmem:[%s790_s0 + $0x50] sm:$0xff]  ;;  %v127_v20 = vld [vmem:[%s790_s0 + $0x3b8] sm:$0xff]  ;;  %v81_v23 = vld [vmem:[%s790_s0 + $0x248] sm:$0xff] }
  0x1d   :  { %v225_v15 = vmax.f32 %v224_v7, %v49_v1  ;;  %v34_v17 = vld [vmem:[%s790_s0 + $0xd0] sm:$0xff]  ;;  %v206_v19 = vmax.f32 %v205_v8, %v126_v3  ;;  %v143_v21 = vld [vmem:[%s790_s0 + $0x438] sm:$0xff]  ;;  %v112_v26 = vld [vmem:[%s790_s0 + $0x340] sm:$0xff] }
  0x1e   :  { %v50_v18 = vld [vmem:[%s790_s0 + $0x150] sm:$0xff]  ;;  %v219_v22 = vmax.f32 %v218_v11, %v80_v6  ;;  %v232_v24 = vmax.f32 %v18_v16, %v34_v17  ;;  %285 = vst [vmem:[%s791_s1 + $0x28] sm:$0xff] %v199_v13  ;;  %v213_v25 = vmax.f32 %v212_v14, %v111_v9  ;;  %v97_v27 = vld [vmem:[%s790_s0 + $0x2c8] sm:$0xff]  ;;  %v19_v33 = vld [vmem:[%s790_s0 + $0x58] sm:$0xff] }
  0x1f   :  { %v226_v28 = vmax.f32 %v225_v15, %v65_v12  ;;  %v66_v29 = vld [vmem:[%s790_s0 + $0x1d0] sm:$0xff]  ;;  %v207_v30 = vmax.f32 %v206_v19, %v142_v4  ;;  %v35_v34 = vld [vmem:[%s790_s0 + $0xd8] sm:$0xff]  ;;  %v128_v37 = vld [vmem:[%s790_s0 + $0x3c0] sm:$0xff] }
  0x20   :  { %v220_v31 = vmax.f32 %v219_v22, %v96_v10  ;;  %v233_v32 = vmax.f32 %v232_v24, %v50_v18  ;;  %v51_v35 = vld [vmem:[%s790_s0 + $0x158] sm:$0xff]  ;;  %v214_v36 = vmax.f32 %v213_v25, %v127_v20  ;;  %v144_v38 = vld [vmem:[%s790_s0 + $0x440] sm:$0xff]  ;;  %v82_v40 = vld [vmem:[%s790_s0 + $0x250] sm:$0xff]  ;;  %v240_v41 = vmax.f32 %v19_v33, %v35_v34 }
  0x21   :  { %v227_v39 = vmax.f32 %v226_v28, %v81_v23  ;;  %286 = vst [vmem:[%s791_s1 + $0x30] sm:$0xff] %v207_v30  ;;  %v113_v43 = vld [vmem:[%s790_s0 + $0x348] sm:$0xff]  ;;  %v98_v44 = vld [vmem:[%s790_s0 + $0x2d0] sm:$0xff]  ;;  %v67_v46 = vld [vmem:[%s790_s0 + $0x1d8] sm:$0xff] }
  0x22   :  { %v221_v42 = vmax.f32 %v220_v31, %v112_v26  ;;  %v234_v45 = vmax.f32 %v233_v32, %v66_v29  ;;  %v215_v47 = vmax.f32 %v214_v36, %v143_v21  ;;  %v241_v49 = vmax.f32 %v240_v41, %v51_v35  ;;  %v20_v50 = vld [vmem:[%s790_s0 + $0x60] sm:$0xff]  ;;  %v129_v54 = vld [vmem:[%s790_s0 + $0x3c8] sm:$0xff]  ;;  %v83_v57 = vld [vmem:[%s790_s0 + $0x258] sm:$0xff] }
  0x23   :  { %v228_v48 = vmax.f32 %v227_v39, %v97_v27  ;;  %v36_v51 = vld [vmem:[%s790_s0 + $0xe0] sm:$0xff]  ;;  %v145_v55 = vld [vmem:[%s790_s0 + $0x448] sm:$0xff]  ;;  %v114_v60 = vld [vmem:[%s790_s0 + $0x350] sm:$0xff] }
  0x24   :  { %v52_v52 = vld [vmem:[%s790_s0 + $0x160] sm:$0xff]  ;;  %v222_v53 = vmax.f32 %v221_v42, %v128_v37  ;;  %v235_v56 = vmax.f32 %v234_v45, %v82_v40  ;;  %v248_v58 = vmax.f32 %v20_v50, %v36_v51  ;;  %287 = vst [vmem:[%s791_s1 + $0x38] sm:$0xff] %v215_v47  ;;  %v99_v61 = vld [vmem:[%s790_s0 + $0x2d8] sm:$0xff]  ;;  %v242_v62 = vmax.f32 %v241_v49, %v67_v46  ;;  %v21_v3 = vld [vmem:[%s790_s0 + $0x68] sm:$0xff] }
  0x25   :  { %v229_v59 = vmax.f32 %v228_v48, %v113_v43  ;;  %v68_v63 = vld [vmem:[%s790_s0 + $0x1e0] sm:$0xff]  ;;  %v37_v4 = vld [vmem:[%s790_s0 + $0xe8] sm:$0xff]  ;;  %v130_v7 = vld [vmem:[%s790_s0 + $0x3d0] sm:$0xff] }
  0x26   :  { %v223_v0 = vmax.f32 %v222_v53, %v144_v38  ;;  %v236_v1 = vmax.f32 %v235_v56, %v98_v44  ;;  %v249_v2 = vmax.f32 %v248_v58, %v52_v52  ;;  %v53_v5 = vld [vmem:[%s790_s0 + $0x168] sm:$0xff]  ;;  %v146_v8 = vld [vmem:[%s790_s0 + $0x450] sm:$0xff]  ;;  %v243_v9 = vmax.f32 %v242_v62, %v83_v57  ;;  %v84_v10 = vld [vmem:[%s790_s0 + $0x260] sm:$0xff] }
  0x27   :  { %v230_v6 = vmax.f32 %v229_v59, %v129_v54  ;;  %v256_v11 = vmax.f32 %v21_v3, %v37_v4  ;;  %v115_v13 = vld [vmem:[%s790_s0 + $0x358] sm:$0xff]  ;;  %v100_v14 = vld [vmem:[%s790_s0 + $0x2e0] sm:$0xff]  ;;  %v69_v16 = vld [vmem:[%s790_s0 + $0x1e8] sm:$0xff] }
  0x28   :  { %288 = vst [vmem:[%s791_s1 + $0x40] sm:$0xff] %v223_v0  ;;  %v237_v12 = vmax.f32 %v236_v1, %v114_v60  ;;  %v250_v15 = vmax.f32 %v249_v2, %v68_v63  ;;  %v244_v18 = vmax.f32 %v243_v9, %v99_v61  ;;  %v22_v20 = vld [vmem:[%s790_s0 + $0x70] sm:$0xff]  ;;  %v131_v24 = vld [vmem:[%s790_s0 + $0x3d8] sm:$0xff]  ;;  %v85_v27 = vld [vmem:[%s790_s0 + $0x268] sm:$0xff] }
  0x29   :  { %v231_v17 = vmax.f32 %v230_v6, %v145_v55  ;;  %v257_v19 = vmax.f32 %v256_v11, %v53_v5  ;;  %v38_v21 = vld [vmem:[%s790_s0 + $0xf0] sm:$0xff]  ;;  %v147_v25 = vld [vmem:[%s790_s0 + $0x458] sm:$0xff]  ;;  %v116_v30 = vld [vmem:[%s790_s0 + $0x360] sm:$0xff] }
  0x2a   :  { %v54_v22 = vld [vmem:[%s790_s0 + $0x170] sm:$0xff]  ;;  %v238_v23 = vmax.f32 %v237_v12, %v130_v7  ;;  %v251_v26 = vmax.f32 %v250_v15, %v84_v10  ;;  %v264_v28 = vmax.f32 %v22_v20, %v38_v21  ;;  %v245_v29 = vmax.f32 %v244_v18, %v115_v13  ;;  %v101_v31 = vld [vmem:[%s790_s0 + $0x2e8] sm:$0xff]  ;;  %v23_v37 = vld [vmem:[%s790_s0 + $0x78] sm:$0xff] }
  0x2b   :  { %289 = vst [vmem:[%s791_s1 + $0x48] sm:$0xff] %v231_v17  ;;  %v258_v32 = vmax.f32 %v257_v19, %v69_v16  ;;  %v70_v33 = vld [vmem:[%s790_s0 + $0x1f0] sm:$0xff]  ;;  %v39_v38 = vld [vmem:[%s790_s0 + $0xf8] sm:$0xff]  ;;  %v132_v41 = vld [vmem:[%s790_s0 + $0x3e0] sm:$0xff] }
  0x2c   :  { %v239_v34 = vmax.f32 %v238_v23, %v146_v8  ;;  %v252_v35 = vmax.f32 %v251_v26, %v100_v14  ;;  %v265_v36 = vmax.f32 %v264_v28, %v54_v22  ;;  %v55_v39 = vld [vmem:[%s790_s0 + $0x178] sm:$0xff]  ;;  %v246_v40 = vmax.f32 %v245_v29, %v131_v24  ;;  %v86_v43 = vld [vmem:[%s790_s0 + $0x270] sm:$0xff]  ;;  %v117_v46 = vld [vmem:[%s790_s0 + $0x368] sm:$0xff] }
  0x2d   :  { %v259_v42 = vmax.f32 %v258_v32, %v85_v27  ;;  %v272_v44 = vmax.f32 %v23_v37, %v39_v38  ;;  %v71_v48 = vld [vmem:[%s790_s0 + $0x1f8] sm:$0xff]  ;;  %v148_v50 = vld [vmem:[%s790_s0 + $0x460] sm:$0xff]  ;;  %v102_v52 = vld [vmem:[%s790_s0 + $0x2f0] sm:$0xff] }
  0x2e   :  { %290 = vst [vmem:[%s791_s1 + $0x50] sm:$0xff] %v239_v34  ;;  %v253_v45 = vmax.f32 %v252_v35, %v116_v30  ;;  %v266_v47 = vmax.f32 %v265_v36, %v70_v33  ;;  %v247_v49 = vmax.f32 %v246_v40, %v147_v25  ;;  %v133_v55 = vld [vmem:[%s790_s0 + $0x3e8] sm:$0xff]  ;;  %v87_v57 = vld [vmem:[%s790_s0 + $0x278] sm:$0xff]  ;;  %v118_v59 = vld [vmem:[%s790_s0 + $0x370] sm:$0xff] }
  0x2f   :  { %v260_v51 = vmax.f32 %v259_v42, %v101_v31  ;;  %v273_v53 = vmax.f32 %v272_v44, %v55_v39  ;;  %v149_v62 = vld [vmem:[%s790_s0 + $0x468] sm:$0xff]  ;;  %v103_v0 = vld [vmem:[%s790_s0 + $0x2f8] sm:$0xff]  ;;  %v134_v2 = vld [vmem:[%s790_s0 + $0x3f0] sm:$0xff] }
  0x30   :  { %v254_v54 = vmax.f32 %v253_v45, %v132_v41  ;;  %v267_v56 = vmax.f32 %v266_v47, %v86_v43  ;;  %291 = vst [vmem:[%s791_s1 + $0x58] sm:$0xff] %v247_v49  ;;  %v119_v5 = vld [vmem:[%s790_s0 + $0x378] sm:$0xff]  ;;  %v150_v7 = vld [vmem:[%s790_s0 + $0x470] sm:$0xff] }
  0x31   :  { %v261_v58 = vmax.f32 %v260_v51, %v117_v46  ;;  %v274_v60 = vmax.f32 %v273_v53, %v71_v48  ;;  %v135_v10 = vld [vmem:[%s790_s0 + $0x3f8] sm:$0xff] }
  0x32   :  { %v255_v61 = vmax.f32 %v254_v54, %v148_v50  ;;  %v268_v63 = vmax.f32 %v267_v56, %v102_v52  ;;  %v151_v13 = vld [vmem:[%s790_s0 + $0x478] sm:$0xff] }
  0x33   :  { %v262_v1 = vmax.f32 %v261_v58, %v133_v55  ;;  %v275_v3 = vmax.f32 %v274_v60, %v87_v57 }
  0x34   :  { %292 = vst [vmem:[%s791_s1 + $0x60] sm:$0xff] %v255_v61  ;;  %v269_v4 = vmax.f32 %v268_v63, %v118_v59 }
  0x35   :  { %v263_v6 = vmax.f32 %v262_v1, %v149_v62  ;;  %v276_v8 = vmax.f32 %v275_v3, %v103_v0 }
  0x36   :  { %v270_v9 = vmax.f32 %v269_v4, %v134_v2 }
  0x37   :  { %293 = vst [vmem:[%s791_s1 + $0x68] sm:$0xff] %v263_v6  ;;  %v277_v11 = vmax.f32 %v276_v8, %v119_v5 }
  0x38   :  { %v271_v12 = vmax.f32 %v270_v9, %v150_v7 }
  0x39   :  { %v278_v14 = vmax.f32 %v277_v11, %v135_v10 }
  0x3a   :  { %294 = vst [vmem:[%s791_s1 + $0x70] sm:$0xff] %v271_v12 }
  0x3b   :  { %v279_v15 = vmax.f32 %v278_v14, %v151_v13 }
  0x3d   :  { %295 = vst [vmem:[%s791_s1 + $0x78] sm:$0xff] %v279_v15 }

// kernel: resnet_forward.26
= control target key start
LH: loop header
LB: loop body
LE: loop exit
PB: predicated region body
PF: predicated region fallthrough
CT: control target
= control target key end

     0   :  { %s1625_s12 = smov 0   ;;  %s1627_s13 = smov 0   ;;  %s1879_s0 = inlined_call_operand.vmem [shape: bf16[128,1024], index: 0, kind: input, shape index: {}]   ;;  %s1880_s1 = inlined_call_operand.vmem [shape: bf16[1024,128], index: 1, kind: input, shape index: {}]   ;;  %s1881_s2 = inlined_call_operand.vmem [shape: f32[1,128], index: 2, kind: input, shape index: {}]   ;;  %s1882_s3 = inlined_call_operand.vmem [shape: f32[128,128], index: 3, kind: output, shape index: {}]  }
   0x1   :  { %s1629_s14 = smov 0   ;;  %s1631_s15 = smov 0  }
   0x2   :  { %s1633_s16 = smov 0  }
   0x3 LB: > { %s25_s17 = sadd.s32 1, %s1598_s15  ;;  %p48_p1 = scmp.ne.s32.totalorder %s1590_s13, %s1586_s12  ;;  %s1602_s16 = sphi %s1633_s16, %s13_s16   ;;  %s1598_s15 = sphi %s1631_s15, %s1886_s15   ;;  %s1594_s14 = sphi %s1629_s14, %s1885_s14   ;;  %s1590_s13 = sphi %s1627_s13, %s1884_s13   ;;  %s1586_s12 = sphi %s1625_s12, %s1883_s12  }
   0x4   : > { %p26_p0 = scmp.ge.s32.totalorder %s25_s17, 2  ;;  %p49_p2 = scmp.eq.s32.totalorder %s1602_s16, 0 }
   0x5   : > { %s41_s19 = sadd.s32 1, %s1590_s13  ;;  %p1235_p5 = scmp.ge.s32.totalorder %s1602_s16, 2 }
   0x6   : > { %s1888_s17 = smov (%p26_p0, %s25_s17), 0  ;;  %p50_p3 = por %p49_p2, %p48_p1 }
   0x7   : > { %s37_s18 = ssub.s32 %s1598_s15, %s1888_s17  ;;  %162 = sbr.rel (%p1235_p5) target bundleno = 34 (0x22), region = 20 }
   0x8   : > { %p39_p4 = scmp.eq.s32.totalorder %s37_s18, 0 }
   0xa   : > { %s1660_s20 = scalar_select %p39_p4, %s1590_s13, %s41_s19  }
   0xe   : > { %165 = sbr.rel (!%p50_p3) target bundleno = 34 (0x22), region = 24  ;;  %s167_s21 = sand.u32 (%p50_p3), 1, %s1590_s13  }
   0xf   : > { %s1314_s22 = sshll.u32 (%p50_p3), %s1598_s15, 4  ;;  %s1236_s23 = sshll.u32 (%p50_p3), %s167_s21, 8 }
  0x10   : > { %s1668_s26 = scalar_lea.vmem (%p50_p3), %s1879_s0, %s1314_s22  ;;  %s1673_s27 = scalar_lea.vmem (%p50_p3), [#allocation3], %s1236_s23 }
  0x11   : > { %v188_v0 = vld [vmem:[%s1668_s26] sm:$0xff] (%p50_p3)  ;;  %v190_v1 = vld [vmem:[%s1668_s26 + $0x8] sm:$0xff] (%p50_p3) }
  0x12   : > { %v192_v2 = vld [vmem:[%s1668_s26 + $0x20] sm:$0xff] (%p50_p3)  ;;  %189 = vst [vmem:[%s1673_s27] sm:$0xff] (%p50_p3), %v188_v0  ;;  %191 = vst [vmem:[%s1673_s27 + $0x8] sm:$0xff] (%p50_p3), %v190_v1  ;;  %v194_v3 = vld [vmem:[%s1668_s26 + $0x28] sm:$0xff] (%p50_p3) }
  0x13   : > { %193 = vst [vmem:[%s1673_s27 + $0x10] sm:$0xff] (%p50_p3), %v192_v2  ;;  %v196_v4 = vld [vmem:[%s1668_s26 + $0x40] sm:$0xff] (%p50_p3)  ;;  %v198_v5 = vld [vmem:[%s1668_s26 + $0x48] sm:$0xff] (%p50_p3)  ;;  %195 = vst [vmem:[%s1673_s27 + $0x18] sm:$0xff] (%p50_p3), %v194_v3 }
  0x14   : > { %197 = vst [vmem:[%s1673_s27 + $0x20] sm:$0xff] (%p50_p3), %v196_v4  ;;  %199 = vst [vmem:[%s1673_s27 + $0x28] sm:$0xff] (%p50_p3), %v198_v5  ;;  %v200_v6 = vld [vmem:[%s1668_s26 + $0x60] sm:$0xff] (%p50_p3)  ;;  %v202_v7 = vld [vmem:[%s1668_s26 + $0x68] sm:$0xff] (%p50_p3) }
  0x15   : > { %v204_v8 = vld [vmem:[%s1668_s26 + $0x80] sm:$0xff]  ;;  %201 = vst [vmem:[%s1673_s27 + $0x30] sm:$0xff] %v200_v6  ;;  %203 = vst [vmem:[%s1673_s27 + $0x38] sm:$0xff] %v202_v7  ;;  %v206_v9 = vld [vmem:[%s1668_s26 + $0x88] sm:$0xff] }
  0x16   : > { %205 = vst [vmem:[%s1673_s27 + $0x40] sm:$0xff] %v204_v8  ;;  %v208_v10 = vld [vmem:[%s1668_s26 + $0xa0] sm:$0xff]  ;;  %v210_v11 = vld [vmem:[%s1668_s26 + $0xa8] sm:$0xff]  ;;  %207 = vst [vmem:[%s1673_s27 + $0x48] sm:$0xff] %v206_v9 }
  0x17   : > { %209 = vst [vmem:[%s1673_s27 + $0x50] sm:$0xff] %v208_v10  ;;  %211 = vst [vmem:[%s1673_s27 + $0x58] sm:$0xff] %v210_v11  ;;  %v212_v12 = vld [vmem:[%s1668_s26 + $0xc0] sm:$0xff]  ;;  %v214_v13 = vld [vmem:[%s1668_s26 + $0xc8] sm:$0xff] }
  0x18   : > { %v216_v14 = vld [vmem:[%s1668_s26 + $0xe0] sm:$0xff]  ;;  %213 = vst [vmem:[%s1673_s27 + $0x60] sm:$0xff] %v212_v12  ;;  %215 = vst [vmem:[%s1673_s27 + $0x68] sm:$0xff] %v214_v13  ;;  %v218_v15 = vld [vmem:[%s1668_s26 + $0xe8] sm:$0xff] }
  0x19   : > { %217 = vst [vmem:[%s1673_s27 + $0x70] sm:$0xff] %v216_v14  ;;  %v220_v16 = vld [vmem:[%s1668_s26 + $0x100] sm:$0xff]  ;;  %v222_v17 = vld [vmem:[%s1668_s26 + $0x108] sm:$0xff]  ;;  %219 = vst [vmem:[%s1673_s27 + $0x78] sm:$0xff] %v218_v15 }
  0x1a   : > { %221 = vst [vmem:[%s1673_s27 + $0x80] sm:$0xff] %v220_v16  ;;  %223 = vst [vmem:[%s1673_s27 + $0x88] sm:$0xff] %v222_v17  ;;  %v224_v18 = vld [vmem:[%s1668_s26 + $0x120] sm:$0xff]  ;;  %v226_v19 = vld [vmem:[%s1668_s26 + $0x128] sm:$0xff] }
  0x1b   : > { %v228_v20 = vld [vmem:[%s1668_s26 + $0x140] sm:$0xff]  ;;  %225 = vst [vmem:[%s1673_s27 + $0x90] sm:$0xff] %v224_v18  ;;  %227 = vst [vmem:[%s1673_s27 + $0x98] sm:$0xff] %v226_v19  ;;  %v230_v21 = vld [vmem:[%s1668_s26 + $0x148] sm:$0xff] }
  0x1c   : > { %229 = vst [vmem:[%s1673_s27 + $0xa0] sm:$0xff] %v228_v20  ;;  %v232_v22 = vld [vmem:[%s1668_s26 + $0x160] sm:$0xff]  ;;  %v234_v23 = vld [vmem:[%s1668_s26 + $0x168] sm:$0xff]  ;;  %231 = vst [vmem:[%s1673_s27 + $0xa8] sm:$0xff] %v230_v21 }
  0x1d   : > { %233 = vst [vmem:[%s1673_s27 + $0xb0] sm:$0xff] %v232_v22  ;;  %235 = vst [vmem:[%s1673_s27 + $0xb8] sm:$0xff] %v234_v23  ;;  %v236_v24 = vld [vmem:[%s1668_s26 + $0x180] sm:$0xff]  ;;  %v238_v25 = vld [vmem:[%s1668_s26 + $0x188] sm:$0xff] }
  0x1e   : > { %v240_v26 = vld [vmem:[%s1668_s26 + $0x1a0] sm:$0xff]  ;;  %237 = vst [vmem:[%s1673_s27 + $0xc0] sm:$0xff] %v236_v24  ;;  %239 = vst [vmem:[%s1673_s27 + $0xc8] sm:$0xff] %v238_v25  ;;  %v242_v27 = vld [vmem:[%s1668_s26 + $0x1a8] sm:$0xff] }
  0x1f   : > { %241 = vst [vmem:[%s1673_s27 + $0xd0] sm:$0xff] %v240_v26  ;;  %v244_v28 = vld [vmem:[%s1668_s26 + $0x1c0] sm:$0xff]  ;;  %v246_v29 = vld [vmem:[%s1668_s26 + $0x1c8] sm:$0xff]  ;;  %243 = vst [vmem:[%s1673_s27 + $0xd8] sm:$0xff] %v242_v27 }
  0x20   : > { %245 = vst [vmem:[%s1673_s27 + $0xe0] sm:$0xff] %v244_v28  ;;  %247 = vst [vmem:[%s1673_s27 + $0xe8] sm:$0xff] %v246_v29  ;;  %v248_v30 = vld [vmem:[%s1668_s26 + $0x1e0] sm:$0xff]  ;;  %v250_v31 = vld [vmem:[%s1668_s26 + $0x1e8] sm:$0xff] }
  0x21   : > { %249 = vst [vmem:[%s1673_s27 + $0xf0] sm:$0xff] %v248_v30  ;;  %251 = vst [vmem:[%s1673_s27 + $0xf8] sm:$0xff] %v250_v31 }
  0x22 PF: > { %p1239_p6 = scmp.ge.s32.totalorder %s1602_s16, 1  ;;  %p268_p7 = scmp.lt.s32.totalorder %s1602_s16, 3 }
  0x24   : > { %p269_p8 = pnand %p1239_p6, %p268_p7 }
  0x25   : > { %s275_s28 = sand.u32 (!%p269_p8), 1, %s1586_s12   ;;  %s1241_s29 = sshll.u32 (!%p269_p8), %s1594_s14, 6 }
  0x26   : > { %272 = sbr.rel (%p269_p8) target bundleno = 380 (0x17c), region = 51  ;;  %s1240_s30 = sshll.u32 (!%p269_p8), %s275_s28, 8 }
  0x27   : > { %p315_p9 = scmp.lt.s32.totalorder (!%p269_p8), %s1241_s29, 127  ;;  %s1745_s8 = scalar_lea.vmem (!%p269_p8), [#allocation3], %s1240_s30 }
  0x28   : > { %p1243_p10 = scmp.ne.s32.totalorder (!%p269_p8), %s1594_s14, 0 }
  0x2d   : > { %s1890_s29 = smov (!%p315_p9, %s1241_s29), 127  ;;  %339 = sbr.rel (%p1243_p10) target bundleno = 55 (0x37), region = 59 }
  0x2e   : > { %s1242_s4 = sshll.u32 %s1890_s29, 2  ;;  %v1604_v32 = vmov (!%p1243_p10), 0.0  }
  0x2f   : > { %s1743_s7 = scalar_lea.vmem %s1880_s1, %s1242_s4  ;;  %340 = vst [vmem:[#allocation2] sm:$0xff] (!%p1243_p10), %v1604_v32  ;;  %341 = vst [vmem:[#allocation2 + $0x8] sm:$0xff] (!%p1243_p10), %v1604_v32 }
  0x30   : > { %342 = vst [vmem:[#allocation2 + $0x10] sm:$0xff] (!%p1243_p10), %v1604_v32  ;;  %343 = vst [vmem:[#allocation2 + $0x18] sm:$0xff] (!%p1243_p10), %v1604_v32 }
  0x31   : > { %344 = vst [vmem:[#allocation2 + $0x20] sm:$0xff] (!%p1243_p10), %v1604_v32  ;;  %345 = vst [vmem:[#allocation2 + $0x28] sm:$0xff] (!%p1243_p10), %v1604_v32 }
  0x32   : > { %346 = vst [vmem:[#allocation2 + $0x30] sm:$0xff] (!%p1243_p10), %v1604_v32  ;;  %347 = vst [vmem:[#allocation2 + $0x38] sm:$0xff] (!%p1243_p10), %v1604_v32 }
  0x33   : > { %348 = vst [vmem:[#allocation2 + $0x40] sm:$0xff] (!%p1243_p10), %v1604_v32  ;;  %349 = vst [vmem:[#allocation2 + $0x48] sm:$0xff] (!%p1243_p10), %v1604_v32 }
  0x34   : > { %350 = vst [vmem:[#allocation2 + $0x50] sm:$0xff] %v1604_v32  ;;  %351 = vst [vmem:[#allocation2 + $0x58] sm:$0xff] %v1604_v32 }
  0x35   : > { %352 = vst [vmem:[#allocation2 + $0x60] sm:$0xff] %v1604_v32  ;;  %353 = vst [vmem:[#allocation2 + $0x68] sm:$0xff] %v1604_v32 }
  0x36   : > { %354 = vst [vmem:[#allocation2 + $0x70] sm:$0xff] %v1604_v32  ;;  %355 = vst [vmem:[#allocation2 + $0x78] sm:$0xff] %v1604_v32 }
  0x37 PF: > { %v1484_v33 = vld [vmem:[%s1743_s7 + $0x40] sm:$0xff]   ;;  %v1488_v37 = vld [vmem:[%s1743_s7 + $0x48] sm:$0xff]   ;;  %v1492_v41 = vld [vmem:[%s1743_s7 + $0x50] sm:$0xff]   ;;  %p1308_p11 = scmp.ne.s32.totalorder %s1594_s14, 1 }
  0x38   : > { %v1485_v34 = vld [vmem:[%s1743_s7 + $0xc0] sm:$0xff]   ;;  %1315 = vmatprep.subr.bf16.mxu0 %v1484_v33  ;;  %v1489_v38 = vld [vmem:[%s1743_s7 + $0xc8] sm:$0xff]   ;;  %v1493_v42 = vld [vmem:[%s1743_s7 + $0xd0] sm:$0xff]  }
  0x39   : > { %v1486_v35 = vld [vmem:[%s1743_s7] sm:$0xff]   ;;  %1379 = vmatprep.subr.bf16.mxu1 %v1485_v34  ;;  %v1490_v39 = vld [vmem:[%s1743_s7 + $0x8] sm:$0xff]   ;;  %v1494_v43 = vld [vmem:[%s1743_s7 + $0x10] sm:$0xff]  }
  0x3a   : > { %v1487_v36 = vld [vmem:[%s1743_s7 + $0x80] sm:$0xff]   ;;  %1316 = vmatpush3.bf16.msra.mxu0 %v1486_v35  ;;  %v1491_v40 = vld [vmem:[%s1743_s7 + $0x88] sm:$0xff]   ;;  %v1495_v44 = vld [vmem:[%s1743_s7 + $0x90] sm:$0xff]  }
  0x3b   : > { %1380 = vmatpush3.bf16.msra.mxu1 %v1487_v36  ;;  %1317 = vmatprep.subr.bf16.mxu0 %v1488_v37  ;;  %v1496_v45 = vld [vmem:[%s1743_s7 + $0x58] sm:$0xff]   ;;  %v1500_v49 = vld [vmem:[%s1743_s7 + $0x60] sm:$0xff]   ;;  %v1504_v53 = vld [vmem:[%s1743_s7 + $0x68] sm:$0xff]  }
  0x3c   : > { %1381 = vmatprep.subr.bf16.mxu1 %v1489_v38  ;;  %v1497_v46 = vld [vmem:[%s1743_s7 + $0xd8] sm:$0xff]   ;;  %v1501_v50 = vld [vmem:[%s1743_s7 + $0xe0] sm:$0xff]   ;;  %v1505_v54 = vld [vmem:[%s1743_s7 + $0xe8] sm:$0xff]  }
  0x3d   : > { %v1498_v47 = vld [vmem:[%s1743_s7 + $0x18] sm:$0xff]   ;;  %v1502_v51 = vld [vmem:[%s1743_s7 + $0x20] sm:$0xff]   ;;  %v1506_v55 = vld [vmem:[%s1743_s7 + $0x28] sm:$0xff]  }
  0x3e   : > { %1318 = vmatpush3.bf16.msra.mxu0 %v1490_v39  ;;  %v1499_v48 = vld [vmem:[%s1743_s7 + $0x98] sm:$0xff]   ;;  %v1503_v52 = vld [vmem:[%s1743_s7 + $0xa0] sm:$0xff]   ;;  %v1507_v56 = vld [vmem:[%s1743_s7 + $0xa8] sm:$0xff]  }
  0x3f   : > { %1382 = vmatpush3.bf16.msra.mxu1 %v1491_v40  ;;  %1319 = vmatprep.subr.bf16.mxu0 %v1492_v41  ;;  %v1508_v57 = vld [vmem:[%s1743_s7 + $0x70] sm:$0xff]   ;;  %v1512_v61 = vld [vmem:[%s1743_s7 + $0x78] sm:$0xff]  }
  0x40   : > { %1383 = vmatprep.subr.bf16.mxu1 %v1493_v42  ;;  %v1509_v58 = vld [vmem:[%s1743_s7 + $0xf0] sm:$0xff]   ;;  %v1513_v62 = vld [vmem:[%s1743_s7 + $0xf8] sm:$0xff]   ;;  %v356_v42 = vld [vmem:[#allocation2] sm:$0xff] }
  0x41   : > { %v1510_v59 = vld [vmem:[%s1743_s7 + $0x30] sm:$0xff]   ;;  %v1514_v63 = vld [vmem:[%s1743_s7 + $0x38] sm:$0xff]  }
  0x42   : > { %1320 = vmatpush3.bf16.msra.mxu0 %v1494_v43  ;;  %v1511_v60 = vld [vmem:[%s1743_s7 + $0xb0] sm:$0xff]   ;;  %v1515_v0 = vld [vmem:[%s1743_s7 + $0xb8] sm:$0xff]  }
  0x43   : > { %1384 = vmatpush3.bf16.msra.mxu1 %v1495_v44  ;;  %1321 = vmatprep.subr.bf16.mxu0 %v1496_v45  ;;  %v1516_v1 = vld [vmem:[%s1745_s8] ss:$16 sps:$4 sm:$0xff]   ;;  %v1518_v2 = vld [vmem:[%s1745_s8 + $0x4] ss:$16 sps:$4 sm:$0xff]   ;;  %v1519_v3 = vld [vmem:[%s1745_s8 + $0x8] ss:$16 sps:$4 sm:$0xff]  }
  0x44   : > { %1385 = vmatprep.subr.bf16.mxu1 %v1497_v46  ;;  %v1521_v4 = vld [vmem:[%s1745_s8 + $0xc] ss:$16 sps:$4 sm:$0xff]   ;;  %852 = vmatprep.mubr.bf16.mxu0 %v1518_v2  ;;  %v1522_v5 = vld [vmem:[%s1745_s8 + $0x24] ss:$16 sps:$4 sm:$0xff]   ;;  %v1526_v7 = vld [vmem:[%s1745_s8 + $0x20] ss:$16 sps:$4 sm:$0xff]  }
  0x45   : > { %949 = vmatprep.mubr.bf16.mxu1 %v1521_v4  ;;  %v1524_v6 = vld [vmem:[%s1745_s8 + $0x2c] ss:$16 sps:$4 sm:$0xff]   ;;  %v1527_v8 = vld [vmem:[%s1745_s8 + $0x28] ss:$16 sps:$4 sm:$0xff]   ;;  %v1528_v9 = vld [vmem:[%s1745_s8 + $0x44] ss:$16 sps:$4 sm:$0xff]  }
  0x46   : > { %1322 = vmatpush3.bf16.msra.mxu0 %v1498_v47  ;;  %v1530_v10 = vld [vmem:[%s1745_s8 + $0x4c] ss:$16 sps:$4 sm:$0xff]   ;;  %v1532_v11 = vld [vmem:[%s1745_s8 + $0x40] ss:$16 sps:$4 sm:$0xff]   ;;  %v1533_v12 = vld [vmem:[%s1745_s8 + $0x48] ss:$16 sps:$4 sm:$0xff]  }
  0x47   : > { %1386 = vmatpush3.bf16.msra.mxu1 %v1499_v48  ;;  %1323 = vmatprep.subr.bf16.mxu0 %v1500_v49  ;;  %v1534_v13 = vld [vmem:[%s1745_s8 + $0x64] ss:$16 sps:$4 sm:$0xff]   ;;  %v1536_v14 = vld [vmem:[%s1745_s8 + $0x6c] ss:$16 sps:$4 sm:$0xff]   ;;  %v1538_v15 = vld [vmem:[%s1745_s8 + $0x60] ss:$16 sps:$4 sm:$0xff]  }
  0x48   : > { %1387 = vmatprep.subr.bf16.mxu1 %v1501_v50  ;;  %v1539_v16 = vld [vmem:[%s1745_s8 + $0x68] ss:$16 sps:$4 sm:$0xff]   ;;  %v1540_v17 = vld [vmem:[%s1745_s8 + $0x84] ss:$16 sps:$4 sm:$0xff]   ;;  %v1542_v18 = vld [vmem:[%s1745_s8 + $0x8c] ss:$16 sps:$4 sm:$0xff]  }
  0x49   : > { %v1544_v19 = vld [vmem:[%s1745_s8 + $0x80] ss:$16 sps:$4 sm:$0xff]   ;;  %v1545_v20 = vld [vmem:[%s1745_s8 + $0x88] ss:$16 sps:$4 sm:$0xff]   ;;  %v1546_v21 = vld [vmem:[%s1745_s8 + $0xa4] ss:$16 sps:$4 sm:$0xff]  }
  0x4a   : > { %1324 = vmatpush3.bf16.msra.mxu0 %v1502_v51  ;;  %v1548_v22 = vld [vmem:[%s1745_s8 + $0xac] ss:$16 sps:$4 sm:$0xff]   ;;  %v1550_v23 = vld [vmem:[%s1745_s8 + $0xa0] ss:$16 sps:$4 sm:$0xff]   ;;  %v1551_v24 = vld [vmem:[%s1745_s8 + $0xa8] ss:$16 sps:$4 sm:$0xff]  }
  0x4b   : > { %1388 = vmatpush3.bf16.msra.mxu1 %v1503_v52  ;;  %1325 = vmatprep.subr.bf16.mxu0 %v1504_v53  ;;  %v1552_v25 = vld [vmem:[%s1745_s8 + $0xc4] ss:$16 sps:$4 sm:$0xff]   ;;  %v1554_v26 = vld [vmem:[%s1745_s8 + $0xcc] ss:$16 sps:$4 sm:$0xff]   ;;  %v1556_v27 = vld [vmem:[%s1745_s8 + $0xc0] ss:$16 sps:$4 sm:$0xff]  }
  0x4c   : > { %1389 = vmatprep.subr.bf16.mxu1 %v1505_v54  ;;  %v1557_v28 = vld [vmem:[%s1745_s8 + $0xc8] ss:$16 sps:$4 sm:$0xff]   ;;  %v1558_v29 = vld [vmem:[%s1745_s8 + $0xe4] ss:$16 sps:$4 sm:$0xff]   ;;  %v1560_v30 = vld [vmem:[%s1745_s8 + $0xec] ss:$16 sps:$4 sm:$0xff]  }
  0x4d   : > { %v1562_v31 = vld [vmem:[%s1745_s8 + $0xe0] ss:$16 sps:$4 sm:$0xff]   ;;  %v1563_v32 = vld [vmem:[%s1745_s8 + $0xe8] ss:$16 sps:$4 sm:$0xff]  }
  0x4e   : > { %1326 = vmatpush3.bf16.msra.mxu0 %v1506_v55  ;;  %v357_v47 = vld [vmem:[#allocation2 + $0x8] sm:$0xff] }
  0x4f   : > { %1390 = vmatpush3.bf16.msra.mxu1 %v1507_v56  ;;  %1327 = vmatprep.subr.bf16.mxu0 %v1508_v57 }
  0x50   : > { %1391 = vmatprep.subr.bf16.mxu1 %v1509_v58 }
  0x52   : > { %1328 = vmatpush3.bf16.msra.mxu0 %v1510_v59 }
  0x53   : > { %1392 = vmatpush3.bf16.msra.mxu1 %v1511_v60  ;;  %1329 = vmatprep.subr.bf16.mxu0 %v1512_v61  ;;  %v358_v60 = vld [vmem:[#allocation2 + $0x10] sm:$0xff] }
  0x54   : > { %1393 = vmatprep.subr.bf16.mxu1 %v1513_v62 }
  0x56   : > { %1330 = vmatpush3.bf16.msra.mxu0 %v1514_v63 }
  0x57   : > { %1394 = vmatpush3.bf16.msra.mxu1 %v1515_v0 }
  0x59   : > { %853 = vmatmul.mubr.bf16.vlgmr.msra.gmra.mrb[0].mxu0 %v1516_v1  ;;  %v359_v1 = vld [vmem:[#allocation2 + $0x18] sm:$0xff] }
  0x5a   : > { %950 = vmatmul.mubr.bf16.vlgmr.msra.gmra.mrb[0].mxu1 %v1519_v3  ;;  %860 = vmatprep.mubr.bf16.mxu0 %v1522_v5 }
  0x5b   : > { %957 = vmatprep.mubr.bf16.mxu1 %v1524_v6 }
  0x61   : > { %861 = vmatmul.mubr.bf16.gmra.mrb[4].mxu0 %v1526_v7 }
  0x62   : > { %958 = vmatmul.mubr.bf16.gmra.mrb[4].mxu1 %v1527_v8  ;;  %868 = vmatprep.mubr.bf16.mxu0 %v1528_v9 }
  0x63   : > { %965 = vmatprep.mubr.bf16.mxu1 %v1530_v10 }
  0x69   : > { %869 = vmatmul.mubr.bf16.gmra.mrb[8].mxu0 %v1532_v11 }
  0x6a   : > { %966 = vmatmul.mubr.bf16.gmra.mrb[8].mxu1 %v1533_v12  ;;  %876 = vmatprep.mubr.bf16.mxu0 %v1534_v13 }
  0x6b   : > { %973 = vmatprep.mubr.bf16.mxu1 %v1536_v14  ;;  %v360_v14 = vld [vmem:[#allocation2 + $0x20] sm:$0xff] }
  0x71   : > { %877 = vmatmul.mubr.bf16.gmra.mrb[12].mxu0 %v1538_v15 }
  0x72   : > { %974 = vmatmul.mubr.bf16.gmra.mrb[12].mxu1 %v1539_v16  ;;  %884 = vmatprep.mubr.bf16.mxu0 %v1540_v17 }
  0x73   : > { %981 = vmatprep.mubr.bf16.mxu1 %v1542_v18 }
  0x79   : > { %885 = vmatmul.mubr.bf16.gmra.mrb[16].mxu0 %v1544_v19  ;;  %v361_v19 = vld [vmem:[#allocation2 + $0x28] sm:$0xff] }
  0x7a   : > { %982 = vmatmul.mubr.bf16.gmra.mrb[16].mxu1 %v1545_v20  ;;  %892 = vmatprep.mubr.bf16.mxu0 %v1546_v21 }
  0x7b   : > { %989 = vmatprep.mubr.bf16.mxu1 %v1548_v22 }
  0x81   : > { %893 = vmatmul.mubr.bf16.gmra.mrb[20].mxu0 %v1550_v23 }
  0x82   : > { %990 = vmatmul.mubr.bf16.gmra.mrb[20].mxu1 %v1551_v24  ;;  %900 = vmatprep.mubr.bf16.mxu0 %v1552_v25 }
  0x83   : > { %997 = vmatprep.mubr.bf16.mxu1 %v1554_v26 }
  0x89   : > { %901 = vmatmul.mubr.bf16.gmra.mrb[24].mxu0 %v1556_v27 }
  0x8a   : > { %998 = vmatmul.mubr.bf16.gmra.mrb[24].mxu1 %v1557_v28  ;;  %908 = vmatprep.mubr.bf16.mxu0 %v1558_v29 }
  0x8b   : > { %1005 = vmatprep.mubr.bf16.mxu1 %v1560_v30 }
  0x91   : > { %909 = vmatmul.mubr.bf16.gmra.mrb[28].mxu0 %v1562_v31 }
  0x92   : > { %1006 = vmatmul.mubr.bf16.gmra.mrb[28].mxu1 %v1563_v32  ;;  %v362_v32 = vld [vmem:[#allocation2 + $0x30] sm:$0xff] }
 0x12c   : > { %v1331_v33 = vpop.f32.mrb[0].mxu0 }
 0x12d   : > { %v1395_v34 = vpop.f32.mrb[0].mxu1  ;;  %v1332_v35 = vpop.f32.mrb[1].mxu0 }
 0x12e   : > { %v1333_v36 = vadd.f32 %v1332_v35, %v1331_v33  ;;  %v1396_v37 = vpop.f32.mrb[1].mxu1  ;;  %v1334_v38 = vpop.f32.mrb[2].mxu0 }
 0x12f   : > { %v1397_v39 = vadd.f32 %v1396_v37, %v1395_v34  ;;  %v1398_v40 = vpop.f32.mrb[2].mxu1  ;;  %v1335_v41 = vpop.f32.mrb[3].mxu0  ;;  %v363_v37 = vld [vmem:[#allocation2 + $0x38] sm:$0xff] }
 0x130   : > { %v1336_v43 = vadd.f32 %v1335_v41, %v1334_v38  ;;  %v1399_v44 = vpop.f32.mrb[3].mxu1 }
 0x131   : > { %v952_v45 = vadd.f32 %v1397_v39, %v1333_v36  ;;  %v1400_v46 = vadd.f32 %v1399_v44, %v1398_v40 }
 0x133   : > { %v1014_v48 = vadd.f32 %v952_v45, %v356_v42  ;;  %v955_v49 = vadd.f32 %v1400_v46, %v1336_v43 }
 0x134   : > { %v1337_v50 = vpop.f32.mrb[4].mxu0 }
 0x135   : > { %1030 = vst [vmem:[#allocation2] sm:$0xff] %v1014_v48  ;;  %v1015_v51 = vadd.f32 %v955_v49, %v357_v47  ;;  %v1401_v52 = vpop.f32.mrb[4].mxu1  ;;  %v1338_v53 = vpop.f32.mrb[5].mxu0 }
 0x136   : > { %v1339_v54 = vadd.f32 %v1338_v53, %v1337_v50  ;;  %v1402_v55 = vpop.f32.mrb[5].mxu1  ;;  %v1340_v56 = vpop.f32.mrb[6].mxu0  ;;  %v364_v50 = vld [vmem:[#allocation2 + $0x40] sm:$0xff] }
 0x137   : > { %1031 = vst [vmem:[#allocation2 + $0x8] sm:$0xff] %v1015_v51  ;;  %v1403_v57 = vadd.f32 %v1402_v55, %v1401_v52  ;;  %v1404_v58 = vpop.f32.mrb[6].mxu1  ;;  %v1341_v59 = vpop.f32.mrb[7].mxu0  ;;  %v365_v55 = vld [vmem:[#allocation2 + $0x48] sm:$0xff] }
 0x138   : > { %v1342_v61 = vadd.f32 %v1341_v59, %v1340_v56  ;;  %v1405_v62 = vpop.f32.mrb[7].mxu1 }
 0x139   : > { %v960_v63 = vadd.f32 %v1403_v57, %v1339_v54  ;;  %v1406_v0 = vadd.f32 %v1405_v62, %v1404_v58 }
 0x13b   : > { %v1016_v2 = vadd.f32 %v960_v63, %v358_v60  ;;  %v963_v3 = vadd.f32 %v1406_v0, %v1342_v61 }
 0x13c   : > { %v1343_v4 = vpop.f32.mrb[8].mxu0 }
 0x13d   : > { %1032 = vst [vmem:[#allocation2 + $0x10] sm:$0xff] %v1016_v2  ;;  %v1017_v5 = vadd.f32 %v963_v3, %v359_v1  ;;  %v1407_v6 = vpop.f32.mrb[8].mxu1  ;;  %v1344_v7 = vpop.f32.mrb[9].mxu0 }
 0x13e   : > { %v1345_v8 = vadd.f32 %v1344_v7, %v1343_v4  ;;  %v1408_v9 = vpop.f32.mrb[9].mxu1  ;;  %v1346_v10 = vpop.f32.mrb[10].mxu0  ;;  %v366_v4 = vld [vmem:[#allocation2 + $0x50] sm:$0xff] }
 0x13f   : > { %1033 = vst [vmem:[#allocation2 + $0x18] sm:$0xff] %v1017_v5  ;;  %v1409_v11 = vadd.f32 %v1408_v9, %v1407_v6  ;;  %v1410_v12 = vpop.f32.mrb[10].mxu1  ;;  %v1347_v13 = vpop.f32.mrb[11].mxu0  ;;  %v367_v9 = vld [vmem:[#allocation2 + $0x58] sm:$0xff] }
 0x140   : > { %v1348_v15 = vadd.f32 %v1347_v13, %v1346_v10  ;;  %v1411_v16 = vpop.f32.mrb[11].mxu1 }
 0x141   : > { %v968_v17 = vadd.f32 %v1409_v11, %v1345_v8  ;;  %v1412_v18 = vadd.f32 %v1411_v16, %v1410_v12 }
 0x143   : > { %v1018_v20 = vadd.f32 %v968_v17, %v360_v14  ;;  %v971_v21 = vadd.f32 %v1412_v18, %v1348_v15 }
 0x144   : > { %v1349_v22 = vpop.f32.mrb[12].mxu0 }
 0x145   : > { %1034 = vst [vmem:[#allocation2 + $0x20] sm:$0xff] %v1018_v20  ;;  %v1019_v23 = vadd.f32 %v971_v21, %v361_v19  ;;  %v1413_v24 = vpop.f32.mrb[12].mxu1  ;;  %v1350_v25 = vpop.f32.mrb[13].mxu0 }
 0x146   : > { %v1351_v26 = vadd.f32 %v1350_v25, %v1349_v22  ;;  %v1414_v27 = vpop.f32.mrb[13].mxu1  ;;  %v1352_v28 = vpop.f32.mrb[14].mxu0  ;;  %v368_v22 = vld [vmem:[#allocation2 + $0x60] sm:$0xff] }
 0x147   : > { %1035 = vst [vmem:[#allocation2 + $0x28] sm:$0xff] %v1019_v23  ;;  %v1415_v29 = vadd.f32 %v1414_v27, %v1413_v24  ;;  %v1416_v30 = vpop.f32.mrb[14].mxu1  ;;  %v1353_v31 = vpop.f32.mrb[15].mxu0  ;;  %v369_v27 = vld [vmem:[#allocation2 + $0x68] sm:$0xff] }
 0x148   : > { %v1354_v33 = vadd.f32 %v1353_v31, %v1352_v28  ;;  %v1417_v34 = vpop.f32.mrb[15].mxu1 }
 0x149   : > { %v976_v35 = vadd.f32 %v1415_v29, %v1351_v26  ;;  %v1418_v36 = vadd.f32 %v1417_v34, %v1416_v30 }
 0x14b   : > { %v1020_v38 = vadd.f32 %v976_v35, %v362_v32  ;;  %v979_v39 = vadd.f32 %v1418_v36, %v1354_v33 }
 0x14c   : > { %v1355_v40 = vpop.f32.mrb[16].mxu0 }
 0x14d   : > { %1036 = vst [vmem:[#allocation2 + $0x30] sm:$0xff] %v1020_v38  ;;  %v1021_v41 = vadd.f32 %v979_v39, %v363_v37  ;;  %v1419_v42 = vpop.f32.mrb[16].mxu1  ;;  %v1356_v43 = vpop.f32.mrb[17].mxu0 }
 0x14e   : > { %v1357_v44 = vadd.f32 %v1356_v43, %v1355_v40  ;;  %v1420_v45 = vpop.f32.mrb[17].mxu1  ;;  %v1358_v46 = vpop.f32.mrb[18].mxu0  ;;  %v370_v40 = vld [vmem:[#allocation2 + $0x70] sm:$0xff] }
 0x14f   : > { %1037 = vst [vmem:[#allocation2 + $0x38] sm:$0xff] %v1021_v41  ;;  %v1421_v47 = vadd.f32 %v1420_v45, %v1419_v42  ;;  %v1422_v48 = vpop.f32.mrb[18].mxu1  ;;  %v1359_v49 = vpop.f32.mrb[19].mxu0  ;;  %v371_v45 = vld [vmem:[#allocation2 + $0x78] sm:$0xff] }
 0x150   : > { %v1360_v51 = vadd.f32 %v1359_v49, %v1358_v46  ;;  %v1423_v52 = vpop.f32.mrb[19].mxu1  ;;  %v1050_v49 = vld [vmem:[#allocation2] sm:$0xff] (!%p1308_p11) }
 0x151   : > { %v984_v53 = vadd.f32 %v1421_v47, %v1357_v44  ;;  %v1424_v54 = vadd.f32 %v1423_v52, %v1422_v48 }
 0x153   : > { %v1022_v56 = vadd.f32 %v984_v53, %v364_v50  ;;  %v987_v57 = vadd.f32 %v1424_v54, %v1360_v51  ;;  %v1309_v50 = vld [vmem:[%s1881_s2] ss:$0 sm:$0xff] (!%p1308_p11)  ;;  %v1051_v51 = vld [vmem:[#allocation2 + $0x8] sm:$0xff] (!%p1308_p11)  ;;  %v1052_v54 = vld [vmem:[#allocation2 + $0x10] sm:$0xff] (!%p1308_p11) }
 0x154   : > { %v1361_v58 = vpop.f32.mrb[20].mxu0  ;;  %v1073_v52 = vadd.f32 (!%p1308_p11), %v1309_v50, %v1050_v49  ;;  %v1074_v53 = vadd.f32 (!%p1308_p11), %v1309_v50, %v1051_v51 }
 0x155   : > { %1038 = vst [vmem:[#allocation2 + $0x40] sm:$0xff] %v1022_v56  ;;  %v1023_v59 = vadd.f32 %v987_v57, %v365_v55  ;;  %v1425_v60 = vpop.f32.mrb[20].mxu1  ;;  %v1362_v61 = vpop.f32.mrb[21].mxu0  ;;  %v1053_v55 = vld [vmem:[#allocation2 + $0x18] sm:$0xff] (!%p1308_p11)  ;;  %v1054_v56 = vld [vmem:[#allocation2 + $0x20] sm:$0xff] (!%p1308_p11)  ;;  %v1075_v57 = vadd.f32 (!%p1308_p11), %v1309_v50, %v1052_v54 }
 0x156   : > { %v1363_v62 = vadd.f32 %v1362_v61, %v1361_v58  ;;  %v1426_v63 = vpop.f32.mrb[21].mxu1  ;;  %v1364_v0 = vpop.f32.mrb[22].mxu0  ;;  %v1076_v58 = vadd.f32 (!%p1308_p11), %v1309_v50, %v1053_v55  ;;  %v1056_v61 = vld [vmem:[#allocation2 + $0x30] sm:$0xff] (!%p1308_p11) }
 0x157   : > { %1039 = vst [vmem:[#allocation2 + $0x48] sm:$0xff] %v1023_v59  ;;  %v1427_v1 = vadd.f32 %v1426_v63, %v1425_v60  ;;  %v1428_v2 = vpop.f32.mrb[22].mxu1  ;;  %v1365_v3 = vpop.f32.mrb[23].mxu0  ;;  %v1077_v59 = vadd.f32 (!%p1308_p11), %v1309_v50, %v1054_v56  ;;  %v1055_v60 = vld [vmem:[#allocation2 + $0x28] sm:$0xff] (!%p1308_p11)  ;;  %v1089_v63 = vmax.f32 (!%p1308_p11), %v1073_v52, 0.0 }
 0x158   : > { %v1366_v5 = vadd.f32 %v1365_v3, %v1364_v0  ;;  %v1429_v6 = vpop.f32.mrb[23].mxu1  ;;  %v1090_v0 = vmax.f32 (!%p1308_p11), %v1074_v53, 0.0 }
 0x159   : > { %v992_v7 = vadd.f32 %v1427_v1, %v1363_v62  ;;  %v1430_v8 = vadd.f32 %v1429_v6, %v1428_v2  ;;  %v1057_v62 = vld [vmem:[#allocation2 + $0x38] sm:$0xff] (!%p1308_p11)  ;;  %v1078_v1 = vadd.f32 (!%p1308_p11), %v1309_v50, %v1055_v60  ;;  %v1079_v2 = vadd.f32 (!%p1308_p11), %v1309_v50, %v1056_v61  ;;  %1105 = vst [vmem:[%s1882_s3] sm:$0xff] (!%p1308_p11), %v1089_v63 }
 0x15a   : > { %v1091_v6 = vmax.f32 (!%p1308_p11), %v1075_v57, 0.0  ;;  %1106 = vst [vmem:[%s1882_s3 + $0x8] sm:$0xff] (!%p1308_p11), %v1090_v0 }
 0x15b   : > { %v1024_v10 = vadd.f32 %v992_v7, %v366_v4  ;;  %v995_v11 = vadd.f32 %v1430_v8, %v1366_v5  ;;  %v1092_v7 = vmax.f32 (!%p1308_p11), %v1076_v58, 0.0  ;;  %v1093_v8 = vmax.f32 (!%p1308_p11), %v1077_v59, 0.0 }
 0x15c   : > { %v1367_v12 = vpop.f32.mrb[24].mxu0  ;;  %v1058_v3 = vld [vmem:[#allocation2 + $0x40] sm:$0xff] (!%p1308_p11)  ;;  %1107 = vst [vmem:[%s1882_s3 + $0x10] sm:$0xff] (!%p1308_p11), %v1091_v6 }
 0x15d   : > { %1040 = vst [vmem:[#allocation2 + $0x50] sm:$0xff] %v1024_v10  ;;  %v1025_v13 = vadd.f32 %v995_v11, %v367_v9  ;;  %v1431_v14 = vpop.f32.mrb[24].mxu1  ;;  %v1368_v15 = vpop.f32.mrb[25].mxu0  ;;  %v1080_v9 = vadd.f32 (!%p1308_p11), %v1309_v50, %v1057_v62  ;;  %1108 = vst [vmem:[%s1882_s3 + $0x18] sm:$0xff] (!%p1308_p11), %v1092_v7 }
 0x15e   : > { %v1369_v16 = vadd.f32 %v1368_v15, %v1367_v12  ;;  %v1432_v17 = vpop.f32.mrb[25].mxu1  ;;  %v1370_v18 = vpop.f32.mrb[26].mxu0  ;;  %v1059_v4 = vld [vmem:[#allocation2 + $0x48] sm:$0xff] (!%p1308_p11)  ;;  %v1081_v15 = vadd.f32 (!%p1308_p11), %v1309_v50, %v1058_v3  ;;  %1109 = vst [vmem:[%s1882_s3 + $0x20] sm:$0xff] (!%p1308_p11), %v1093_v8 }
 0x15f   : > { %1041 = vst [vmem:[#allocation2 + $0x58] sm:$0xff] %v1025_v13  ;;  %v1433_v19 = vadd.f32 %v1432_v17, %v1431_v14  ;;  %v1434_v20 = vpop.f32.mrb[26].mxu1  ;;  %v1371_v21 = vpop.f32.mrb[27].mxu0  ;;  %v1094_v13 = vmax.f32 (!%p1308_p11), %v1078_v1, 0.0  ;;  %v1095_v14 = vmax.f32 (!%p1308_p11), %v1079_v2, 0.0 }
 0x160   : > { %v1372_v23 = vadd.f32 %v1371_v21, %v1370_v18  ;;  %v1435_v24 = vpop.f32.mrb[27].mxu1 }
 0x161   : > { %v1000_v25 = vadd.f32 %v1433_v19, %v1369_v16  ;;  %v1436_v26 = vadd.f32 %v1435_v24, %v1434_v20  ;;  %v1082_v16 = vadd.f32 (!%p1308_p11), %v1309_v50, %v1059_v4  ;;  %v1096_v19 = vmax.f32 (!%p1308_p11), %v1080_v9, 0.0  ;;  %1110 = vst [vmem:[%s1882_s3 + $0x28] sm:$0xff] (!%p1308_p11), %v1094_v13  ;;  %1111 = vst [vmem:[%s1882_s3 + $0x30] sm:$0xff] (!%p1308_p11), %v1095_v14 }
 0x163   : > { %v1026_v28 = vadd.f32 %v1000_v25, %v368_v22  ;;  %v1003_v29 = vadd.f32 %v1436_v26, %v1372_v23  ;;  %v1097_v23 = vmax.f32 (!%p1308_p11), %v1081_v15, 0.0  ;;  %v1098_v24 = vmax.f32 (!%p1308_p11), %v1082_v16, 0.0  ;;  %1112 = vst [vmem:[%s1882_s3 + $0x38] sm:$0xff] (!%p1308_p11), %v1096_v19 }
 0x164   : > { %v1373_v30 = vpop.f32.mrb[28].mxu0  ;;  %v1060_v5 = vld [vmem:[#allocation2 + $0x50] sm:$0xff] (!%p1308_p11) }
 0x165   : > { %1042 = vst [vmem:[#allocation2 + $0x60] sm:$0xff] %v1026_v28  ;;  %v1027_v31 = vadd.f32 %v1003_v29, %v369_v27  ;;  %v1437_v32 = vpop.f32.mrb[28].mxu1  ;;  %v1374_v33 = vpop.f32.mrb[29].mxu0  ;;  %v1083_v20 = vadd.f32 (!%p1308_p11), %v1309_v50, %v1060_v5  ;;  %1113 = vst [vmem:[%s1882_s3 + $0x40] sm:$0xff] (!%p1308_p11), %v1097_v23 }
 0x166   : > { %v1375_v34 = vadd.f32 %v1374_v33, %v1373_v30  ;;  %v1438_v35 = vpop.f32.mrb[29].mxu1  ;;  %v1376_v36 = vpop.f32.mrb[30].mxu0  ;;  %v1061_v10 = vld [vmem:[#allocation2 + $0x58] sm:$0xff] (!%p1308_p11)  ;;  %1114 = vst [vmem:[%s1882_s3 + $0x48] sm:$0xff] (!%p1308_p11), %v1098_v24 }
 0x167   : > { %1043 = vst [vmem:[#allocation2 + $0x68] sm:$0xff] %v1027_v31  ;;  %v1439_v37 = vadd.f32 %v1438_v35, %v1437_v32  ;;  %v1440_v38 = vpop.f32.mrb[30].mxu1  ;;  %v1377_v39 = vpop.f32.mrb[31].mxu0  ;;  %v1084_v21 = vadd.f32 (!%p1308_p11), %v1309_v50, %v1061_v10  ;;  %v1099_v27 = vmax.f32 (!%p1308_p11), %v1083_v20, 0.0 }
 0x168   : > { %v1378_v41 = vadd.f32 %v1377_v39, %v1376_v36  ;;  %v1441_v42 = vpop.f32.mrb[31].mxu1 }
 0x169   : > { %v1008_v43 = vadd.f32 %v1439_v37, %v1375_v34  ;;  %v1442_v44 = vadd.f32 %v1441_v42, %v1440_v38  ;;  %1049 = sbr.rel (%p1308_p11) target bundleno = 380 (0x17c), region = 63  ;;  %v1100_v28 = vmax.f32 (!%p1308_p11), %v1084_v21, 0.0  ;;  %1115 = vst [vmem:[%s1882_s3 + $0x50] sm:$0xff] (!%p1308_p11), %v1099_v27 }
 0x16b   : > { %v1028_v46 = vadd.f32 %v1008_v43, %v370_v40  ;;  %v1011_v47 = vadd.f32 %v1442_v44, %v1378_v41  ;;  %1116 = vst [vmem:[%s1882_s3 + $0x58] sm:$0xff] (!%p1308_p11), %v1100_v28 }
 0x16c   : > { %v1062_v11 = vld [vmem:[#allocation2 + $0x60] sm:$0xff] (!%p1308_p11) }
 0x16d   : > { %1044 = vst [vmem:[#allocation2 + $0x70] sm:$0xff] %v1028_v46  ;;  %v1029_v48 = vadd.f32 %v1011_v47, %v371_v45  ;;  %v1085_v22 = vadd.f32 (!%p1308_p11), %v1309_v50, %v1062_v11 }
 0x16e   : > { %v1063_v12 = vld [vmem:[#allocation2 + $0x68] sm:$0xff] (!%p1308_p11) }
 0x16f   : > { %1045 = vst [vmem:[#allocation2 + $0x78] sm:$0xff] %v1029_v48  ;;  %v1086_v25 = vadd.f32 (!%p1308_p11), %v1309_v50, %v1063_v12  ;;  %v1101_v29 = vmax.f32 (!%p1308_p11), %v1085_v22, 0.0 }
 0x171   : > { %v1102_v31 = vmax.f32 %v1086_v25, 0.0  ;;  %1117 = vst [vmem:[%s1882_s3 + $0x60] sm:$0xff] %v1101_v29 }
 0x173   : > { %1118 = vst [vmem:[%s1882_s3 + $0x68] sm:$0xff] %v1102_v31 }
 0x174   : > { %v1064_v17 = vld [vmem:[#allocation2 + $0x70] sm:$0xff] }
 0x175   : > { %v1087_v26 = vadd.f32 %v1309_v50, %v1064_v17 }
 0x176   : > { %v1065_v18 = vld [vmem:[#allocation2 + $0x78] sm:$0xff] }
 0x177   : > { %v1088_v30 = vadd.f32 %v1309_v50, %v1065_v18  ;;  %v1103_v32 = vmax.f32 %v1087_v26, 0.0 }
 0x179   : > { %v1104_v33 = vmax.f32 %v1088_v30, 0.0  ;;  %1119 = vst [vmem:[%s1882_s3 + $0x70] sm:$0xff] %v1103_v32 }
 0x17b   : > { %1120 = vst [vmem:[%s1882_s3 + $0x78] sm:$0xff] %v1104_v33 }
 0x17c PF: > { %s13_s16 = sadd.s32 1, %s1602_s16   ;;  %s1883_s12 = smov %s1590_s13 }
 0x17d   : > { %p10_p12 = scmp.ge.s32.totalorder %s13_s16, 4   ;;  %s1884_s13 = smov %s1660_s20 }
 0x17e   : > { %s1885_s14 = smov %s1598_s15  ;;  %s1886_s15 = smov %s1888_s17 }
 0x17f   :  { %12 = sbr.rel (!%p10_p12) target bundleno = 3 (0x3), region = 104 }

// kernel: resnet_forward.27
= control target key start
LH: loop header
LB: loop body
LE: loop exit
PB: predicated region body
PF: predicated region fallthrough
CT: control target
= control target key end

     0   :  { %s1741_s15 = smov 0   ;;  %s1743_s16 = smov 0   ;;  %s2061_s0 = inlined_call_operand.vmem [shape: bf16[128,1024], index: 0, kind: input, shape index: {}]   ;;  %s2062_s1 = inlined_call_operand.vmem [shape: bf16[1024,128], index: 1, kind: input, shape index: {}]   ;;  %s2063_s2 = inlined_call_operand.vmem [shape: f32[1,128], index: 2, kind: input, shape index: {}]   ;;  %s2064_s3 = inlined_call_operand.vmem [shape: f32[128,128], index: 3, kind: input, shape index: {}]   ;;  %s2065_s4 = inlined_call_operand.vmem [shape: f32[128,128], index: 4, kind: output, shape index: {}]  }
   0x1   :  { %s1745_s17 = smov 0   ;;  %s1747_s18 = smov 0  }
   0x2   :  { %s1749_s19 = smov 0  }
   0x3 LB: > { %s26_s20 = sadd.s32 1, %s1709_s18  ;;  %p49_p1 = scmp.ne.s32.totalorder %s1701_s16, %s1697_s15  ;;  %s1713_s19 = sphi %s1749_s19, %s14_s19   ;;  %s1709_s18 = sphi %s1747_s18, %s2069_s18   ;;  %s1705_s17 = sphi %s1745_s17, %s2068_s17   ;;  %s1701_s16 = sphi %s1743_s16, %s2067_s16   ;;  %s1697_s15 = sphi %s1741_s15, %s2066_s15  }
   0x4   : > { %p27_p0 = scmp.ge.s32.totalorder %s26_s20, 2  ;;  %p50_p2 = scmp.eq.s32.totalorder %s1713_s19, 0 }
   0x5   : > { %s42_s22 = sadd.s32 1, %s1701_s16  ;;  %p1346_p5 = scmp.ge.s32.totalorder %s1713_s19, 2 }
   0x6   : > { %s2071_s20 = smov (%p27_p0, %s26_s20), 0  ;;  %p51_p3 = por %p50_p2, %p49_p1 }
   0x7   : > { %s38_s21 = ssub.s32 %s1709_s18, %s2071_s20  ;;  %203 = sbr.rel (%p1346_p5) target bundleno = 34 (0x22), region = 24 }
   0x8   : > { %p40_p4 = scmp.eq.s32.totalorder %s38_s21, 0 }
   0xa   : > { %s1776_s23 = scalar_select %p40_p4, %s1701_s16, %s42_s22  }
   0xe   : > { %206 = sbr.rel (!%p51_p3) target bundleno = 34 (0x22), region = 28  ;;  %s208_s24 = sand.u32 (%p51_p3), 1, %s1701_s16  }
   0xf   : > { %s1425_s25 = sshll.u32 (%p51_p3), %s1709_s18, 4  ;;  %s1347_s26 = sshll.u32 (%p51_p3), %s208_s24, 8 }
  0x10   : > { %s1784_s29 = scalar_lea.vmem (%p51_p3), %s2061_s0, %s1425_s25  ;;  %s1789_s30 = scalar_lea.vmem (%p51_p3), [#allocation3], %s1347_s26 }
  0x11   : > { %v229_v0 = vld [vmem:[%s1784_s29] sm:$0xff] (%p51_p3)  ;;  %v231_v1 = vld [vmem:[%s1784_s29 + $0x8] sm:$0xff] (%p51_p3) }
  0x12   : > { %v233_v2 = vld [vmem:[%s1784_s29 + $0x20] sm:$0xff] (%p51_p3)  ;;  %230 = vst [vmem:[%s1789_s30] sm:$0xff] (%p51_p3), %v229_v0  ;;  %232 = vst [vmem:[%s1789_s30 + $0x8] sm:$0xff] (%p51_p3), %v231_v1  ;;  %v235_v3 = vld [vmem:[%s1784_s29 + $0x28] sm:$0xff] (%p51_p3) }
  0x13   : > { %234 = vst [vmem:[%s1789_s30 + $0x10] sm:$0xff] (%p51_p3), %v233_v2  ;;  %v237_v4 = vld [vmem:[%s1784_s29 + $0x40] sm:$0xff] (%p51_p3)  ;;  %v239_v5 = vld [vmem:[%s1784_s29 + $0x48] sm:$0xff] (%p51_p3)  ;;  %236 = vst [vmem:[%s1789_s30 + $0x18] sm:$0xff] (%p51_p3), %v235_v3 }
  0x14   : > { %238 = vst [vmem:[%s1789_s30 + $0x20] sm:$0xff] (%p51_p3), %v237_v4  ;;  %240 = vst [vmem:[%s1789_s30 + $0x28] sm:$0xff] (%p51_p3), %v239_v5  ;;  %v241_v6 = vld [vmem:[%s1784_s29 + $0x60] sm:$0xff] (%p51_p3)  ;;  %v243_v7 = vld [vmem:[%s1784_s29 + $0x68] sm:$0xff] (%p51_p3) }
  0x15   : > { %v245_v8 = vld [vmem:[%s1784_s29 + $0x80] sm:$0xff]  ;;  %242 = vst [vmem:[%s1789_s30 + $0x30] sm:$0xff] %v241_v6  ;;  %244 = vst [vmem:[%s1789_s30 + $0x38] sm:$0xff] %v243_v7  ;;  %v247_v9 = vld [vmem:[%s1784_s29 + $0x88] sm:$0xff] }
  0x16   : > { %246 = vst [vmem:[%s1789_s30 + $0x40] sm:$0xff] %v245_v8  ;;  %v249_v10 = vld [vmem:[%s1784_s29 + $0xa0] sm:$0xff]  ;;  %v251_v11 = vld [vmem:[%s1784_s29 + $0xa8] sm:$0xff]  ;;  %248 = vst [vmem:[%s1789_s30 + $0x48] sm:$0xff] %v247_v9 }
  0x17   : > { %250 = vst [vmem:[%s1789_s30 + $0x50] sm:$0xff] %v249_v10  ;;  %252 = vst [vmem:[%s1789_s30 + $0x58] sm:$0xff] %v251_v11  ;;  %v253_v12 = vld [vmem:[%s1784_s29 + $0xc0] sm:$0xff]  ;;  %v255_v13 = vld [vmem:[%s1784_s29 + $0xc8] sm:$0xff] }
  0x18   : > { %v257_v14 = vld [vmem:[%s1784_s29 + $0xe0] sm:$0xff]  ;;  %254 = vst [vmem:[%s1789_s30 + $0x60] sm:$0xff] %v253_v12  ;;  %256 = vst [vmem:[%s1789_s30 + $0x68] sm:$0xff] %v255_v13  ;;  %v259_v15 = vld [vmem:[%s1784_s29 + $0xe8] sm:$0xff] }
  0x19   : > { %258 = vst [vmem:[%s1789_s30 + $0x70] sm:$0xff] %v257_v14  ;;  %v261_v16 = vld [vmem:[%s1784_s29 + $0x100] sm:$0xff]  ;;  %v263_v17 = vld [vmem:[%s1784_s29 + $0x108] sm:$0xff]  ;;  %260 = vst [vmem:[%s1789_s30 + $0x78] sm:$0xff] %v259_v15 }
  0x1a   : > { %262 = vst [vmem:[%s1789_s30 + $0x80] sm:$0xff] %v261_v16  ;;  %264 = vst [vmem:[%s1789_s30 + $0x88] sm:$0xff] %v263_v17  ;;  %v265_v18 = vld [vmem:[%s1784_s29 + $0x120] sm:$0xff]  ;;  %v267_v19 = vld [vmem:[%s1784_s29 + $0x128] sm:$0xff] }
  0x1b   : > { %v269_v20 = vld [vmem:[%s1784_s29 + $0x140] sm:$0xff]  ;;  %266 = vst [vmem:[%s1789_s30 + $0x90] sm:$0xff] %v265_v18  ;;  %268 = vst [vmem:[%s1789_s30 + $0x98] sm:$0xff] %v267_v19  ;;  %v271_v21 = vld [vmem:[%s1784_s29 + $0x148] sm:$0xff] }
  0x1c   : > { %270 = vst [vmem:[%s1789_s30 + $0xa0] sm:$0xff] %v269_v20  ;;  %v273_v22 = vld [vmem:[%s1784_s29 + $0x160] sm:$0xff]  ;;  %v275_v23 = vld [vmem:[%s1784_s29 + $0x168] sm:$0xff]  ;;  %272 = vst [vmem:[%s1789_s30 + $0xa8] sm:$0xff] %v271_v21 }
  0x1d   : > { %274 = vst [vmem:[%s1789_s30 + $0xb0] sm:$0xff] %v273_v22  ;;  %276 = vst [vmem:[%s1789_s30 + $0xb8] sm:$0xff] %v275_v23  ;;  %v277_v24 = vld [vmem:[%s1784_s29 + $0x180] sm:$0xff]  ;;  %v279_v25 = vld [vmem:[%s1784_s29 + $0x188] sm:$0xff] }
  0x1e   : > { %v281_v26 = vld [vmem:[%s1784_s29 + $0x1a0] sm:$0xff]  ;;  %278 = vst [vmem:[%s1789_s30 + $0xc0] sm:$0xff] %v277_v24  ;;  %280 = vst [vmem:[%s1789_s30 + $0xc8] sm:$0xff] %v279_v25  ;;  %v283_v27 = vld [vmem:[%s1784_s29 + $0x1a8] sm:$0xff] }
  0x1f   : > { %282 = vst [vmem:[%s1789_s30 + $0xd0] sm:$0xff] %v281_v26  ;;  %v285_v28 = vld [vmem:[%s1784_s29 + $0x1c0] sm:$0xff]  ;;  %v287_v29 = vld [vmem:[%s1784_s29 + $0x1c8] sm:$0xff]  ;;  %284 = vst [vmem:[%s1789_s30 + $0xd8] sm:$0xff] %v283_v27 }
  0x20   : > { %286 = vst [vmem:[%s1789_s30 + $0xe0] sm:$0xff] %v285_v28  ;;  %288 = vst [vmem:[%s1789_s30 + $0xe8] sm:$0xff] %v287_v29  ;;  %v289_v30 = vld [vmem:[%s1784_s29 + $0x1e0] sm:$0xff]  ;;  %v291_v31 = vld [vmem:[%s1784_s29 + $0x1e8] sm:$0xff] }
  0x21   : > { %290 = vst [vmem:[%s1789_s30 + $0xf0] sm:$0xff] %v289_v30  ;;  %292 = vst [vmem:[%s1789_s30 + $0xf8] sm:$0xff] %v291_v31 }
  0x22 PF: > { %p1350_p6 = scmp.ge.s32.totalorder %s1713_s19, 1  ;;  %p309_p7 = scmp.lt.s32.totalorder %s1713_s19, 3 }
  0x24   : > { %p310_p8 = pnand %p1350_p6, %p309_p7 }
  0x25   : > { %s316_s5 = sand.u32 (!%p310_p8), 1, %s1697_s15   ;;  %s1352_s6 = sshll.u32 (!%p310_p8), %s1705_s17, 6 }
  0x26   : > { %313 = sbr.rel (%p310_p8) target bundleno = 382 (0x17e), region = 55  ;;  %s1351_s7 = sshll.u32 (!%p310_p8), %s316_s5, 8 }
  0x27   : > { %p366_p9 = scmp.lt.s32.totalorder (!%p310_p8), %s1352_s6, 127  ;;  %s1861_s12 = scalar_lea.vmem (!%p310_p8), [#allocation3], %s1351_s7 }
  0x28   : > { %p1354_p10 = scmp.ne.s32.totalorder (!%p310_p8), %s1705_s17, 0 }
  0x2d   : > { %s2073_s6 = smov (!%p366_p9, %s1352_s6), 127  ;;  %399 = sbr.rel (%p1354_p10) target bundleno = 55 (0x37), region = 63 }
  0x2e   : > { %s1353_s8 = sshll.u32 %s2073_s6, 2  ;;  %v1715_v32 = vmov (!%p1354_p10), 0.0  }
  0x2f   : > { %s1859_s11 = scalar_lea.vmem %s2062_s1, %s1353_s8  ;;  %400 = vst [vmem:[#allocation2] sm:$0xff] (!%p1354_p10), %v1715_v32  ;;  %401 = vst [vmem:[#allocation2 + $0x8] sm:$0xff] (!%p1354_p10), %v1715_v32 }
  0x30   : > { %402 = vst [vmem:[#allocation2 + $0x10] sm:$0xff] (!%p1354_p10), %v1715_v32  ;;  %403 = vst [vmem:[#allocation2 + $0x18] sm:$0xff] (!%p1354_p10), %v1715_v32 }
  0x31   : > { %404 = vst [vmem:[#allocation2 + $0x20] sm:$0xff] (!%p1354_p10), %v1715_v32  ;;  %405 = vst [vmem:[#allocation2 + $0x28] sm:$0xff] (!%p1354_p10), %v1715_v32 }
  0x32   : > { %406 = vst [vmem:[#allocation2 + $0x30] sm:$0xff] (!%p1354_p10), %v1715_v32  ;;  %407 = vst [vmem:[#allocation2 + $0x38] sm:$0xff] (!%p1354_p10), %v1715_v32 }
  0x33   : > { %408 = vst [vmem:[#allocation2 + $0x40] sm:$0xff] (!%p1354_p10), %v1715_v32  ;;  %409 = vst [vmem:[#allocation2 + $0x48] sm:$0xff] (!%p1354_p10), %v1715_v32 }
  0x34   : > { %410 = vst [vmem:[#allocation2 + $0x50] sm:$0xff] %v1715_v32  ;;  %411 = vst [vmem:[#allocation2 + $0x58] sm:$0xff] %v1715_v32 }
  0x35   : > { %412 = vst [vmem:[#allocation2 + $0x60] sm:$0xff] %v1715_v32  ;;  %413 = vst [vmem:[#allocation2 + $0x68] sm:$0xff] %v1715_v32 }
  0x36   : > { %414 = vst [vmem:[#allocation2 + $0x70] sm:$0xff] %v1715_v32  ;;  %415 = vst [vmem:[#allocation2 + $0x78] sm:$0xff] %v1715_v32 }
  0x37 PF: > { %v1595_v33 = vld [vmem:[%s1859_s11 + $0x40] sm:$0xff]   ;;  %v1599_v37 = vld [vmem:[%s1859_s11 + $0x48] sm:$0xff]   ;;  %v1603_v41 = vld [vmem:[%s1859_s11 + $0x50] sm:$0xff]   ;;  %p1419_p11 = scmp.ne.s32.totalorder %s1705_s17, 1 }
  0x38   : > { %v1596_v34 = vld [vmem:[%s1859_s11 + $0xc0] sm:$0xff]   ;;  %1426 = vmatprep.subr.bf16.mxu0 %v1595_v33  ;;  %v1600_v38 = vld [vmem:[%s1859_s11 + $0xc8] sm:$0xff]   ;;  %v1604_v42 = vld [vmem:[%s1859_s11 + $0xd0] sm:$0xff]  }
  0x39   : > { %v1597_v35 = vld [vmem:[%s1859_s11] sm:$0xff]   ;;  %1490 = vmatprep.subr.bf16.mxu1 %v1596_v34  ;;  %v1601_v39 = vld [vmem:[%s1859_s11 + $0x8] sm:$0xff]   ;;  %v1605_v43 = vld [vmem:[%s1859_s11 + $0x10] sm:$0xff]  }
  0x3a   : > { %v1598_v36 = vld [vmem:[%s1859_s11 + $0x80] sm:$0xff]   ;;  %1427 = vmatpush3.bf16.msra.mxu0 %v1597_v35  ;;  %v1602_v40 = vld [vmem:[%s1859_s11 + $0x88] sm:$0xff]   ;;  %v1606_v44 = vld [vmem:[%s1859_s11 + $0x90] sm:$0xff]  }
  0x3b   : > { %1491 = vmatpush3.bf16.msra.mxu1 %v1598_v36  ;;  %1428 = vmatprep.subr.bf16.mxu0 %v1599_v37  ;;  %v1607_v45 = vld [vmem:[%s1859_s11 + $0x58] sm:$0xff]   ;;  %v1611_v49 = vld [vmem:[%s1859_s11 + $0x60] sm:$0xff]   ;;  %v1615_v53 = vld [vmem:[%s1859_s11 + $0x68] sm:$0xff]  }
  0x3c   : > { %1492 = vmatprep.subr.bf16.mxu1 %v1600_v38  ;;  %v1608_v46 = vld [vmem:[%s1859_s11 + $0xd8] sm:$0xff]   ;;  %v1612_v50 = vld [vmem:[%s1859_s11 + $0xe0] sm:$0xff]   ;;  %v1616_v54 = vld [vmem:[%s1859_s11 + $0xe8] sm:$0xff]  }
  0x3d   : > { %v1609_v47 = vld [vmem:[%s1859_s11 + $0x18] sm:$0xff]   ;;  %v1613_v51 = vld [vmem:[%s1859_s11 + $0x20] sm:$0xff]   ;;  %v1617_v55 = vld [vmem:[%s1859_s11 + $0x28] sm:$0xff]  }
  0x3e   : > { %1429 = vmatpush3.bf16.msra.mxu0 %v1601_v39  ;;  %v1610_v48 = vld [vmem:[%s1859_s11 + $0x98] sm:$0xff]   ;;  %v1614_v52 = vld [vmem:[%s1859_s11 + $0xa0] sm:$0xff]   ;;  %v1618_v56 = vld [vmem:[%s1859_s11 + $0xa8] sm:$0xff]  }
  0x3f   : > { %1493 = vmatpush3.bf16.msra.mxu1 %v1602_v40  ;;  %1430 = vmatprep.subr.bf16.mxu0 %v1603_v41  ;;  %v1619_v57 = vld [vmem:[%s1859_s11 + $0x70] sm:$0xff]   ;;  %v1623_v61 = vld [vmem:[%s1859_s11 + $0x78] sm:$0xff]  }
  0x40   : > { %1494 = vmatprep.subr.bf16.mxu1 %v1604_v42  ;;  %v1620_v58 = vld [vmem:[%s1859_s11 + $0xf0] sm:$0xff]   ;;  %v1624_v62 = vld [vmem:[%s1859_s11 + $0xf8] sm:$0xff]   ;;  %v416_v42 = vld [vmem:[#allocation2] sm:$0xff] }
  0x41   : > { %v1621_v59 = vld [vmem:[%s1859_s11 + $0x30] sm:$0xff]   ;;  %v1625_v63 = vld [vmem:[%s1859_s11 + $0x38] sm:$0xff]  }
  0x42   : > { %1431 = vmatpush3.bf16.msra.mxu0 %v1605_v43  ;;  %v1622_v60 = vld [vmem:[%s1859_s11 + $0xb0] sm:$0xff]   ;;  %v1626_v0 = vld [vmem:[%s1859_s11 + $0xb8] sm:$0xff]  }
  0x43   : > { %1495 = vmatpush3.bf16.msra.mxu1 %v1606_v44  ;;  %1432 = vmatprep.subr.bf16.mxu0 %v1607_v45  ;;  %v1627_v1 = vld [vmem:[%s1861_s12] ss:$16 sps:$4 sm:$0xff]   ;;  %v1629_v2 = vld [vmem:[%s1861_s12 + $0x4] ss:$16 sps:$4 sm:$0xff]   ;;  %v1630_v3 = vld [vmem:[%s1861_s12 + $0x8] ss:$16 sps:$4 sm:$0xff]  }
  0x44   : > { %1496 = vmatprep.subr.bf16.mxu1 %v1608_v46  ;;  %v1632_v4 = vld [vmem:[%s1861_s12 + $0xc] ss:$16 sps:$4 sm:$0xff]   ;;  %912 = vmatprep.mubr.bf16.mxu0 %v1629_v2  ;;  %v1633_v5 = vld [vmem:[%s1861_s12 + $0x24] ss:$16 sps:$4 sm:$0xff]   ;;  %v1637_v7 = vld [vmem:[%s1861_s12 + $0x20] ss:$16 sps:$4 sm:$0xff]  }
  0x45   : > { %1009 = vmatprep.mubr.bf16.mxu1 %v1632_v4  ;;  %v1635_v6 = vld [vmem:[%s1861_s12 + $0x2c] ss:$16 sps:$4 sm:$0xff]   ;;  %v1638_v8 = vld [vmem:[%s1861_s12 + $0x28] ss:$16 sps:$4 sm:$0xff]   ;;  %v1639_v9 = vld [vmem:[%s1861_s12 + $0x44] ss:$16 sps:$4 sm:$0xff]  }
  0x46   : > { %1433 = vmatpush3.bf16.msra.mxu0 %v1609_v47  ;;  %v1641_v10 = vld [vmem:[%s1861_s12 + $0x4c] ss:$16 sps:$4 sm:$0xff]   ;;  %v1643_v11 = vld [vmem:[%s1861_s12 + $0x40] ss:$16 sps:$4 sm:$0xff]   ;;  %v1644_v12 = vld [vmem:[%s1861_s12 + $0x48] ss:$16 sps:$4 sm:$0xff]  }
  0x47   : > { %1497 = vmatpush3.bf16.msra.mxu1 %v1610_v48  ;;  %1434 = vmatprep.subr.bf16.mxu0 %v1611_v49  ;;  %v1645_v13 = vld [vmem:[%s1861_s12 + $0x64] ss:$16 sps:$4 sm:$0xff]   ;;  %v1647_v14 = vld [vmem:[%s1861_s12 + $0x6c] ss:$16 sps:$4 sm:$0xff]   ;;  %v1649_v15 = vld [vmem:[%s1861_s12 + $0x60] ss:$16 sps:$4 sm:$0xff]  }
  0x48   : > { %1498 = vmatprep.subr.bf16.mxu1 %v1612_v50  ;;  %v1650_v16 = vld [vmem:[%s1861_s12 + $0x68] ss:$16 sps:$4 sm:$0xff]   ;;  %v1651_v17 = vld [vmem:[%s1861_s12 + $0x84] ss:$16 sps:$4 sm:$0xff]   ;;  %v1653_v18 = vld [vmem:[%s1861_s12 + $0x8c] ss:$16 sps:$4 sm:$0xff]  }
  0x49   : > { %v1655_v19 = vld [vmem:[%s1861_s12 + $0x80] ss:$16 sps:$4 sm:$0xff]   ;;  %v1656_v20 = vld [vmem:[%s1861_s12 + $0x88] ss:$16 sps:$4 sm:$0xff]   ;;  %v1657_v21 = vld [vmem:[%s1861_s12 + $0xa4] ss:$16 sps:$4 sm:$0xff]  }
  0x4a   : > { %1435 = vmatpush3.bf16.msra.mxu0 %v1613_v51  ;;  %v1659_v22 = vld [vmem:[%s1861_s12 + $0xac] ss:$16 sps:$4 sm:$0xff]   ;;  %v1661_v23 = vld [vmem:[%s1861_s12 + $0xa0] ss:$16 sps:$4 sm:$0xff]   ;;  %v1662_v24 = vld [vmem:[%s1861_s12 + $0xa8] ss:$16 sps:$4 sm:$0xff]  }
  0x4b   : > { %1499 = vmatpush3.bf16.msra.mxu1 %v1614_v52  ;;  %1436 = vmatprep.subr.bf16.mxu0 %v1615_v53  ;;  %v1663_v25 = vld [vmem:[%s1861_s12 + $0xc4] ss:$16 sps:$4 sm:$0xff]   ;;  %v1665_v26 = vld [vmem:[%s1861_s12 + $0xcc] ss:$16 sps:$4 sm:$0xff]   ;;  %v1667_v27 = vld [vmem:[%s1861_s12 + $0xc0] ss:$16 sps:$4 sm:$0xff]  }
  0x4c   : > { %1500 = vmatprep.subr.bf16.mxu1 %v1616_v54  ;;  %v1668_v28 = vld [vmem:[%s1861_s12 + $0xc8] ss:$16 sps:$4 sm:$0xff]   ;;  %v1669_v29 = vld [vmem:[%s1861_s12 + $0xe4] ss:$16 sps:$4 sm:$0xff]   ;;  %v1671_v30 = vld [vmem:[%s1861_s12 + $0xec] ss:$16 sps:$4 sm:$0xff]  }
  0x4d   : > { %v1673_v31 = vld [vmem:[%s1861_s12 + $0xe0] ss:$16 sps:$4 sm:$0xff]   ;;  %v1674_v32 = vld [vmem:[%s1861_s12 + $0xe8] ss:$16 sps:$4 sm:$0xff]  }
  0x4e   : > { %1437 = vmatpush3.bf16.msra.mxu0 %v1617_v55  ;;  %v417_v47 = vld [vmem:[#allocation2 + $0x8] sm:$0xff] }
  0x4f   : > { %1501 = vmatpush3.bf16.msra.mxu1 %v1618_v56  ;;  %1438 = vmatprep.subr.bf16.mxu0 %v1619_v57 }
  0x50   : > { %1502 = vmatprep.subr.bf16.mxu1 %v1620_v58 }
  0x52   : > { %1439 = vmatpush3.bf16.msra.mxu0 %v1621_v59 }
  0x53   : > { %1503 = vmatpush3.bf16.msra.mxu1 %v1622_v60  ;;  %1440 = vmatprep.subr.bf16.mxu0 %v1623_v61  ;;  %v418_v60 = vld [vmem:[#allocation2 + $0x10] sm:$0xff] }
  0x54   : > { %1504 = vmatprep.subr.bf16.mxu1 %v1624_v62 }
  0x56   : > { %1441 = vmatpush3.bf16.msra.mxu0 %v1625_v63 }
  0x57   : > { %1505 = vmatpush3.bf16.msra.mxu1 %v1626_v0 }
  0x59   : > { %913 = vmatmul.mubr.bf16.vlgmr.msra.gmra.mrb[0].mxu0 %v1627_v1  ;;  %v419_v1 = vld [vmem:[#allocation2 + $0x18] sm:$0xff] }
  0x5a   : > { %1010 = vmatmul.mubr.bf16.vlgmr.msra.gmra.mrb[0].mxu1 %v1630_v3  ;;  %920 = vmatprep.mubr.bf16.mxu0 %v1633_v5 }
  0x5b   : > { %1017 = vmatprep.mubr.bf16.mxu1 %v1635_v6 }
  0x61   : > { %921 = vmatmul.mubr.bf16.gmra.mrb[4].mxu0 %v1637_v7 }
  0x62   : > { %1018 = vmatmul.mubr.bf16.gmra.mrb[4].mxu1 %v1638_v8  ;;  %928 = vmatprep.mubr.bf16.mxu0 %v1639_v9 }
  0x63   : > { %1025 = vmatprep.mubr.bf16.mxu1 %v1641_v10 }
  0x69   : > { %929 = vmatmul.mubr.bf16.gmra.mrb[8].mxu0 %v1643_v11 }
  0x6a   : > { %1026 = vmatmul.mubr.bf16.gmra.mrb[8].mxu1 %v1644_v12  ;;  %936 = vmatprep.mubr.bf16.mxu0 %v1645_v13 }
  0x6b   : > { %1033 = vmatprep.mubr.bf16.mxu1 %v1647_v14  ;;  %v420_v14 = vld [vmem:[#allocation2 + $0x20] sm:$0xff] }
  0x71   : > { %937 = vmatmul.mubr.bf16.gmra.mrb[12].mxu0 %v1649_v15 }
  0x72   : > { %1034 = vmatmul.mubr.bf16.gmra.mrb[12].mxu1 %v1650_v16  ;;  %944 = vmatprep.mubr.bf16.mxu0 %v1651_v17 }
  0x73   : > { %1041 = vmatprep.mubr.bf16.mxu1 %v1653_v18 }
  0x79   : > { %945 = vmatmul.mubr.bf16.gmra.mrb[16].mxu0 %v1655_v19  ;;  %v421_v19 = vld [vmem:[#allocation2 + $0x28] sm:$0xff] }
  0x7a   : > { %1042 = vmatmul.mubr.bf16.gmra.mrb[16].mxu1 %v1656_v20  ;;  %952 = vmatprep.mubr.bf16.mxu0 %v1657_v21 }
  0x7b   : > { %1049 = vmatprep.mubr.bf16.mxu1 %v1659_v22 }
  0x81   : > { %953 = vmatmul.mubr.bf16.gmra.mrb[20].mxu0 %v1661_v23 }
  0x82   : > { %1050 = vmatmul.mubr.bf16.gmra.mrb[20].mxu1 %v1662_v24  ;;  %960 = vmatprep.mubr.bf16.mxu0 %v1663_v25 }
  0x83   : > { %1057 = vmatprep.mubr.bf16.mxu1 %v1665_v26 }
  0x89   : > { %961 = vmatmul.mubr.bf16.gmra.mrb[24].mxu0 %v1667_v27 }
  0x8a   : > { %1058 = vmatmul.mubr.bf16.gmra.mrb[24].mxu1 %v1668_v28  ;;  %968 = vmatprep.mubr.bf16.mxu0 %v1669_v29 }
  0x8b   : > { %1065 = vmatprep.mubr.bf16.mxu1 %v1671_v30 }
  0x91   : > { %969 = vmatmul.mubr.bf16.gmra.mrb[28].mxu0 %v1673_v31 }
  0x92   : > { %1066 = vmatmul.mubr.bf16.gmra.mrb[28].mxu1 %v1674_v32  ;;  %v422_v32 = vld [vmem:[#allocation2 + $0x30] sm:$0xff] }
 0x12c   : > { %v1442_v33 = vpop.f32.mrb[0].mxu0 }
 0x12d   : > { %v1506_v34 = vpop.f32.mrb[0].mxu1  ;;  %v1443_v35 = vpop.f32.mrb[1].mxu0 }
 0x12e   : > { %v1444_v36 = vadd.f32 %v1443_v35, %v1442_v33  ;;  %v1507_v37 = vpop.f32.mrb[1].mxu1  ;;  %v1445_v38 = vpop.f32.mrb[2].mxu0 }
 0x12f   : > { %v1508_v39 = vadd.f32 %v1507_v37, %v1506_v34  ;;  %v1509_v40 = vpop.f32.mrb[2].mxu1  ;;  %v1446_v41 = vpop.f32.mrb[3].mxu0  ;;  %v423_v37 = vld [vmem:[#allocation2 + $0x38] sm:$0xff] }
 0x130   : > { %v1447_v43 = vadd.f32 %v1446_v41, %v1445_v38  ;;  %v1510_v44 = vpop.f32.mrb[3].mxu1 }
 0x131   : > { %v1012_v45 = vadd.f32 %v1508_v39, %v1444_v36  ;;  %v1511_v46 = vadd.f32 %v1510_v44, %v1509_v40 }
 0x133   : > { %v1074_v48 = vadd.f32 %v1012_v45, %v416_v42  ;;  %v1015_v49 = vadd.f32 %v1511_v46, %v1447_v43 }
 0x134   : > { %v1448_v50 = vpop.f32.mrb[4].mxu0 }
 0x135   : > { %1090 = vst [vmem:[#allocation2] sm:$0xff] %v1074_v48  ;;  %v1075_v51 = vadd.f32 %v1015_v49, %v417_v47  ;;  %v1512_v52 = vpop.f32.mrb[4].mxu1  ;;  %v1449_v53 = vpop.f32.mrb[5].mxu0 }
 0x136   : > { %v1450_v54 = vadd.f32 %v1449_v53, %v1448_v50  ;;  %v1513_v55 = vpop.f32.mrb[5].mxu1  ;;  %v1451_v56 = vpop.f32.mrb[6].mxu0  ;;  %v424_v50 = vld [vmem:[#allocation2 + $0x40] sm:$0xff] }
 0x137   : > { %1091 = vst [vmem:[#allocation2 + $0x8] sm:$0xff] %v1075_v51  ;;  %v1514_v57 = vadd.f32 %v1513_v55, %v1512_v52  ;;  %v1515_v58 = vpop.f32.mrb[6].mxu1  ;;  %v1452_v59 = vpop.f32.mrb[7].mxu0  ;;  %v425_v55 = vld [vmem:[#allocation2 + $0x48] sm:$0xff] }
 0x138   : > { %v1453_v61 = vadd.f32 %v1452_v59, %v1451_v56  ;;  %v1516_v62 = vpop.f32.mrb[7].mxu1 }
 0x139   : > { %v1020_v63 = vadd.f32 %v1514_v57, %v1450_v54  ;;  %v1517_v0 = vadd.f32 %v1516_v62, %v1515_v58 }
 0x13b   : > { %v1076_v2 = vadd.f32 %v1020_v63, %v418_v60  ;;  %v1023_v3 = vadd.f32 %v1517_v0, %v1453_v61 }
 0x13c   : > { %v1454_v4 = vpop.f32.mrb[8].mxu0 }
 0x13d   : > { %1092 = vst [vmem:[#allocation2 + $0x10] sm:$0xff] %v1076_v2  ;;  %v1077_v5 = vadd.f32 %v1023_v3, %v419_v1  ;;  %v1518_v6 = vpop.f32.mrb[8].mxu1  ;;  %v1455_v7 = vpop.f32.mrb[9].mxu0 }
 0x13e   : > { %v1456_v8 = vadd.f32 %v1455_v7, %v1454_v4  ;;  %v1519_v9 = vpop.f32.mrb[9].mxu1  ;;  %v1457_v10 = vpop.f32.mrb[10].mxu0  ;;  %v426_v4 = vld [vmem:[#allocation2 + $0x50] sm:$0xff] }
 0x13f   : > { %1093 = vst [vmem:[#allocation2 + $0x18] sm:$0xff] %v1077_v5  ;;  %v1520_v11 = vadd.f32 %v1519_v9, %v1518_v6  ;;  %v1521_v12 = vpop.f32.mrb[10].mxu1  ;;  %v1458_v13 = vpop.f32.mrb[11].mxu0  ;;  %v427_v9 = vld [vmem:[#allocation2 + $0x58] sm:$0xff] }
 0x140   : > { %v1459_v15 = vadd.f32 %v1458_v13, %v1457_v10  ;;  %v1522_v16 = vpop.f32.mrb[11].mxu1 }
 0x141   : > { %v1028_v17 = vadd.f32 %v1520_v11, %v1456_v8  ;;  %v1523_v18 = vadd.f32 %v1522_v16, %v1521_v12 }
 0x143   : > { %v1078_v20 = vadd.f32 %v1028_v17, %v420_v14  ;;  %v1031_v21 = vadd.f32 %v1523_v18, %v1459_v15 }
 0x144   : > { %v1460_v22 = vpop.f32.mrb[12].mxu0 }
 0x145   : > { %1094 = vst [vmem:[#allocation2 + $0x20] sm:$0xff] %v1078_v20  ;;  %v1079_v23 = vadd.f32 %v1031_v21, %v421_v19  ;;  %v1524_v24 = vpop.f32.mrb[12].mxu1  ;;  %v1461_v25 = vpop.f32.mrb[13].mxu0 }
 0x146   : > { %v1462_v26 = vadd.f32 %v1461_v25, %v1460_v22  ;;  %v1525_v27 = vpop.f32.mrb[13].mxu1  ;;  %v1463_v28 = vpop.f32.mrb[14].mxu0  ;;  %v428_v22 = vld [vmem:[#allocation2 + $0x60] sm:$0xff] }
 0x147   : > { %1095 = vst [vmem:[#allocation2 + $0x28] sm:$0xff] %v1079_v23  ;;  %v1526_v29 = vadd.f32 %v1525_v27, %v1524_v24  ;;  %v1527_v30 = vpop.f32.mrb[14].mxu1  ;;  %v1464_v31 = vpop.f32.mrb[15].mxu0  ;;  %v429_v27 = vld [vmem:[#allocation2 + $0x68] sm:$0xff] }
 0x148   : > { %v1465_v33 = vadd.f32 %v1464_v31, %v1463_v28  ;;  %v1528_v34 = vpop.f32.mrb[15].mxu1 }
 0x149   : > { %v1036_v35 = vadd.f32 %v1526_v29, %v1462_v26  ;;  %v1529_v36 = vadd.f32 %v1528_v34, %v1527_v30 }
 0x14b   : > { %v1080_v38 = vadd.f32 %v1036_v35, %v422_v32  ;;  %v1039_v39 = vadd.f32 %v1529_v36, %v1465_v33 }
 0x14c   : > { %v1466_v40 = vpop.f32.mrb[16].mxu0 }
 0x14d   : > { %1096 = vst [vmem:[#allocation2 + $0x30] sm:$0xff] %v1080_v38  ;;  %v1081_v41 = vadd.f32 %v1039_v39, %v423_v37  ;;  %v1530_v42 = vpop.f32.mrb[16].mxu1  ;;  %v1467_v43 = vpop.f32.mrb[17].mxu0 }
 0x14e   : > { %v1468_v44 = vadd.f32 %v1467_v43, %v1466_v40  ;;  %v1531_v45 = vpop.f32.mrb[17].mxu1  ;;  %v1469_v46 = vpop.f32.mrb[18].mxu0  ;;  %v430_v40 = vld [vmem:[#allocation2 + $0x70] sm:$0xff] }
 0x14f   : > { %1097 = vst [vmem:[#allocation2 + $0x38] sm:$0xff] %v1081_v41  ;;  %v1532_v47 = vadd.f32 %v1531_v45, %v1530_v42  ;;  %v1533_v48 = vpop.f32.mrb[18].mxu1  ;;  %v1470_v49 = vpop.f32.mrb[19].mxu0  ;;  %v431_v45 = vld [vmem:[#allocation2 + $0x78] sm:$0xff] }
 0x150   : > { %v1471_v51 = vadd.f32 %v1470_v49, %v1469_v46  ;;  %v1534_v52 = vpop.f32.mrb[19].mxu1  ;;  %v1110_v49 = vld [vmem:[#allocation2] sm:$0xff] (!%p1419_p11) }
 0x151   : > { %v1044_v53 = vadd.f32 %v1532_v47, %v1468_v44  ;;  %v1535_v54 = vadd.f32 %v1534_v52, %v1533_v48 }
 0x153   : > { %v1082_v56 = vadd.f32 %v1044_v53, %v424_v50  ;;  %v1047_v57 = vadd.f32 %v1535_v54, %v1471_v51  ;;  %v1932_v50 = vld [vmem:[%s2063_s2] ss:$0 sm:$0xff] (!%p1419_p11)  ;;  %v1111_v53 = vld [vmem:[#allocation2 + $0x8] sm:$0xff] (!%p1419_p11) }
 0x154   : > { %v1472_v58 = vpop.f32.mrb[20].mxu0  ;;  %v1149_v51 = vld [vmem:[%s2064_s3] sm:$0xff] (!%p1419_p11)  ;;  %v1133_v52 = vadd.f32 (!%p1419_p11), %v1932_v50, %v1110_v49  ;;  %v1150_v54 = vld [vmem:[%s2064_s3 + $0x8] sm:$0xff] (!%p1419_p11) }
 0x155   : > { %1098 = vst [vmem:[#allocation2 + $0x40] sm:$0xff] %v1082_v56  ;;  %v1083_v59 = vadd.f32 %v1047_v57, %v425_v55  ;;  %v1536_v60 = vpop.f32.mrb[20].mxu1  ;;  %v1473_v61 = vpop.f32.mrb[21].mxu0  ;;  %v1112_v55 = vld [vmem:[#allocation2 + $0x10] sm:$0xff] (!%p1419_p11)  ;;  %v1134_v56 = vadd.f32 (!%p1419_p11), %v1932_v50, %v1111_v53 }
 0x156   : > { %v1474_v62 = vadd.f32 %v1473_v61, %v1472_v58  ;;  %v1537_v63 = vpop.f32.mrb[21].mxu1  ;;  %v1475_v0 = vpop.f32.mrb[22].mxu0  ;;  %v1135_v57 = vadd.f32 (!%p1419_p11), %v1932_v50, %v1112_v55  ;;  %v1151_v58 = vld [vmem:[%s2064_s3 + $0x10] sm:$0xff] (!%p1419_p11)  ;;  %v1165_v61 = vadd.f32 (!%p1419_p11), %v1149_v51, %v1133_v52 }
 0x157   : > { %1099 = vst [vmem:[#allocation2 + $0x48] sm:$0xff] %v1083_v59  ;;  %v1538_v1 = vadd.f32 %v1537_v63, %v1536_v60  ;;  %v1539_v2 = vpop.f32.mrb[22].mxu1  ;;  %v1476_v3 = vpop.f32.mrb[23].mxu0  ;;  %v1113_v59 = vld [vmem:[#allocation2 + $0x18] sm:$0xff] (!%p1419_p11)  ;;  %v1114_v63 = vld [vmem:[#allocation2 + $0x20] sm:$0xff] (!%p1419_p11) }
 0x158   : > { %v1477_v5 = vadd.f32 %v1476_v3, %v1475_v0  ;;  %v1540_v6 = vpop.f32.mrb[23].mxu1  ;;  %v1152_v60 = vld [vmem:[%s2064_s3 + $0x18] sm:$0xff] (!%p1419_p11)  ;;  %v1153_v0 = vld [vmem:[%s2064_s3 + $0x20] sm:$0xff] (!%p1419_p11)  ;;  %v1167_v3 = vadd.f32 (!%p1419_p11), %v1151_v58, %v1135_v57 }
 0x159   : > { %v1052_v7 = vadd.f32 %v1538_v1, %v1474_v62  ;;  %v1541_v8 = vadd.f32 %v1540_v6, %v1539_v2  ;;  %v1136_v62 = vadd.f32 (!%p1419_p11), %v1932_v50, %v1113_v59  ;;  %v1115_v1 = vld [vmem:[#allocation2 + $0x28] sm:$0xff] (!%p1419_p11)  ;;  %v1166_v2 = vadd.f32 (!%p1419_p11), %v1150_v54, %v1134_v56  ;;  %v1164_v58 = vld [vmem:[%s2064_s3 + $0x78] sm:$0xff] (!%p1419_p11) }
 0x15a   : > { %v1154_v6 = vld [vmem:[%s2064_s3 + $0x28] sm:$0xff] (!%p1419_p11) }
 0x15b   : > { %v1084_v10 = vadd.f32 %v1052_v7, %v426_v4  ;;  %v1055_v11 = vadd.f32 %v1541_v8, %v1477_v5  ;;  %v1137_v4 = vadd.f32 (!%p1419_p11), %v1932_v50, %v1114_v63  ;;  %v1138_v5 = vadd.f32 (!%p1419_p11), %v1932_v50, %v1115_v1  ;;  %v1116_v7 = vld [vmem:[#allocation2 + $0x30] sm:$0xff] (!%p1419_p11) }
 0x15c   : > { %v1478_v12 = vpop.f32.mrb[24].mxu0  ;;  %v1155_v8 = vld [vmem:[%s2064_s3 + $0x30] sm:$0xff] (!%p1419_p11) }
 0x15d   : > { %1100 = vst [vmem:[#allocation2 + $0x50] sm:$0xff] %v1084_v10  ;;  %v1085_v13 = vadd.f32 %v1055_v11, %v427_v9  ;;  %v1542_v14 = vpop.f32.mrb[24].mxu1  ;;  %v1479_v15 = vpop.f32.mrb[25].mxu0  ;;  %v1181_v9 = vmax.f32 (!%p1419_p11), %v1165_v61, 0.0  ;;  %v1168_v10 = vadd.f32 (!%p1419_p11), %v1152_v60, %v1136_v62  ;;  %v1139_v11 = vadd.f32 (!%p1419_p11), %v1932_v50, %v1116_v7 }
 0x15e   : > { %v1480_v16 = vadd.f32 %v1479_v15, %v1478_v12  ;;  %v1543_v17 = vpop.f32.mrb[25].mxu1  ;;  %v1481_v18 = vpop.f32.mrb[26].mxu0  ;;  %v1117_v12 = vld [vmem:[#allocation2 + $0x38] sm:$0xff] (!%p1419_p11)  ;;  %v1182_v15 = vmax.f32 (!%p1419_p11), %v1166_v2, 0.0 }
 0x15f   : > { %1101 = vst [vmem:[#allocation2 + $0x58] sm:$0xff] %v1085_v13  ;;  %v1544_v19 = vadd.f32 %v1543_v17, %v1542_v14  ;;  %v1545_v20 = vpop.f32.mrb[26].mxu1  ;;  %v1482_v21 = vpop.f32.mrb[27].mxu0  ;;  %v1156_v13 = vld [vmem:[%s2064_s3 + $0x38] sm:$0xff] (!%p1419_p11)  ;;  %v1118_v14 = vld [vmem:[#allocation2 + $0x40] sm:$0xff] (!%p1419_p11)  ;;  %v1169_v17 = vadd.f32 (!%p1419_p11), %v1153_v0, %v1137_v4  ;;  %1197 = vst [vmem:[%s2065_s4] sm:$0xff] (!%p1419_p11), %v1181_v9 }
 0x160   : > { %v1483_v23 = vadd.f32 %v1482_v21, %v1481_v18  ;;  %v1546_v24 = vpop.f32.mrb[27].mxu1  ;;  %v1170_v18 = vadd.f32 (!%p1419_p11), %v1154_v6, %v1138_v5  ;;  %v1158_v21 = vld [vmem:[%s2064_s3 + $0x48] sm:$0xff] (!%p1419_p11)  ;;  %1198 = vst [vmem:[%s2065_s4 + $0x8] sm:$0xff] (!%p1419_p11), %v1182_v15 }
 0x161   : > { %v1060_v25 = vadd.f32 %v1544_v19, %v1480_v16  ;;  %v1547_v26 = vadd.f32 %v1546_v24, %v1545_v20  ;;  %v1183_v16 = vmax.f32 (!%p1419_p11), %v1167_v3, 0.0  ;;  %v1157_v19 = vld [vmem:[%s2064_s3 + $0x40] sm:$0xff] (!%p1419_p11)  ;;  %v1119_v20 = vld [vmem:[#allocation2 + $0x48] sm:$0xff] (!%p1419_p11)  ;;  %v1140_v24 = vadd.f32 (!%p1419_p11), %v1932_v50, %v1117_v12 }
 0x163   : > { %v1086_v28 = vadd.f32 %v1060_v25, %v428_v22  ;;  %v1063_v29 = vadd.f32 %v1547_v26, %v1483_v23  ;;  %v1184_v22 = vmax.f32 (!%p1419_p11), %v1168_v10, 0.0  ;;  %v1171_v23 = vadd.f32 (!%p1419_p11), %v1155_v8, %v1139_v11  ;;  %1199 = vst [vmem:[%s2065_s4 + $0x10] sm:$0xff] (!%p1419_p11), %v1183_v16 }
 0x164   : > { %v1484_v30 = vpop.f32.mrb[28].mxu0  ;;  %v1141_v25 = vadd.f32 (!%p1419_p11), %v1932_v50, %v1118_v14  ;;  %v1120_v26 = vld [vmem:[#allocation2 + $0x50] sm:$0xff] (!%p1419_p11) }
 0x165   : > { %1102 = vst [vmem:[#allocation2 + $0x60] sm:$0xff] %v1086_v28  ;;  %v1087_v31 = vadd.f32 %v1063_v29, %v429_v27  ;;  %v1548_v32 = vpop.f32.mrb[28].mxu1  ;;  %v1485_v33 = vpop.f32.mrb[29].mxu0  ;;  %v1159_v27 = vld [vmem:[%s2064_s3 + $0x50] sm:$0xff] (!%p1419_p11)  ;;  %v1185_v29 = vmax.f32 (!%p1419_p11), %v1169_v17, 0.0  ;;  %1200 = vst [vmem:[%s2065_s4 + $0x18] sm:$0xff] (!%p1419_p11), %v1184_v22 }
 0x166   : > { %v1486_v34 = vadd.f32 %v1485_v33, %v1484_v30  ;;  %v1549_v35 = vpop.f32.mrb[29].mxu1  ;;  %v1487_v36 = vpop.f32.mrb[30].mxu0  ;;  %v1121_v28 = vld [vmem:[#allocation2 + $0x58] sm:$0xff] (!%p1419_p11)  ;;  %v1186_v30 = vmax.f32 (!%p1419_p11), %v1170_v18, 0.0 }
 0x167   : > { %1103 = vst [vmem:[#allocation2 + $0x68] sm:$0xff] %v1087_v31  ;;  %v1550_v37 = vadd.f32 %v1549_v35, %v1548_v32  ;;  %v1551_v38 = vpop.f32.mrb[30].mxu1  ;;  %v1488_v39 = vpop.f32.mrb[31].mxu0  ;;  %v1142_v31 = vadd.f32 (!%p1419_p11), %v1932_v50, %v1119_v20  ;;  %v1143_v32 = vadd.f32 (!%p1419_p11), %v1932_v50, %v1120_v26  ;;  %v1160_v33 = vld [vmem:[%s2064_s3 + $0x58] sm:$0xff] (!%p1419_p11)  ;;  %v1161_v35 = vld [vmem:[%s2064_s3 + $0x60] sm:$0xff] (!%p1419_p11)  ;;  %1201 = vst [vmem:[%s2065_s4 + $0x20] sm:$0xff] (!%p1419_p11), %v1185_v29 }
 0x168   : > { %v1489_v41 = vadd.f32 %v1488_v39, %v1487_v36  ;;  %v1552_v42 = vpop.f32.mrb[31].mxu1  ;;  %v1187_v36 = vmax.f32 (!%p1419_p11), %v1171_v23, 0.0  ;;  %v1144_v39 = vadd.f32 (!%p1419_p11), %v1932_v50, %v1121_v28  ;;  %1202 = vst [vmem:[%s2065_s4 + $0x28] sm:$0xff] (!%p1419_p11), %v1186_v30 }
 0x169   : > { %v1068_v43 = vadd.f32 %v1550_v37, %v1486_v34  ;;  %v1553_v44 = vadd.f32 %v1552_v42, %v1551_v38  ;;  %1109 = sbr.rel (%p1419_p11) target bundleno = 382 (0x17e), region = 67  ;;  %v1172_v37 = vadd.f32 (!%p1419_p11), %v1156_v13, %v1140_v24  ;;  %v1173_v38 = vadd.f32 (!%p1419_p11), %v1157_v19, %v1141_v25 }
 0x16a   : > { %1203 = vst [vmem:[%s2065_s4 + $0x30] sm:$0xff] (!%p1419_p11), %v1187_v36  ;;  %v1176_v52 = vadd.f32 (!%p1419_p11), %v1160_v33, %v1144_v39 }
 0x16b   : > { %v1088_v46 = vadd.f32 %v1068_v43, %v430_v40  ;;  %v1071_v47 = vadd.f32 %v1553_v44, %v1489_v41  ;;  %v1162_v41 = vld [vmem:[%s2064_s3 + $0x68] sm:$0xff] (!%p1419_p11)  ;;  %v1174_v43 = vadd.f32 (!%p1419_p11), %v1158_v21, %v1142_v31  ;;  %v1175_v44 = vadd.f32 (!%p1419_p11), %v1159_v27, %v1143_v32 }
 0x16c   : > { %v1122_v34 = vld [vmem:[#allocation2 + $0x60] sm:$0xff] (!%p1419_p11)  ;;  %v1188_v49 = vmax.f32 (!%p1419_p11), %v1172_v37, 0.0  ;;  %v1189_v51 = vmax.f32 (!%p1419_p11), %v1173_v38, 0.0  ;;  %v1192_v59 = vmax.f32 (!%p1419_p11), %v1176_v52, 0.0 }
 0x16d   : > { %1104 = vst [vmem:[#allocation2 + $0x70] sm:$0xff] %v1088_v46  ;;  %v1089_v48 = vadd.f32 %v1071_v47, %v431_v45  ;;  %v1145_v45 = vadd.f32 (!%p1419_p11), %v1932_v50, %v1122_v34  ;;  %v1163_v47 = vld [vmem:[%s2064_s3 + $0x70] sm:$0xff] (!%p1419_p11)  ;;  %v1190_v54 = vmax.f32 (!%p1419_p11), %v1174_v43, 0.0  ;;  %v1191_v55 = vmax.f32 (!%p1419_p11), %v1175_v44, 0.0 }
 0x16e   : > { %v1123_v40 = vld [vmem:[#allocation2 + $0x68] sm:$0xff] (!%p1419_p11)  ;;  %1204 = vst [vmem:[%s2065_s4 + $0x38] sm:$0xff] (!%p1419_p11), %v1188_v49  ;;  %1205 = vst [vmem:[%s2065_s4 + $0x40] sm:$0xff] (!%p1419_p11), %v1189_v51 }
 0x16f   : > { %1105 = vst [vmem:[#allocation2 + $0x78] sm:$0xff] %v1089_v48  ;;  %v1146_v46 = vadd.f32 (!%p1419_p11), %v1932_v50, %v1123_v40  ;;  %v1177_v56 = vadd.f32 (!%p1419_p11), %v1161_v35, %v1145_v45  ;;  %1206 = vst [vmem:[%s2065_s4 + $0x48] sm:$0xff] (!%p1419_p11), %v1190_v54 }
 0x170   : > { %1207 = vst [vmem:[%s2065_s4 + $0x50] sm:$0xff] %v1191_v55  ;;  %1208 = vst [vmem:[%s2065_s4 + $0x58] sm:$0xff] %v1192_v59 }
 0x171   : > { %v1178_v57 = vadd.f32 %v1162_v41, %v1146_v46  ;;  %v1193_v62 = vmax.f32 %v1177_v56, 0.0 }
 0x173   : > { %v1194_v63 = vmax.f32 %v1178_v57, 0.0  ;;  %1209 = vst [vmem:[%s2065_s4 + $0x60] sm:$0xff] %v1193_v62 }
 0x174   : > { %v1124_v42 = vld [vmem:[#allocation2 + $0x70] sm:$0xff] }
 0x175   : > { %v1147_v53 = vadd.f32 %v1932_v50, %v1124_v42  ;;  %1210 = vst [vmem:[%s2065_s4 + $0x68] sm:$0xff] %v1194_v63 }
 0x176   : > { %v1125_v48 = vld [vmem:[#allocation2 + $0x78] sm:$0xff] }
 0x177   : > { %v1179_v60 = vadd.f32 %v1163_v47, %v1147_v53  ;;  %v1148_v61 = vadd.f32 %v1932_v50, %v1125_v48 }
 0x179   : > { %v1195_v0 = vmax.f32 %v1179_v60, 0.0  ;;  %v1180_v1 = vadd.f32 %v1164_v58, %v1148_v61 }
 0x17b   : > { %1211 = vst [vmem:[%s2065_s4 + $0x70] sm:$0xff] %v1195_v0  ;;  %v1196_v50 = vmax.f32 %v1180_v1, 0.0 }
 0x17d   : > { %1212 = vst [vmem:[%s2065_s4 + $0x78] sm:$0xff] %v1196_v50 }
 0x17e PF: > { %s14_s19 = sadd.s32 1, %s1713_s19   ;;  %s2066_s15 = smov %s1701_s16 }
 0x17f   : > { %p11_p12 = scmp.ge.s32.totalorder %s14_s19, 4   ;;  %s2067_s16 = smov %s1776_s23 }
 0x180   : > { %s2068_s17 = smov %s1709_s18  ;;  %s2069_s18 = smov %s2071_s20 }
 0x181   :  { %13 = sbr.rel (!%p11_p12) target bundleno = 3 (0x3), region = 111 }

// kernel: resnet_forward.30
= control target key start
LH: loop header
LB: loop body
LE: loop exit
PB: predicated region body
PF: predicated region fallthrough
CT: control target
= control target key end

     0   :  { %s1109_s12 = smov 0   ;;  %s1111_s13 = smov 0   ;;  %s1235_s0 = inlined_call_operand.vmem [shape: bf16[32,1024], index: 0, kind: input, shape index: {}]   ;;  %s1236_s1 = inlined_call_operand.vmem [shape: bf16[1024,128], index: 1, kind: input, shape index: {}]   ;;  %s1237_s2 = inlined_call_operand.vmem [shape: f32[1,128], index: 2, kind: input, shape index: {}]   ;;  %s1238_s3 = inlined_call_operand.vmem [shape: f32[32,128], index: 3, kind: output, shape index: {}]  }
   0x1   :  { %s1113_s14 = smov 0   ;;  %s1115_s15 = smov 0  }
   0x2   :  { %s1117_s16 = smov 0  }
   0x3 LB: > { %s25_s17 = sadd.s32 1, %s1082_s15  ;;  %p48_p1 = scmp.ne.s32.totalorder %s1074_s13, %s1070_s12  ;;  %s1086_s16 = sphi %s1117_s16, %s13_s16   ;;  %s1082_s15 = sphi %s1115_s15, %s1242_s15   ;;  %s1078_s14 = sphi %s1113_s14, %s1241_s14   ;;  %s1074_s13 = sphi %s1111_s13, %s1240_s13   ;;  %s1070_s12 = sphi %s1109_s12, %s1239_s12  }
   0x4   : > { %p26_p0 = scmp.ge.s32.totalorder %s25_s17, 2  ;;  %p49_p2 = scmp.eq.s32.totalorder %s1086_s16, 0 }
   0x5   : > { %s41_s19 = sadd.s32 1, %s1074_s13  ;;  %p851_p5 = scmp.ge.s32.totalorder %s1086_s16, 2 }
   0x6   : > { %s1244_s17 = smov (%p26_p0, %s25_s17), 0  ;;  %p50_p3 = por %p49_p2, %p48_p1 }
   0x7   : > { %s37_s18 = ssub.s32 %s1082_s15, %s1244_s17  ;;  %162 = sbr.rel (%p851_p5) target bundleno = 22 (0x16), region = 20 }
   0x8   : > { %p39_p4 = scmp.eq.s32.totalorder %s37_s18, 0 }
   0xa   : > { %s1144_s20 = scalar_select %p39_p4, %s1074_s13, %s41_s19  }
   0xe   : > { %165 = sbr.rel (!%p50_p3) target bundleno = 22 (0x16), region = 24  ;;  %s167_s21 = sand.u32 (%p50_p3), 1, %s1074_s13  }
   0xf   : > { %s906_s22 = sshll.u32 (%p50_p3), %s1082_s15, 4  ;;  %s852_s23 = sshll.u32 (%p50_p3), %s167_s21, 6 }
  0x10   : > { %s175_s26 = scalar_lea.vmem (%p50_p3), %s1235_s0, %s906_s22  ;;  %s169_s27 = scalar_lea.vmem (%p50_p3), [#allocation3], %s852_s23 }
  0x11   : > { %v188_v0 = vld [vmem:[%s175_s26] sm:$0xff] (%p50_p3)  ;;  %v190_v1 = vld [vmem:[%s175_s26 + $0x8] sm:$0xff] (%p50_p3) }
  0x12   : > { %v192_v2 = vld [vmem:[%s175_s26 + $0x20] sm:$0xff] (%p50_p3)  ;;  %189 = vst [vmem:[%s169_s27] sm:$0xff] (%p50_p3), %v188_v0  ;;  %191 = vst [vmem:[%s169_s27 + $0x8] sm:$0xff] (%p50_p3), %v190_v1  ;;  %v194_v3 = vld [vmem:[%s175_s26 + $0x28] sm:$0xff] (%p50_p3) }
  0x13   : > { %193 = vst [vmem:[%s169_s27 + $0x10] sm:$0xff] (%p50_p3), %v192_v2  ;;  %v196_v4 = vld [vmem:[%s175_s26 + $0x40] sm:$0xff] (%p50_p3)  ;;  %v198_v5 = vld [vmem:[%s175_s26 + $0x48] sm:$0xff] (%p50_p3)  ;;  %195 = vst [vmem:[%s169_s27 + $0x18] sm:$0xff] (%p50_p3), %v194_v3 }
  0x14   : > { %197 = vst [vmem:[%s169_s27 + $0x20] sm:$0xff] (%p50_p3), %v196_v4  ;;  %199 = vst [vmem:[%s169_s27 + $0x28] sm:$0xff] (%p50_p3), %v198_v5  ;;  %v200_v6 = vld [vmem:[%s175_s26 + $0x60] sm:$0xff] (%p50_p3)  ;;  %v202_v7 = vld [vmem:[%s175_s26 + $0x68] sm:$0xff] (%p50_p3) }
  0x15   : > { %201 = vst [vmem:[%s169_s27 + $0x30] sm:$0xff] %v200_v6  ;;  %203 = vst [vmem:[%s169_s27 + $0x38] sm:$0xff] %v202_v7 }
  0x16 PF: > { %p855_p6 = scmp.ge.s32.totalorder %s1086_s16, 1  ;;  %p220_p7 = scmp.lt.s32.totalorder %s1086_s16, 3 }
  0x18   : > { %p221_p8 = pnand %p855_p6, %p220_p7 }
  0x19   : > { %s227_s28 = sand.u32 (!%p221_p8), 1, %s1070_s12   ;;  %s857_s29 = sshll.u32 (!%p221_p8), %s1078_s14, 6 }
  0x1a   : > { %224 = sbr.rel (%p221_p8) target bundleno = 317 (0x13d), region = 51  ;;  %s856_s30 = sshll.u32 (!%p221_p8), %s227_s28, 6 }
  0x1b   : > { %p267_p9 = scmp.lt.s32.totalorder (!%p221_p8), %s857_s29, 127  ;;  %s1161_s8 = scalar_lea.vmem (!%p221_p8), [#allocation3], %s856_s30 }
  0x1c   : > { %p859_p10 = scmp.ne.s32.totalorder (!%p221_p8), %s1078_s14, 0 }
  0x21   : > { %s1246_s29 = smov (!%p267_p9, %s857_s29), 127  ;;  %291 = sbr.rel (%p859_p10) target bundleno = 40 (0x28), region = 59 }
  0x22   : > { %s858_s4 = sshll.u32 %s1246_s29, 2  ;;  %v1088_v8 = vmov (!%p859_p10), 0.0  }
  0x23   : > { %s1159_s7 = scalar_lea.vmem %s1236_s1, %s858_s4  ;;  %292 = vst [vmem:[#allocation2] sm:$0xff] (!%p859_p10), %v1088_v8  ;;  %293 = vst [vmem:[#allocation2 + $0x8] sm:$0xff] (!%p859_p10), %v1088_v8 }
  0x24   : > { %294 = vst [vmem:[#allocation2 + $0x10] sm:$0xff] (!%p859_p10), %v1088_v8  ;;  %295 = vst [vmem:[#allocation2 + $0x18] sm:$0xff] (!%p859_p10), %v1088_v8 }
  0x28 PF: > { %v1004_v9 = vld [vmem:[%s1159_s7 + $0x40] sm:$0xff]   ;;  %v1008_v13 = vld [vmem:[%s1159_s7 + $0x48] sm:$0xff]   ;;  %v1012_v17 = vld [vmem:[%s1159_s7 + $0x50] sm:$0xff]   ;;  %p900_p11 = scmp.ne.s32.totalorder %s1078_s14, 1 }
  0x29   : > { %v1005_v10 = vld [vmem:[%s1159_s7 + $0xc0] sm:$0xff]   ;;  %907 = vmatprep.subr.bf16.mxu0 %v1004_v9  ;;  %v1009_v14 = vld [vmem:[%s1159_s7 + $0xc8] sm:$0xff]   ;;  %v1013_v18 = vld [vmem:[%s1159_s7 + $0xd0] sm:$0xff]  }
  0x2a   : > { %v1006_v11 = vld [vmem:[%s1159_s7] sm:$0xff]   ;;  %935 = vmatprep.subr.bf16.mxu1 %v1005_v10  ;;  %v1010_v15 = vld [vmem:[%s1159_s7 + $0x8] sm:$0xff]   ;;  %v1014_v19 = vld [vmem:[%s1159_s7 + $0x10] sm:$0xff]  }
  0x2b   : > { %v1007_v12 = vld [vmem:[%s1159_s7 + $0x80] sm:$0xff]   ;;  %908 = vmatpush3.bf16.msra.mxu0 %v1006_v11  ;;  %v1011_v16 = vld [vmem:[%s1159_s7 + $0x88] sm:$0xff]   ;;  %v1015_v20 = vld [vmem:[%s1159_s7 + $0x90] sm:$0xff]  }
  0x2c   : > { %936 = vmatpush3.bf16.msra.mxu1 %v1007_v12  ;;  %909 = vmatprep.subr.bf16.mxu0 %v1008_v13  ;;  %v1016_v21 = vld [vmem:[%s1159_s7 + $0x58] sm:$0xff]   ;;  %v1020_v25 = vld [vmem:[%s1159_s7 + $0x60] sm:$0xff]   ;;  %v1024_v29 = vld [vmem:[%s1159_s7 + $0x68] sm:$0xff]  }
  0x2d   : > { %937 = vmatprep.subr.bf16.mxu1 %v1009_v14  ;;  %v1017_v22 = vld [vmem:[%s1159_s7 + $0xd8] sm:$0xff]   ;;  %v1021_v26 = vld [vmem:[%s1159_s7 + $0xe0] sm:$0xff]   ;;  %v1025_v30 = vld [vmem:[%s1159_s7 + $0xe8] sm:$0xff]  }
  0x2e   : > { %v1018_v23 = vld [vmem:[%s1159_s7 + $0x18] sm:$0xff]   ;;  %v1022_v27 = vld [vmem:[%s1159_s7 + $0x20] sm:$0xff]   ;;  %v1026_v31 = vld [vmem:[%s1159_s7 + $0x28] sm:$0xff]  }
  0x2f   : > { %910 = vmatpush3.bf16.msra.mxu0 %v1010_v15  ;;  %v1019_v24 = vld [vmem:[%s1159_s7 + $0x98] sm:$0xff]   ;;  %v1023_v28 = vld [vmem:[%s1159_s7 + $0xa0] sm:$0xff]   ;;  %v1027_v32 = vld [vmem:[%s1159_s7 + $0xa8] sm:$0xff]  }
  0x30   : > { %938 = vmatpush3.bf16.msra.mxu1 %v1011_v16  ;;  %911 = vmatprep.subr.bf16.mxu0 %v1012_v17  ;;  %v1028_v33 = vld [vmem:[%s1159_s7 + $0x70] sm:$0xff]   ;;  %v1032_v37 = vld [vmem:[%s1159_s7 + $0x78] sm:$0xff]   ;;  %v296_v58 = vld [vmem:[#allocation2] sm:$0xff] }
  0x31   : > { %939 = vmatprep.subr.bf16.mxu1 %v1013_v18  ;;  %v1029_v34 = vld [vmem:[%s1159_s7 + $0xf0] sm:$0xff]   ;;  %v1033_v38 = vld [vmem:[%s1159_s7 + $0xf8] sm:$0xff]   ;;  %v297_v63 = vld [vmem:[#allocation2 + $0x8] sm:$0xff] }
  0x32   : > { %v1030_v35 = vld [vmem:[%s1159_s7 + $0x30] sm:$0xff]   ;;  %v1034_v39 = vld [vmem:[%s1159_s7 + $0x38] sm:$0xff]  }
  0x33   : > { %912 = vmatpush3.bf16.msra.mxu0 %v1014_v19  ;;  %v1031_v36 = vld [vmem:[%s1159_s7 + $0xb0] sm:$0xff]   ;;  %v1035_v40 = vld [vmem:[%s1159_s7 + $0xb8] sm:$0xff]  }
  0x34   : > { %940 = vmatpush3.bf16.msra.mxu1 %v1015_v20  ;;  %913 = vmatprep.subr.bf16.mxu0 %v1016_v21  ;;  %v1036_v41 = vld [vmem:[%s1161_s8] ss:$16 sps:$4 sm:$0xff]   ;;  %v1038_v42 = vld [vmem:[%s1161_s8 + $0x4] ss:$16 sps:$4 sm:$0xff]   ;;  %v1039_v43 = vld [vmem:[%s1161_s8 + $0x8] ss:$16 sps:$4 sm:$0xff]  }
  0x35   : > { %941 = vmatprep.subr.bf16.mxu1 %v1017_v22  ;;  %v1041_v44 = vld [vmem:[%s1161_s8 + $0xc] ss:$16 sps:$4 sm:$0xff]   ;;  %636 = vmatprep.mubr.bf16.mxu0 %v1038_v42  ;;  %v1042_v45 = vld [vmem:[%s1161_s8 + $0x24] ss:$16 sps:$4 sm:$0xff]   ;;  %v1046_v47 = vld [vmem:[%s1161_s8 + $0x20] ss:$16 sps:$4 sm:$0xff]  }
  0x36   : > { %685 = vmatprep.mubr.bf16.mxu1 %v1041_v44  ;;  %v1044_v46 = vld [vmem:[%s1161_s8 + $0x2c] ss:$16 sps:$4 sm:$0xff]   ;;  %v1047_v48 = vld [vmem:[%s1161_s8 + $0x28] ss:$16 sps:$4 sm:$0xff]   ;;  %v298_v12 = vld [vmem:[#allocation2 + $0x10] sm:$0xff] }
  0x37   : > { %914 = vmatpush3.bf16.msra.mxu0 %v1018_v23  ;;  %v299_v17 = vld [vmem:[#allocation2 + $0x18] sm:$0xff]  ;;  %v901_v22 = vld [vmem:[%s1237_s2] ss:$0 sm:$0xff] (!%p900_p11) }
  0x38   : > { %942 = vmatpush3.bf16.msra.mxu1 %v1019_v24  ;;  %915 = vmatprep.subr.bf16.mxu0 %v1020_v25 }
  0x39   : > { %943 = vmatprep.subr.bf16.mxu1 %v1021_v26 }
  0x3b   : > { %916 = vmatpush3.bf16.msra.mxu0 %v1022_v27 }
  0x3c   : > { %944 = vmatpush3.bf16.msra.mxu1 %v1023_v28  ;;  %917 = vmatprep.subr.bf16.mxu0 %v1024_v29 }
  0x3d   : > { %945 = vmatprep.subr.bf16.mxu1 %v1025_v30 }
  0x3f   : > { %918 = vmatpush3.bf16.msra.mxu0 %v1026_v31 }
  0x40   : > { %946 = vmatpush3.bf16.msra.mxu1 %v1027_v32  ;;  %919 = vmatprep.subr.bf16.mxu0 %v1028_v33 }
  0x41   : > { %947 = vmatprep.subr.bf16.mxu1 %v1029_v34 }
  0x43   : > { %920 = vmatpush3.bf16.msra.mxu0 %v1030_v35 }
  0x44   : > { %948 = vmatpush3.bf16.msra.mxu1 %v1031_v36  ;;  %921 = vmatprep.subr.bf16.mxu0 %v1032_v37 }
  0x45   : > { %949 = vmatprep.subr.bf16.mxu1 %v1033_v38 }
  0x47   : > { %922 = vmatpush3.bf16.msra.mxu0 %v1034_v39 }
  0x48   : > { %950 = vmatpush3.bf16.msra.mxu1 %v1035_v40 }
  0x4a   : > { %637 = vmatmul.mubr.bf16.vlgmr.msra.gmra.mrb[0].mxu0 %v1036_v41 }
  0x4b   : > { %686 = vmatmul.mubr.bf16.vlgmr.msra.gmra.mrb[0].mxu1 %v1039_v43  ;;  %644 = vmatprep.mubr.bf16.mxu0 %v1042_v45 }
  0x4c   : > { %693 = vmatprep.mubr.bf16.mxu1 %v1044_v46 }
  0x52   : > { %645 = vmatmul.mubr.bf16.gmra.mrb[4].mxu0 %v1046_v47 }
  0x53   : > { %694 = vmatmul.mubr.bf16.gmra.mrb[4].mxu1 %v1047_v48 }
 0x11d   : > { %v923_v49 = vpop.f32.mrb[0].mxu0 }
 0x11e   : > { %v951_v50 = vpop.f32.mrb[0].mxu1  ;;  %v924_v51 = vpop.f32.mrb[1].mxu0 }
 0x11f   : > { %v925_v52 = vadd.f32 %v924_v51, %v923_v49  ;;  %v952_v53 = vpop.f32.mrb[1].mxu1  ;;  %v926_v54 = vpop.f32.mrb[2].mxu0 }
 0x120   : > { %v953_v55 = vadd.f32 %v952_v53, %v951_v50  ;;  %v954_v56 = vpop.f32.mrb[2].mxu1  ;;  %v927_v57 = vpop.f32.mrb[3].mxu0 }
 0x121   : > { %v928_v59 = vadd.f32 %v927_v57, %v926_v54  ;;  %v955_v60 = vpop.f32.mrb[3].mxu1 }
 0x122   : > { %v688_v61 = vadd.f32 %v953_v55, %v925_v52  ;;  %v956_v62 = vadd.f32 %v955_v60, %v954_v56 }
 0x124   : > { %v702_v0 = vadd.f32 %v688_v61, %v296_v58  ;;  %v691_v1 = vadd.f32 %v956_v62, %v928_v59 }
 0x125   : > { %v929_v2 = vpop.f32.mrb[4].mxu0 }
 0x126   : > { %706 = vst [vmem:[#allocation2] sm:$0xff] %v702_v0  ;;  %v703_v3 = vadd.f32 %v691_v1, %v297_v63  ;;  %v957_v4 = vpop.f32.mrb[4].mxu1  ;;  %v930_v5 = vpop.f32.mrb[5].mxu0 }
 0x127   : > { %v931_v6 = vadd.f32 %v930_v5, %v929_v2  ;;  %v958_v7 = vpop.f32.mrb[5].mxu1  ;;  %v932_v8 = vpop.f32.mrb[6].mxu0 }
 0x128   : > { %707 = vst [vmem:[#allocation2 + $0x8] sm:$0xff] %v703_v3  ;;  %v959_v9 = vadd.f32 %v958_v7, %v957_v4  ;;  %v960_v10 = vpop.f32.mrb[6].mxu1  ;;  %v933_v11 = vpop.f32.mrb[7].mxu0 }
 0x129   : > { %v934_v13 = vadd.f32 %v933_v11, %v932_v8  ;;  %v961_v14 = vpop.f32.mrb[7].mxu1 }
 0x12a   : > { %v696_v15 = vadd.f32 %v959_v9, %v931_v6  ;;  %v962_v16 = vadd.f32 %v961_v14, %v960_v10  ;;  %713 = sbr.rel (%p900_p11) target bundleno = 317 (0x13d), region = 63 }
 0x12c   : > { %v704_v18 = vadd.f32 %v696_v15, %v298_v12  ;;  %v699_v19 = vadd.f32 %v962_v16, %v934_v13 }
 0x12d   : > { %v714_v21 = vld [vmem:[#allocation2] sm:$0xff] (!%p900_p11) }
 0x12e   : > { %708 = vst [vmem:[#allocation2 + $0x10] sm:$0xff] %v704_v18  ;;  %v705_v20 = vadd.f32 %v699_v19, %v299_v17  ;;  %v725_v24 = vadd.f32 (!%p900_p11), %v901_v22, %v714_v21 }
 0x12f   : > { %v715_v23 = vld [vmem:[#allocation2 + $0x8] sm:$0xff] (!%p900_p11) }
 0x130   : > { %709 = vst [vmem:[#allocation2 + $0x18] sm:$0xff] %v705_v20  ;;  %v726_v25 = vadd.f32 (!%p900_p11), %v901_v22, %v715_v23  ;;  %v729_v30 = vmax.f32 (!%p900_p11), %v725_v24, 0.0 }
 0x132   : > { %v730_v31 = vmax.f32 %v726_v25, 0.0  ;;  %733 = vst [vmem:[%s1238_s3] sm:$0xff] %v729_v30 }
 0x134   : > { %734 = vst [vmem:[%s1238_s3 + $0x8] sm:$0xff] %v730_v31 }
 0x135   : > { %v716_v26 = vld [vmem:[#allocation2 + $0x10] sm:$0xff] }
 0x136   : > { %v727_v28 = vadd.f32 %v901_v22, %v716_v26 }
 0x137   : > { %v717_v27 = vld [vmem:[#allocation2 + $0x18] sm:$0xff] }
 0x138   : > { %v728_v29 = vadd.f32 %v901_v22, %v717_v27  ;;  %v731_v32 = vmax.f32 %v727_v28, 0.0 }
 0x13a   : > { %v732_v33 = vmax.f32 %v728_v29, 0.0  ;;  %735 = vst [vmem:[%s1238_s3 + $0x10] sm:$0xff] %v731_v32 }
 0x13c   : > { %736 = vst [vmem:[%s1238_s3 + $0x18] sm:$0xff] %v732_v33 }
 0x13d PF: > { %s13_s16 = sadd.s32 1, %s1086_s16   ;;  %s1239_s12 = smov %s1074_s13 }
 0x13e   : > { %p10_p12 = scmp.ge.s32.totalorder %s13_s16, 4   ;;  %s1240_s13 = smov %s1144_s20 }
 0x13f   : > { %s1241_s14 = smov %s1082_s15  ;;  %s1242_s15 = smov %s1244_s17 }
 0x140   :  { %12 = sbr.rel (!%p10_p12) target bundleno = 3 (0x3), region = 104 }

// kernel: resnet_forward.31
= control target key start
LH: loop header
LB: loop body
LE: loop exit
PB: predicated region body
PF: predicated region fallthrough
CT: control target
= control target key end

     0   :  { %s306_s1 = inlined_call_operand.vmem [shape: bf16[128,128], index: 1, kind: input, shape index: {}]   ;;  %s307_s0 = inlined_call_operand.vmem [shape: bf16[32,128], index: 0, kind: input, shape index: {}]   ;;  %s308_s2 = inlined_call_operand.vmem [shape: f32[1,128], index: 2, kind: input, shape index: {}]   ;;  %s309_s3 = inlined_call_operand.vmem [shape: f32[32,128], index: 3, kind: output, shape index: {}]  }
   0x1   :  { %v231_v0 = vld [vmem:[%s306_s1] sm:$0xff]   ;;  %v232_v1 = vld [vmem:[%s306_s1 + $0x8] sm:$0xff]   ;;  %v233_v2 = vld [vmem:[%s306_s1 + $0x10] sm:$0xff]  }
   0x2   :  { %211 = vmatprep.subr.bf16.mxu0 %v231_v0  ;;  %v234_v3 = vld [vmem:[%s306_s1 + $0x18] sm:$0xff]   ;;  %v239_v4 = vld [vmem:[%s307_s0] sm:$0xff]   ;;  %v236_v6 = vld [vmem:[%s306_s1 + $0x28] sm:$0xff]  }
   0x3   :  { %212 = vmatpush3.bf16.msra.mxu0 %v231_v0  ;;  %227 = vmatprep.mubr.bf16.mxu0 %v239_v4  ;;  %v235_v5 = vld [vmem:[%s306_s1 + $0x20] sm:$0xff]   ;;  %v237_v7 = vld [vmem:[%s306_s1 + $0x30] sm:$0xff]   ;;  %v238_v8 = vld [vmem:[%s306_s1 + $0x38] sm:$0xff]  }
   0x4   :  { %213 = vmatprep.subr.bf16.mxu0 %v232_v1  ;;  %v240_v9 = vld [vmem:[%s307_s0 + $0x8] sm:$0xff]   ;;  %v200_v10 = vld [vmem:[%s308_s2] ss:$0 sm:$0xff] }
   0x7   :  { %214 = vmatpush3.bf16.msra.mxu0 %v232_v1 }
   0x8   :  { %215 = vmatprep.subr.bf16.mxu0 %v233_v2 }
   0xb   :  { %216 = vmatpush3.bf16.msra.mxu0 %v233_v2 }
   0xc   :  { %217 = vmatprep.subr.bf16.mxu0 %v234_v3 }
   0xf   :  { %218 = vmatpush3.bf16.msra.mxu0 %v234_v3 }
  0x10   :  { %219 = vmatprep.subr.bf16.mxu0 %v235_v5 }
  0x13   :  { %220 = vmatpush3.bf16.msra.mxu0 %v235_v5 }
  0x14   :  { %221 = vmatprep.subr.bf16.mxu0 %v236_v6 }
  0x17   :  { %222 = vmatpush3.bf16.msra.mxu0 %v236_v6 }
  0x18   :  { %223 = vmatprep.subr.bf16.mxu0 %v237_v7 }
  0x1b   :  { %224 = vmatpush3.bf16.msra.mxu0 %v237_v7 }
  0x1c   :  { %225 = vmatprep.subr.bf16.mxu0 %v238_v8 }
  0x1f   :  { %226 = vmatpush3.bf16.msra.mxu0 %v238_v8 }
  0x22   :  { %228 = vmatmul.mubr.bf16.vlgmr.msra.gmra.mrb[0].mxu0 %v240_v9 }
  0xf5   :  { %v229_v11 = vpop.f32.mrb[0].mxu0 }
  0xf6   :  { %v180_v12 = vadd.f32 %v229_v11, %v200_v10  ;;  %v141_v13 = vpop.f32.mrb[1].mxu0 }
  0xf7   :  { %v178_v14 = vadd.f32 %v200_v10, %v141_v13  ;;  %v230_v15 = vpop.f32.mrb[2].mxu0 }
  0xf8   :  { %184 = vst [vmem:[%s309_s3 + $0x10] sm:$0xff] %v180_v12  ;;  %v181_v16 = vadd.f32 %v230_v15, %v200_v10  ;;  %v144_v17 = vpop.f32.mrb[3].mxu0 }
  0xf9   :  { %182 = vst [vmem:[%s309_s3] sm:$0xff] %v178_v14  ;;  %v179_v18 = vadd.f32 %v200_v10, %v144_v17 }
  0xfa   :  { %185 = vst [vmem:[%s309_s3 + $0x18] sm:$0xff] %v181_v16 }
  0xfb   :  { %183 = vst [vmem:[%s309_s3 + $0x8] sm:$0xff] %v179_v18 }

// kernel: resnet_forward.32
= control target key start
LH: loop header
LB: loop body
LE: loop exit
PB: predicated region body
PF: predicated region fallthrough
CT: control target
= control target key end

     0   :  { %s1201_s15 = smov 0   ;;  %s1203_s16 = smov 0   ;;  %s1339_s0 = inlined_call_operand.vmem [shape: bf16[32,1536], index: 0, kind: input, shape index: {}]   ;;  %s1340_s1 = inlined_call_operand.vmem [shape: bf16[1536,128], index: 1, kind: input, shape index: {}]   ;;  %s1341_s2 = inlined_call_operand.vmem [shape: f32[1,128], index: 2, kind: input, shape index: {}]   ;;  %s1342_s3 = inlined_call_operand.vmem [shape: f32[32,128], index: 3, kind: input, shape index: {}]   ;;  %s1343_s4 = inlined_call_operand.vmem [shape: f32[32,128], index: 4, kind: output, shape index: {}]  }
   0x1   :  { %s1205_s17 = smov 0   ;;  %s1207_s18 = smov 0  }
   0x2   :  { %s1209_s19 = smov 0  }
   0x3 LB: > { %s26_s20 = sadd.s32 1, %s1169_s18  ;;  %p49_p1 = scmp.ne.s32.totalorder %s1161_s16, %s1157_s15  ;;  %s1173_s19 = sphi %s1209_s19, %s14_s19   ;;  %s1169_s18 = sphi %s1207_s18, %s1347_s18   ;;  %s1165_s17 = sphi %s1205_s17, %s1346_s17   ;;  %s1161_s16 = sphi %s1203_s16, %s1345_s16   ;;  %s1157_s15 = sphi %s1201_s15, %s1344_s15  }
   0x4   : > { %p27_p0 = scmp.ge.s32.totalorder %s26_s20, 3  ;;  %p50_p2 = scmp.eq.s32.totalorder %s1173_s19, 0 }
   0x5   : > { %s42_s22 = sadd.s32 1, %s1161_s16  ;;  %p938_p5 = scmp.ge.s32.totalorder %s1173_s19, 3 }
   0x6   : > { %s1349_s20 = smov (%p27_p0, %s26_s20), 0  ;;  %p51_p3 = por %p50_p2, %p49_p1 }
   0x7   : > { %s38_s21 = ssub.s32 %s1169_s18, %s1349_s20  ;;  %203 = sbr.rel (%p938_p5) target bundleno = 22 (0x16), region = 24 }
   0x8   : > { %p40_p4 = scmp.eq.s32.totalorder %s38_s21, 0 }
   0xa   : > { %s1236_s23 = scalar_select %p40_p4, %s1161_s16, %s42_s22  }
   0xe   : > { %206 = sbr.rel (!%p51_p3) target bundleno = 22 (0x16), region = 28  ;;  %s208_s24 = sand.u32 (%p51_p3), 1, %s1161_s16  }
   0xf   : > { %s993_s25 = sshll.u32 (%p51_p3), %s1169_s18, 4  ;;  %s939_s26 = sshll.u32 (%p51_p3), %s208_s24, 6 }
  0x10   : > { %s216_s29 = scalar_lea.vmem (%p51_p3), %s1339_s0, %s993_s25  ;;  %s210_s30 = scalar_lea.vmem (%p51_p3), [#allocation3], %s939_s26 }
  0x11   : > { %v229_v0 = vld [vmem:[%s216_s29] sm:$0xff] (%p51_p3)  ;;  %v231_v1 = vld [vmem:[%s216_s29 + $0x8] sm:$0xff] (%p51_p3)  ;;  %v233_v2 = vld [vmem:[%s216_s29 + $0x30] sm:$0xff] (%p51_p3) }
  0x12   : > { %230 = vst [vmem:[%s210_s30] sm:$0xff] (%p51_p3), %v229_v0  ;;  %232 = vst [vmem:[%s210_s30 + $0x8] sm:$0xff] (%p51_p3), %v231_v1  ;;  %v235_v3 = vld [vmem:[%s216_s29 + $0x38] sm:$0xff] (%p51_p3)  ;;  %v237_v4 = vld [vmem:[%s216_s29 + $0x60] sm:$0xff] (%p51_p3) }
  0x13   : > { %234 = vst [vmem:[%s210_s30 + $0x10] sm:$0xff] (%p51_p3), %v233_v2  ;;  %v239_v5 = vld [vmem:[%s216_s29 + $0x68] sm:$0xff] (%p51_p3)  ;;  %236 = vst [vmem:[%s210_s30 + $0x18] sm:$0xff] (%p51_p3), %v235_v3  ;;  %v241_v6 = vld [vmem:[%s216_s29 + $0x90] sm:$0xff] (%p51_p3) }
  0x14   : > { %238 = vst [vmem:[%s210_s30 + $0x20] sm:$0xff] (%p51_p3), %v237_v4  ;;  %240 = vst [vmem:[%s210_s30 + $0x28] sm:$0xff] (%p51_p3), %v239_v5  ;;  %v243_v7 = vld [vmem:[%s216_s29 + $0x98] sm:$0xff] (%p51_p3) }
  0x15   : > { %242 = vst [vmem:[%s210_s30 + $0x30] sm:$0xff] %v241_v6  ;;  %244 = vst [vmem:[%s210_s30 + $0x38] sm:$0xff] %v243_v7 }
  0x16 PF: > { %p942_p6 = scmp.ge.s32.totalorder %s1173_s19, 1  ;;  %p261_p7 = scmp.lt.s32.totalorder %s1173_s19, 4 }
  0x18   : > { %p262_p8 = pnand %p942_p6, %p261_p7 }
  0x19   : > { %s268_s5 = sand.u32 (!%p262_p8), 1, %s1157_s15   ;;  %s944_s6 = sshll.u32 (!%p262_p8), %s1165_s17, 6 }
  0x1a   : > { %265 = sbr.rel (%p262_p8) target bundleno = 319 (0x13f), region = 55  ;;  %s943_s7 = sshll.u32 (!%p262_p8), %s268_s5, 6 }
  0x1b   : > { %p318_p9 = scmp.lt.s32.totalorder (!%p262_p8), %s944_s6, 191  ;;  %s1253_s12 = scalar_lea.vmem (!%p262_p8), [#allocation3], %s943_s7 }
  0x1c   : > { %p946_p10 = scmp.ne.s32.totalorder (!%p262_p8), %s1165_s17, 0 }
  0x21   : > { %s1351_s6 = smov (!%p318_p9, %s944_s6), 191  ;;  %351 = sbr.rel (%p946_p10) target bundleno = 40 (0x28), region = 63 }
  0x22   : > { %s945_s8 = sshll.u32 %s1351_s6, 2  ;;  %v1175_v8 = vmov (!%p946_p10), 0.0  }
  0x23   : > { %s1251_s11 = scalar_lea.vmem %s1340_s1, %s945_s8  ;;  %352 = vst [vmem:[#allocation2] sm:$0xff] (!%p946_p10), %v1175_v8  ;;  %353 = vst [vmem:[#allocation2 + $0x8] sm:$0xff] (!%p946_p10), %v1175_v8 }
  0x24   : > { %354 = vst [vmem:[#allocation2 + $0x10] sm:$0xff] (!%p946_p10), %v1175_v8  ;;  %355 = vst [vmem:[#allocation2 + $0x18] sm:$0xff] (!%p946_p10), %v1175_v8 }
  0x28 PF: > { %v1091_v9 = vld [vmem:[%s1251_s11 + $0x40] sm:$0xff]   ;;  %v1095_v13 = vld [vmem:[%s1251_s11 + $0x48] sm:$0xff]   ;;  %v1099_v17 = vld [vmem:[%s1251_s11 + $0x50] sm:$0xff]   ;;  %p987_p11 = scmp.ne.s32.totalorder %s1165_s17, 2 }
  0x29   : > { %v1092_v10 = vld [vmem:[%s1251_s11 + $0xc0] sm:$0xff]   ;;  %994 = vmatprep.subr.bf16.mxu0 %v1091_v9  ;;  %v1096_v14 = vld [vmem:[%s1251_s11 + $0xc8] sm:$0xff]   ;;  %v1100_v18 = vld [vmem:[%s1251_s11 + $0xd0] sm:$0xff]  }
  0x2a   : > { %v1093_v11 = vld [vmem:[%s1251_s11] sm:$0xff]   ;;  %1022 = vmatprep.subr.bf16.mxu1 %v1092_v10  ;;  %v1097_v15 = vld [vmem:[%s1251_s11 + $0x8] sm:$0xff]   ;;  %v1101_v19 = vld [vmem:[%s1251_s11 + $0x10] sm:$0xff]  }
  0x2b   : > { %v1094_v12 = vld [vmem:[%s1251_s11 + $0x80] sm:$0xff]   ;;  %995 = vmatpush3.bf16.msra.mxu0 %v1093_v11  ;;  %v1098_v16 = vld [vmem:[%s1251_s11 + $0x88] sm:$0xff]   ;;  %v1102_v20 = vld [vmem:[%s1251_s11 + $0x90] sm:$0xff]  }
  0x2c   : > { %1023 = vmatpush3.bf16.msra.mxu1 %v1094_v12  ;;  %996 = vmatprep.subr.bf16.mxu0 %v1095_v13  ;;  %v1103_v21 = vld [vmem:[%s1251_s11 + $0x58] sm:$0xff]   ;;  %v1107_v25 = vld [vmem:[%s1251_s11 + $0x60] sm:$0xff]   ;;  %v1111_v29 = vld [vmem:[%s1251_s11 + $0x68] sm:$0xff]  }
  0x2d   : > { %1024 = vmatprep.subr.bf16.mxu1 %v1096_v14  ;;  %v1104_v22 = vld [vmem:[%s1251_s11 + $0xd8] sm:$0xff]   ;;  %v1108_v26 = vld [vmem:[%s1251_s11 + $0xe0] sm:$0xff]   ;;  %v1112_v30 = vld [vmem:[%s1251_s11 + $0xe8] sm:$0xff]  }
  0x2e   : > { %v1105_v23 = vld [vmem:[%s1251_s11 + $0x18] sm:$0xff]   ;;  %v1109_v27 = vld [vmem:[%s1251_s11 + $0x20] sm:$0xff]   ;;  %v1113_v31 = vld [vmem:[%s1251_s11 + $0x28] sm:$0xff]  }
  0x2f   : > { %997 = vmatpush3.bf16.msra.mxu0 %v1097_v15  ;;  %v1106_v24 = vld [vmem:[%s1251_s11 + $0x98] sm:$0xff]   ;;  %v1110_v28 = vld [vmem:[%s1251_s11 + $0xa0] sm:$0xff]   ;;  %v1114_v32 = vld [vmem:[%s1251_s11 + $0xa8] sm:$0xff]  }
  0x30   : > { %1025 = vmatpush3.bf16.msra.mxu1 %v1098_v16  ;;  %998 = vmatprep.subr.bf16.mxu0 %v1099_v17  ;;  %v1115_v33 = vld [vmem:[%s1251_s11 + $0x70] sm:$0xff]   ;;  %v1119_v37 = vld [vmem:[%s1251_s11 + $0x78] sm:$0xff]   ;;  %v356_v58 = vld [vmem:[#allocation2] sm:$0xff] }
  0x31   : > { %1026 = vmatprep.subr.bf16.mxu1 %v1100_v18  ;;  %v1116_v34 = vld [vmem:[%s1251_s11 + $0xf0] sm:$0xff]   ;;  %v1120_v38 = vld [vmem:[%s1251_s11 + $0xf8] sm:$0xff]   ;;  %v357_v63 = vld [vmem:[#allocation2 + $0x8] sm:$0xff] }
  0x32   : > { %v1117_v35 = vld [vmem:[%s1251_s11 + $0x30] sm:$0xff]   ;;  %v1121_v39 = vld [vmem:[%s1251_s11 + $0x38] sm:$0xff]  }
  0x33   : > { %999 = vmatpush3.bf16.msra.mxu0 %v1101_v19  ;;  %v1118_v36 = vld [vmem:[%s1251_s11 + $0xb0] sm:$0xff]   ;;  %v1122_v40 = vld [vmem:[%s1251_s11 + $0xb8] sm:$0xff]  }
  0x34   : > { %1027 = vmatpush3.bf16.msra.mxu1 %v1102_v20  ;;  %1000 = vmatprep.subr.bf16.mxu0 %v1103_v21  ;;  %v1123_v41 = vld [vmem:[%s1253_s12] ss:$16 sps:$4 sm:$0xff]   ;;  %v1125_v42 = vld [vmem:[%s1253_s12 + $0x4] ss:$16 sps:$4 sm:$0xff]   ;;  %v1126_v43 = vld [vmem:[%s1253_s12 + $0x8] ss:$16 sps:$4 sm:$0xff]  }
  0x35   : > { %1028 = vmatprep.subr.bf16.mxu1 %v1104_v22  ;;  %v1128_v44 = vld [vmem:[%s1253_s12 + $0xc] ss:$16 sps:$4 sm:$0xff]   ;;  %696 = vmatprep.mubr.bf16.mxu0 %v1125_v42  ;;  %v1129_v45 = vld [vmem:[%s1253_s12 + $0x24] ss:$16 sps:$4 sm:$0xff]   ;;  %v1133_v47 = vld [vmem:[%s1253_s12 + $0x20] ss:$16 sps:$4 sm:$0xff]  }
  0x36   : > { %745 = vmatprep.mubr.bf16.mxu1 %v1128_v44  ;;  %v1131_v46 = vld [vmem:[%s1253_s12 + $0x2c] ss:$16 sps:$4 sm:$0xff]   ;;  %v1134_v48 = vld [vmem:[%s1253_s12 + $0x28] ss:$16 sps:$4 sm:$0xff]   ;;  %v358_v12 = vld [vmem:[#allocation2 + $0x10] sm:$0xff] }
  0x37   : > { %1001 = vmatpush3.bf16.msra.mxu0 %v1105_v23  ;;  %v359_v17 = vld [vmem:[#allocation2 + $0x18] sm:$0xff]  ;;  %v988_v22 = vld [vmem:[%s1341_s2] ss:$0 sm:$0xff] (!%p987_p11) }
  0x38   : > { %1029 = vmatpush3.bf16.msra.mxu1 %v1106_v24  ;;  %1002 = vmatprep.subr.bf16.mxu0 %v1107_v25  ;;  %v789_v23 = vld [vmem:[%s1342_s3] sm:$0xff] (!%p987_p11) }
  0x39   : > { %1030 = vmatprep.subr.bf16.mxu1 %v1108_v26  ;;  %v790_v26 = vld [vmem:[%s1342_s3 + $0x8] sm:$0xff] (!%p987_p11) }
  0x3b   : > { %1003 = vmatpush3.bf16.msra.mxu0 %v1109_v27 }
  0x3c   : > { %1031 = vmatpush3.bf16.msra.mxu1 %v1110_v28  ;;  %1004 = vmatprep.subr.bf16.mxu0 %v1111_v29 }
  0x3d   : > { %1032 = vmatprep.subr.bf16.mxu1 %v1112_v30  ;;  %v791_v30 = vld [vmem:[%s1342_s3 + $0x10] sm:$0xff] (!%p987_p11) }
  0x3f   : > { %1005 = vmatpush3.bf16.msra.mxu0 %v1113_v31 }
  0x40   : > { %1033 = vmatpush3.bf16.msra.mxu1 %v1114_v32  ;;  %1006 = vmatprep.subr.bf16.mxu0 %v1115_v33  ;;  %v792_v32 = vld [vmem:[%s1342_s3 + $0x18] sm:$0xff] (!%p987_p11) }
  0x41   : > { %1034 = vmatprep.subr.bf16.mxu1 %v1116_v34 }
  0x43   : > { %1007 = vmatpush3.bf16.msra.mxu0 %v1117_v35 }
  0x44   : > { %1035 = vmatpush3.bf16.msra.mxu1 %v1118_v36  ;;  %1008 = vmatprep.subr.bf16.mxu0 %v1119_v37 }
  0x45   : > { %1036 = vmatprep.subr.bf16.mxu1 %v1120_v38 }
  0x47   : > { %1009 = vmatpush3.bf16.msra.mxu0 %v1121_v39 }
  0x48   : > { %1037 = vmatpush3.bf16.msra.mxu1 %v1122_v40 }
  0x4a   : > { %697 = vmatmul.mubr.bf16.vlgmr.msra.gmra.mrb[0].mxu0 %v1123_v41 }
  0x4b   : > { %746 = vmatmul.mubr.bf16.vlgmr.msra.gmra.mrb[0].mxu1 %v1126_v43  ;;  %704 = vmatprep.mubr.bf16.mxu0 %v1129_v45 }
  0x4c   : > { %753 = vmatprep.mubr.bf16.mxu1 %v1131_v46 }
  0x52   : > { %705 = vmatmul.mubr.bf16.gmra.mrb[4].mxu0 %v1133_v47 }
  0x53   : > { %754 = vmatmul.mubr.bf16.gmra.mrb[4].mxu1 %v1134_v48 }
 0x11d   : > { %v1010_v49 = vpop.f32.mrb[0].mxu0 }
 0x11e   : > { %v1038_v50 = vpop.f32.mrb[0].mxu1  ;;  %v1011_v51 = vpop.f32.mrb[1].mxu0 }
 0x11f   : > { %v1012_v52 = vadd.f32 %v1011_v51, %v1010_v49  ;;  %v1039_v53 = vpop.f32.mrb[1].mxu1  ;;  %v1013_v54 = vpop.f32.mrb[2].mxu0 }
 0x120   : > { %v1040_v55 = vadd.f32 %v1039_v53, %v1038_v50  ;;  %v1041_v56 = vpop.f32.mrb[2].mxu1  ;;  %v1014_v57 = vpop.f32.mrb[3].mxu0 }
 0x121   : > { %v1015_v59 = vadd.f32 %v1014_v57, %v1013_v54  ;;  %v1042_v60 = vpop.f32.mrb[3].mxu1 }
 0x122   : > { %v748_v61 = vadd.f32 %v1040_v55, %v1012_v52  ;;  %v1043_v62 = vadd.f32 %v1042_v60, %v1041_v56 }
 0x124   : > { %v762_v0 = vadd.f32 %v748_v61, %v356_v58  ;;  %v751_v1 = vadd.f32 %v1043_v62, %v1015_v59 }
 0x125   : > { %v1016_v2 = vpop.f32.mrb[4].mxu0 }
 0x126   : > { %766 = vst [vmem:[#allocation2] sm:$0xff] %v762_v0  ;;  %v763_v3 = vadd.f32 %v751_v1, %v357_v63  ;;  %v1044_v4 = vpop.f32.mrb[4].mxu1  ;;  %v1017_v5 = vpop.f32.mrb[5].mxu0 }
 0x127   : > { %v1018_v6 = vadd.f32 %v1017_v5, %v1016_v2  ;;  %v1045_v7 = vpop.f32.mrb[5].mxu1  ;;  %v1019_v8 = vpop.f32.mrb[6].mxu0 }
 0x128   : > { %767 = vst [vmem:[#allocation2 + $0x8] sm:$0xff] %v763_v3  ;;  %v1046_v9 = vadd.f32 %v1045_v7, %v1044_v4  ;;  %v1047_v10 = vpop.f32.mrb[6].mxu1  ;;  %v1020_v11 = vpop.f32.mrb[7].mxu0 }
 0x129   : > { %v1021_v13 = vadd.f32 %v1020_v11, %v1019_v8  ;;  %v1048_v14 = vpop.f32.mrb[7].mxu1 }
 0x12a   : > { %v756_v15 = vadd.f32 %v1046_v9, %v1018_v6  ;;  %v1049_v16 = vadd.f32 %v1048_v14, %v1047_v10  ;;  %773 = sbr.rel (%p987_p11) target bundleno = 319 (0x13f), region = 67 }
 0x12c   : > { %v764_v18 = vadd.f32 %v756_v15, %v358_v12  ;;  %v759_v19 = vadd.f32 %v1049_v16, %v1021_v13 }
 0x12d   : > { %v774_v21 = vld [vmem:[#allocation2] sm:$0xff] (!%p987_p11) }
 0x12e   : > { %768 = vst [vmem:[#allocation2 + $0x10] sm:$0xff] %v764_v18  ;;  %v765_v20 = vadd.f32 %v759_v19, %v359_v17  ;;  %v785_v24 = vadd.f32 (!%p987_p11), %v988_v22, %v774_v21 }
 0x12f   : > { %v775_v25 = vld [vmem:[#allocation2 + $0x8] sm:$0xff] (!%p987_p11) }
 0x130   : > { %769 = vst [vmem:[#allocation2 + $0x18] sm:$0xff] %v765_v20  ;;  %v786_v28 = vadd.f32 (!%p987_p11), %v988_v22, %v775_v25  ;;  %v793_v33 = vadd.f32 (!%p987_p11), %v789_v23, %v785_v24 }
 0x132   : > { %v794_v35 = vadd.f32 %v790_v26, %v786_v28  ;;  %v797_v37 = vmax.f32 %v793_v33, 0.0 }
 0x134   : > { %v798_v39 = vmax.f32 %v794_v35, 0.0  ;;  %801 = vst [vmem:[%s1343_s4] sm:$0xff] %v797_v37 }
 0x135   : > { %v776_v27 = vld [vmem:[#allocation2 + $0x10] sm:$0xff] }
 0x136   : > { %v787_v29 = vadd.f32 %v988_v22, %v776_v27  ;;  %802 = vst [vmem:[%s1343_s4 + $0x8] sm:$0xff] %v798_v39 }
 0x137   : > { %v777_v31 = vld [vmem:[#allocation2 + $0x18] sm:$0xff] }
 0x138   : > { %v788_v34 = vadd.f32 %v988_v22, %v777_v31  ;;  %v795_v36 = vadd.f32 %v791_v30, %v787_v29 }
 0x13a   : > { %v796_v38 = vadd.f32 %v792_v32, %v788_v34  ;;  %v799_v40 = vmax.f32 %v795_v36, 0.0 }
 0x13c   : > { %v800_v41 = vmax.f32 %v796_v38, 0.0  ;;  %803 = vst [vmem:[%s1343_s4 + $0x10] sm:$0xff] %v799_v40 }
 0x13e   : > { %804 = vst [vmem:[%s1343_s4 + $0x18] sm:$0xff] %v800_v41 }
 0x13f PF: > { %s14_s19 = sadd.s32 1, %s1173_s19   ;;  %s1344_s15 = smov %s1161_s16 }
 0x140   : > { %p11_p12 = scmp.ge.s32.totalorder %s14_s19, 5   ;;  %s1345_s16 = smov %s1236_s23 }
 0x141   : > { %s1346_s17 = smov %s1169_s18  ;;  %s1347_s18 = smov %s1349_s20 }
 0x142   :  { %13 = sbr.rel (!%p11_p12) target bundleno = 3 (0x3), region = 111 }

// kernel: resnet_forward.33
= control target key start
LH: loop header
LB: loop body
LE: loop exit
PB: predicated region body
PF: predicated region fallthrough
CT: control target
= control target key end

     0   :  { %s1109_s12 = smov 0   ;;  %s1111_s13 = smov 0   ;;  %s1235_s0 = inlined_call_operand.vmem [shape: bf16[32,1536], index: 0, kind: input, shape index: {}]   ;;  %s1236_s1 = inlined_call_operand.vmem [shape: bf16[1536,128], index: 1, kind: input, shape index: {}]   ;;  %s1237_s2 = inlined_call_operand.vmem [shape: f32[1,128], index: 2, kind: input, shape index: {}]   ;;  %s1238_s3 = inlined_call_operand.vmem [shape: f32[32,128], index: 3, kind: output, shape index: {}]  }
   0x1   :  { %s1113_s14 = smov 0   ;;  %s1115_s15 = smov 0  }
   0x2   :  { %s1117_s16 = smov 0  }
   0x3 LB: > { %s25_s17 = sadd.s32 1, %s1082_s15  ;;  %p48_p1 = scmp.ne.s32.totalorder %s1074_s13, %s1070_s12  ;;  %s1086_s16 = sphi %s1117_s16, %s13_s16   ;;  %s1082_s15 = sphi %s1115_s15, %s1242_s15   ;;  %s1078_s14 = sphi %s1113_s14, %s1241_s14   ;;  %s1074_s13 = sphi %s1111_s13, %s1240_s13   ;;  %s1070_s12 = sphi %s1109_s12, %s1239_s12  }
   0x4   : > { %p26_p0 = scmp.ge.s32.totalorder %s25_s17, 3  ;;  %p49_p2 = scmp.eq.s32.totalorder %s1086_s16, 0 }
   0x5   : > { %s41_s19 = sadd.s32 1, %s1074_s13  ;;  %p851_p5 = scmp.ge.s32.totalorder %s1086_s16, 3 }
   0x6   : > { %s1244_s17 = smov (%p26_p0, %s25_s17), 0  ;;  %p50_p3 = por %p49_p2, %p48_p1 }
   0x7   : > { %s37_s18 = ssub.s32 %s1082_s15, %s1244_s17  ;;  %162 = sbr.rel (%p851_p5) target bundleno = 22 (0x16), region = 20 }
   0x8   : > { %p39_p4 = scmp.eq.s32.totalorder %s37_s18, 0 }
   0xa   : > { %s1144_s20 = scalar_select %p39_p4, %s1074_s13, %s41_s19  }
   0xe   : > { %165 = sbr.rel (!%p50_p3) target bundleno = 22 (0x16), region = 24  ;;  %s167_s21 = sand.u32 (%p50_p3), 1, %s1074_s13  }
   0xf   : > { %s906_s22 = sshll.u32 (%p50_p3), %s1082_s15, 4  ;;  %s852_s23 = sshll.u32 (%p50_p3), %s167_s21, 6 }
  0x10   : > { %s175_s26 = scalar_lea.vmem (%p50_p3), %s1235_s0, %s906_s22  ;;  %s169_s27 = scalar_lea.vmem (%p50_p3), [#allocation3], %s852_s23 }
  0x11   : > { %v188_v0 = vld [vmem:[%s175_s26] sm:$0xff] (%p50_p3)  ;;  %v190_v1 = vld [vmem:[%s175_s26 + $0x8] sm:$0xff] (%p50_p3)  ;;  %v192_v2 = vld [vmem:[%s175_s26 + $0x30] sm:$0xff] (%p50_p3) }
  0x12   : > { %189 = vst [vmem:[%s169_s27] sm:$0xff] (%p50_p3), %v188_v0  ;;  %191 = vst [vmem:[%s169_s27 + $0x8] sm:$0xff] (%p50_p3), %v190_v1  ;;  %v194_v3 = vld [vmem:[%s175_s26 + $0x38] sm:$0xff] (%p50_p3)  ;;  %v196_v4 = vld [vmem:[%s175_s26 + $0x60] sm:$0xff] (%p50_p3) }
  0x13   : > { %193 = vst [vmem:[%s169_s27 + $0x10] sm:$0xff] (%p50_p3), %v192_v2  ;;  %v198_v5 = vld [vmem:[%s175_s26 + $0x68] sm:$0xff] (%p50_p3)  ;;  %195 = vst [vmem:[%s169_s27 + $0x18] sm:$0xff] (%p50_p3), %v194_v3  ;;  %v200_v6 = vld [vmem:[%s175_s26 + $0x90] sm:$0xff] (%p50_p3) }
  0x14   : > { %197 = vst [vmem:[%s169_s27 + $0x20] sm:$0xff] (%p50_p3), %v196_v4  ;;  %199 = vst [vmem:[%s169_s27 + $0x28] sm:$0xff] (%p50_p3), %v198_v5  ;;  %v202_v7 = vld [vmem:[%s175_s26 + $0x98] sm:$0xff] (%p50_p3) }
  0x15   : > { %201 = vst [vmem:[%s169_s27 + $0x30] sm:$0xff] %v200_v6  ;;  %203 = vst [vmem:[%s169_s27 + $0x38] sm:$0xff] %v202_v7 }
  0x16 PF: > { %p855_p6 = scmp.ge.s32.totalorder %s1086_s16, 1  ;;  %p220_p7 = scmp.lt.s32.totalorder %s1086_s16, 4 }
  0x18   : > { %p221_p8 = pnand %p855_p6, %p220_p7 }
  0x19   : > { %s227_s28 = sand.u32 (!%p221_p8), 1, %s1070_s12   ;;  %s857_s29 = sshll.u32 (!%p221_p8), %s1078_s14, 6 }
  0x1a   : > { %224 = sbr.rel (%p221_p8) target bundleno = 317 (0x13d), region = 51  ;;  %s856_s30 = sshll.u32 (!%p221_p8), %s227_s28, 6 }
  0x1b   : > { %p267_p9 = scmp.lt.s32.totalorder (!%p221_p8), %s857_s29, 191  ;;  %s1161_s8 = scalar_lea.vmem (!%p221_p8), [#allocation3], %s856_s30 }
  0x1c   : > { %p859_p10 = scmp.ne.s32.totalorder (!%p221_p8), %s1078_s14, 0 }
  0x21   : > { %s1246_s29 = smov (!%p267_p9, %s857_s29), 191  ;;  %291 = sbr.rel (%p859_p10) target bundleno = 40 (0x28), region = 59 }
  0x22   : > { %s858_s4 = sshll.u32 %s1246_s29, 2  ;;  %v1088_v8 = vmov (!%p859_p10), 0.0  }
  0x23   : > { %s1159_s7 = scalar_lea.vmem %s1236_s1, %s858_s4  ;;  %292 = vst [vmem:[#allocation2] sm:$0xff] (!%p859_p10), %v1088_v8  ;;  %293 = vst [vmem:[#allocation2 + $0x8] sm:$0xff] (!%p859_p10), %v1088_v8 }
  0x24   : > { %294 = vst [vmem:[#allocation2 + $0x10] sm:$0xff] (!%p859_p10), %v1088_v8  ;;  %295 = vst [vmem:[#allocation2 + $0x18] sm:$0xff] (!%p859_p10), %v1088_v8 }
  0x28 PF: > { %v1004_v9 = vld [vmem:[%s1159_s7 + $0x40] sm:$0xff]   ;;  %v1008_v13 = vld [vmem:[%s1159_s7 + $0x48] sm:$0xff]   ;;  %v1012_v17 = vld [vmem:[%s1159_s7 + $0x50] sm:$0xff]   ;;  %p900_p11 = scmp.ne.s32.totalorder %s1078_s14, 2 }
  0x29   : > { %v1005_v10 = vld [vmem:[%s1159_s7 + $0xc0] sm:$0xff]   ;;  %907 = vmatprep.subr.bf16.mxu0 %v1004_v9  ;;  %v1009_v14 = vld [vmem:[%s1159_s7 + $0xc8] sm:$0xff]   ;;  %v1013_v18 = vld [vmem:[%s1159_s7 + $0xd0] sm:$0xff]  }
  0x2a   : > { %v1006_v11 = vld [vmem:[%s1159_s7] sm:$0xff]   ;;  %935 = vmatprep.subr.bf16.mxu1 %v1005_v10  ;;  %v1010_v15 = vld [vmem:[%s1159_s7 + $0x8] sm:$0xff]   ;;  %v1014_v19 = vld [vmem:[%s1159_s7 + $0x10] sm:$0xff]  }
  0x2b   : > { %v1007_v12 = vld [vmem:[%s1159_s7 + $0x80] sm:$0xff]   ;;  %908 = vmatpush3.bf16.msra.mxu0 %v1006_v11  ;;  %v1011_v16 = vld [vmem:[%s1159_s7 + $0x88] sm:$0xff]   ;;  %v1015_v20 = vld [vmem:[%s1159_s7 + $0x90] sm:$0xff]  }
  0x2c   : > { %936 = vmatpush3.bf16.msra.mxu1 %v1007_v12  ;;  %909 = vmatprep.subr.bf16.mxu0 %v1008_v13  ;;  %v1016_v21 = vld [vmem:[%s1159_s7 + $0x58] sm:$0xff]   ;;  %v1020_v25 = vld [vmem:[%s1159_s7 + $0x60] sm:$0xff]   ;;  %v1024_v29 = vld [vmem:[%s1159_s7 + $0x68] sm:$0xff]  }
  0x2d   : > { %937 = vmatprep.subr.bf16.mxu1 %v1009_v14  ;;  %v1017_v22 = vld [vmem:[%s1159_s7 + $0xd8] sm:$0xff]   ;;  %v1021_v26 = vld [vmem:[%s1159_s7 + $0xe0] sm:$0xff]   ;;  %v1025_v30 = vld [vmem:[%s1159_s7 + $0xe8] sm:$0xff]  }
  0x2e   : > { %v1018_v23 = vld [vmem:[%s1159_s7 + $0x18] sm:$0xff]   ;;  %v1022_v27 = vld [vmem:[%s1159_s7 + $0x20] sm:$0xff]   ;;  %v1026_v31 = vld [vmem:[%s1159_s7 + $0x28] sm:$0xff]  }
  0x2f   : > { %910 = vmatpush3.bf16.msra.mxu0 %v1010_v15  ;;  %v1019_v24 = vld [vmem:[%s1159_s7 + $0x98] sm:$0xff]   ;;  %v1023_v28 = vld [vmem:[%s1159_s7 + $0xa0] sm:$0xff]   ;;  %v1027_v32 = vld [vmem:[%s1159_s7 + $0xa8] sm:$0xff]  }
  0x30   : > { %938 = vmatpush3.bf16.msra.mxu1 %v1011_v16  ;;  %911 = vmatprep.subr.bf16.mxu0 %v1012_v17  ;;  %v1028_v33 = vld [vmem:[%s1159_s7 + $0x70] sm:$0xff]   ;;  %v1032_v37 = vld [vmem:[%s1159_s7 + $0x78] sm:$0xff]   ;;  %v296_v58 = vld [vmem:[#allocation2] sm:$0xff] }
  0x31   : > { %939 = vmatprep.subr.bf16.mxu1 %v1013_v18  ;;  %v1029_v34 = vld [vmem:[%s1159_s7 + $0xf0] sm:$0xff]   ;;  %v1033_v38 = vld [vmem:[%s1159_s7 + $0xf8] sm:$0xff]   ;;  %v297_v63 = vld [vmem:[#allocation2 + $0x8] sm:$0xff] }
  0x32   : > { %v1030_v35 = vld [vmem:[%s1159_s7 + $0x30] sm:$0xff]   ;;  %v1034_v39 = vld [vmem:[%s1159_s7 + $0x38] sm:$0xff]  }
  0x33   : > { %912 = vmatpush3.bf16.msra.mxu0 %v1014_v19  ;;  %v1031_v36 = vld [vmem:[%s1159_s7 + $0xb0] sm:$0xff]   ;;  %v1035_v40 = vld [vmem:[%s1159_s7 + $0xb8] sm:$0xff]  }
  0x34   : > { %940 = vmatpush3.bf16.msra.mxu1 %v1015_v20  ;;  %913 = vmatprep.subr.bf16.mxu0 %v1016_v21  ;;  %v1036_v41 = vld [vmem:[%s1161_s8] ss:$16 sps:$4 sm:$0xff]   ;;  %v1038_v42 = vld [vmem:[%s1161_s8 + $0x4] ss:$16 sps:$4 sm:$0xff]   ;;  %v1039_v43 = vld [vmem:[%s1161_s8 + $0x8] ss:$16 sps:$4 sm:$0xff]  }
  0x35   : > { %941 = vmatprep.subr.bf16.mxu1 %v1017_v22  ;;  %v1041_v44 = vld [vmem:[%s1161_s8 + $0xc] ss:$16 sps:$4 sm:$0xff]   ;;  %636 = vmatprep.mubr.bf16.mxu0 %v1038_v42  ;;  %v1042_v45 = vld [vmem:[%s1161_s8 + $0x24] ss:$16 sps:$4 sm:$0xff]   ;;  %v1046_v47 = vld [vmem:[%s1161_s8 + $0x20] ss:$16 sps:$4 sm:$0xff]  }
  0x36   : > { %685 = vmatprep.mubr.bf16.mxu1 %v1041_v44  ;;  %v1044_v46 = vld [vmem:[%s1161_s8 + $0x2c] ss:$16 sps:$4 sm:$0xff]   ;;  %v1047_v48 = vld [vmem:[%s1161_s8 + $0x28] ss:$16 sps:$4 sm:$0xff]   ;;  %v298_v12 = vld [vmem:[#allocation2 + $0x10] sm:$0xff] }
  0x37   : > { %914 = vmatpush3.bf16.msra.mxu0 %v1018_v23  ;;  %v299_v17 = vld [vmem:[#allocation2 + $0x18] sm:$0xff]  ;;  %v901_v22 = vld [vmem:[%s1237_s2] ss:$0 sm:$0xff] (!%p900_p11) }
  0x38   : > { %942 = vmatpush3.bf16.msra.mxu1 %v1019_v24  ;;  %915 = vmatprep.subr.bf16.mxu0 %v1020_v25 }
  0x39   : > { %943 = vmatprep.subr.bf16.mxu1 %v1021_v26 }
  0x3b   : > { %916 = vmatpush3.bf16.msra.mxu0 %v1022_v27 }
  0x3c   : > { %944 = vmatpush3.bf16.msra.mxu1 %v1023_v28  ;;  %917 = vmatprep.subr.bf16.mxu0 %v1024_v29 }
  0x3d   : > { %945 = vmatprep.subr.bf16.mxu1 %v1025_v30 }
  0x3f   : > { %918 = vmatpush3.bf16.msra.mxu0 %v1026_v31 }
  0x40   : > { %946 = vmatpush3.bf16.msra.mxu1 %v1027_v32  ;;  %919 = vmatprep.subr.bf16.mxu0 %v1028_v33 }
  0x41   : > { %947 = vmatprep.subr.bf16.mxu1 %v1029_v34 }
  0x43   : > { %920 = vmatpush3.bf16.msra.mxu0 %v1030_v35 }
  0x44   : > { %948 = vmatpush3.bf16.msra.mxu1 %v1031_v36  ;;  %921 = vmatprep.subr.bf16.mxu0 %v1032_v37 }
  0x45   : > { %949 = vmatprep.subr.bf16.mxu1 %v1033_v38 }
  0x47   : > { %922 = vmatpush3.bf16.msra.mxu0 %v1034_v39 }
  0x48   : > { %950 = vmatpush3.bf16.msra.mxu1 %v1035_v40 }
  0x4a   : > { %637 = vmatmul.mubr.bf16.vlgmr.msra.gmra.mrb[0].mxu0 %v1036_v41 }
  0x4b   : > { %686 = vmatmul.mubr.bf16.vlgmr.msra.gmra.mrb[0].mxu1 %v1039_v43  ;;  %644 = vmatprep.mubr.bf16.mxu0 %v1042_v45 }
  0x4c   : > { %693 = vmatprep.mubr.bf16.mxu1 %v1044_v46 }
  0x52   : > { %645 = vmatmul.mubr.bf16.gmra.mrb[4].mxu0 %v1046_v47 }
  0x53   : > { %694 = vmatmul.mubr.bf16.gmra.mrb[4].mxu1 %v1047_v48 }
 0x11d   : > { %v923_v49 = vpop.f32.mrb[0].mxu0 }
 0x11e   : > { %v951_v50 = vpop.f32.mrb[0].mxu1  ;;  %v924_v51 = vpop.f32.mrb[1].mxu0 }
 0x11f   : > { %v925_v52 = vadd.f32 %v924_v51, %v923_v49  ;;  %v952_v53 = vpop.f32.mrb[1].mxu1  ;;  %v926_v54 = vpop.f32.mrb[2].mxu0 }
 0x120   : > { %v953_v55 = vadd.f32 %v952_v53, %v951_v50  ;;  %v954_v56 = vpop.f32.mrb[2].mxu1  ;;  %v927_v57 = vpop.f32.mrb[3].mxu0 }
 0x121   : > { %v928_v59 = vadd.f32 %v927_v57, %v926_v54  ;;  %v955_v60 = vpop.f32.mrb[3].mxu1 }
 0x122   : > { %v688_v61 = vadd.f32 %v953_v55, %v925_v52  ;;  %v956_v62 = vadd.f32 %v955_v60, %v954_v56 }
 0x124   : > { %v702_v0 = vadd.f32 %v688_v61, %v296_v58  ;;  %v691_v1 = vadd.f32 %v956_v62, %v928_v59 }
 0x125   : > { %v929_v2 = vpop.f32.mrb[4].mxu0 }
 0x126   : > { %706 = vst [vmem:[#allocation2] sm:$0xff] %v702_v0  ;;  %v703_v3 = vadd.f32 %v691_v1, %v297_v63  ;;  %v957_v4 = vpop.f32.mrb[4].mxu1  ;;  %v930_v5 = vpop.f32.mrb[5].mxu0 }
 0x127   : > { %v931_v6 = vadd.f32 %v930_v5, %v929_v2  ;;  %v958_v7 = vpop.f32.mrb[5].mxu1  ;;  %v932_v8 = vpop.f32.mrb[6].mxu0 }
 0x128   : > { %707 = vst [vmem:[#allocation2 + $0x8] sm:$0xff] %v703_v3  ;;  %v959_v9 = vadd.f32 %v958_v7, %v957_v4  ;;  %v960_v10 = vpop.f32.mrb[6].mxu1  ;;  %v933_v11 = vpop.f32.mrb[7].mxu0 }
 0x129   : > { %v934_v13 = vadd.f32 %v933_v11, %v932_v8  ;;  %v961_v14 = vpop.f32.mrb[7].mxu1 }
 0x12a   : > { %v696_v15 = vadd.f32 %v959_v9, %v931_v6  ;;  %v962_v16 = vadd.f32 %v961_v14, %v960_v10  ;;  %713 = sbr.rel (%p900_p11) target bundleno = 317 (0x13d), region = 63 }
 0x12c   : > { %v704_v18 = vadd.f32 %v696_v15, %v298_v12  ;;  %v699_v19 = vadd.f32 %v962_v16, %v934_v13 }
 0x12d   : > { %v714_v21 = vld [vmem:[#allocation2] sm:$0xff] (!%p900_p11) }
 0x12e   : > { %708 = vst [vmem:[#allocation2 + $0x10] sm:$0xff] %v704_v18  ;;  %v705_v20 = vadd.f32 %v699_v19, %v299_v17  ;;  %v725_v24 = vadd.f32 (!%p900_p11), %v901_v22, %v714_v21 }
 0x12f   : > { %v715_v23 = vld [vmem:[#allocation2 + $0x8] sm:$0xff] (!%p900_p11) }
 0x130   : > { %709 = vst [vmem:[#allocation2 + $0x18] sm:$0xff] %v705_v20  ;;  %v726_v25 = vadd.f32 (!%p900_p11), %v901_v22, %v715_v23  ;;  %v729_v30 = vmax.f32 (!%p900_p11), %v725_v24, 0.0 }
 0x132   : > { %v730_v31 = vmax.f32 %v726_v25, 0.0  ;;  %733 = vst [vmem:[%s1238_s3] sm:$0xff] %v729_v30 }
 0x134   : > { %734 = vst [vmem:[%s1238_s3 + $0x8] sm:$0xff] %v730_v31 }
 0x135   : > { %v716_v26 = vld [vmem:[#allocation2 + $0x10] sm:$0xff] }
 0x136   : > { %v727_v28 = vadd.f32 %v901_v22, %v716_v26 }
 0x137   : > { %v717_v27 = vld [vmem:[#allocation2 + $0x18] sm:$0xff] }
 0x138   : > { %v728_v29 = vadd.f32 %v901_v22, %v717_v27  ;;  %v731_v32 = vmax.f32 %v727_v28, 0.0 }
 0x13a   : > { %v732_v33 = vmax.f32 %v728_v29, 0.0  ;;  %735 = vst [vmem:[%s1238_s3 + $0x10] sm:$0xff] %v731_v32 }
 0x13c   : > { %736 = vst [vmem:[%s1238_s3 + $0x18] sm:$0xff] %v732_v33 }
 0x13d PF: > { %s13_s16 = sadd.s32 1, %s1086_s16   ;;  %s1239_s12 = smov %s1074_s13 }
 0x13e   : > { %p10_p12 = scmp.ge.s32.totalorder %s13_s16, 5   ;;  %s1240_s13 = smov %s1144_s20 }
 0x13f   : > { %s1241_s14 = smov %s1082_s15  ;;  %s1242_s15 = smov %s1244_s17 }
 0x140   :  { %12 = sbr.rel (!%p10_p12) target bundleno = 3 (0x3), region = 104 }

// kernel: resnet_forward.35
= control target key start
LH: loop header
LB: loop body
LE: loop exit
PB: predicated region body
PF: predicated region fallthrough
CT: control target
= control target key end

     0   :  { %s1167_s12 = smov 0   ;;  %s1169_s13 = smov 0   ;;  %s1285_s0 = inlined_call_operand.vmem [shape: bf16[8,1536], index: 0, kind: input, shape index: {}]   ;;  %s1286_s1 = inlined_call_operand.vmem [shape: bf16[1536,256], index: 1, kind: input, shape index: {}]   ;;  %s1287_s2 = inlined_call_operand.vmem [shape: f32[1,256], index: 2, kind: input, shape index: {}]   ;;  %s1288_s3 = inlined_call_operand.vmem [shape: f32[8,256], index: 3, kind: output, shape index: {}]  }
   0x1   :  { %s1171_s14 = smov 0  }
   0x2 LB: > { %s25_s15 = sadd.s32 1, %s1140_s13  ;;  %p916_p0 = scmp.ge.s32.totalorder %s1144_s14, 1  ;;  %s1144_s14 = sphi %s1171_s14, %s13_s14   ;;  %s1140_s13 = sphi %s1169_s13, %s1290_s13   ;;  %s1136_s12 = sphi %s1167_s12, %s1289_s12  }
   0x3   : > { %p26_p1 = scmp.ge.s32.totalorder %s25_s15, 3  ;;  %p194_p2 = scmp.lt.s32.totalorder %s1144_s14, 4 }
   0x5   : > { %s1292_s15 = smov (%p26_p1, %s25_s15), 0  ;;  %p195_p3 = pnand %p916_p0, %p194_p2 }
   0x6   : > { %s917_s16 = sshll.u32 (!%p195_p3), %s1136_s12, 2  ;;  %s919_s17 = sshll.u32 (!%p195_p3), %s1136_s12, 6 }
   0x7   : > { %198 = sbr.rel (%p195_p3) target bundleno = 320 (0x140), region = 32  ;;  %p243_p4 = scmp.lt.s32.totalorder (!%p195_p3), %s917_s16, 11 }
   0x8   : > { %p252_p5 = scmp.lt.s32.totalorder (!%p195_p3), %s919_s17, 191  ;;  %p922_p6 = scmp.ne.s32.totalorder (!%p195_p3), %s1136_s12, 0 }
   0xe   : > { %s1294_s16 = smov (!%p243_p4, %s917_s16), 11  ;;  %s1296_s17 = smov (!%p252_p5, %s919_s17), 191 }
   0xf   : > { %s918_s18 = sshll.u32 %s1294_s16, 2  ;;  %s996_s22 = sshll.u32 %s1296_s17, 3  ;;  %v1146_v0 = vmov (!%p922_p6), 0.0  }
  0x10   : > { %s1192_s21 = scalar_lea.vmem %s1285_s0, %s918_s18  ;;  %s1197_s25 = scalar_lea.vmem %s1286_s1, %s996_s22  ;;  %281 = vst [vmem:[#allocation2] sm:$0xff] (!%p922_p6), %v1146_v0  ;;  %282 = vst [vmem:[#allocation2 + $0x8] sm:$0xff] (!%p922_p6), %v1146_v0 }
  0x11   : > { %280 = sbr.rel (%p922_p6) target bundleno = 24 (0x18), region = 36 }
  0x18 PF: > { %v1022_v1 = vld [vmem:[%s1197_s25 + $0x4] ss:$8 sps:$4 sm:$0xff]   ;;  %v1026_v3 = vld [vmem:[%s1197_s25] ss:$8 sps:$4 sm:$0xff]   ;;  %v1028_v5 = vld [vmem:[%s1197_s25 + $0x14] ss:$8 sps:$4 sm:$0xff]  }
  0x19   : > { %v1024_v2 = vld [vmem:[%s1197_s25 + $0x104] ss:$8 sps:$4 sm:$0xff]   ;;  %685 = vmatprep.subr.bf16.mxu0 %v1022_v1  ;;  %v1027_v4 = vld [vmem:[%s1197_s25 + $0x100] ss:$8 sps:$4 sm:$0xff]   ;;  %v1030_v6 = vld [vmem:[%s1197_s25 + $0x114] ss:$8 sps:$4 sm:$0xff]  }
  0x1a   : > { %726 = vmatprep.subr.bf16.mxu1 %v1024_v2  ;;  %686 = vmatpush1.bf16.msra.mxu0 %v1026_v3  ;;  %v1032_v7 = vld [vmem:[%s1197_s25 + $0x10] ss:$8 sps:$4 sm:$0xff]   ;;  %v1034_v9 = vld [vmem:[%s1197_s25 + $0x24] ss:$8 sps:$4 sm:$0xff]   ;;  %v1038_v11 = vld [vmem:[%s1197_s25 + $0x20] ss:$8 sps:$4 sm:$0xff]  }
  0x1b   : > { %727 = vmatpush1.bf16.msra.mxu1 %v1027_v4  ;;  %687 = vmatprep.subr.bf16.mxu0 %v1028_v5  ;;  %v1033_v8 = vld [vmem:[%s1197_s25 + $0x110] ss:$8 sps:$4 sm:$0xff]   ;;  %v1036_v10 = vld [vmem:[%s1197_s25 + $0x124] ss:$8 sps:$4 sm:$0xff]   ;;  %v1039_v12 = vld [vmem:[%s1197_s25 + $0x120] ss:$8 sps:$4 sm:$0xff]  }
  0x1c   : > { %728 = vmatprep.subr.bf16.mxu1 %v1030_v6  ;;  %v1040_v13 = vld [vmem:[%s1197_s25 + $0x34] ss:$8 sps:$4 sm:$0xff]   ;;  %v1044_v15 = vld [vmem:[%s1197_s25 + $0x30] ss:$8 sps:$4 sm:$0xff]   ;;  %v1046_v17 = vld [vmem:[%s1197_s25 + $0x44] ss:$8 sps:$4 sm:$0xff]  }
  0x1d   : > { %v1042_v14 = vld [vmem:[%s1197_s25 + $0x134] ss:$8 sps:$4 sm:$0xff]   ;;  %v1045_v16 = vld [vmem:[%s1197_s25 + $0x130] ss:$8 sps:$4 sm:$0xff]   ;;  %v1048_v18 = vld [vmem:[%s1197_s25 + $0x144] ss:$8 sps:$4 sm:$0xff]  }
  0x1e   : > { %688 = vmatpush1.bf16.msra.mxu0 %v1032_v7  ;;  %v1050_v19 = vld [vmem:[%s1197_s25 + $0x40] ss:$8 sps:$4 sm:$0xff]   ;;  %v1052_v21 = vld [vmem:[%s1197_s25 + $0x54] ss:$8 sps:$4 sm:$0xff]   ;;  %v1056_v23 = vld [vmem:[%s1197_s25 + $0x50] ss:$8 sps:$4 sm:$0xff]  }
  0x1f   : > { %729 = vmatpush1.bf16.msra.mxu1 %v1033_v8  ;;  %689 = vmatprep.subr.bf16.mxu0 %v1034_v9  ;;  %v1051_v20 = vld [vmem:[%s1197_s25 + $0x140] ss:$8 sps:$4 sm:$0xff]   ;;  %v1054_v22 = vld [vmem:[%s1197_s25 + $0x154] ss:$8 sps:$4 sm:$0xff]   ;;  %v1057_v24 = vld [vmem:[%s1197_s25 + $0x150] ss:$8 sps:$4 sm:$0xff]  }
  0x20   : > { %730 = vmatprep.subr.bf16.mxu1 %v1036_v10  ;;  %v1058_v25 = vld [vmem:[%s1197_s25 + $0x64] ss:$8 sps:$4 sm:$0xff]   ;;  %v1062_v27 = vld [vmem:[%s1197_s25 + $0x60] ss:$8 sps:$4 sm:$0xff]   ;;  %v1064_v29 = vld [vmem:[%s1197_s25 + $0x74] ss:$8 sps:$4 sm:$0xff]  }
  0x21   : > { %v1060_v26 = vld [vmem:[%s1197_s25 + $0x164] ss:$8 sps:$4 sm:$0xff]   ;;  %v1063_v28 = vld [vmem:[%s1197_s25 + $0x160] ss:$8 sps:$4 sm:$0xff]   ;;  %v1066_v30 = vld [vmem:[%s1197_s25 + $0x174] ss:$8 sps:$4 sm:$0xff]  }
  0x22   : > { %690 = vmatpush1.bf16.msra.mxu0 %v1038_v11  ;;  %v1068_v31 = vld [vmem:[%s1197_s25 + $0x70] ss:$8 sps:$4 sm:$0xff]   ;;  %v1070_v33 = vld [vmem:[%s1197_s25 + $0x84] ss:$8 sps:$4 sm:$0xff]   ;;  %v1074_v35 = vld [vmem:[%s1197_s25 + $0x80] ss:$8 sps:$4 sm:$0xff]  }
  0x23   : > { %731 = vmatpush1.bf16.msra.mxu1 %v1039_v12  ;;  %691 = vmatprep.subr.bf16.mxu0 %v1040_v13  ;;  %v1069_v32 = vld [vmem:[%s1197_s25 + $0x170] ss:$8 sps:$4 sm:$0xff]   ;;  %v1072_v34 = vld [vmem:[%s1197_s25 + $0x184] ss:$8 sps:$4 sm:$0xff]   ;;  %v1075_v36 = vld [vmem:[%s1197_s25 + $0x180] ss:$8 sps:$4 sm:$0xff]  }
  0x24   : > { %732 = vmatprep.subr.bf16.mxu1 %v1042_v14  ;;  %v1076_v37 = vld [vmem:[%s1197_s25 + $0x94] ss:$8 sps:$4 sm:$0xff]   ;;  %v1080_v39 = vld [vmem:[%s1197_s25 + $0x90] ss:$8 sps:$4 sm:$0xff]   ;;  %v1082_v41 = vld [vmem:[%s1197_s25 + $0xa4] ss:$8 sps:$4 sm:$0xff]  }
  0x25   : > { %v1078_v38 = vld [vmem:[%s1197_s25 + $0x194] ss:$8 sps:$4 sm:$0xff]   ;;  %v1081_v40 = vld [vmem:[%s1197_s25 + $0x190] ss:$8 sps:$4 sm:$0xff]   ;;  %v1084_v42 = vld [vmem:[%s1197_s25 + $0x1a4] ss:$8 sps:$4 sm:$0xff]  }
  0x26   : > { %692 = vmatpush1.bf16.msra.mxu0 %v1044_v15  ;;  %v1086_v43 = vld [vmem:[%s1197_s25 + $0xa0] ss:$8 sps:$4 sm:$0xff]   ;;  %v1088_v45 = vld [vmem:[%s1197_s25 + $0xb4] ss:$8 sps:$4 sm:$0xff]   ;;  %v1092_v50 = vld [vmem:[%s1197_s25 + $0xb0] ss:$8 sps:$4 sm:$0xff]  }
  0x27   : > { %733 = vmatpush1.bf16.msra.mxu1 %v1045_v16  ;;  %693 = vmatprep.subr.bf16.mxu0 %v1046_v17  ;;  %v1087_v44 = vld [vmem:[%s1197_s25 + $0x1a0] ss:$8 sps:$4 sm:$0xff]   ;;  %v1090_v46 = vld [vmem:[%s1197_s25 + $0x1b4] ss:$8 sps:$4 sm:$0xff]   ;;  %v1093_v51 = vld [vmem:[%s1197_s25 + $0x1b0] ss:$8 sps:$4 sm:$0xff]  }
  0x28   : > { %734 = vmatprep.subr.bf16.mxu1 %v1048_v18  ;;  %v285_v47 = vld [vmem:[%s1192_s21] sm:$0xff]  ;;  %v286_v49 = vld [vmem:[%s1192_s21 + $0x8] sm:$0xff]  ;;  %v1100_v57 = vld [vmem:[%s1197_s25 + $0xd4] ss:$8 sps:$4 sm:$0xff]   ;;  %p991_p7 = scmp.ne.s32.totalorder %s1136_s12, 2 }
  0x29   : > { %v924_v48 = vcombine.high %v285_v47, %v285_v47  ;;  %v926_v52 = vcombine.high %v286_v49, %v286_v49  ;;  %v1094_v53 = vld [vmem:[%s1197_s25 + $0xc4] ss:$8 sps:$4 sm:$0xff]   ;;  %v1098_v55 = vld [vmem:[%s1197_s25 + $0xc0] ss:$8 sps:$4 sm:$0xff]   ;;  %v1102_v58 = vld [vmem:[%s1197_s25 + $0x1d4] ss:$8 sps:$4 sm:$0xff]   ;;  %v923_v5 = vcombine.low %v285_v47, %v285_v47  ;;  %v925_v6 = vcombine.low %v286_v49, %v286_v49 }
  0x2a   : > { %694 = vmatpush1.bf16.msra.mxu0 %v1050_v19  ;;  %v1096_v54 = vld [vmem:[%s1197_s25 + $0x1c4] ss:$8 sps:$4 sm:$0xff]   ;;  %v1099_v56 = vld [vmem:[%s1197_s25 + $0x1c0] ss:$8 sps:$4 sm:$0xff]   ;;  %v1104_v59 = vld [vmem:[%s1197_s25 + $0xd0] ss:$8 sps:$4 sm:$0xff]  }
  0x2b   : > { %735 = vmatpush1.bf16.msra.mxu1 %v1051_v20  ;;  %695 = vmatprep.subr.bf16.mxu0 %v1052_v21  ;;  %v1105_v60 = vld [vmem:[%s1197_s25 + $0x1d0] ss:$8 sps:$4 sm:$0xff]   ;;  %v1106_v61 = vld [vmem:[%s1197_s25 + $0xe4] ss:$8 sps:$4 sm:$0xff]   ;;  %v1110_v63 = vld [vmem:[%s1197_s25 + $0xe0] ss:$8 sps:$4 sm:$0xff]   ;;  %v779_v21 = vlaneseq (!%p991_p7) }
  0x2c   : > { %736 = vmatprep.subr.bf16.mxu1 %v1054_v22  ;;  %717 = vmatprep.mubr.bf16.mxu0 %v924_v48  ;;  %v1108_v62 = vld [vmem:[%s1197_s25 + $0x1e4] ss:$8 sps:$4 sm:$0xff]   ;;  %v1111_v0 = vld [vmem:[%s1197_s25 + $0x1e0] ss:$8 sps:$4 sm:$0xff]   ;;  %v1112_v1 = vld [vmem:[%s1197_s25 + $0xf4] ss:$8 sps:$4 sm:$0xff]  }
  0x2d   : > { %758 = vmatprep.mubr.bf16.mxu1 %v926_v52  ;;  %v1114_v2 = vld [vmem:[%s1197_s25 + $0x1f4] ss:$8 sps:$4 sm:$0xff]   ;;  %v1116_v3 = vld [vmem:[%s1197_s25 + $0xf0] ss:$8 sps:$4 sm:$0xff]   ;;  %v283_v8 = vld [vmem:[#allocation2] sm:$0xff]  ;;  %v780_v22 = vshrl.u32 (!%p991_p7), %v779_v21, 7 }
  0x2e   : > { %696 = vmatpush1.bf16.msra.mxu0 %v1056_v23  ;;  %v1117_v4 = vld [vmem:[%s1197_s25 + $0x1f0] ss:$8 sps:$4 sm:$0xff]   ;;  %v284_v12 = vld [vmem:[#allocation2 + $0x8] sm:$0xff]  ;;  %v777_v23 = vld [vmem:[%s1287_s2] sm:$0x3] (!%p991_p7) }
  0x2f   : > { %737 = vmatpush1.bf16.msra.mxu1 %v1057_v24  ;;  %697 = vmatprep.subr.bf16.mxu0 %v1058_v25  ;;  %v781_v24 = vsub.s32 (!%p991_p7), 0, %v780_v22  ;;  %v785_v25 = vsub.s32 (!%p991_p7), 1, %v780_v22 }
  0x30   : > { %738 = vmatprep.subr.bf16.mxu1 %v1060_v26 }
  0x32   : > { %698 = vmatpush1.bf16.msra.mxu0 %v1062_v27 }
  0x33   : > { %739 = vmatpush1.bf16.msra.mxu1 %v1063_v28  ;;  %699 = vmatprep.subr.bf16.mxu0 %v1064_v29  ;;  %v782_v28 = vrot.slane (!%p991_p7), %v777_v23, %v781_v24  ;;  %v786_v29 = vrot.slane (!%p991_p7), %v777_v23, %v785_v25 }
  0x34   : > { %740 = vmatprep.subr.bf16.mxu1 %v1066_v30 }
  0x36   : > { %700 = vmatpush1.bf16.msra.mxu0 %v1068_v31 }
  0x37   : > { %741 = vmatpush1.bf16.msra.mxu1 %v1069_v32  ;;  %701 = vmatprep.subr.bf16.mxu0 %v1070_v33 }
  0x38   : > { %742 = vmatprep.subr.bf16.mxu1 %v1072_v34 }
  0x3a   : > { %702 = vmatpush1.bf16.msra.mxu0 %v1074_v35 }
  0x3b   : > { %743 = vmatpush1.bf16.msra.mxu1 %v1075_v36  ;;  %703 = vmatprep.subr.bf16.mxu0 %v1076_v37 }
  0x3c   : > { %744 = vmatprep.subr.bf16.mxu1 %v1078_v38 }
  0x3e   : > { %704 = vmatpush1.bf16.msra.mxu0 %v1080_v39 }
  0x3f   : > { %745 = vmatpush1.bf16.msra.mxu1 %v1081_v40  ;;  %705 = vmatprep.subr.bf16.mxu0 %v1082_v41 }
  0x40   : > { %746 = vmatprep.subr.bf16.mxu1 %v1084_v42 }
  0x42   : > { %706 = vmatpush1.bf16.msra.mxu0 %v1086_v43 }
  0x43   : > { %747 = vmatpush1.bf16.msra.mxu1 %v1087_v44  ;;  %707 = vmatprep.subr.bf16.mxu0 %v1088_v45 }
  0x44   : > { %748 = vmatprep.subr.bf16.mxu1 %v1090_v46 }
  0x46   : > { %708 = vmatpush1.bf16.msra.mxu0 %v1092_v50 }
  0x47   : > { %749 = vmatpush1.bf16.msra.mxu1 %v1093_v51  ;;  %709 = vmatprep.subr.bf16.mxu0 %v1094_v53 }
  0x48   : > { %750 = vmatprep.subr.bf16.mxu1 %v1096_v54 }
  0x4a   : > { %710 = vmatpush1.bf16.msra.mxu0 %v1098_v55 }
  0x4b   : > { %751 = vmatpush1.bf16.msra.mxu1 %v1099_v56  ;;  %711 = vmatprep.subr.bf16.mxu0 %v1100_v57 }
  0x4c   : > { %752 = vmatprep.subr.bf16.mxu1 %v1102_v58 }
  0x4e   : > { %712 = vmatpush1.bf16.msra.mxu0 %v1104_v59 }
  0x4f   : > { %753 = vmatpush1.bf16.msra.mxu1 %v1105_v60  ;;  %713 = vmatprep.subr.bf16.mxu0 %v1106_v61 }
  0x50   : > { %754 = vmatprep.subr.bf16.mxu1 %v1108_v62 }
  0x52   : > { %714 = vmatpush1.bf16.msra.mxu0 %v1110_v63 }
  0x53   : > { %755 = vmatpush1.bf16.msra.mxu1 %v1111_v0  ;;  %715 = vmatprep.subr.bf16.mxu0 %v1112_v1 }
  0x54   : > { %756 = vmatprep.subr.bf16.mxu1 %v1114_v2 }
  0x56   : > { %716 = vmatpush1.bf16.msra.mxu0 %v1116_v3 }
  0x57   : > { %757 = vmatpush1.bf16.msra.mxu1 %v1117_v4 }
  0x59   : > { %718 = vmatmul.mubr.bf16.vlgmr.msra.gmra.mrb[0].mxu0 %v923_v5 }
  0x5a   : > { %759 = vmatmul.mubr.bf16.vlgmr.msra.gmra.mrb[0].mxu1 %v925_v6 }
 0x12c   : > { %v719_v7 = vpop.f32.mrb[0].mxu0 }
 0x12d   : > { %v760_v9 = vpop.f32.mrb[0].mxu1  ;;  %v721_v11 = vpop.f32.mrb[1].mxu0  ;;  %774 = sbr.rel (%p991_p7) target bundleno = 320 (0x140), region = 40 }
 0x12e   : > { %v761_v10 = vadd.f32 %v760_v9, %v719_v7  ;;  %v762_v13 = vpop.f32.mrb[1].mxu1  ;;  %v723_v15 = vpop.f32.mrb[2].mxu0 }
 0x12f   : > { %v763_v14 = vadd.f32 %v762_v13, %v721_v11  ;;  %v764_v16 = vpop.f32.mrb[2].mxu1  ;;  %v724_v18 = vpop.f32.mrb[3].mxu0 }
 0x130   : > { %v767_v17 = vadd.f32 %v761_v10, %v283_v8  ;;  %v765_v19 = vpop.f32.mrb[3].mxu1 }
 0x131   : > { %v768_v20 = vadd.f32 %v763_v14, %v284_v12 }
 0x132   : > { %769 = vst [vmem:[#allocation2] sm:$0xff] %v767_v17 }
 0x133   : > { %770 = vst [vmem:[#allocation2 + $0x8] sm:$0xff] %v768_v20 }
 0x139   : > { %v775_v26 = vld [vmem:[#allocation2] sm:$0xff] }
 0x13a   : > { %v776_v27 = vld [vmem:[#allocation2 + $0x8] sm:$0xff]  ;;  %v789_v30 = vadd.f32 %v782_v28, %v775_v26 }
 0x13b   : > { %v790_v31 = vadd.f32 %v786_v29, %v776_v27 }
 0x13c   : > { %v791_v32 = vmax.f32 %v789_v30, 0.0 }
 0x13d   : > { %v792_v33 = vmax.f32 %v790_v31, 0.0 }
 0x13e   : > { %793 = vst [vmem:[%s1288_s3] sm:$0xff] %v791_v32 }
 0x13f   : > { %794 = vst [vmem:[%s1288_s3 + $0x8] sm:$0xff] %v792_v33 }
 0x140 PF: > { %s13_s14 = sadd.s32 1, %s1144_s14   ;;  %s1289_s12 = smov %s1140_s13 }
 0x141   : > { %p10_p8 = scmp.ge.s32.totalorder %s13_s14, 5   ;;  %s1290_s13 = smov %s1292_s15 }
 0x143   :  { %12 = sbr.rel (!%p10_p8) target bundleno = 2 (0x2), region = 76 }

// kernel: resnet_forward.36
= control target key start
LH: loop header
LB: loop body
LE: loop exit
PB: predicated region body
PF: predicated region fallthrough
CT: control target
= control target key end

     0   :  { %v231_v1 = vmov 0   ;;  %v172_v18 = vlaneseq  ;;  %s312_s1 = inlined_call_operand.vmem [shape: bf16[128,256], index: 1, kind: input, shape index: {}]   ;;  %s313_s0 = inlined_call_operand.vmem [shape: bf16[8,128], index: 0, kind: input, shape index: {}]   ;;  %s314_s2 = inlined_call_operand.vmem [shape: f32[1,256], index: 2, kind: input, shape index: {}]   ;;  %s315_s3 = inlined_call_operand.vmem [shape: f32[8,256], index: 3, kind: output, shape index: {}]  }
   0x1   :  { %v207_v0 = vld [vmem:[%s312_s1 + $0x4] ss:$8 sps:$4 sm:$0xff]   ;;  %152 = vmatprep.mubr.bf16.mxu0 %v231_v1  ;;  %v209_v2 = vld [vmem:[%s312_s1] ss:$8 sps:$4 sm:$0xff]   ;;  %v210_v3 = vld [vmem:[%s312_s1 + $0x14] ss:$8 sps:$4 sm:$0xff]  }
   0x2   :  { %120 = vmatprep.subr.bf16.mxu0 %v207_v0  ;;  %v212_v4 = vld [vmem:[%s312_s1 + $0x10] ss:$8 sps:$4 sm:$0xff]   ;;  %v213_v5 = vld [vmem:[%s312_s1 + $0x24] ss:$8 sps:$4 sm:$0xff]   ;;  %v215_v6 = vld [vmem:[%s312_s1 + $0x20] ss:$8 sps:$4 sm:$0xff]  }
   0x3   :  { %121 = vmatpush1.bf16.msra.mxu0 %v209_v2  ;;  %v216_v7 = vld [vmem:[%s312_s1 + $0x34] ss:$8 sps:$4 sm:$0xff]   ;;  %v218_v8 = vld [vmem:[%s312_s1 + $0x30] ss:$8 sps:$4 sm:$0xff]   ;;  %v219_v9 = vld [vmem:[%s312_s1 + $0x44] ss:$8 sps:$4 sm:$0xff]  }
   0x4   :  { %122 = vmatprep.subr.bf16.mxu0 %v210_v3  ;;  %v221_v10 = vld [vmem:[%s312_s1 + $0x40] ss:$8 sps:$4 sm:$0xff]   ;;  %v222_v11 = vld [vmem:[%s312_s1 + $0x54] ss:$8 sps:$4 sm:$0xff]   ;;  %v224_v12 = vld [vmem:[%s312_s1 + $0x50] ss:$8 sps:$4 sm:$0xff]  }
   0x5   :  { %v225_v13 = vld [vmem:[%s312_s1 + $0x64] ss:$8 sps:$4 sm:$0xff]   ;;  %v227_v14 = vld [vmem:[%s312_s1 + $0x60] ss:$8 sps:$4 sm:$0xff]   ;;  %v228_v15 = vld [vmem:[%s312_s1 + $0x74] ss:$8 sps:$4 sm:$0xff]  }
   0x6   :  { %v230_v16 = vld [vmem:[%s312_s1 + $0x70] ss:$8 sps:$4 sm:$0xff]   ;;  %v23_v17 = vld [vmem:[%s313_s0] sm:$0xf]  ;;  %v173_v19 = vshrl.u32 %v172_v18, 7 }
   0x7   :  { %123 = vmatpush1.bf16.msra.mxu0 %v212_v4  ;;  %v170_v21 = vld [vmem:[%s314_s2] sm:$0x3] }
   0x8   :  { %124 = vmatprep.subr.bf16.mxu0 %v213_v5  ;;  %v174_v20 = vsub.s32 0, %v173_v19  ;;  %v178_v22 = vsub.s32 1, %v173_v19 }
   0xa   :  { %v175_v23 = vrot.slane %v170_v21, %v174_v20  ;;  %v179_v24 = vrot.slane %v170_v21, %v178_v22 }
   0xb   :  { %125 = vmatpush1.bf16.msra.mxu0 %v215_v6 }
   0xc   :  { %126 = vmatprep.subr.bf16.mxu0 %v216_v7 }
   0xf   :  { %127 = vmatpush1.bf16.msra.mxu0 %v218_v8 }
  0x10   :  { %128 = vmatprep.subr.bf16.mxu0 %v219_v9 }
  0x13   :  { %129 = vmatpush1.bf16.msra.mxu0 %v221_v10 }
  0x14   :  { %130 = vmatprep.subr.bf16.mxu0 %v222_v11 }
  0x17   :  { %131 = vmatpush1.bf16.msra.mxu0 %v224_v12 }
  0x18   :  { %132 = vmatprep.subr.bf16.mxu0 %v225_v13 }
  0x1b   :  { %133 = vmatpush1.bf16.msra.mxu0 %v227_v14 }
  0x1c   :  { %134 = vmatprep.subr.bf16.mxu0 %v228_v15 }
  0x1f   :  { %135 = vmatpush1.bf16.msra.mxu0 %v230_v16 }
  0x22   :  { %153 = vmatmul.mubr.bf16.vlgmr.msra.gmra.mrb[0].mxu0 %v23_v17 }
  0xf5   :  { %v154_v25 = vpop.f32.mrb[0].mxu0 }
  0xf6   :  { %v182_v26 = vadd.f32 %v175_v23, %v154_v25  ;;  %v156_v27 = vpop.f32.mrb[1].mxu0 }
  0xf7   :  { %v183_v28 = vadd.f32 %v179_v24, %v156_v27  ;;  %v158_v29 = vpop.f32.mrb[2].mxu0 }
  0xf8   :  { %184 = vst [vmem:[%s315_s3] sm:$0xff] %v182_v26  ;;  %v159_v30 = vpop.f32.mrb[3].mxu0 }
  0xf9   :  { %185 = vst [vmem:[%s315_s3 + $0x8] sm:$0xff] %v183_v28 }

// kernel: resnet_forward.37
= control target key start
LH: loop header
LB: loop body
LE: loop exit
PB: predicated region body
PF: predicated region fallthrough
CT: control target
= control target key end

     0   :  { %s1261_s15 = smov 0   ;;  %s1263_s16 = smov 0   ;;  %s1385_s0 = inlined_call_operand.vmem [shape: bf16[8,2560], index: 0, kind: input, shape index: {}]   ;;  %s1386_s1 = inlined_call_operand.vmem [shape: bf16[2560,256], index: 1, kind: input, shape index: {}]   ;;  %s1387_s2 = inlined_call_operand.vmem [shape: f32[1,256], index: 2, kind: input, shape index: {}]   ;;  %s1388_s3 = inlined_call_operand.vmem [shape: f32[8,256], index: 3, kind: input, shape index: {}]   ;;  %s1389_s4 = inlined_call_operand.vmem [shape: f32[8,256], index: 4, kind: output, shape index: {}]  }
   0x1   :  { %s1265_s17 = smov 0  }
   0x2 LB: > { %s26_s18 = sadd.s32 1, %s1229_s16  ;;  %p1005_p0 = scmp.ge.s32.totalorder %s1233_s17, 1  ;;  %s1233_s17 = sphi %s1265_s17, %s14_s17   ;;  %s1229_s16 = sphi %s1263_s16, %s1391_s16   ;;  %s1225_s15 = sphi %s1261_s15, %s1390_s15  }
   0x3   : > { %p27_p1 = scmp.ge.s32.totalorder %s26_s18, 5  ;;  %p236_p2 = scmp.lt.s32.totalorder %s1233_s17, 6 }
   0x5   : > { %s1393_s18 = smov (%p27_p1, %s26_s18), 0  ;;  %p237_p3 = pnand %p1005_p0, %p236_p2 }
   0x6   : > { %s1006_s19 = sshll.u32 (!%p237_p3), %s1225_s15, 2  ;;  %s1008_s20 = sshll.u32 (!%p237_p3), %s1225_s15, 6 }
   0x7   : > { %240 = sbr.rel (%p237_p3) target bundleno = 322 (0x142), region = 36  ;;  %p296_p4 = scmp.lt.s32.totalorder (!%p237_p3), %s1006_s19, 19 }
   0x8   : > { %p305_p5 = scmp.lt.s32.totalorder (!%p237_p3), %s1008_s20, 319  ;;  %p1011_p6 = scmp.ne.s32.totalorder (!%p237_p3), %s1225_s15, 0 }
   0xe   : > { %s1395_s19 = smov (!%p296_p4, %s1006_s19), 19  ;;  %s1397_s20 = smov (!%p305_p5, %s1008_s20), 319 }
   0xf   : > { %s1007_s21 = sshll.u32 %s1395_s19, 2  ;;  %s1085_s25 = sshll.u32 %s1397_s20, 3  ;;  %v1235_v0 = vmov (!%p1011_p6), 0.0  }
  0x10   : > { %s1286_s24 = scalar_lea.vmem %s1385_s0, %s1007_s21  ;;  %s1291_s28 = scalar_lea.vmem %s1386_s1, %s1085_s25  ;;  %344 = vst [vmem:[#allocation2] sm:$0xff] (!%p1011_p6), %v1235_v0  ;;  %345 = vst [vmem:[#allocation2 + $0x8] sm:$0xff] (!%p1011_p6), %v1235_v0 }
  0x11   : > { %343 = sbr.rel (%p1011_p6) target bundleno = 24 (0x18), region = 40 }
  0x18 PF: > { %v1111_v1 = vld [vmem:[%s1291_s28 + $0x4] ss:$8 sps:$4 sm:$0xff]   ;;  %v1115_v3 = vld [vmem:[%s1291_s28] ss:$8 sps:$4 sm:$0xff]   ;;  %v1117_v5 = vld [vmem:[%s1291_s28 + $0x14] ss:$8 sps:$4 sm:$0xff]  }
  0x19   : > { %v1113_v2 = vld [vmem:[%s1291_s28 + $0x104] ss:$8 sps:$4 sm:$0xff]   ;;  %748 = vmatprep.subr.bf16.mxu0 %v1111_v1  ;;  %v1116_v4 = vld [vmem:[%s1291_s28 + $0x100] ss:$8 sps:$4 sm:$0xff]   ;;  %v1119_v6 = vld [vmem:[%s1291_s28 + $0x114] ss:$8 sps:$4 sm:$0xff]  }
  0x1a   : > { %789 = vmatprep.subr.bf16.mxu1 %v1113_v2  ;;  %749 = vmatpush1.bf16.msra.mxu0 %v1115_v3  ;;  %v1121_v7 = vld [vmem:[%s1291_s28 + $0x10] ss:$8 sps:$4 sm:$0xff]   ;;  %v1123_v9 = vld [vmem:[%s1291_s28 + $0x24] ss:$8 sps:$4 sm:$0xff]   ;;  %v1127_v11 = vld [vmem:[%s1291_s28 + $0x20] ss:$8 sps:$4 sm:$0xff]  }
  0x1b   : > { %790 = vmatpush1.bf16.msra.mxu1 %v1116_v4  ;;  %750 = vmatprep.subr.bf16.mxu0 %v1117_v5  ;;  %v1122_v8 = vld [vmem:[%s1291_s28 + $0x110] ss:$8 sps:$4 sm:$0xff]   ;;  %v1125_v10 = vld [vmem:[%s1291_s28 + $0x124] ss:$8 sps:$4 sm:$0xff]   ;;  %v1128_v12 = vld [vmem:[%s1291_s28 + $0x120] ss:$8 sps:$4 sm:$0xff]  }
  0x1c   : > { %791 = vmatprep.subr.bf16.mxu1 %v1119_v6  ;;  %v1129_v13 = vld [vmem:[%s1291_s28 + $0x34] ss:$8 sps:$4 sm:$0xff]   ;;  %v1133_v15 = vld [vmem:[%s1291_s28 + $0x30] ss:$8 sps:$4 sm:$0xff]   ;;  %v1135_v17 = vld [vmem:[%s1291_s28 + $0x44] ss:$8 sps:$4 sm:$0xff]  }
  0x1d   : > { %v1131_v14 = vld [vmem:[%s1291_s28 + $0x134] ss:$8 sps:$4 sm:$0xff]   ;;  %v1134_v16 = vld [vmem:[%s1291_s28 + $0x130] ss:$8 sps:$4 sm:$0xff]   ;;  %v1137_v18 = vld [vmem:[%s1291_s28 + $0x144] ss:$8 sps:$4 sm:$0xff]  }
  0x1e   : > { %751 = vmatpush1.bf16.msra.mxu0 %v1121_v7  ;;  %v1139_v19 = vld [vmem:[%s1291_s28 + $0x40] ss:$8 sps:$4 sm:$0xff]   ;;  %v1141_v21 = vld [vmem:[%s1291_s28 + $0x54] ss:$8 sps:$4 sm:$0xff]   ;;  %v1145_v23 = vld [vmem:[%s1291_s28 + $0x50] ss:$8 sps:$4 sm:$0xff]  }
  0x1f   : > { %792 = vmatpush1.bf16.msra.mxu1 %v1122_v8  ;;  %752 = vmatprep.subr.bf16.mxu0 %v1123_v9  ;;  %v1140_v20 = vld [vmem:[%s1291_s28 + $0x140] ss:$8 sps:$4 sm:$0xff]   ;;  %v1143_v22 = vld [vmem:[%s1291_s28 + $0x154] ss:$8 sps:$4 sm:$0xff]   ;;  %v1146_v24 = vld [vmem:[%s1291_s28 + $0x150] ss:$8 sps:$4 sm:$0xff]  }
  0x20   : > { %793 = vmatprep.subr.bf16.mxu1 %v1125_v10  ;;  %v1147_v25 = vld [vmem:[%s1291_s28 + $0x64] ss:$8 sps:$4 sm:$0xff]   ;;  %v1151_v27 = vld [vmem:[%s1291_s28 + $0x60] ss:$8 sps:$4 sm:$0xff]   ;;  %v1153_v29 = vld [vmem:[%s1291_s28 + $0x74] ss:$8 sps:$4 sm:$0xff]  }
  0x21   : > { %v1149_v26 = vld [vmem:[%s1291_s28 + $0x164] ss:$8 sps:$4 sm:$0xff]   ;;  %v1152_v28 = vld [vmem:[%s1291_s28 + $0x160] ss:$8 sps:$4 sm:$0xff]   ;;  %v1155_v30 = vld [vmem:[%s1291_s28 + $0x174] ss:$8 sps:$4 sm:$0xff]  }
  0x22   : > { %753 = vmatpush1.bf16.msra.mxu0 %v1127_v11  ;;  %v1157_v31 = vld [vmem:[%s1291_s28 + $0x70] ss:$8 sps:$4 sm:$0xff]   ;;  %v1159_v33 = vld [vmem:[%s1291_s28 + $0x84] ss:$8 sps:$4 sm:$0xff]   ;;  %v1163_v35 = vld [vmem:[%s1291_s28 + $0x80] ss:$8 sps:$4 sm:$0xff]  }
  0x23   : > { %794 = vmatpush1.bf16.msra.mxu1 %v1128_v12  ;;  %754 = vmatprep.subr.bf16.mxu0 %v1129_v13  ;;  %v1158_v32 = vld [vmem:[%s1291_s28 + $0x170] ss:$8 sps:$4 sm:$0xff]   ;;  %v1161_v34 = vld [vmem:[%s1291_s28 + $0x184] ss:$8 sps:$4 sm:$0xff]   ;;  %v1164_v36 = vld [vmem:[%s1291_s28 + $0x180] ss:$8 sps:$4 sm:$0xff]  }
  0x24   : > { %795 = vmatprep.subr.bf16.mxu1 %v1131_v14  ;;  %v1165_v37 = vld [vmem:[%s1291_s28 + $0x94] ss:$8 sps:$4 sm:$0xff]   ;;  %v1169_v39 = vld [vmem:[%s1291_s28 + $0x90] ss:$8 sps:$4 sm:$0xff]   ;;  %v1171_v41 = vld [vmem:[%s1291_s28 + $0xa4] ss:$8 sps:$4 sm:$0xff]  }
  0x25   : > { %v1167_v38 = vld [vmem:[%s1291_s28 + $0x194] ss:$8 sps:$4 sm:$0xff]   ;;  %v1170_v40 = vld [vmem:[%s1291_s28 + $0x190] ss:$8 sps:$4 sm:$0xff]   ;;  %v1173_v42 = vld [vmem:[%s1291_s28 + $0x1a4] ss:$8 sps:$4 sm:$0xff]  }
  0x26   : > { %755 = vmatpush1.bf16.msra.mxu0 %v1133_v15  ;;  %v1175_v43 = vld [vmem:[%s1291_s28 + $0xa0] ss:$8 sps:$4 sm:$0xff]   ;;  %v1177_v45 = vld [vmem:[%s1291_s28 + $0xb4] ss:$8 sps:$4 sm:$0xff]   ;;  %v1181_v50 = vld [vmem:[%s1291_s28 + $0xb0] ss:$8 sps:$4 sm:$0xff]  }
  0x27   : > { %796 = vmatpush1.bf16.msra.mxu1 %v1134_v16  ;;  %756 = vmatprep.subr.bf16.mxu0 %v1135_v17  ;;  %v1176_v44 = vld [vmem:[%s1291_s28 + $0x1a0] ss:$8 sps:$4 sm:$0xff]   ;;  %v1179_v46 = vld [vmem:[%s1291_s28 + $0x1b4] ss:$8 sps:$4 sm:$0xff]   ;;  %v1182_v51 = vld [vmem:[%s1291_s28 + $0x1b0] ss:$8 sps:$4 sm:$0xff]  }
  0x28   : > { %797 = vmatprep.subr.bf16.mxu1 %v1137_v18  ;;  %v348_v47 = vld [vmem:[%s1286_s24] sm:$0xff]  ;;  %v349_v49 = vld [vmem:[%s1286_s24 + $0x8] sm:$0xff]  ;;  %v1189_v57 = vld [vmem:[%s1291_s28 + $0xd4] ss:$8 sps:$4 sm:$0xff]   ;;  %p1080_p7 = scmp.ne.s32.totalorder %s1225_s15, 4 }
  0x29   : > { %v1013_v48 = vcombine.high %v348_v47, %v348_v47  ;;  %v1015_v52 = vcombine.high %v349_v49, %v349_v49  ;;  %v1183_v53 = vld [vmem:[%s1291_s28 + $0xc4] ss:$8 sps:$4 sm:$0xff]   ;;  %v1187_v55 = vld [vmem:[%s1291_s28 + $0xc0] ss:$8 sps:$4 sm:$0xff]   ;;  %v1191_v58 = vld [vmem:[%s1291_s28 + $0x1d4] ss:$8 sps:$4 sm:$0xff]   ;;  %v1012_v5 = vcombine.low %v348_v47, %v348_v47  ;;  %v1014_v6 = vcombine.low %v349_v49, %v349_v49 }
  0x2a   : > { %757 = vmatpush1.bf16.msra.mxu0 %v1139_v19  ;;  %v1185_v54 = vld [vmem:[%s1291_s28 + $0x1c4] ss:$8 sps:$4 sm:$0xff]   ;;  %v1188_v56 = vld [vmem:[%s1291_s28 + $0x1c0] ss:$8 sps:$4 sm:$0xff]   ;;  %v1193_v59 = vld [vmem:[%s1291_s28 + $0xd0] ss:$8 sps:$4 sm:$0xff]  }
  0x2b   : > { %798 = vmatpush1.bf16.msra.mxu1 %v1140_v20  ;;  %758 = vmatprep.subr.bf16.mxu0 %v1141_v21  ;;  %v1194_v60 = vld [vmem:[%s1291_s28 + $0x1d0] ss:$8 sps:$4 sm:$0xff]   ;;  %v1195_v61 = vld [vmem:[%s1291_s28 + $0xe4] ss:$8 sps:$4 sm:$0xff]   ;;  %v1199_v63 = vld [vmem:[%s1291_s28 + $0xe0] ss:$8 sps:$4 sm:$0xff]   ;;  %v842_v21 = vlaneseq (!%p1080_p7) }
  0x2c   : > { %799 = vmatprep.subr.bf16.mxu1 %v1143_v22  ;;  %780 = vmatprep.mubr.bf16.mxu0 %v1013_v48  ;;  %v1197_v62 = vld [vmem:[%s1291_s28 + $0x1e4] ss:$8 sps:$4 sm:$0xff]   ;;  %v1200_v0 = vld [vmem:[%s1291_s28 + $0x1e0] ss:$8 sps:$4 sm:$0xff]   ;;  %v1201_v1 = vld [vmem:[%s1291_s28 + $0xf4] ss:$8 sps:$4 sm:$0xff]  }
  0x2d   : > { %821 = vmatprep.mubr.bf16.mxu1 %v1015_v52  ;;  %v1203_v2 = vld [vmem:[%s1291_s28 + $0x1f4] ss:$8 sps:$4 sm:$0xff]   ;;  %v1205_v3 = vld [vmem:[%s1291_s28 + $0xf0] ss:$8 sps:$4 sm:$0xff]   ;;  %v346_v8 = vld [vmem:[#allocation2] sm:$0xff]  ;;  %v843_v22 = vshrl.u32 (!%p1080_p7), %v842_v21, 7 }
  0x2e   : > { %759 = vmatpush1.bf16.msra.mxu0 %v1145_v23  ;;  %v1206_v4 = vld [vmem:[%s1291_s28 + $0x1f0] ss:$8 sps:$4 sm:$0xff]   ;;  %v347_v12 = vld [vmem:[#allocation2 + $0x8] sm:$0xff]  ;;  %v840_v23 = vld [vmem:[%s1387_s2] sm:$0x3] (!%p1080_p7) }
  0x2f   : > { %800 = vmatpush1.bf16.msra.mxu1 %v1146_v24  ;;  %760 = vmatprep.subr.bf16.mxu0 %v1147_v25  ;;  %v844_v24 = vsub.s32 (!%p1080_p7), 0, %v843_v22  ;;  %v848_v25 = vsub.s32 (!%p1080_p7), 1, %v843_v22 }
  0x30   : > { %801 = vmatprep.subr.bf16.mxu1 %v1149_v26 }
  0x32   : > { %761 = vmatpush1.bf16.msra.mxu0 %v1151_v27 }
  0x33   : > { %802 = vmatpush1.bf16.msra.mxu1 %v1152_v28  ;;  %762 = vmatprep.subr.bf16.mxu0 %v1153_v29  ;;  %v845_v28 = vrot.slane (!%p1080_p7), %v840_v23, %v844_v24  ;;  %v849_v29 = vrot.slane (!%p1080_p7), %v840_v23, %v848_v25 }
  0x34   : > { %803 = vmatprep.subr.bf16.mxu1 %v1155_v30  ;;  %v854_v30 = vld [vmem:[%s1388_s3] sm:$0xff] (!%p1080_p7) }
  0x36   : > { %763 = vmatpush1.bf16.msra.mxu0 %v1157_v31  ;;  %v855_v31 = vld [vmem:[%s1388_s3 + $0x8] sm:$0xff] (!%p1080_p7) }
  0x37   : > { %804 = vmatpush1.bf16.msra.mxu1 %v1158_v32  ;;  %764 = vmatprep.subr.bf16.mxu0 %v1159_v33 }
  0x38   : > { %805 = vmatprep.subr.bf16.mxu1 %v1161_v34 }
  0x3a   : > { %765 = vmatpush1.bf16.msra.mxu0 %v1163_v35 }
  0x3b   : > { %806 = vmatpush1.bf16.msra.mxu1 %v1164_v36  ;;  %766 = vmatprep.subr.bf16.mxu0 %v1165_v37 }
  0x3c   : > { %807 = vmatprep.subr.bf16.mxu1 %v1167_v38 }
  0x3e   : > { %767 = vmatpush1.bf16.msra.mxu0 %v1169_v39 }
  0x3f   : > { %808 = vmatpush1.bf16.msra.mxu1 %v1170_v40  ;;  %768 = vmatprep.subr.bf16.mxu0 %v1171_v41 }
  0x40   : > { %809 = vmatprep.subr.bf16.mxu1 %v1173_v42 }
  0x42   : > { %769 = vmatpush1.bf16.msra.mxu0 %v1175_v43 }
  0x43   : > { %810 = vmatpush1.bf16.msra.mxu1 %v1176_v44  ;;  %770 = vmatprep.subr.bf16.mxu0 %v1177_v45 }
  0x44   : > { %811 = vmatprep.subr.bf16.mxu1 %v1179_v46 }
  0x46   : > { %771 = vmatpush1.bf16.msra.mxu0 %v1181_v50 }
  0x47   : > { %812 = vmatpush1.bf16.msra.mxu1 %v1182_v51  ;;  %772 = vmatprep.subr.bf16.mxu0 %v1183_v53 }
  0x48   : > { %813 = vmatprep.subr.bf16.mxu1 %v1185_v54 }
  0x4a   : > { %773 = vmatpush1.bf16.msra.mxu0 %v1187_v55 }
  0x4b   : > { %814 = vmatpush1.bf16.msra.mxu1 %v1188_v56  ;;  %774 = vmatprep.subr.bf16.mxu0 %v1189_v57 }
  0x4c   : > { %815 = vmatprep.subr.bf16.mxu1 %v1191_v58 }
  0x4e   : > { %775 = vmatpush1.bf16.msra.mxu0 %v1193_v59 }
  0x4f   : > { %816 = vmatpush1.bf16.msra.mxu1 %v1194_v60  ;;  %776 = vmatprep.subr.bf16.mxu0 %v1195_v61 }
  0x50   : > { %817 = vmatprep.subr.bf16.mxu1 %v1197_v62 }
  0x52   : > { %777 = vmatpush1.bf16.msra.mxu0 %v1199_v63 }
  0x53   : > { %818 = vmatpush1.bf16.msra.mxu1 %v1200_v0  ;;  %778 = vmatprep.subr.bf16.mxu0 %v1201_v1 }
  0x54   : > { %819 = vmatprep.subr.bf16.mxu1 %v1203_v2 }
  0x56   : > { %779 = vmatpush1.bf16.msra.mxu0 %v1205_v3 }
  0x57   : > { %820 = vmatpush1.bf16.msra.mxu1 %v1206_v4 }
  0x59   : > { %781 = vmatmul.mubr.bf16.vlgmr.msra.gmra.mrb[0].mxu0 %v1012_v5 }
  0x5a   : > { %822 = vmatmul.mubr.bf16.vlgmr.msra.gmra.mrb[0].mxu1 %v1014_v6 }
 0x12c   : > { %v782_v7 = vpop.f32.mrb[0].mxu0 }
 0x12d   : > { %v823_v9 = vpop.f32.mrb[0].mxu1  ;;  %v784_v11 = vpop.f32.mrb[1].mxu0  ;;  %837 = sbr.rel (%p1080_p7) target bundleno = 322 (0x142), region = 44 }
 0x12e   : > { %v824_v10 = vadd.f32 %v823_v9, %v782_v7  ;;  %v825_v13 = vpop.f32.mrb[1].mxu1  ;;  %v786_v15 = vpop.f32.mrb[2].mxu0 }
 0x12f   : > { %v826_v14 = vadd.f32 %v825_v13, %v784_v11  ;;  %v827_v16 = vpop.f32.mrb[2].mxu1  ;;  %v787_v18 = vpop.f32.mrb[3].mxu0 }
 0x130   : > { %v830_v17 = vadd.f32 %v824_v10, %v346_v8  ;;  %v828_v19 = vpop.f32.mrb[3].mxu1 }
 0x131   : > { %v831_v20 = vadd.f32 %v826_v14, %v347_v12 }
 0x132   : > { %832 = vst [vmem:[#allocation2] sm:$0xff] %v830_v17 }
 0x133   : > { %833 = vst [vmem:[#allocation2 + $0x8] sm:$0xff] %v831_v20 }
 0x139   : > { %v838_v26 = vld [vmem:[#allocation2] sm:$0xff] }
 0x13a   : > { %v839_v27 = vld [vmem:[#allocation2 + $0x8] sm:$0xff]  ;;  %v852_v32 = vadd.f32 %v845_v28, %v838_v26 }
 0x13b   : > { %v853_v33 = vadd.f32 %v849_v29, %v839_v27 }
 0x13c   : > { %v856_v34 = vadd.f32 %v854_v30, %v852_v32 }
 0x13d   : > { %v857_v35 = vadd.f32 %v855_v31, %v853_v33 }
 0x13e   : > { %v858_v36 = vmax.f32 %v856_v34, 0.0 }
 0x13f   : > { %v859_v37 = vmax.f32 %v857_v35, 0.0 }
 0x140   : > { %860 = vst [vmem:[%s1389_s4] sm:$0xff] %v858_v36 }
 0x141   : > { %861 = vst [vmem:[%s1389_s4 + $0x8] sm:$0xff] %v859_v37 }
 0x142 PF: > { %s14_s17 = sadd.s32 1, %s1233_s17   ;;  %s1390_s15 = smov %s1229_s16 }
 0x143   : > { %p11_p8 = scmp.ge.s32.totalorder %s14_s17, 7   ;;  %s1391_s16 = smov %s1393_s18 }
 0x145   :  { %13 = sbr.rel (!%p11_p8) target bundleno = 2 (0x2), region = 83 }

// kernel: resnet_forward.38
= control target key start
LH: loop header
LB: loop body
LE: loop exit
PB: predicated region body
PF: predicated region fallthrough
CT: control target
= control target key end

     0   :  { %s1167_s12 = smov 0   ;;  %s1169_s13 = smov 0   ;;  %s1285_s0 = inlined_call_operand.vmem [shape: bf16[8,2560], index: 0, kind: input, shape index: {}]   ;;  %s1286_s1 = inlined_call_operand.vmem [shape: bf16[2560,256], index: 1, kind: input, shape index: {}]   ;;  %s1287_s2 = inlined_call_operand.vmem [shape: f32[1,256], index: 2, kind: input, shape index: {}]   ;;  %s1288_s3 = inlined_call_operand.vmem [shape: f32[8,256], index: 3, kind: output, shape index: {}]  }
   0x1   :  { %s1171_s14 = smov 0  }
   0x2 LB: > { %s25_s15 = sadd.s32 1, %s1140_s13  ;;  %p916_p0 = scmp.ge.s32.totalorder %s1144_s14, 1  ;;  %s1144_s14 = sphi %s1171_s14, %s13_s14   ;;  %s1140_s13 = sphi %s1169_s13, %s1290_s13   ;;  %s1136_s12 = sphi %s1167_s12, %s1289_s12  }
   0x3   : > { %p26_p1 = scmp.ge.s32.totalorder %s25_s15, 5  ;;  %p194_p2 = scmp.lt.s32.totalorder %s1144_s14, 6 }
   0x5   : > { %s1292_s15 = smov (%p26_p1, %s25_s15), 0  ;;  %p195_p3 = pnand %p916_p0, %p194_p2 }
   0x6   : > { %s917_s16 = sshll.u32 (!%p195_p3), %s1136_s12, 2  ;;  %s919_s17 = sshll.u32 (!%p195_p3), %s1136_s12, 6 }
   0x7   : > { %198 = sbr.rel (%p195_p3) target bundleno = 320 (0x140), region = 32  ;;  %p243_p4 = scmp.lt.s32.totalorder (!%p195_p3), %s917_s16, 19 }
   0x8   : > { %p252_p5 = scmp.lt.s32.totalorder (!%p195_p3), %s919_s17, 319  ;;  %p922_p6 = scmp.ne.s32.totalorder (!%p195_p3), %s1136_s12, 0 }
   0xe   : > { %s1294_s16 = smov (!%p243_p4, %s917_s16), 19  ;;  %s1296_s17 = smov (!%p252_p5, %s919_s17), 319 }
   0xf   : > { %s918_s18 = sshll.u32 %s1294_s16, 2  ;;  %s996_s22 = sshll.u32 %s1296_s17, 3  ;;  %v1146_v0 = vmov (!%p922_p6), 0.0  }
  0x10   : > { %s1192_s21 = scalar_lea.vmem %s1285_s0, %s918_s18  ;;  %s1197_s25 = scalar_lea.vmem %s1286_s1, %s996_s22  ;;  %281 = vst [vmem:[#allocation2] sm:$0xff] (!%p922_p6), %v1146_v0  ;;  %282 = vst [vmem:[#allocation2 + $0x8] sm:$0xff] (!%p922_p6), %v1146_v0 }
  0x11   : > { %280 = sbr.rel (%p922_p6) target bundleno = 24 (0x18), region = 36 }
  0x18 PF: > { %v1022_v1 = vld [vmem:[%s1197_s25 + $0x4] ss:$8 sps:$4 sm:$0xff]   ;;  %v1026_v3 = vld [vmem:[%s1197_s25] ss:$8 sps:$4 sm:$0xff]   ;;  %v1028_v5 = vld [vmem:[%s1197_s25 + $0x14] ss:$8 sps:$4 sm:$0xff]  }
  0x19   : > { %v1024_v2 = vld [vmem:[%s1197_s25 + $0x104] ss:$8 sps:$4 sm:$0xff]   ;;  %685 = vmatprep.subr.bf16.mxu0 %v1022_v1  ;;  %v1027_v4 = vld [vmem:[%s1197_s25 + $0x100] ss:$8 sps:$4 sm:$0xff]   ;;  %v1030_v6 = vld [vmem:[%s1197_s25 + $0x114] ss:$8 sps:$4 sm:$0xff]  }
  0x1a   : > { %726 = vmatprep.subr.bf16.mxu1 %v1024_v2  ;;  %686 = vmatpush1.bf16.msra.mxu0 %v1026_v3  ;;  %v1032_v7 = vld [vmem:[%s1197_s25 + $0x10] ss:$8 sps:$4 sm:$0xff]   ;;  %v1034_v9 = vld [vmem:[%s1197_s25 + $0x24] ss:$8 sps:$4 sm:$0xff]   ;;  %v1038_v11 = vld [vmem:[%s1197_s25 + $0x20] ss:$8 sps:$4 sm:$0xff]  }
  0x1b   : > { %727 = vmatpush1.bf16.msra.mxu1 %v1027_v4  ;;  %687 = vmatprep.subr.bf16.mxu0 %v1028_v5  ;;  %v1033_v8 = vld [vmem:[%s1197_s25 + $0x110] ss:$8 sps:$4 sm:$0xff]   ;;  %v1036_v10 = vld [vmem:[%s1197_s25 + $0x124] ss:$8 sps:$4 sm:$0xff]   ;;  %v1039_v12 = vld [vmem:[%s1197_s25 + $0x120] ss:$8 sps:$4 sm:$0xff]  }
  0x1c   : > { %728 = vmatprep.subr.bf16.mxu1 %v1030_v6  ;;  %v1040_v13 = vld [vmem:[%s1197_s25 + $0x34] ss:$8 sps:$4 sm:$0xff]   ;;  %v1044_v15 = vld [vmem:[%s1197_s25 + $0x30] ss:$8 sps:$4 sm:$0xff]   ;;  %v1046_v17 = vld [vmem:[%s1197_s25 + $0x44] ss:$8 sps:$4 sm:$0xff]  }
  0x1d   : > { %v1042_v14 = vld [vmem:[%s1197_s25 + $0x134] ss:$8 sps:$4 sm:$0xff]   ;;  %v1045_v16 = vld [vmem:[%s1197_s25 + $0x130] ss:$8 sps:$4 sm:$0xff]   ;;  %v1048_v18 = vld [vmem:[%s1197_s25 + $0x144] ss:$8 sps:$4 sm:$0xff]  }
  0x1e   : > { %688 = vmatpush1.bf16.msra.mxu0 %v1032_v7  ;;  %v1050_v19 = vld [vmem:[%s1197_s25 + $0x40] ss:$8 sps:$4 sm:$0xff]   ;;  %v1052_v21 = vld [vmem:[%s1197_s25 + $0x54] ss:$8 sps:$4 sm:$0xff]   ;;  %v1056_v23 = vld [vmem:[%s1197_s25 + $0x50] ss:$8 sps:$4 sm:$0xff]  }
  0x1f   : > { %729 = vmatpush1.bf16.msra.mxu1 %v1033_v8  ;;  %689 = vmatprep.subr.bf16.mxu0 %v1034_v9  ;;  %v1051_v20 = vld [vmem:[%s1197_s25 + $0x140] ss:$8 sps:$4 sm:$0xff]   ;;  %v1054_v22 = vld [vmem:[%s1197_s25 + $0x154] ss:$8 sps:$4 sm:$0xff]   ;;  %v1057_v24 = vld [vmem:[%s1197_s25 + $0x150] ss:$8 sps:$4 sm:$0xff]  }
  0x20   : > { %730 = vmatprep.subr.bf16.mxu1 %v1036_v10  ;;  %v1058_v25 = vld [vmem:[%s1197_s25 + $0x64] ss:$8 sps:$4 sm:$0xff]   ;;  %v1062_v27 = vld [vmem:[%s1197_s25 + $0x60] ss:$8 sps:$4 sm:$0xff]   ;;  %v1064_v29 = vld [vmem:[%s1197_s25 + $0x74] ss:$8 sps:$4 sm:$0xff]  }
  0x21   : > { %v1060_v26 = vld [vmem:[%s1197_s25 + $0x164] ss:$8 sps:$4 sm:$0xff]   ;;  %v1063_v28 = vld [vmem:[%s1197_s25 + $0x160] ss:$8 sps:$4 sm:$0xff]   ;;  %v1066_v30 = vld [vmem:[%s1197_s25 + $0x174] ss:$8 sps:$4 sm:$0xff]  }
  0x22   : > { %690 = vmatpush1.bf16.msra.mxu0 %v1038_v11  ;;  %v1068_v31 = vld [vmem:[%s1197_s25 + $0x70] ss:$8 sps:$4 sm:$0xff]   ;;  %v1070_v33 = vld [vmem:[%s1197_s25 + $0x84] ss:$8 sps:$4 sm:$0xff]   ;;  %v1074_v35 = vld [vmem:[%s1197_s25 + $0x80] ss:$8 sps:$4 sm:$0xff]  }
  0x23   : > { %731 = vmatpush1.bf16.msra.mxu1 %v1039_v12  ;;  %691 = vmatprep.subr.bf16.mxu0 %v1040_v13  ;;  %v1069_v32 = vld [vmem:[%s1197_s25 + $0x170] ss:$8 sps:$4 sm:$0xff]   ;;  %v1072_v34 = vld [vmem:[%s1197_s25 + $0x184] ss:$8 sps:$4 sm:$0xff]   ;;  %v1075_v36 = vld [vmem:[%s1197_s25 + $0x180] ss:$8 sps:$4 sm:$0xff]  }
  0x24   : > { %732 = vmatprep.subr.bf16.mxu1 %v1042_v14  ;;  %v1076_v37 = vld [vmem:[%s1197_s25 + $0x94] ss:$8 sps:$4 sm:$0xff]   ;;  %v1080_v39 = vld [vmem:[%s1197_s25 + $0x90] ss:$8 sps:$4 sm:$0xff]   ;;  %v1082_v41 = vld [vmem:[%s1197_s25 + $0xa4] ss:$8 sps:$4 sm:$0xff]  }
  0x25   : > { %v1078_v38 = vld [vmem:[%s1197_s25 + $0x194] ss:$8 sps:$4 sm:$0xff]   ;;  %v1081_v40 = vld [vmem:[%s1197_s25 + $0x190] ss:$8 sps:$4 sm:$0xff]   ;;  %v1084_v42 = vld [vmem:[%s1197_s25 + $0x1a4] ss:$8 sps:$4 sm:$0xff]  }
  0x26   : > { %692 = vmatpush1.bf16.msra.mxu0 %v1044_v15  ;;  %v1086_v43 = vld [vmem:[%s1197_s25 + $0xa0] ss:$8 sps:$4 sm:$0xff]   ;;  %v1088_v45 = vld [vmem:[%s1197_s25 + $0xb4] ss:$8 sps:$4 sm:$0xff]   ;;  %v1092_v50 = vld [vmem:[%s1197_s25 + $0xb0] ss:$8 sps:$4 sm:$0xff]  }
  0x27   : > { %733 = vmatpush1.bf16.msra.mxu1 %v1045_v16  ;;  %693 = vmatprep.subr.bf16.mxu0 %v1046_v17  ;;  %v1087_v44 = vld [vmem:[%s1197_s25 + $0x1a0] ss:$8 sps:$4 sm:$0xff]   ;;  %v1090_v46 = vld [vmem:[%s1197_s25 + $0x1b4] ss:$8 sps:$4 sm:$0xff]   ;;  %v1093_v51 = vld [vmem:[%s1197_s25 + $0x1b0] ss:$8 sps:$4 sm:$0xff]  }
  0x28   : > { %734 = vmatprep.subr.bf16.mxu1 %v1048_v18  ;;  %v285_v47 = vld [vmem:[%s1192_s21] sm:$0xff]  ;;  %v286_v49 = vld [vmem:[%s1192_s21 + $0x8] sm:$0xff]  ;;  %v1100_v57 = vld [vmem:[%s1197_s25 + $0xd4] ss:$8 sps:$4 sm:$0xff]   ;;  %p991_p7 = scmp.ne.s32.totalorder %s1136_s12, 4 }
  0x29   : > { %v924_v48 = vcombine.high %v285_v47, %v285_v47  ;;  %v926_v52 = vcombine.high %v286_v49, %v286_v49  ;;  %v1094_v53 = vld [vmem:[%s1197_s25 + $0xc4] ss:$8 sps:$4 sm:$0xff]   ;;  %v1098_v55 = vld [vmem:[%s1197_s25 + $0xc0] ss:$8 sps:$4 sm:$0xff]   ;;  %v1102_v58 = vld [vmem:[%s1197_s25 + $0x1d4] ss:$8 sps:$4 sm:$0xff]   ;;  %v923_v5 = vcombine.low %v285_v47, %v285_v47  ;;  %v925_v6 = vcombine.low %v286_v49, %v286_v49 }
  0x2a   : > { %694 = vmatpush1.bf16.msra.mxu0 %v1050_v19  ;;  %v1096_v54 = vld [vmem:[%s1197_s25 + $0x1c4] ss:$8 sps:$4 sm:$0xff]   ;;  %v1099_v56 = vld [vmem:[%s1197_s25 + $0x1c0] ss:$8 sps:$4 sm:$0xff]   ;;  %v1104_v59 = vld [vmem:[%s1197_s25 + $0xd0] ss:$8 sps:$4 sm:$0xff]  }
  0x2b   : > { %735 = vmatpush1.bf16.msra.mxu1 %v1051_v20  ;;  %695 = vmatprep.subr.bf16.mxu0 %v1052_v21  ;;  %v1105_v60 = vld [vmem:[%s1197_s25 + $0x1d0] ss:$8 sps:$4 sm:$0xff]   ;;  %v1106_v61 = vld [vmem:[%s1197_s25 + $0xe4] ss:$8 sps:$4 sm:$0xff]   ;;  %v1110_v63 = vld [vmem:[%s1197_s25 + $0xe0] ss:$8 sps:$4 sm:$0xff]   ;;  %v779_v21 = vlaneseq (!%p991_p7) }
  0x2c   : > { %736 = vmatprep.subr.bf16.mxu1 %v1054_v22  ;;  %717 = vmatprep.mubr.bf16.mxu0 %v924_v48  ;;  %v1108_v62 = vld [vmem:[%s1197_s25 + $0x1e4] ss:$8 sps:$4 sm:$0xff]   ;;  %v1111_v0 = vld [vmem:[%s1197_s25 + $0x1e0] ss:$8 sps:$4 sm:$0xff]   ;;  %v1112_v1 = vld [vmem:[%s1197_s25 + $0xf4] ss:$8 sps:$4 sm:$0xff]  }
  0x2d   : > { %758 = vmatprep.mubr.bf16.mxu1 %v926_v52  ;;  %v1114_v2 = vld [vmem:[%s1197_s25 + $0x1f4] ss:$8 sps:$4 sm:$0xff]   ;;  %v1116_v3 = vld [vmem:[%s1197_s25 + $0xf0] ss:$8 sps:$4 sm:$0xff]   ;;  %v283_v8 = vld [vmem:[#allocation2] sm:$0xff]  ;;  %v780_v22 = vshrl.u32 (!%p991_p7), %v779_v21, 7 }
  0x2e   : > { %696 = vmatpush1.bf16.msra.mxu0 %v1056_v23  ;;  %v1117_v4 = vld [vmem:[%s1197_s25 + $0x1f0] ss:$8 sps:$4 sm:$0xff]   ;;  %v284_v12 = vld [vmem:[#allocation2 + $0x8] sm:$0xff]  ;;  %v777_v23 = vld [vmem:[%s1287_s2] sm:$0x3] (!%p991_p7) }
  0x2f   : > { %737 = vmatpush1.bf16.msra.mxu1 %v1057_v24  ;;  %697 = vmatprep.subr.bf16.mxu0 %v1058_v25  ;;  %v781_v24 = vsub.s32 (!%p991_p7), 0, %v780_v22  ;;  %v785_v25 = vsub.s32 (!%p991_p7), 1, %v780_v22 }
  0x30   : > { %738 = vmatprep.subr.bf16.mxu1 %v1060_v26 }
  0x32   : > { %698 = vmatpush1.bf16.msra.mxu0 %v1062_v27 }
  0x33   : > { %739 = vmatpush1.bf16.msra.mxu1 %v1063_v28  ;;  %699 = vmatprep.subr.bf16.mxu0 %v1064_v29  ;;  %v782_v28 = vrot.slane (!%p991_p7), %v777_v23, %v781_v24  ;;  %v786_v29 = vrot.slane (!%p991_p7), %v777_v23, %v785_v25 }
  0x34   : > { %740 = vmatprep.subr.bf16.mxu1 %v1066_v30 }
  0x36   : > { %700 = vmatpush1.bf16.msra.mxu0 %v1068_v31 }
  0x37   : > { %741 = vmatpush1.bf16.msra.mxu1 %v1069_v32  ;;  %701 = vmatprep.subr.bf16.mxu0 %v1070_v33 }
  0x38   : > { %742 = vmatprep.subr.bf16.mxu1 %v1072_v34 }
  0x3a   : > { %702 = vmatpush1.bf16.msra.mxu0 %v1074_v35 }
  0x3b   : > { %743 = vmatpush1.bf16.msra.mxu1 %v1075_v36  ;;  %703 = vmatprep.subr.bf16.mxu0 %v1076_v37 }
  0x3c   : > { %744 = vmatprep.subr.bf16.mxu1 %v1078_v38 }
  0x3e   : > { %704 = vmatpush1.bf16.msra.mxu0 %v1080_v39 }
  0x3f   : > { %745 = vmatpush1.bf16.msra.mxu1 %v1081_v40  ;;  %705 = vmatprep.subr.bf16.mxu0 %v1082_v41 }
  0x40   : > { %746 = vmatprep.subr.bf16.mxu1 %v1084_v42 }
  0x42   : > { %706 = vmatpush1.bf16.msra.mxu0 %v1086_v43 }
  0x43   : > { %747 = vmatpush1.bf16.msra.mxu1 %v1087_v44  ;;  %707 = vmatprep.subr.bf16.mxu0 %v1088_v45 }
  0x44   : > { %748 = vmatprep.subr.bf16.mxu1 %v1090_v46 }
  0x46   : > { %708 = vmatpush1.bf16.msra.mxu0 %v1092_v50 }
  0x47   : > { %749 = vmatpush1.bf16.msra.mxu1 %v1093_v51  ;;  %709 = vmatprep.subr.bf16.mxu0 %v1094_v53 }
  0x48   : > { %750 = vmatprep.subr.bf16.mxu1 %v1096_v54 }
  0x4a   : > { %710 = vmatpush1.bf16.msra.mxu0 %v1098_v55 }
  0x4b   : > { %751 = vmatpush1.bf16.msra.mxu1 %v1099_v56  ;;  %711 = vmatprep.subr.bf16.mxu0 %v1100_v57 }
  0x4c   : > { %752 = vmatprep.subr.bf16.mxu1 %v1102_v58 }
  0x4e   : > { %712 = vmatpush1.bf16.msra.mxu0 %v1104_v59 }
  0x4f   : > { %753 = vmatpush1.bf16.msra.mxu1 %v1105_v60  ;;  %713 = vmatprep.subr.bf16.mxu0 %v1106_v61 }
  0x50   : > { %754 = vmatprep.subr.bf16.mxu1 %v1108_v62 }
  0x52   : > { %714 = vmatpush1.bf16.msra.mxu0 %v1110_v63 }
  0x53   : > { %755 = vmatpush1.bf16.msra.mxu1 %v1111_v0  ;;  %715 = vmatprep.subr.bf16.mxu0 %v1112_v1 }
  0x54   : > { %756 = vmatprep.subr.bf16.mxu1 %v1114_v2 }
  0x56   : > { %716 = vmatpush1.bf16.msra.mxu0 %v1116_v3 }
  0x57   : > { %757 = vmatpush1.bf16.msra.mxu1 %v1117_v4 }
  0x59   : > { %718 = vmatmul.mubr.bf16.vlgmr.msra.gmra.mrb[0].mxu0 %v923_v5 }
  0x5a   : > { %759 = vmatmul.mubr.bf16.vlgmr.msra.gmra.mrb[0].mxu1 %v925_v6 }
 0x12c   : > { %v719_v7 = vpop.f32.mrb[0].mxu0 }
 0x12d   : > { %v760_v9 = vpop.f32.mrb[0].mxu1  ;;  %v721_v11 = vpop.f32.mrb[1].mxu0  ;;  %774 = sbr.rel (%p991_p7) target bundleno = 320 (0x140), region = 40 }
 0x12e   : > { %v761_v10 = vadd.f32 %v760_v9, %v719_v7  ;;  %v762_v13 = vpop.f32.mrb[1].mxu1  ;;  %v723_v15 = vpop.f32.mrb[2].mxu0 }
 0x12f   : > { %v763_v14 = vadd.f32 %v762_v13, %v721_v11  ;;  %v764_v16 = vpop.f32.mrb[2].mxu1  ;;  %v724_v18 = vpop.f32.mrb[3].mxu0 }
 0x130   : > { %v767_v17 = vadd.f32 %v761_v10, %v283_v8  ;;  %v765_v19 = vpop.f32.mrb[3].mxu1 }
 0x131   : > { %v768_v20 = vadd.f32 %v763_v14, %v284_v12 }
 0x132   : > { %769 = vst [vmem:[#allocation2] sm:$0xff] %v767_v17 }
 0x133   : > { %770 = vst [vmem:[#allocation2 + $0x8] sm:$0xff] %v768_v20 }
 0x139   : > { %v775_v26 = vld [vmem:[#allocation2] sm:$0xff] }
 0x13a   : > { %v776_v27 = vld [vmem:[#allocation2 + $0x8] sm:$0xff]  ;;  %v789_v30 = vadd.f32 %v782_v28, %v775_v26 }
 0x13b   : > { %v790_v31 = vadd.f32 %v786_v29, %v776_v27 }
 0x13c   : > { %v791_v32 = vmax.f32 %v789_v30, 0.0 }
 0x13d   : > { %v792_v33 = vmax.f32 %v790_v31, 0.0 }
 0x13e   : > { %793 = vst [vmem:[%s1288_s3] sm:$0xff] %v791_v32 }
 0x13f   : > { %794 = vst [vmem:[%s1288_s3 + $0x8] sm:$0xff] %v792_v33 }
 0x140 PF: > { %s13_s14 = sadd.s32 1, %s1144_s14   ;;  %s1289_s12 = smov %s1140_s13 }
 0x141   : > { %p10_p8 = scmp.ge.s32.totalorder %s13_s14, 7   ;;  %s1290_s13 = smov %s1292_s15 }
 0x143   :  { %12 = sbr.rel (!%p10_p8) target bundleno = 2 (0x2), region = 76 }

// kernel: resnet_forward.40
= control target key start
LH: loop header
LB: loop body
LE: loop exit
PB: predicated region body
PF: predicated region fallthrough
CT: control target
= control target key end

     0   :  { %s1514_s12 = smov 0   ;;  %s1516_s13 = smov 0   ;;  %s1826_s0 = inlined_call_operand.vmem [shape: bf16[8,2560], index: 0, kind: input, shape index: {}]   ;;  %s1827_s1 = inlined_call_operand.vmem [shape: bf16[2560,512], index: 1, kind: input, shape index: {}]   ;;  %s1828_s2 = inlined_call_operand.vmem [shape: f32[1,512], index: 2, kind: input, shape index: {}]   ;;  %s1829_s3 = inlined_call_operand.vmem [shape: f32[8,512], index: 3, kind: output, shape index: {}]  }
   0x1   :  { %s1518_s14 = smov 0   ;;  %s1520_s15 = smov 0  }
   0x2   :  { %s1522_s16 = smov 0   ;;  %s1524_s17 = smov 0  }
   0x3   :  { %s1526_s18 = smov 0  }
   0x4 LB: > { %s25_s19 = sadd.s32 1, %s1483_s16  ;;  %s28_s20 = sadd.s32 1, %s1487_s17  ;;  %s1491_s18 = sphi %s1526_s18, %s13_s18   ;;  %s1487_s17 = sphi %s1524_s17, %s1835_s17   ;;  %s1483_s16 = sphi %s1522_s16, %s1834_s16   ;;  %s1479_s15 = sphi %s1520_s15, %s1833_s15   ;;  %s1475_s14 = sphi %s1518_s14, %s1832_s14   ;;  %s1471_s13 = sphi %s1516_s13, %s1831_s13   ;;  %s1467_s12 = sphi %s1514_s12, %s1830_s12  }
   0x5   : > { %p26_p0 = scmp.ge.s32.totalorder %s25_s19, 5  ;;  %p76_p1 = scmp.ne.s32.totalorder %s1471_s13, %s1467_s12 }
   0x6   : > { %p77_p2 = scmp.eq.s32.totalorder %s1491_s18, 0  ;;  %s69_s24 = sadd.s32 1, %s1471_s13 }
   0x7   : > { %s1837_s19 = smov (%p26_p0, %s25_s19), 0  ;;  %s1839_s20 = smov (!%p26_p0, %s28_s20), %s1487_s17 }
   0x8   : > { %p78_p3 = por %p77_p2, %p76_p1  ;;  %p30_p4 = scmp.ge.s32.totalorder %s1839_s20, 2 }
   0x9   : > { %s64_s21 = ssub.s32 %s1483_s16, %s1837_s19  ;;  %p1194_p6 = scmp.ge.s32.totalorder %s1491_s18, 10 }
   0xa   : > { %s1841_s20 = smov (%p30_p4, %s1839_s20), 0 }
   0xb   : > { %s65_s22 = ssub.s32 %s1487_s17, %s1841_s20  ;;  %156 = sbr.rel (%p1194_p6) target bundleno = 57 (0x39), region = 16 }
   0xc   : > { %s66_s23 = sor.u32 %s65_s22, %s64_s21 }
   0xd   : > { %p67_p5 = scmp.eq.s32.totalorder %s66_s23, 0 }
   0xf   : > { %s1565_s25 = scalar_select %p67_p5, %s1471_s13, %s69_s24  }
  0x12   : > { %172 = sbr.rel (!%p78_p3) target bundleno = 57 (0x39), region = 24  ;;  %s174_s26 = sand.u32 (%p78_p3), 1, %s1471_s13  }
  0x13   : > { %s1197_s27 = sshll.u32 (%p78_p3), %s1487_s17, 1  ;;  %s1195_s28 = sshll.u32 (%p78_p3), %s174_s26, 9 }
  0x14   : > { %s1279_s29 = sshll.u32 (%p78_p3), %s1483_s16, 8  ;;  %s1579_s8 = scalar_lea.vmem (%p78_p3), [#allocation3], %s1195_s28 }
  0x15   : > { %s180_s30 = sadd.s32 (%p78_p3), %s1279_s29, %s1197_s27 }
  0x16   : > { %s1199_s4 = sshll.u32 (%p78_p3), %s180_s30, 2 }
  0x17   : > { %s1574_s7 = scalar_lea.vmem (%p78_p3), %s1827_s1, %s1199_s4 }
  0x18   : > { %v336_v0 = vld [vmem:[%s1574_s7] sm:$0xff] (%p78_p3)  ;;  %v338_v1 = vld [vmem:[%s1574_s7 + $0x10] sm:$0xff] (%p78_p3) }
  0x19   : > { %v340_v2 = vld [vmem:[%s1574_s7 + $0x20] sm:$0xff]  ;;  %337 = vst [vmem:[%s1579_s8] sm:$0xff] %v336_v0  ;;  %339 = vst [vmem:[%s1579_s8 + $0x8] sm:$0xff] %v338_v1  ;;  %v342_v3 = vld [vmem:[%s1574_s7 + $0x30] sm:$0xff] }
  0x1a   : > { %341 = vst [vmem:[%s1579_s8 + $0x10] sm:$0xff] %v340_v2  ;;  %v344_v4 = vld [vmem:[%s1574_s7 + $0x40] sm:$0xff]  ;;  %v346_v5 = vld [vmem:[%s1574_s7 + $0x50] sm:$0xff]  ;;  %343 = vst [vmem:[%s1579_s8 + $0x18] sm:$0xff] %v342_v3 }
  0x1b   : > { %345 = vst [vmem:[%s1579_s8 + $0x20] sm:$0xff] %v344_v4  ;;  %347 = vst [vmem:[%s1579_s8 + $0x28] sm:$0xff] %v346_v5  ;;  %v348_v6 = vld [vmem:[%s1574_s7 + $0x60] sm:$0xff]  ;;  %v350_v7 = vld [vmem:[%s1574_s7 + $0x70] sm:$0xff] }
  0x1c   : > { %v352_v8 = vld [vmem:[%s1574_s7 + $0x80] sm:$0xff]  ;;  %349 = vst [vmem:[%s1579_s8 + $0x30] sm:$0xff] %v348_v6  ;;  %351 = vst [vmem:[%s1579_s8 + $0x38] sm:$0xff] %v350_v7  ;;  %v354_v9 = vld [vmem:[%s1574_s7 + $0x90] sm:$0xff] }
  0x1d   : > { %353 = vst [vmem:[%s1579_s8 + $0x40] sm:$0xff] %v352_v8  ;;  %v356_v10 = vld [vmem:[%s1574_s7 + $0xa0] sm:$0xff]  ;;  %v358_v11 = vld [vmem:[%s1574_s7 + $0xb0] sm:$0xff]  ;;  %355 = vst [vmem:[%s1579_s8 + $0x48] sm:$0xff] %v354_v9 }
  0x1e   : > { %357 = vst [vmem:[%s1579_s8 + $0x50] sm:$0xff] %v356_v10  ;;  %359 = vst [vmem:[%s1579_s8 + $0x58] sm:$0xff] %v358_v11  ;;  %v360_v12 = vld [vmem:[%s1574_s7 + $0xc0] sm:$0xff]  ;;  %v362_v13 = vld [vmem:[%s1574_s7 + $0xd0] sm:$0xff] }
  0x1f   : > { %v364_v14 = vld [vmem:[%s1574_s7 + $0xe0] sm:$0xff]  ;;  %361 = vst [vmem:[%s1579_s8 + $0x60] sm:$0xff] %v360_v12  ;;  %363 = vst [vmem:[%s1579_s8 + $0x68] sm:$0xff] %v362_v13  ;;  %v366_v15 = vld [vmem:[%s1574_s7 + $0xf0] sm:$0xff] }
  0x20   : > { %365 = vst [vmem:[%s1579_s8 + $0x70] sm:$0xff] %v364_v14  ;;  %v368_v16 = vld [vmem:[%s1574_s7 + $0x100] sm:$0xff]  ;;  %v370_v17 = vld [vmem:[%s1574_s7 + $0x110] sm:$0xff]  ;;  %367 = vst [vmem:[%s1579_s8 + $0x78] sm:$0xff] %v366_v15 }
  0x21   : > { %369 = vst [vmem:[%s1579_s8 + $0x80] sm:$0xff] %v368_v16  ;;  %371 = vst [vmem:[%s1579_s8 + $0x88] sm:$0xff] %v370_v17  ;;  %v372_v18 = vld [vmem:[%s1574_s7 + $0x120] sm:$0xff]  ;;  %v374_v19 = vld [vmem:[%s1574_s7 + $0x130] sm:$0xff] }
  0x22   : > { %v376_v20 = vld [vmem:[%s1574_s7 + $0x140] sm:$0xff]  ;;  %373 = vst [vmem:[%s1579_s8 + $0x90] sm:$0xff] %v372_v18  ;;  %375 = vst [vmem:[%s1579_s8 + $0x98] sm:$0xff] %v374_v19  ;;  %v378_v21 = vld [vmem:[%s1574_s7 + $0x150] sm:$0xff] }
  0x23   : > { %377 = vst [vmem:[%s1579_s8 + $0xa0] sm:$0xff] %v376_v20  ;;  %v380_v22 = vld [vmem:[%s1574_s7 + $0x160] sm:$0xff]  ;;  %v382_v23 = vld [vmem:[%s1574_s7 + $0x170] sm:$0xff]  ;;  %379 = vst [vmem:[%s1579_s8 + $0xa8] sm:$0xff] %v378_v21 }
  0x24   : > { %381 = vst [vmem:[%s1579_s8 + $0xb0] sm:$0xff] %v380_v22  ;;  %383 = vst [vmem:[%s1579_s8 + $0xb8] sm:$0xff] %v382_v23  ;;  %v384_v24 = vld [vmem:[%s1574_s7 + $0x180] sm:$0xff]  ;;  %v386_v25 = vld [vmem:[%s1574_s7 + $0x190] sm:$0xff] }
  0x25   : > { %v388_v26 = vld [vmem:[%s1574_s7 + $0x1a0] sm:$0xff]  ;;  %385 = vst [vmem:[%s1579_s8 + $0xc0] sm:$0xff] %v384_v24  ;;  %387 = vst [vmem:[%s1579_s8 + $0xc8] sm:$0xff] %v386_v25  ;;  %v390_v27 = vld [vmem:[%s1574_s7 + $0x1b0] sm:$0xff] }
  0x26   : > { %389 = vst [vmem:[%s1579_s8 + $0xd0] sm:$0xff] %v388_v26  ;;  %v392_v28 = vld [vmem:[%s1574_s7 + $0x1c0] sm:$0xff]  ;;  %v394_v29 = vld [vmem:[%s1574_s7 + $0x1d0] sm:$0xff]  ;;  %391 = vst [vmem:[%s1579_s8 + $0xd8] sm:$0xff] %v390_v27 }
  0x27   : > { %393 = vst [vmem:[%s1579_s8 + $0xe0] sm:$0xff] %v392_v28  ;;  %395 = vst [vmem:[%s1579_s8 + $0xe8] sm:$0xff] %v394_v29  ;;  %v396_v30 = vld [vmem:[%s1574_s7 + $0x1e0] sm:$0xff]  ;;  %v398_v31 = vld [vmem:[%s1574_s7 + $0x1f0] sm:$0xff] }
  0x28   : > { %v400_v32 = vld [vmem:[%s1574_s7 + $0x200] sm:$0xff]  ;;  %397 = vst [vmem:[%s1579_s8 + $0xf0] sm:$0xff] %v396_v30  ;;  %399 = vst [vmem:[%s1579_s8 + $0xf8] sm:$0xff] %v398_v31  ;;  %v402_v33 = vld [vmem:[%s1574_s7 + $0x210] sm:$0xff] }
  0x29   : > { %401 = vst [vmem:[%s1579_s8 + $0x100] sm:$0xff] %v400_v32  ;;  %v404_v34 = vld [vmem:[%s1574_s7 + $0x220] sm:$0xff]  ;;  %v406_v35 = vld [vmem:[%s1574_s7 + $0x230] sm:$0xff]  ;;  %403 = vst [vmem:[%s1579_s8 + $0x108] sm:$0xff] %v402_v33 }
  0x2a   : > { %405 = vst [vmem:[%s1579_s8 + $0x110] sm:$0xff] %v404_v34  ;;  %407 = vst [vmem:[%s1579_s8 + $0x118] sm:$0xff] %v406_v35  ;;  %v408_v36 = vld [vmem:[%s1574_s7 + $0x240] sm:$0xff]  ;;  %v410_v37 = vld [vmem:[%s1574_s7 + $0x250] sm:$0xff] }
  0x2b   : > { %v412_v38 = vld [vmem:[%s1574_s7 + $0x260] sm:$0xff]  ;;  %409 = vst [vmem:[%s1579_s8 + $0x120] sm:$0xff] %v408_v36  ;;  %411 = vst [vmem:[%s1579_s8 + $0x128] sm:$0xff] %v410_v37  ;;  %v414_v39 = vld [vmem:[%s1574_s7 + $0x270] sm:$0xff] }
  0x2c   : > { %413 = vst [vmem:[%s1579_s8 + $0x130] sm:$0xff] %v412_v38  ;;  %v416_v40 = vld [vmem:[%s1574_s7 + $0x280] sm:$0xff]  ;;  %v418_v41 = vld [vmem:[%s1574_s7 + $0x290] sm:$0xff]  ;;  %415 = vst [vmem:[%s1579_s8 + $0x138] sm:$0xff] %v414_v39 }
  0x2d   : > { %417 = vst [vmem:[%s1579_s8 + $0x140] sm:$0xff] %v416_v40  ;;  %419 = vst [vmem:[%s1579_s8 + $0x148] sm:$0xff] %v418_v41  ;;  %v420_v42 = vld [vmem:[%s1574_s7 + $0x2a0] sm:$0xff]  ;;  %v422_v43 = vld [vmem:[%s1574_s7 + $0x2b0] sm:$0xff] }
  0x2e   : > { %v424_v44 = vld [vmem:[%s1574_s7 + $0x2c0] sm:$0xff]  ;;  %421 = vst [vmem:[%s1579_s8 + $0x150] sm:$0xff] %v420_v42  ;;  %423 = vst [vmem:[%s1579_s8 + $0x158] sm:$0xff] %v422_v43  ;;  %v426_v45 = vld [vmem:[%s1574_s7 + $0x2d0] sm:$0xff] }
  0x2f   : > { %425 = vst [vmem:[%s1579_s8 + $0x160] sm:$0xff] %v424_v44  ;;  %v428_v46 = vld [vmem:[%s1574_s7 + $0x2e0] sm:$0xff]  ;;  %v430_v47 = vld [vmem:[%s1574_s7 + $0x2f0] sm:$0xff]  ;;  %427 = vst [vmem:[%s1579_s8 + $0x168] sm:$0xff] %v426_v45 }
  0x30   : > { %429 = vst [vmem:[%s1579_s8 + $0x170] sm:$0xff] %v428_v46  ;;  %431 = vst [vmem:[%s1579_s8 + $0x178] sm:$0xff] %v430_v47  ;;  %v432_v48 = vld [vmem:[%s1574_s7 + $0x300] sm:$0xff]  ;;  %v434_v49 = vld [vmem:[%s1574_s7 + $0x310] sm:$0xff] }
  0x31   : > { %v436_v50 = vld [vmem:[%s1574_s7 + $0x320] sm:$0xff]  ;;  %433 = vst [vmem:[%s1579_s8 + $0x180] sm:$0xff] %v432_v48  ;;  %435 = vst [vmem:[%s1579_s8 + $0x188] sm:$0xff] %v434_v49  ;;  %v438_v51 = vld [vmem:[%s1574_s7 + $0x330] sm:$0xff] }
  0x32   : > { %437 = vst [vmem:[%s1579_s8 + $0x190] sm:$0xff] %v436_v50  ;;  %v440_v52 = vld [vmem:[%s1574_s7 + $0x340] sm:$0xff]  ;;  %v442_v53 = vld [vmem:[%s1574_s7 + $0x350] sm:$0xff]  ;;  %439 = vst [vmem:[%s1579_s8 + $0x198] sm:$0xff] %v438_v51 }
  0x33   : > { %441 = vst [vmem:[%s1579_s8 + $0x1a0] sm:$0xff] %v440_v52  ;;  %443 = vst [vmem:[%s1579_s8 + $0x1a8] sm:$0xff] %v442_v53  ;;  %v444_v54 = vld [vmem:[%s1574_s7 + $0x360] sm:$0xff]  ;;  %v446_v55 = vld [vmem:[%s1574_s7 + $0x370] sm:$0xff] }
  0x34   : > { %v448_v56 = vld [vmem:[%s1574_s7 + $0x380] sm:$0xff]  ;;  %445 = vst [vmem:[%s1579_s8 + $0x1b0] sm:$0xff] %v444_v54  ;;  %447 = vst [vmem:[%s1579_s8 + $0x1b8] sm:$0xff] %v446_v55  ;;  %v450_v57 = vld [vmem:[%s1574_s7 + $0x390] sm:$0xff] }
  0x35   : > { %449 = vst [vmem:[%s1579_s8 + $0x1c0] sm:$0xff] %v448_v56  ;;  %v452_v58 = vld [vmem:[%s1574_s7 + $0x3a0] sm:$0xff]  ;;  %v454_v59 = vld [vmem:[%s1574_s7 + $0x3b0] sm:$0xff]  ;;  %451 = vst [vmem:[%s1579_s8 + $0x1c8] sm:$0xff] %v450_v57 }
  0x36   : > { %453 = vst [vmem:[%s1579_s8 + $0x1d0] sm:$0xff] %v452_v58  ;;  %455 = vst [vmem:[%s1579_s8 + $0x1d8] sm:$0xff] %v454_v59  ;;  %v456_v60 = vld [vmem:[%s1574_s7 + $0x3c0] sm:$0xff]  ;;  %v458_v61 = vld [vmem:[%s1574_s7 + $0x3d0] sm:$0xff] }
  0x37   : > { %v460_v62 = vld [vmem:[%s1574_s7 + $0x3e0] sm:$0xff]  ;;  %457 = vst [vmem:[%s1579_s8 + $0x1e0] sm:$0xff] %v456_v60  ;;  %459 = vst [vmem:[%s1579_s8 + $0x1e8] sm:$0xff] %v458_v61  ;;  %v462_v63 = vld [vmem:[%s1574_s7 + $0x3f0] sm:$0xff] }
  0x38   : > { %461 = vst [vmem:[%s1579_s8 + $0x1f0] sm:$0xff] %v460_v62  ;;  %463 = vst [vmem:[%s1579_s8 + $0x1f8] sm:$0xff] %v462_v63 }
  0x39 PF: > { %p1200_p7 = scmp.ge.s32.totalorder %s1491_s18, 1  ;;  %p476_p8 = scmp.lt.s32.totalorder %s1491_s18, 11 }
  0x3b   : > { %p477_p9 = pnand %p1200_p7, %p476_p8 }
  0x3c   : > { %s483_s9 = sand.u32 (!%p477_p9), 1, %s1467_s12   ;;  %s1202_s10 = sshll.u32 (!%p477_p9), %s1475_s14, 2 }
  0x3d   : > { %480 = sbr.rel (%p477_p9) target bundleno = 374 (0x176), region = 66  ;;  %s1201_s11 = sshll.u32 (!%p477_p9), %s483_s9, 9 }
  0x3e   : > { %p526_p10 = scmp.lt.s32.totalorder (!%p477_p9), %s1202_s10, 19  ;;  %s1204_s21 = sshll.u32 (!%p477_p9), %s1479_s15, 1 }
  0x3f   : > { %p536_p11 = scmp.lt.s32.totalorder (!%p477_p9), %s1204_s21, 3  ;;  %s1728_s5 = scalar_lea.vmem (!%p477_p9), [#allocation3], %s1201_s11 }
  0x40   : > { %p1207_p12 = scmp.ne.s32.totalorder (!%p477_p9), %s1475_s14, 0 }
  0x44   : > { %s1843_s10 = smov (!%p526_p10, %s1202_s10), 19  ;;  %s1845_s21 = smov (!%p536_p11, %s1204_s21), 3 }
  0x45   : > { %s1203_s22 = sshll.u32 %s1843_s10, 2  ;;  %s538_s12 = scalar_lea.vmem %s1828_s2, %s1845_s21  ;;  %v1493_v0 = vmov (!%p1207_p12), 0.0  }
  0x46   : > { %s1714_s26 = scalar_lea.vmem %s1826_s0, %s1203_s22  ;;  %s1206_s29 = sshll.u32 %s1845_s21, 3  ;;  %554 = vst [vmem:[#allocation2] sm:$0xff] (!%p1207_p12), %v1493_v0  ;;  %555 = vst [vmem:[#allocation2 + $0x8] sm:$0xff] (!%p1207_p12), %v1493_v0 }
  0x47   : > { %s1726_s15 = scalar_lea.vmem %s1829_s3, %s1206_s29  ;;  %553 = sbr.rel (%p1207_p12) target bundleno = 78 (0x4e), region = 74 }
  0x4e PF: > { %v1337_v1 = vld [vmem:[%s1728_s5 + $0x4] ss:$8 sps:$4 sm:$0xff]   ;;  %v1341_v3 = vld [vmem:[%s1728_s5] ss:$8 sps:$4 sm:$0xff]   ;;  %v1343_v5 = vld [vmem:[%s1728_s5 + $0x14] ss:$8 sps:$4 sm:$0xff]  }
  0x4f   : > { %v1339_v2 = vld [vmem:[%s1728_s5 + $0x104] ss:$8 sps:$4 sm:$0xff]   ;;  %958 = vmatprep.subr.bf16.mxu0 %v1337_v1  ;;  %v1342_v4 = vld [vmem:[%s1728_s5 + $0x100] ss:$8 sps:$4 sm:$0xff]   ;;  %v1345_v6 = vld [vmem:[%s1728_s5 + $0x114] ss:$8 sps:$4 sm:$0xff]  }
  0x50   : > { %999 = vmatprep.subr.bf16.mxu1 %v1339_v2  ;;  %959 = vmatpush1.bf16.msra.mxu0 %v1341_v3  ;;  %v1347_v7 = vld [vmem:[%s1728_s5 + $0x10] ss:$8 sps:$4 sm:$0xff]   ;;  %v1349_v9 = vld [vmem:[%s1728_s5 + $0x24] ss:$8 sps:$4 sm:$0xff]   ;;  %v1353_v11 = vld [vmem:[%s1728_s5 + $0x20] ss:$8 sps:$4 sm:$0xff]  }
  0x51   : > { %1000 = vmatpush1.bf16.msra.mxu1 %v1342_v4  ;;  %960 = vmatprep.subr.bf16.mxu0 %v1343_v5  ;;  %v1348_v8 = vld [vmem:[%s1728_s5 + $0x110] ss:$8 sps:$4 sm:$0xff]   ;;  %v1351_v10 = vld [vmem:[%s1728_s5 + $0x124] ss:$8 sps:$4 sm:$0xff]   ;;  %v1354_v12 = vld [vmem:[%s1728_s5 + $0x120] ss:$8 sps:$4 sm:$0xff]  }
  0x52   : > { %1001 = vmatprep.subr.bf16.mxu1 %v1345_v6  ;;  %v1355_v13 = vld [vmem:[%s1728_s5 + $0x34] ss:$8 sps:$4 sm:$0xff]   ;;  %v1359_v15 = vld [vmem:[%s1728_s5 + $0x30] ss:$8 sps:$4 sm:$0xff]   ;;  %v1361_v17 = vld [vmem:[%s1728_s5 + $0x44] ss:$8 sps:$4 sm:$0xff]  }
  0x53   : > { %v1357_v14 = vld [vmem:[%s1728_s5 + $0x134] ss:$8 sps:$4 sm:$0xff]   ;;  %v1360_v16 = vld [vmem:[%s1728_s5 + $0x130] ss:$8 sps:$4 sm:$0xff]   ;;  %v1363_v18 = vld [vmem:[%s1728_s5 + $0x144] ss:$8 sps:$4 sm:$0xff]  }
  0x54   : > { %961 = vmatpush1.bf16.msra.mxu0 %v1347_v7  ;;  %v1365_v19 = vld [vmem:[%s1728_s5 + $0x40] ss:$8 sps:$4 sm:$0xff]   ;;  %v1367_v21 = vld [vmem:[%s1728_s5 + $0x54] ss:$8 sps:$4 sm:$0xff]   ;;  %v1371_v23 = vld [vmem:[%s1728_s5 + $0x50] ss:$8 sps:$4 sm:$0xff]  }
  0x55   : > { %1002 = vmatpush1.bf16.msra.mxu1 %v1348_v8  ;;  %962 = vmatprep.subr.bf16.mxu0 %v1349_v9  ;;  %v1366_v20 = vld [vmem:[%s1728_s5 + $0x140] ss:$8 sps:$4 sm:$0xff]   ;;  %v1369_v22 = vld [vmem:[%s1728_s5 + $0x154] ss:$8 sps:$4 sm:$0xff]   ;;  %v1372_v24 = vld [vmem:[%s1728_s5 + $0x150] ss:$8 sps:$4 sm:$0xff]  }
  0x56   : > { %1003 = vmatprep.subr.bf16.mxu1 %v1351_v10  ;;  %v1373_v25 = vld [vmem:[%s1728_s5 + $0x64] ss:$8 sps:$4 sm:$0xff]   ;;  %v1377_v27 = vld [vmem:[%s1728_s5 + $0x60] ss:$8 sps:$4 sm:$0xff]   ;;  %v1379_v29 = vld [vmem:[%s1728_s5 + $0x74] ss:$8 sps:$4 sm:$0xff]  }
  0x57   : > { %v1375_v26 = vld [vmem:[%s1728_s5 + $0x164] ss:$8 sps:$4 sm:$0xff]   ;;  %v1378_v28 = vld [vmem:[%s1728_s5 + $0x160] ss:$8 sps:$4 sm:$0xff]   ;;  %v1381_v30 = vld [vmem:[%s1728_s5 + $0x174] ss:$8 sps:$4 sm:$0xff]  }
  0x58   : > { %963 = vmatpush1.bf16.msra.mxu0 %v1353_v11  ;;  %v1383_v31 = vld [vmem:[%s1728_s5 + $0x70] ss:$8 sps:$4 sm:$0xff]   ;;  %v1385_v33 = vld [vmem:[%s1728_s5 + $0x84] ss:$8 sps:$4 sm:$0xff]   ;;  %v1389_v35 = vld [vmem:[%s1728_s5 + $0x80] ss:$8 sps:$4 sm:$0xff]  }
  0x59   : > { %1004 = vmatpush1.bf16.msra.mxu1 %v1354_v12  ;;  %964 = vmatprep.subr.bf16.mxu0 %v1355_v13  ;;  %v1384_v32 = vld [vmem:[%s1728_s5 + $0x170] ss:$8 sps:$4 sm:$0xff]   ;;  %v1387_v34 = vld [vmem:[%s1728_s5 + $0x184] ss:$8 sps:$4 sm:$0xff]   ;;  %v1390_v36 = vld [vmem:[%s1728_s5 + $0x180] ss:$8 sps:$4 sm:$0xff]  }
  0x5a   : > { %1005 = vmatprep.subr.bf16.mxu1 %v1357_v14  ;;  %v1391_v37 = vld [vmem:[%s1728_s5 + $0x94] ss:$8 sps:$4 sm:$0xff]   ;;  %v1395_v39 = vld [vmem:[%s1728_s5 + $0x90] ss:$8 sps:$4 sm:$0xff]   ;;  %v1397_v41 = vld [vmem:[%s1728_s5 + $0xa4] ss:$8 sps:$4 sm:$0xff]  }
  0x5b   : > { %v1393_v38 = vld [vmem:[%s1728_s5 + $0x194] ss:$8 sps:$4 sm:$0xff]   ;;  %v1396_v40 = vld [vmem:[%s1728_s5 + $0x190] ss:$8 sps:$4 sm:$0xff]   ;;  %v1399_v42 = vld [vmem:[%s1728_s5 + $0x1a4] ss:$8 sps:$4 sm:$0xff]  }
  0x5c   : > { %965 = vmatpush1.bf16.msra.mxu0 %v1359_v15  ;;  %v1401_v43 = vld [vmem:[%s1728_s5 + $0xa0] ss:$8 sps:$4 sm:$0xff]   ;;  %v1403_v45 = vld [vmem:[%s1728_s5 + $0xb4] ss:$8 sps:$4 sm:$0xff]   ;;  %v1407_v50 = vld [vmem:[%s1728_s5 + $0xb0] ss:$8 sps:$4 sm:$0xff]  }
  0x5d   : > { %1006 = vmatpush1.bf16.msra.mxu1 %v1360_v16  ;;  %966 = vmatprep.subr.bf16.mxu0 %v1361_v17  ;;  %v1402_v44 = vld [vmem:[%s1728_s5 + $0x1a0] ss:$8 sps:$4 sm:$0xff]   ;;  %v1405_v46 = vld [vmem:[%s1728_s5 + $0x1b4] ss:$8 sps:$4 sm:$0xff]   ;;  %v1408_v51 = vld [vmem:[%s1728_s5 + $0x1b0] ss:$8 sps:$4 sm:$0xff]  }
  0x5e   : > { %1007 = vmatprep.subr.bf16.mxu1 %v1363_v18  ;;  %v558_v47 = vld [vmem:[%s1714_s26] sm:$0xff]  ;;  %v559_v49 = vld [vmem:[%s1714_s26 + $0x8] sm:$0xff]  ;;  %v1409_v53 = vld [vmem:[%s1728_s5 + $0xc4] ss:$8 sps:$4 sm:$0xff]   ;;  %p1276_p13 = scmp.ne.s32.totalorder %s1475_s14, 4 }
  0x5f   : > { %v1209_v48 = vcombine.high %v558_v47, %v558_v47  ;;  %v1211_v52 = vcombine.high %v559_v49, %v559_v49  ;;  %v1411_v54 = vld [vmem:[%s1728_s5 + $0x1c4] ss:$8 sps:$4 sm:$0xff]   ;;  %v1413_v55 = vld [vmem:[%s1728_s5 + $0xc0] ss:$8 sps:$4 sm:$0xff]   ;;  %v1415_v57 = vld [vmem:[%s1728_s5 + $0xd4] ss:$8 sps:$4 sm:$0xff]   ;;  %v1208_v5 = vcombine.low %v558_v47, %v558_v47  ;;  %v1210_v6 = vcombine.low %v559_v49, %v559_v49 }
  0x60   : > { %967 = vmatpush1.bf16.msra.mxu0 %v1365_v19  ;;  %v1414_v56 = vld [vmem:[%s1728_s5 + $0x1c0] ss:$8 sps:$4 sm:$0xff]   ;;  %v1417_v58 = vld [vmem:[%s1728_s5 + $0x1d4] ss:$8 sps:$4 sm:$0xff]   ;;  %v1419_v59 = vld [vmem:[%s1728_s5 + $0xd0] ss:$8 sps:$4 sm:$0xff]  }
  0x61   : > { %1008 = vmatpush1.bf16.msra.mxu1 %v1366_v20  ;;  %968 = vmatprep.subr.bf16.mxu0 %v1367_v21  ;;  %v1420_v60 = vld [vmem:[%s1728_s5 + $0x1d0] ss:$8 sps:$4 sm:$0xff]   ;;  %v1421_v61 = vld [vmem:[%s1728_s5 + $0xe4] ss:$8 sps:$4 sm:$0xff]   ;;  %v1425_v63 = vld [vmem:[%s1728_s5 + $0xe0] ss:$8 sps:$4 sm:$0xff]   ;;  %v1052_v21 = vlaneseq (!%p1276_p13) }
  0x62   : > { %1009 = vmatprep.subr.bf16.mxu1 %v1369_v22  ;;  %990 = vmatprep.mubr.bf16.mxu0 %v1209_v48  ;;  %v1423_v62 = vld [vmem:[%s1728_s5 + $0x1e4] ss:$8 sps:$4 sm:$0xff]   ;;  %v1426_v0 = vld [vmem:[%s1728_s5 + $0x1e0] ss:$8 sps:$4 sm:$0xff]   ;;  %v1427_v1 = vld [vmem:[%s1728_s5 + $0xf4] ss:$8 sps:$4 sm:$0xff]  }
  0x63   : > { %1031 = vmatprep.mubr.bf16.mxu1 %v1211_v52  ;;  %v1429_v2 = vld [vmem:[%s1728_s5 + $0x1f4] ss:$8 sps:$4 sm:$0xff]   ;;  %v1431_v3 = vld [vmem:[%s1728_s5 + $0xf0] ss:$8 sps:$4 sm:$0xff]   ;;  %v1053_v22 = vshrl.u32 (!%p1276_p13), %v1052_v21, 7 }
  0x64   : > { %969 = vmatpush1.bf16.msra.mxu0 %v1371_v23  ;;  %v1432_v4 = vld [vmem:[%s1728_s5 + $0x1f0] ss:$8 sps:$4 sm:$0xff]  }
  0x65   : > { %1010 = vmatpush1.bf16.msra.mxu1 %v1372_v24  ;;  %970 = vmatprep.subr.bf16.mxu0 %v1373_v25  ;;  %v556_v8 = vld [vmem:[#allocation2] sm:$0xff]  ;;  %v557_v12 = vld [vmem:[#allocation2 + $0x8] sm:$0xff]  ;;  %v1054_v24 = vsub.s32 (!%p1276_p13), 0, %v1053_v22  ;;  %v1058_v25 = vsub.s32 (!%p1276_p13), 1, %v1053_v22 }
  0x66   : > { %1011 = vmatprep.subr.bf16.mxu1 %v1375_v26  ;;  %v1050_v23 = vld [vmem:[%s538_s12] sm:$0x3] (!%p1276_p13) }
  0x68   : > { %971 = vmatpush1.bf16.msra.mxu0 %v1377_v27 }
  0x69   : > { %1012 = vmatpush1.bf16.msra.mxu1 %v1378_v28  ;;  %972 = vmatprep.subr.bf16.mxu0 %v1379_v29  ;;  %v1055_v28 = vrot.slane (!%p1276_p13), %v1050_v23, %v1054_v24  ;;  %v1059_v29 = vrot.slane (!%p1276_p13), %v1050_v23, %v1058_v25 }
  0x6a   : > { %1013 = vmatprep.subr.bf16.mxu1 %v1381_v30 }
  0x6c   : > { %973 = vmatpush1.bf16.msra.mxu0 %v1383_v31 }
  0x6d   : > { %1014 = vmatpush1.bf16.msra.mxu1 %v1384_v32  ;;  %974 = vmatprep.subr.bf16.mxu0 %v1385_v33 }
  0x6e   : > { %1015 = vmatprep.subr.bf16.mxu1 %v1387_v34 }
  0x70   : > { %975 = vmatpush1.bf16.msra.mxu0 %v1389_v35 }
  0x71   : > { %1016 = vmatpush1.bf16.msra.mxu1 %v1390_v36  ;;  %976 = vmatprep.subr.bf16.mxu0 %v1391_v37 }
  0x72   : > { %1017 = vmatprep.subr.bf16.mxu1 %v1393_v38 }
  0x74   : > { %977 = vmatpush1.bf16.msra.mxu0 %v1395_v39 }
  0x75   : > { %1018 = vmatpush1.bf16.msra.mxu1 %v1396_v40  ;;  %978 = vmatprep.subr.bf16.mxu0 %v1397_v41 }
  0x76   : > { %1019 = vmatprep.subr.bf16.mxu1 %v1399_v42 }
  0x78   : > { %979 = vmatpush1.bf16.msra.mxu0 %v1401_v43 }
  0x79   : > { %1020 = vmatpush1.bf16.msra.mxu1 %v1402_v44  ;;  %980 = vmatprep.subr.bf16.mxu0 %v1403_v45 }
  0x7a   : > { %1021 = vmatprep.subr.bf16.mxu1 %v1405_v46 }
  0x7c   : > { %981 = vmatpush1.bf16.msra.mxu0 %v1407_v50 }
  0x7d   : > { %1022 = vmatpush1.bf16.msra.mxu1 %v1408_v51  ;;  %982 = vmatprep.subr.bf16.mxu0 %v1409_v53 }
  0x7e   : > { %1023 = vmatprep.subr.bf16.mxu1 %v1411_v54 }
  0x80   : > { %983 = vmatpush1.bf16.msra.mxu0 %v1413_v55 }
  0x81   : > { %1024 = vmatpush1.bf16.msra.mxu1 %v1414_v56  ;;  %984 = vmatprep.subr.bf16.mxu0 %v1415_v57 }
  0x82   : > { %1025 = vmatprep.subr.bf16.mxu1 %v1417_v58 }
  0x84   : > { %985 = vmatpush1.bf16.msra.mxu0 %v1419_v59 }
  0x85   : > { %1026 = vmatpush1.bf16.msra.mxu1 %v1420_v60  ;;  %986 = vmatprep.subr.bf16.mxu0 %v1421_v61 }
  0x86   : > { %1027 = vmatprep.subr.bf16.mxu1 %v1423_v62 }
  0x88   : > { %987 = vmatpush1.bf16.msra.mxu0 %v1425_v63 }
  0x89   : > { %1028 = vmatpush1.bf16.msra.mxu1 %v1426_v0  ;;  %988 = vmatprep.subr.bf16.mxu0 %v1427_v1 }
  0x8a   : > { %1029 = vmatprep.subr.bf16.mxu1 %v1429_v2 }
  0x8c   : > { %989 = vmatpush1.bf16.msra.mxu0 %v1431_v3 }
  0x8d   : > { %1030 = vmatpush1.bf16.msra.mxu1 %v1432_v4 }
  0x8f   : > { %991 = vmatmul.mubr.bf16.vlgmr.msra.gmra.mrb[0].mxu0 %v1208_v5 }
  0x90   : > { %1032 = vmatmul.mubr.bf16.vlgmr.msra.gmra.mrb[0].mxu1 %v1210_v6 }
 0x162   : > { %v992_v7 = vpop.f32.mrb[0].mxu0 }
 0x163   : > { %v1033_v9 = vpop.f32.mrb[0].mxu1  ;;  %v994_v11 = vpop.f32.mrb[1].mxu0  ;;  %1047 = sbr.rel (%p1276_p13) target bundleno = 374 (0x176), region = 78 }
 0x164   : > { %v1034_v10 = vadd.f32 %v1033_v9, %v992_v7  ;;  %v1035_v13 = vpop.f32.mrb[1].mxu1  ;;  %v996_v15 = vpop.f32.mrb[2].mxu0 }
 0x165   : > { %v1036_v14 = vadd.f32 %v1035_v13, %v994_v11  ;;  %v1037_v16 = vpop.f32.mrb[2].mxu1  ;;  %v997_v18 = vpop.f32.mrb[3].mxu0 }
 0x166   : > { %v1040_v17 = vadd.f32 %v1034_v10, %v556_v8  ;;  %v1038_v19 = vpop.f32.mrb[3].mxu1 }
 0x167   : > { %v1041_v20 = vadd.f32 %v1036_v14, %v557_v12 }
 0x168   : > { %1042 = vst [vmem:[#allocation2] sm:$0xff] %v1040_v17 }
 0x169   : > { %1043 = vst [vmem:[#allocation2 + $0x8] sm:$0xff] %v1041_v20 }
 0x16f   : > { %v1048_v26 = vld [vmem:[#allocation2] sm:$0xff] }
 0x170   : > { %v1049_v27 = vld [vmem:[#allocation2 + $0x8] sm:$0xff]  ;;  %v1062_v30 = vadd.f32 %v1055_v28, %v1048_v26 }
 0x171   : > { %v1063_v31 = vadd.f32 %v1059_v29, %v1049_v27 }
 0x172   : > { %v1064_v32 = vmax.f32 %v1062_v30, 0.0 }
 0x173   : > { %v1065_v33 = vmax.f32 %v1063_v31, 0.0 }
 0x174   : > { %1066 = vst [vmem:[%s1726_s15] sm:$0xff] %v1064_v32 }
 0x175   : > { %1067 = vst [vmem:[%s1726_s15 + $0x8] sm:$0xff] %v1065_v33 }
 0x176 PF: > { %s13_s18 = sadd.s32 1, %s1491_s18   ;;  %s1830_s12 = smov %s1471_s13 }
 0x177   : > { %p10_p0 = scmp.ge.s32.totalorder %s13_s18, 12   ;;  %s1831_s13 = smov %s1565_s25 }
 0x178   : > { %s1832_s14 = smov %s1483_s16  ;;  %s1833_s15 = smov %s1487_s17 }
 0x179   : > { %s1834_s16 = smov %s1837_s19  ;;  %s1835_s17 = smov %s1841_s20 }
 0x17a   :  { %12 = sbr.rel (!%p10_p0) target bundleno = 4 (0x4), region = 119 }

// kernel: resnet_forward.41
= control target key start
LH: loop header
LB: loop body
LE: loop exit
PB: predicated region body
PF: predicated region fallthrough
CT: control target
= control target key end

     0   :  { %s1019_s12 = smov 0   ;;  %s1021_s13 = smov 0   ;;  %s1198_s0 = inlined_call_operand.vmem [shape: bf16[8,256], index: 0, kind: input, shape index: {}]   ;;  %s1199_s1 = inlined_call_operand.vmem [shape: bf16[256,512], index: 1, kind: input, shape index: {}]   ;;  %s1200_s2 = inlined_call_operand.vmem [shape: f32[1,512], index: 2, kind: input, shape index: {}]   ;;  %s1201_s3 = inlined_call_operand.vmem [shape: f32[8,512], index: 3, kind: output, shape index: {}]  }
   0x1   :  { %s1023_s14 = smov 0   ;;  %s1025_s15 = smov 0  }
   0x2   :  { %s1027_s16 = smov 0  }
   0x3 LB: > { %s28_s17 = sadd.s32 1, %s993_s15  ;;  %p76_p1 = scmp.ne.s32.totalorder %s985_s13, %s981_s12  ;;  %s997_s16 = sphi %s1027_s16, %s13_s16   ;;  %s993_s15 = sphi %s1025_s15, %s1205_s15   ;;  %s989_s14 = sphi %s1023_s14, %s1204_s14   ;;  %s985_s13 = sphi %s1021_s13, %s1203_s13   ;;  %s981_s12 = sphi %s1019_s12, %s1202_s12  }
   0x4   : > { %p30_p0 = scmp.ge.s32.totalorder %s28_s17, 2  ;;  %p77_p2 = scmp.eq.s32.totalorder %s997_s16, 0 }
   0x5   : > { %s69_s19 = sadd.s32 1, %s985_s13  ;;  %p823_p5 = scmp.ge.s32.totalorder %s997_s16, 2 }
   0x6   : > { %s1207_s17 = smov (%p30_p0, %s28_s17), 0  ;;  %p78_p3 = por %p77_p2, %p76_p1 }
   0x7   : > { %s65_s18 = ssub.s32 %s993_s15, %s1207_s17  ;;  %169 = sbr.rel (%p823_p5) target bundleno = 34 (0x22), region = 20 }
   0x8   : > { %p67_p4 = scmp.eq.s32.totalorder %s65_s18, 0 }
   0xa   : > { %s1054_s20 = scalar_select %p67_p4, %s985_s13, %s69_s19  }
   0xe   : > { %172 = sbr.rel (!%p78_p3) target bundleno = 34 (0x22), region = 24  ;;  %s174_s21 = sand.u32 (%p78_p3), 1, %s985_s13  }
   0xf   : > { %s868_s22 = sshll.u32 (%p78_p3), %s993_s15, 3  ;;  %s824_s23 = sshll.u32 (%p78_p3), %s174_s21, 8 }
  0x10   : > { %s1062_s26 = scalar_lea.vmem (%p78_p3), %s1199_s1, %s868_s22  ;;  %s1067_s27 = scalar_lea.vmem (%p78_p3), [#allocation3], %s824_s23 }
  0x11   : > { %v272_v0 = vld [vmem:[%s1062_s26] sm:$0xff] (%p78_p3)  ;;  %v274_v1 = vld [vmem:[%s1062_s26 + $0x10] sm:$0xff] (%p78_p3) }
  0x12   : > { %v276_v2 = vld [vmem:[%s1062_s26 + $0x20] sm:$0xff] (%p78_p3)  ;;  %273 = vst [vmem:[%s1067_s27] sm:$0xff] (%p78_p3), %v272_v0  ;;  %275 = vst [vmem:[%s1067_s27 + $0x8] sm:$0xff] (%p78_p3), %v274_v1  ;;  %v278_v3 = vld [vmem:[%s1062_s26 + $0x30] sm:$0xff] (%p78_p3) }
  0x13   : > { %277 = vst [vmem:[%s1067_s27 + $0x10] sm:$0xff] (%p78_p3), %v276_v2  ;;  %v280_v4 = vld [vmem:[%s1062_s26 + $0x40] sm:$0xff] (%p78_p3)  ;;  %v282_v5 = vld [vmem:[%s1062_s26 + $0x50] sm:$0xff] (%p78_p3)  ;;  %279 = vst [vmem:[%s1067_s27 + $0x18] sm:$0xff] (%p78_p3), %v278_v3 }
  0x14   : > { %281 = vst [vmem:[%s1067_s27 + $0x20] sm:$0xff] (%p78_p3), %v280_v4  ;;  %283 = vst [vmem:[%s1067_s27 + $0x28] sm:$0xff] (%p78_p3), %v282_v5  ;;  %v284_v6 = vld [vmem:[%s1062_s26 + $0x60] sm:$0xff] (%p78_p3)  ;;  %v286_v7 = vld [vmem:[%s1062_s26 + $0x70] sm:$0xff] (%p78_p3) }
  0x15   : > { %v288_v8 = vld [vmem:[%s1062_s26 + $0x80] sm:$0xff]  ;;  %285 = vst [vmem:[%s1067_s27 + $0x30] sm:$0xff] %v284_v6  ;;  %287 = vst [vmem:[%s1067_s27 + $0x38] sm:$0xff] %v286_v7  ;;  %v290_v9 = vld [vmem:[%s1062_s26 + $0x90] sm:$0xff] }
  0x16   : > { %289 = vst [vmem:[%s1067_s27 + $0x40] sm:$0xff] %v288_v8  ;;  %v292_v10 = vld [vmem:[%s1062_s26 + $0xa0] sm:$0xff]  ;;  %v294_v11 = vld [vmem:[%s1062_s26 + $0xb0] sm:$0xff]  ;;  %291 = vst [vmem:[%s1067_s27 + $0x48] sm:$0xff] %v290_v9 }
  0x17   : > { %293 = vst [vmem:[%s1067_s27 + $0x50] sm:$0xff] %v292_v10  ;;  %295 = vst [vmem:[%s1067_s27 + $0x58] sm:$0xff] %v294_v11  ;;  %v296_v12 = vld [vmem:[%s1062_s26 + $0xc0] sm:$0xff]  ;;  %v298_v13 = vld [vmem:[%s1062_s26 + $0xd0] sm:$0xff] }
  0x18   : > { %v300_v14 = vld [vmem:[%s1062_s26 + $0xe0] sm:$0xff]  ;;  %297 = vst [vmem:[%s1067_s27 + $0x60] sm:$0xff] %v296_v12  ;;  %299 = vst [vmem:[%s1067_s27 + $0x68] sm:$0xff] %v298_v13  ;;  %v302_v15 = vld [vmem:[%s1062_s26 + $0xf0] sm:$0xff] }
  0x19   : > { %301 = vst [vmem:[%s1067_s27 + $0x70] sm:$0xff] %v300_v14  ;;  %v304_v16 = vld [vmem:[%s1062_s26 + $0x100] sm:$0xff]  ;;  %v306_v17 = vld [vmem:[%s1062_s26 + $0x110] sm:$0xff]  ;;  %303 = vst [vmem:[%s1067_s27 + $0x78] sm:$0xff] %v302_v15 }
  0x1a   : > { %305 = vst [vmem:[%s1067_s27 + $0x80] sm:$0xff] %v304_v16  ;;  %307 = vst [vmem:[%s1067_s27 + $0x88] sm:$0xff] %v306_v17  ;;  %v308_v18 = vld [vmem:[%s1062_s26 + $0x120] sm:$0xff]  ;;  %v310_v19 = vld [vmem:[%s1062_s26 + $0x130] sm:$0xff] }
  0x1b   : > { %v312_v20 = vld [vmem:[%s1062_s26 + $0x140] sm:$0xff]  ;;  %309 = vst [vmem:[%s1067_s27 + $0x90] sm:$0xff] %v308_v18  ;;  %311 = vst [vmem:[%s1067_s27 + $0x98] sm:$0xff] %v310_v19  ;;  %v314_v21 = vld [vmem:[%s1062_s26 + $0x150] sm:$0xff] }
  0x1c   : > { %313 = vst [vmem:[%s1067_s27 + $0xa0] sm:$0xff] %v312_v20  ;;  %v316_v22 = vld [vmem:[%s1062_s26 + $0x160] sm:$0xff]  ;;  %v318_v23 = vld [vmem:[%s1062_s26 + $0x170] sm:$0xff]  ;;  %315 = vst [vmem:[%s1067_s27 + $0xa8] sm:$0xff] %v314_v21 }
  0x1d   : > { %317 = vst [vmem:[%s1067_s27 + $0xb0] sm:$0xff] %v316_v22  ;;  %319 = vst [vmem:[%s1067_s27 + $0xb8] sm:$0xff] %v318_v23  ;;  %v320_v24 = vld [vmem:[%s1062_s26 + $0x180] sm:$0xff]  ;;  %v322_v25 = vld [vmem:[%s1062_s26 + $0x190] sm:$0xff] }
  0x1e   : > { %v324_v26 = vld [vmem:[%s1062_s26 + $0x1a0] sm:$0xff]  ;;  %321 = vst [vmem:[%s1067_s27 + $0xc0] sm:$0xff] %v320_v24  ;;  %323 = vst [vmem:[%s1067_s27 + $0xc8] sm:$0xff] %v322_v25  ;;  %v326_v27 = vld [vmem:[%s1062_s26 + $0x1b0] sm:$0xff] }
  0x1f   : > { %325 = vst [vmem:[%s1067_s27 + $0xd0] sm:$0xff] %v324_v26  ;;  %v328_v28 = vld [vmem:[%s1062_s26 + $0x1c0] sm:$0xff]  ;;  %v330_v29 = vld [vmem:[%s1062_s26 + $0x1d0] sm:$0xff]  ;;  %327 = vst [vmem:[%s1067_s27 + $0xd8] sm:$0xff] %v326_v27 }
  0x20   : > { %329 = vst [vmem:[%s1067_s27 + $0xe0] sm:$0xff] %v328_v28  ;;  %331 = vst [vmem:[%s1067_s27 + $0xe8] sm:$0xff] %v330_v29  ;;  %v332_v30 = vld [vmem:[%s1062_s26 + $0x1e0] sm:$0xff]  ;;  %v334_v31 = vld [vmem:[%s1062_s26 + $0x1f0] sm:$0xff] }
  0x21   : > { %333 = vst [vmem:[%s1067_s27 + $0xf0] sm:$0xff] %v332_v30  ;;  %335 = vst [vmem:[%s1067_s27 + $0xf8] sm:$0xff] %v334_v31 }
  0x22 PF: > { %p827_p6 = scmp.ge.s32.totalorder %s997_s16, 1  ;;  %p348_p7 = scmp.lt.s32.totalorder %s997_s16, 3 }
  0x24   : > { %p349_p8 = pnand %p827_p6, %p348_p7 }
  0x25   : > { %s355_s28 = sand.u32 (!%p349_p8), 1, %s981_s12   ;;  %v1136_v32 = vld [vmem:[%s1198_s0] sm:$0xff] (!%p349_p8)  ;;  %s829_s6 = sshll.u32 (!%p349_p8), %s989_s14, 1  ;;  %v682_v3 = vlaneseq (!%p349_p8) }
  0x26   : > { %352 = sbr.rel (%p349_p8) target bundleno = 321 (0x141), region = 66  ;;  %s828_s4 = sshll.u32 (!%p349_p8), %s355_s28, 8  ;;  %v833_v33 = vcombine.high (!%p349_p8), %v1136_v32, %v1136_v32  ;;  %v832_v2 = vcombine.low (!%p349_p8), %v1136_v32, %v1136_v32 }
  0x27   : > { %s1140_s5 = scalar_lea.vmem (!%p349_p8), [#allocation3], %s828_s4  ;;  %p408_p9 = scmp.lt.s32.totalorder (!%p349_p8), %s829_s6, 3  ;;  %v683_v4 = vshrl.u32 (!%p349_p8), %v682_v3, 7 }
  0x28   : > { %v909_v34 = vld [vmem:[%s1140_s5 + $0x4] ss:$8 sps:$4 sm:$0xff] (!%p349_p8)   ;;  %662 = vmatprep.mubr.bf16.mxu0 (!%p349_p8), %v833_v33  ;;  %v911_v35 = vld [vmem:[%s1140_s5] ss:$8 sps:$4 sm:$0xff] (!%p349_p8)   ;;  %v912_v36 = vld [vmem:[%s1140_s5 + $0x14] ss:$8 sps:$4 sm:$0xff] (!%p349_p8)  }
  0x29   : > { %630 = vmatprep.subr.bf16.mxu0 (!%p349_p8), %v909_v34  ;;  %v914_v37 = vld [vmem:[%s1140_s5 + $0x10] ss:$8 sps:$4 sm:$0xff] (!%p349_p8)   ;;  %v915_v38 = vld [vmem:[%s1140_s5 + $0x24] ss:$8 sps:$4 sm:$0xff] (!%p349_p8)   ;;  %v917_v39 = vld [vmem:[%s1140_s5 + $0x20] ss:$8 sps:$4 sm:$0xff] (!%p349_p8)  }
  0x2a   : > { %631 = vmatpush1.bf16.msra.mxu0 (!%p349_p8), %v911_v35  ;;  %v918_v40 = vld [vmem:[%s1140_s5 + $0x34] ss:$8 sps:$4 sm:$0xff] (!%p349_p8)   ;;  %v920_v41 = vld [vmem:[%s1140_s5 + $0x30] ss:$8 sps:$4 sm:$0xff] (!%p349_p8)   ;;  %v921_v42 = vld [vmem:[%s1140_s5 + $0x44] ss:$8 sps:$4 sm:$0xff] (!%p349_p8)  }
  0x2b   : > { %632 = vmatprep.subr.bf16.mxu0 (!%p349_p8), %v912_v36  ;;  %v923_v43 = vld [vmem:[%s1140_s5 + $0x40] ss:$8 sps:$4 sm:$0xff] (!%p349_p8)   ;;  %v924_v44 = vld [vmem:[%s1140_s5 + $0x54] ss:$8 sps:$4 sm:$0xff] (!%p349_p8)   ;;  %v926_v45 = vld [vmem:[%s1140_s5 + $0x50] ss:$8 sps:$4 sm:$0xff] (!%p349_p8)  }
  0x2c   : > { %v927_v46 = vld [vmem:[%s1140_s5 + $0x64] ss:$8 sps:$4 sm:$0xff] (!%p349_p8)   ;;  %v929_v47 = vld [vmem:[%s1140_s5 + $0x60] ss:$8 sps:$4 sm:$0xff] (!%p349_p8)   ;;  %v930_v48 = vld [vmem:[%s1140_s5 + $0x74] ss:$8 sps:$4 sm:$0xff] (!%p349_p8)  }
  0x2d   : > { %v932_v49 = vld [vmem:[%s1140_s5 + $0x70] ss:$8 sps:$4 sm:$0xff]   ;;  %v933_v50 = vld [vmem:[%s1140_s5 + $0x84] ss:$8 sps:$4 sm:$0xff]   ;;  %v935_v51 = vld [vmem:[%s1140_s5 + $0x80] ss:$8 sps:$4 sm:$0xff]  }
  0x2e   : > { %633 = vmatpush1.bf16.msra.mxu0 %v914_v37  ;;  %v936_v52 = vld [vmem:[%s1140_s5 + $0x94] ss:$8 sps:$4 sm:$0xff]   ;;  %v938_v53 = vld [vmem:[%s1140_s5 + $0x90] ss:$8 sps:$4 sm:$0xff]   ;;  %v939_v54 = vld [vmem:[%s1140_s5 + $0xa4] ss:$8 sps:$4 sm:$0xff]  }
  0x2f   : > { %634 = vmatprep.subr.bf16.mxu0 %v915_v38  ;;  %v941_v55 = vld [vmem:[%s1140_s5 + $0xa0] ss:$8 sps:$4 sm:$0xff]   ;;  %v942_v56 = vld [vmem:[%s1140_s5 + $0xb4] ss:$8 sps:$4 sm:$0xff]   ;;  %v944_v57 = vld [vmem:[%s1140_s5 + $0xb0] ss:$8 sps:$4 sm:$0xff]  }
  0x30   : > { %v945_v58 = vld [vmem:[%s1140_s5 + $0xc4] ss:$8 sps:$4 sm:$0xff]   ;;  %v947_v59 = vld [vmem:[%s1140_s5 + $0xc0] ss:$8 sps:$4 sm:$0xff]   ;;  %v948_v60 = vld [vmem:[%s1140_s5 + $0xd4] ss:$8 sps:$4 sm:$0xff]  }
  0x31   : > { %v950_v61 = vld [vmem:[%s1140_s5 + $0xd0] ss:$8 sps:$4 sm:$0xff]   ;;  %v951_v62 = vld [vmem:[%s1140_s5 + $0xe4] ss:$8 sps:$4 sm:$0xff]   ;;  %v953_v63 = vld [vmem:[%s1140_s5 + $0xe0] ss:$8 sps:$4 sm:$0xff]  }
  0x32   : > { %635 = vmatpush1.bf16.msra.mxu0 %v917_v39  ;;  %v954_v0 = vld [vmem:[%s1140_s5 + $0xf4] ss:$8 sps:$4 sm:$0xff]   ;;  %v956_v1 = vld [vmem:[%s1140_s5 + $0xf0] ss:$8 sps:$4 sm:$0xff]   ;;  %s1209_s6 = smov (!%p408_p9, %s829_s6), 3  ;;  %v684_v5 = vsub.s32 0, %v683_v4 }
  0x33   : > { %636 = vmatprep.subr.bf16.mxu0 %v918_v40  ;;  %s410_s9 = scalar_lea.vmem %s1200_s2, %s1209_s6  ;;  %v688_v7 = vsub.s32 1, %v683_v4  ;;  %s831_s10 = sshll.u32 %s1209_s6, 3 }
  0x34   : > { %v680_v6 = vld [vmem:[%s410_s9] sm:$0x3]  ;;  %s420_s18 = scalar_lea.vmem %s1201_s3, %s831_s10 }
  0x35   : > { %v685_v8 = vrot.slane %v680_v6, %v684_v5  ;;  %v689_v9 = vrot.slane %v680_v6, %v688_v7 }
  0x36   : > { %637 = vmatpush1.bf16.msra.mxu0 %v920_v41 }
  0x37   : > { %638 = vmatprep.subr.bf16.mxu0 %v921_v42 }
  0x3a   : > { %639 = vmatpush1.bf16.msra.mxu0 %v923_v43 }
  0x3b   : > { %640 = vmatprep.subr.bf16.mxu0 %v924_v44 }
  0x3e   : > { %641 = vmatpush1.bf16.msra.mxu0 %v926_v45 }
  0x3f   : > { %642 = vmatprep.subr.bf16.mxu0 %v927_v46 }
  0x42   : > { %643 = vmatpush1.bf16.msra.mxu0 %v929_v47 }
  0x43   : > { %644 = vmatprep.subr.bf16.mxu0 %v930_v48 }
  0x46   : > { %645 = vmatpush1.bf16.msra.mxu0 %v932_v49 }
  0x47   : > { %646 = vmatprep.subr.bf16.mxu0 %v933_v50 }
  0x4a   : > { %647 = vmatpush1.bf16.msra.mxu0 %v935_v51 }
  0x4b   : > { %648 = vmatprep.subr.bf16.mxu0 %v936_v52 }
  0x4e   : > { %649 = vmatpush1.bf16.msra.mxu0 %v938_v53 }
  0x4f   : > { %650 = vmatprep.subr.bf16.mxu0 %v939_v54 }
  0x52   : > { %651 = vmatpush1.bf16.msra.mxu0 %v941_v55 }
  0x53   : > { %652 = vmatprep.subr.bf16.mxu0 %v942_v56 }
  0x56   : > { %653 = vmatpush1.bf16.msra.mxu0 %v944_v57 }
  0x57   : > { %654 = vmatprep.subr.bf16.mxu0 %v945_v58 }
  0x5a   : > { %655 = vmatpush1.bf16.msra.mxu0 %v947_v59 }
  0x5b   : > { %656 = vmatprep.subr.bf16.mxu0 %v948_v60 }
  0x5e   : > { %657 = vmatpush1.bf16.msra.mxu0 %v950_v61 }
  0x5f   : > { %658 = vmatprep.subr.bf16.mxu0 %v951_v62 }
  0x62   : > { %659 = vmatpush1.bf16.msra.mxu0 %v953_v63 }
  0x63   : > { %660 = vmatprep.subr.bf16.mxu0 %v954_v0 }
  0x66   : > { %661 = vmatpush1.bf16.msra.mxu0 %v956_v1 }
  0x69   : > { %663 = vmatmul.mubr.bf16.vlgmr.msra.gmra.mrb[0].mxu0 %v832_v2 }
 0x13c   : > { %v664_v10 = vpop.f32.mrb[0].mxu0 }
 0x13d   : > { %v692_v11 = vadd.f32 %v685_v8, %v664_v10  ;;  %v666_v12 = vpop.f32.mrb[1].mxu0 }
 0x13e   : > { %v693_v13 = vadd.f32 %v689_v9, %v666_v12  ;;  %v668_v14 = vpop.f32.mrb[2].mxu0 }
 0x13f   : > { %694 = vst [vmem:[%s420_s18] sm:$0xff] %v692_v11  ;;  %v669_v15 = vpop.f32.mrb[3].mxu0 }
 0x140   : > { %695 = vst [vmem:[%s420_s18 + $0x8] sm:$0xff] %v693_v13 }
 0x141 PF: > { %s13_s16 = sadd.s32 1, %s997_s16   ;;  %s1202_s12 = smov %s985_s13 }
 0x142   : > { %p10_p10 = scmp.ge.s32.totalorder %s13_s16, 4   ;;  %s1203_s13 = smov %s1054_s20 }
 0x143   : > { %s1204_s14 = smov %s993_s15  ;;  %s1205_s15 = smov %s1207_s17 }
 0x144   :  { %12 = sbr.rel (!%p10_p10) target bundleno = 3 (0x3), region = 119 }

// kernel: resnet_forward.42
= control target key start
LH: loop header
LB: loop body
LE: loop exit
PB: predicated region body
PF: predicated region fallthrough
CT: control target
= control target key end

     0   :  { %s1606_s15 = smov 0   ;;  %s1608_s16 = smov 0   ;;  %s1925_s0 = inlined_call_operand.vmem [shape: bf16[8,4608], index: 0, kind: input, shape index: {}]   ;;  %s1926_s1 = inlined_call_operand.vmem [shape: bf16[4608,512], index: 1, kind: input, shape index: {}]   ;;  %s1927_s2 = inlined_call_operand.vmem [shape: f32[1,512], index: 2, kind: input, shape index: {}]   ;;  %s1928_s3 = inlined_call_operand.vmem [shape: f32[8,512], index: 3, kind: input, shape index: {}]   ;;  %s1929_s4 = inlined_call_operand.vmem [shape: f32[8,512], index: 4, kind: output, shape index: {}]  }
   0x1   :  { %s1610_s17 = smov 0   ;;  %s1612_s18 = smov 0  }
   0x2   :  { %s1614_s19 = smov 0   ;;  %s1616_s20 = smov 0  }
   0x3   :  { %s1618_s21 = smov 0  }
   0x4 LB: > { %s26_s22 = sadd.s32 1, %s1570_s19  ;;  %s29_s23 = sadd.s32 1, %s1574_s20  ;;  %s1578_s21 = sphi %s1618_s21, %s14_s21   ;;  %s1574_s20 = sphi %s1616_s20, %s1935_s20   ;;  %s1570_s19 = sphi %s1614_s19, %s1934_s19   ;;  %s1566_s18 = sphi %s1612_s18, %s1933_s18   ;;  %s1562_s17 = sphi %s1610_s17, %s1932_s17   ;;  %s1558_s16 = sphi %s1608_s16, %s1931_s16   ;;  %s1554_s15 = sphi %s1606_s15, %s1930_s15  }
   0x5   : > { %p27_p0 = scmp.ge.s32.totalorder %s26_s22, 9  ;;  %p77_p1 = scmp.ne.s32.totalorder %s1558_s16, %s1554_s15 }
   0x6   : > { %p78_p2 = scmp.eq.s32.totalorder %s1578_s21, 0  ;;  %s70_s27 = sadd.s32 1, %s1558_s16 }
   0x7   : > { %s1937_s22 = smov (%p27_p0, %s26_s22), 0  ;;  %s1939_s23 = smov (!%p27_p0, %s29_s23), %s1574_s20 }
   0x8   : > { %p79_p3 = por %p78_p2, %p77_p1  ;;  %p31_p4 = scmp.ge.s32.totalorder %s1939_s23, 2 }
   0x9   : > { %s65_s24 = ssub.s32 %s1570_s19, %s1937_s22  ;;  %p1279_p6 = scmp.ge.s32.totalorder %s1578_s21, 18 }
   0xa   : > { %s1941_s23 = smov (%p31_p4, %s1939_s23), 0 }
   0xb   : > { %s66_s25 = ssub.s32 %s1574_s20, %s1941_s23  ;;  %185 = sbr.rel (%p1279_p6) target bundleno = 57 (0x39), region = 16 }
   0xc   : > { %s67_s26 = sor.u32 %s66_s25, %s65_s24 }
   0xd   : > { %p68_p5 = scmp.eq.s32.totalorder %s67_s26, 0 }
   0xf   : > { %s1657_s28 = scalar_select %p68_p5, %s1558_s16, %s70_s27  }
  0x12   : > { %201 = sbr.rel (!%p79_p3) target bundleno = 57 (0x39), region = 24  ;;  %s203_s29 = sand.u32 (%p79_p3), 1, %s1558_s16  }
  0x13   : > { %s1282_s30 = sshll.u32 (%p79_p3), %s1574_s20, 1  ;;  %s1280_s5 = sshll.u32 (%p79_p3), %s203_s29, 9 }
  0x14   : > { %s1366_s6 = sshll.u32 (%p79_p3), %s1570_s19, 8  ;;  %s1671_s12 = scalar_lea.vmem (%p79_p3), [#allocation3], %s1280_s5 }
  0x15   : > { %s209_s7 = sadd.s32 (%p79_p3), %s1366_s6, %s1282_s30 }
  0x16   : > { %s1284_s8 = sshll.u32 (%p79_p3), %s209_s7, 2 }
  0x17   : > { %s1666_s11 = scalar_lea.vmem (%p79_p3), %s1926_s1, %s1284_s8 }
  0x18   : > { %v365_v0 = vld [vmem:[%s1666_s11] sm:$0xff] (%p79_p3)  ;;  %v367_v1 = vld [vmem:[%s1666_s11 + $0x10] sm:$0xff] (%p79_p3) }
  0x19   : > { %v369_v2 = vld [vmem:[%s1666_s11 + $0x20] sm:$0xff]  ;;  %366 = vst [vmem:[%s1671_s12] sm:$0xff] %v365_v0  ;;  %368 = vst [vmem:[%s1671_s12 + $0x8] sm:$0xff] %v367_v1  ;;  %v371_v3 = vld [vmem:[%s1666_s11 + $0x30] sm:$0xff] }
  0x1a   : > { %370 = vst [vmem:[%s1671_s12 + $0x10] sm:$0xff] %v369_v2  ;;  %v373_v4 = vld [vmem:[%s1666_s11 + $0x40] sm:$0xff]  ;;  %v375_v5 = vld [vmem:[%s1666_s11 + $0x50] sm:$0xff]  ;;  %372 = vst [vmem:[%s1671_s12 + $0x18] sm:$0xff] %v371_v3 }
  0x1b   : > { %374 = vst [vmem:[%s1671_s12 + $0x20] sm:$0xff] %v373_v4  ;;  %376 = vst [vmem:[%s1671_s12 + $0x28] sm:$0xff] %v375_v5  ;;  %v377_v6 = vld [vmem:[%s1666_s11 + $0x60] sm:$0xff]  ;;  %v379_v7 = vld [vmem:[%s1666_s11 + $0x70] sm:$0xff] }
  0x1c   : > { %v381_v8 = vld [vmem:[%s1666_s11 + $0x80] sm:$0xff]  ;;  %378 = vst [vmem:[%s1671_s12 + $0x30] sm:$0xff] %v377_v6  ;;  %380 = vst [vmem:[%s1671_s12 + $0x38] sm:$0xff] %v379_v7  ;;  %v383_v9 = vld [vmem:[%s1666_s11 + $0x90] sm:$0xff] }
  0x1d   : > { %382 = vst [vmem:[%s1671_s12 + $0x40] sm:$0xff] %v381_v8  ;;  %v385_v10 = vld [vmem:[%s1666_s11 + $0xa0] sm:$0xff]  ;;  %v387_v11 = vld [vmem:[%s1666_s11 + $0xb0] sm:$0xff]  ;;  %384 = vst [vmem:[%s1671_s12 + $0x48] sm:$0xff] %v383_v9 }
  0x1e   : > { %386 = vst [vmem:[%s1671_s12 + $0x50] sm:$0xff] %v385_v10  ;;  %388 = vst [vmem:[%s1671_s12 + $0x58] sm:$0xff] %v387_v11  ;;  %v389_v12 = vld [vmem:[%s1666_s11 + $0xc0] sm:$0xff]  ;;  %v391_v13 = vld [vmem:[%s1666_s11 + $0xd0] sm:$0xff] }
  0x1f   : > { %v393_v14 = vld [vmem:[%s1666_s11 + $0xe0] sm:$0xff]  ;;  %390 = vst [vmem:[%s1671_s12 + $0x60] sm:$0xff] %v389_v12  ;;  %392 = vst [vmem:[%s1671_s12 + $0x68] sm:$0xff] %v391_v13  ;;  %v395_v15 = vld [vmem:[%s1666_s11 + $0xf0] sm:$0xff] }
  0x20   : > { %394 = vst [vmem:[%s1671_s12 + $0x70] sm:$0xff] %v393_v14  ;;  %v397_v16 = vld [vmem:[%s1666_s11 + $0x100] sm:$0xff]  ;;  %v399_v17 = vld [vmem:[%s1666_s11 + $0x110] sm:$0xff]  ;;  %396 = vst [vmem:[%s1671_s12 + $0x78] sm:$0xff] %v395_v15 }
  0x21   : > { %398 = vst [vmem:[%s1671_s12 + $0x80] sm:$0xff] %v397_v16  ;;  %400 = vst [vmem:[%s1671_s12 + $0x88] sm:$0xff] %v399_v17  ;;  %v401_v18 = vld [vmem:[%s1666_s11 + $0x120] sm:$0xff]  ;;  %v403_v19 = vld [vmem:[%s1666_s11 + $0x130] sm:$0xff] }
  0x22   : > { %v405_v20 = vld [vmem:[%s1666_s11 + $0x140] sm:$0xff]  ;;  %402 = vst [vmem:[%s1671_s12 + $0x90] sm:$0xff] %v401_v18  ;;  %404 = vst [vmem:[%s1671_s12 + $0x98] sm:$0xff] %v403_v19  ;;  %v407_v21 = vld [vmem:[%s1666_s11 + $0x150] sm:$0xff] }
  0x23   : > { %406 = vst [vmem:[%s1671_s12 + $0xa0] sm:$0xff] %v405_v20  ;;  %v409_v22 = vld [vmem:[%s1666_s11 + $0x160] sm:$0xff]  ;;  %v411_v23 = vld [vmem:[%s1666_s11 + $0x170] sm:$0xff]  ;;  %408 = vst [vmem:[%s1671_s12 + $0xa8] sm:$0xff] %v407_v21 }
  0x24   : > { %410 = vst [vmem:[%s1671_s12 + $0xb0] sm:$0xff] %v409_v22  ;;  %412 = vst [vmem:[%s1671_s12 + $0xb8] sm:$0xff] %v411_v23  ;;  %v413_v24 = vld [vmem:[%s1666_s11 + $0x180] sm:$0xff]  ;;  %v415_v25 = vld [vmem:[%s1666_s11 + $0x190] sm:$0xff] }
  0x25   : > { %v417_v26 = vld [vmem:[%s1666_s11 + $0x1a0] sm:$0xff]  ;;  %414 = vst [vmem:[%s1671_s12 + $0xc0] sm:$0xff] %v413_v24  ;;  %416 = vst [vmem:[%s1671_s12 + $0xc8] sm:$0xff] %v415_v25  ;;  %v419_v27 = vld [vmem:[%s1666_s11 + $0x1b0] sm:$0xff] }
  0x26   : > { %418 = vst [vmem:[%s1671_s12 + $0xd0] sm:$0xff] %v417_v26  ;;  %v421_v28 = vld [vmem:[%s1666_s11 + $0x1c0] sm:$0xff]  ;;  %v423_v29 = vld [vmem:[%s1666_s11 + $0x1d0] sm:$0xff]  ;;  %420 = vst [vmem:[%s1671_s12 + $0xd8] sm:$0xff] %v419_v27 }
  0x27   : > { %422 = vst [vmem:[%s1671_s12 + $0xe0] sm:$0xff] %v421_v28  ;;  %424 = vst [vmem:[%s1671_s12 + $0xe8] sm:$0xff] %v423_v29  ;;  %v425_v30 = vld [vmem:[%s1666_s11 + $0x1e0] sm:$0xff]  ;;  %v427_v31 = vld [vmem:[%s1666_s11 + $0x1f0] sm:$0xff] }
  0x28   : > { %v429_v32 = vld [vmem:[%s1666_s11 + $0x200] sm:$0xff]  ;;  %426 = vst [vmem:[%s1671_s12 + $0xf0] sm:$0xff] %v425_v30  ;;  %428 = vst [vmem:[%s1671_s12 + $0xf8] sm:$0xff] %v427_v31  ;;  %v431_v33 = vld [vmem:[%s1666_s11 + $0x210] sm:$0xff] }
  0x29   : > { %430 = vst [vmem:[%s1671_s12 + $0x100] sm:$0xff] %v429_v32  ;;  %v433_v34 = vld [vmem:[%s1666_s11 + $0x220] sm:$0xff]  ;;  %v435_v35 = vld [vmem:[%s1666_s11 + $0x230] sm:$0xff]  ;;  %432 = vst [vmem:[%s1671_s12 + $0x108] sm:$0xff] %v431_v33 }
  0x2a   : > { %434 = vst [vmem:[%s1671_s12 + $0x110] sm:$0xff] %v433_v34  ;;  %436 = vst [vmem:[%s1671_s12 + $0x118] sm:$0xff] %v435_v35  ;;  %v437_v36 = vld [vmem:[%s1666_s11 + $0x240] sm:$0xff]  ;;  %v439_v37 = vld [vmem:[%s1666_s11 + $0x250] sm:$0xff] }
  0x2b   : > { %v441_v38 = vld [vmem:[%s1666_s11 + $0x260] sm:$0xff]  ;;  %438 = vst [vmem:[%s1671_s12 + $0x120] sm:$0xff] %v437_v36  ;;  %440 = vst [vmem:[%s1671_s12 + $0x128] sm:$0xff] %v439_v37  ;;  %v443_v39 = vld [vmem:[%s1666_s11 + $0x270] sm:$0xff] }
  0x2c   : > { %442 = vst [vmem:[%s1671_s12 + $0x130] sm:$0xff] %v441_v38  ;;  %v445_v40 = vld [vmem:[%s1666_s11 + $0x280] sm:$0xff]  ;;  %v447_v41 = vld [vmem:[%s1666_s11 + $0x290] sm:$0xff]  ;;  %444 = vst [vmem:[%s1671_s12 + $0x138] sm:$0xff] %v443_v39 }
  0x2d   : > { %446 = vst [vmem:[%s1671_s12 + $0x140] sm:$0xff] %v445_v40  ;;  %448 = vst [vmem:[%s1671_s12 + $0x148] sm:$0xff] %v447_v41  ;;  %v449_v42 = vld [vmem:[%s1666_s11 + $0x2a0] sm:$0xff]  ;;  %v451_v43 = vld [vmem:[%s1666_s11 + $0x2b0] sm:$0xff] }
  0x2e   : > { %v453_v44 = vld [vmem:[%s1666_s11 + $0x2c0] sm:$0xff]  ;;  %450 = vst [vmem:[%s1671_s12 + $0x150] sm:$0xff] %v449_v42  ;;  %452 = vst [vmem:[%s1671_s12 + $0x158] sm:$0xff] %v451_v43  ;;  %v455_v45 = vld [vmem:[%s1666_s11 + $0x2d0] sm:$0xff] }
  0x2f   : > { %454 = vst [vmem:[%s1671_s12 + $0x160] sm:$0xff] %v453_v44  ;;  %v457_v46 = vld [vmem:[%s1666_s11 + $0x2e0] sm:$0xff]  ;;  %v459_v47 = vld [vmem:[%s1666_s11 + $0x2f0] sm:$0xff]  ;;  %456 = vst [vmem:[%s1671_s12 + $0x168] sm:$0xff] %v455_v45 }
  0x30   : > { %458 = vst [vmem:[%s1671_s12 + $0x170] sm:$0xff] %v457_v46  ;;  %460 = vst [vmem:[%s1671_s12 + $0x178] sm:$0xff] %v459_v47  ;;  %v461_v48 = vld [vmem:[%s1666_s11 + $0x300] sm:$0xff]  ;;  %v463_v49 = vld [vmem:[%s1666_s11 + $0x310] sm:$0xff] }
  0x31   : > { %v465_v50 = vld [vmem:[%s1666_s11 + $0x320] sm:$0xff]  ;;  %462 = vst [vmem:[%s1671_s12 + $0x180] sm:$0xff] %v461_v48  ;;  %464 = vst [vmem:[%s1671_s12 + $0x188] sm:$0xff] %v463_v49  ;;  %v467_v51 = vld [vmem:[%s1666_s11 + $0x330] sm:$0xff] }
  0x32   : > { %466 = vst [vmem:[%s1671_s12 + $0x190] sm:$0xff] %v465_v50  ;;  %v469_v52 = vld [vmem:[%s1666_s11 + $0x340] sm:$0xff]  ;;  %v471_v53 = vld [vmem:[%s1666_s11 + $0x350] sm:$0xff]  ;;  %468 = vst [vmem:[%s1671_s12 + $0x198] sm:$0xff] %v467_v51 }
  0x33   : > { %470 = vst [vmem:[%s1671_s12 + $0x1a0] sm:$0xff] %v469_v52  ;;  %472 = vst [vmem:[%s1671_s12 + $0x1a8] sm:$0xff] %v471_v53  ;;  %v473_v54 = vld [vmem:[%s1666_s11 + $0x360] sm:$0xff]  ;;  %v475_v55 = vld [vmem:[%s1666_s11 + $0x370] sm:$0xff] }
  0x34   : > { %v477_v56 = vld [vmem:[%s1666_s11 + $0x380] sm:$0xff]  ;;  %474 = vst [vmem:[%s1671_s12 + $0x1b0] sm:$0xff] %v473_v54  ;;  %476 = vst [vmem:[%s1671_s12 + $0x1b8] sm:$0xff] %v475_v55  ;;  %v479_v57 = vld [vmem:[%s1666_s11 + $0x390] sm:$0xff] }
  0x35   : > { %478 = vst [vmem:[%s1671_s12 + $0x1c0] sm:$0xff] %v477_v56  ;;  %v481_v58 = vld [vmem:[%s1666_s11 + $0x3a0] sm:$0xff]  ;;  %v483_v59 = vld [vmem:[%s1666_s11 + $0x3b0] sm:$0xff]  ;;  %480 = vst [vmem:[%s1671_s12 + $0x1c8] sm:$0xff] %v479_v57 }
  0x36   : > { %482 = vst [vmem:[%s1671_s12 + $0x1d0] sm:$0xff] %v481_v58  ;;  %484 = vst [vmem:[%s1671_s12 + $0x1d8] sm:$0xff] %v483_v59  ;;  %v485_v60 = vld [vmem:[%s1666_s11 + $0x3c0] sm:$0xff]  ;;  %v487_v61 = vld [vmem:[%s1666_s11 + $0x3d0] sm:$0xff] }
  0x37   : > { %v489_v62 = vld [vmem:[%s1666_s11 + $0x3e0] sm:$0xff]  ;;  %486 = vst [vmem:[%s1671_s12 + $0x1e0] sm:$0xff] %v485_v60  ;;  %488 = vst [vmem:[%s1671_s12 + $0x1e8] sm:$0xff] %v487_v61  ;;  %v491_v63 = vld [vmem:[%s1666_s11 + $0x3f0] sm:$0xff] }
  0x38   : > { %490 = vst [vmem:[%s1671_s12 + $0x1f0] sm:$0xff] %v489_v62  ;;  %492 = vst [vmem:[%s1671_s12 + $0x1f8] sm:$0xff] %v491_v63 }
  0x39 PF: > { %p1285_p7 = scmp.ge.s32.totalorder %s1578_s21, 1  ;;  %p518_p8 = scmp.lt.s32.totalorder %s1578_s21, 19 }
  0x3b   : > { %p519_p9 = pnand %p1285_p7, %p518_p8 }
  0x3c   : > { %s525_s13 = sand.u32 (!%p519_p9), 1, %s1554_s15   ;;  %s1287_s14 = sshll.u32 (!%p519_p9), %s1562_s17, 2 }
  0x3d   : > { %522 = sbr.rel (%p519_p9) target bundleno = 377 (0x179), region = 70  ;;  %s1286_s24 = sshll.u32 (!%p519_p9), %s525_s13, 9 }
  0x3e   : > { %p579_p10 = scmp.lt.s32.totalorder (!%p519_p9), %s1287_s14, 35  ;;  %s1289_s25 = sshll.u32 (!%p519_p9), %s1566_s18, 1 }
  0x3f   : > { %p589_p11 = scmp.lt.s32.totalorder (!%p519_p9), %s1289_s25, 3  ;;  %s1825_s13 = scalar_lea.vmem (!%p519_p9), [#allocation3], %s1286_s24 }
  0x40   : > { %p1294_p12 = scmp.ne.s32.totalorder (!%p519_p9), %s1562_s17, 0 }
  0x44   : > { %s1943_s14 = smov (!%p579_p10, %s1287_s14), 35  ;;  %s1945_s25 = smov (!%p589_p11, %s1289_s25), 3 }
  0x45   : > { %s1288_s26 = sshll.u32 %s1943_s14, 2  ;;  %s591_s15 = scalar_lea.vmem %s1927_s2, %s1945_s25  ;;  %v1580_v0 = vmov (!%p1294_p12), 0.0  }
  0x46   : > { %s1806_s30 = scalar_lea.vmem %s1925_s0, %s1288_s26  ;;  %s1291_s7 = sshll.u32 %s1945_s25, 3  ;;  %617 = vst [vmem:[#allocation2] sm:$0xff] (!%p1294_p12), %v1580_v0  ;;  %618 = vst [vmem:[#allocation2 + $0x8] sm:$0xff] (!%p1294_p12), %v1580_v0 }
  0x47   : > { %s1818_s18 = scalar_lea.vmem %s1928_s3, %s1291_s7  ;;  %s1823_s12 = scalar_lea.vmem %s1929_s4, %s1291_s7 }
  0x48   : > { %616 = sbr.rel (%p1294_p12) target bundleno = 79 (0x4f), region = 78 }
  0x4f PF: > { %v1424_v1 = vld [vmem:[%s1825_s13 + $0x4] ss:$8 sps:$4 sm:$0xff]   ;;  %v1428_v3 = vld [vmem:[%s1825_s13] ss:$8 sps:$4 sm:$0xff]   ;;  %v1430_v5 = vld [vmem:[%s1825_s13 + $0x14] ss:$8 sps:$4 sm:$0xff]  }
  0x50   : > { %v1426_v2 = vld [vmem:[%s1825_s13 + $0x104] ss:$8 sps:$4 sm:$0xff]   ;;  %1021 = vmatprep.subr.bf16.mxu0 %v1424_v1  ;;  %v1429_v4 = vld [vmem:[%s1825_s13 + $0x100] ss:$8 sps:$4 sm:$0xff]   ;;  %v1432_v6 = vld [vmem:[%s1825_s13 + $0x114] ss:$8 sps:$4 sm:$0xff]  }
  0x51   : > { %1062 = vmatprep.subr.bf16.mxu1 %v1426_v2  ;;  %1022 = vmatpush1.bf16.msra.mxu0 %v1428_v3  ;;  %v1434_v7 = vld [vmem:[%s1825_s13 + $0x10] ss:$8 sps:$4 sm:$0xff]   ;;  %v1436_v9 = vld [vmem:[%s1825_s13 + $0x24] ss:$8 sps:$4 sm:$0xff]   ;;  %v1440_v11 = vld [vmem:[%s1825_s13 + $0x20] ss:$8 sps:$4 sm:$0xff]  }
  0x52   : > { %1063 = vmatpush1.bf16.msra.mxu1 %v1429_v4  ;;  %1023 = vmatprep.subr.bf16.mxu0 %v1430_v5  ;;  %v1435_v8 = vld [vmem:[%s1825_s13 + $0x110] ss:$8 sps:$4 sm:$0xff]   ;;  %v1438_v10 = vld [vmem:[%s1825_s13 + $0x124] ss:$8 sps:$4 sm:$0xff]   ;;  %v1441_v12 = vld [vmem:[%s1825_s13 + $0x120] ss:$8 sps:$4 sm:$0xff]  }
  0x53   : > { %1064 = vmatprep.subr.bf16.mxu1 %v1432_v6  ;;  %v1442_v13 = vld [vmem:[%s1825_s13 + $0x34] ss:$8 sps:$4 sm:$0xff]   ;;  %v1446_v15 = vld [vmem:[%s1825_s13 + $0x30] ss:$8 sps:$4 sm:$0xff]   ;;  %v1448_v17 = vld [vmem:[%s1825_s13 + $0x44] ss:$8 sps:$4 sm:$0xff]  }
  0x54   : > { %v1444_v14 = vld [vmem:[%s1825_s13 + $0x134] ss:$8 sps:$4 sm:$0xff]   ;;  %v1447_v16 = vld [vmem:[%s1825_s13 + $0x130] ss:$8 sps:$4 sm:$0xff]   ;;  %v1450_v18 = vld [vmem:[%s1825_s13 + $0x144] ss:$8 sps:$4 sm:$0xff]  }
  0x55   : > { %1024 = vmatpush1.bf16.msra.mxu0 %v1434_v7  ;;  %v1452_v19 = vld [vmem:[%s1825_s13 + $0x40] ss:$8 sps:$4 sm:$0xff]   ;;  %v1454_v21 = vld [vmem:[%s1825_s13 + $0x54] ss:$8 sps:$4 sm:$0xff]   ;;  %v1458_v23 = vld [vmem:[%s1825_s13 + $0x50] ss:$8 sps:$4 sm:$0xff]  }
  0x56   : > { %1065 = vmatpush1.bf16.msra.mxu1 %v1435_v8  ;;  %1025 = vmatprep.subr.bf16.mxu0 %v1436_v9  ;;  %v1453_v20 = vld [vmem:[%s1825_s13 + $0x140] ss:$8 sps:$4 sm:$0xff]   ;;  %v1456_v22 = vld [vmem:[%s1825_s13 + $0x154] ss:$8 sps:$4 sm:$0xff]   ;;  %v1459_v24 = vld [vmem:[%s1825_s13 + $0x150] ss:$8 sps:$4 sm:$0xff]  }
  0x57   : > { %1066 = vmatprep.subr.bf16.mxu1 %v1438_v10  ;;  %v1460_v25 = vld [vmem:[%s1825_s13 + $0x64] ss:$8 sps:$4 sm:$0xff]   ;;  %v1464_v27 = vld [vmem:[%s1825_s13 + $0x60] ss:$8 sps:$4 sm:$0xff]   ;;  %v1466_v29 = vld [vmem:[%s1825_s13 + $0x74] ss:$8 sps:$4 sm:$0xff]  }
  0x58   : > { %v1462_v26 = vld [vmem:[%s1825_s13 + $0x164] ss:$8 sps:$4 sm:$0xff]   ;;  %v1465_v28 = vld [vmem:[%s1825_s13 + $0x160] ss:$8 sps:$4 sm:$0xff]   ;;  %v1468_v30 = vld [vmem:[%s1825_s13 + $0x174] ss:$8 sps:$4 sm:$0xff]  }
  0x59   : > { %1026 = vmatpush1.bf16.msra.mxu0 %v1440_v11  ;;  %v1470_v31 = vld [vmem:[%s1825_s13 + $0x70] ss:$8 sps:$4 sm:$0xff]   ;;  %v1472_v33 = vld [vmem:[%s1825_s13 + $0x84] ss:$8 sps:$4 sm:$0xff]   ;;  %v1476_v35 = vld [vmem:[%s1825_s13 + $0x80] ss:$8 sps:$4 sm:$0xff]  }
  0x5a   : > { %1067 = vmatpush1.bf16.msra.mxu1 %v1441_v12  ;;  %1027 = vmatprep.subr.bf16.mxu0 %v1442_v13  ;;  %v1471_v32 = vld [vmem:[%s1825_s13 + $0x170] ss:$8 sps:$4 sm:$0xff]   ;;  %v1474_v34 = vld [vmem:[%s1825_s13 + $0x184] ss:$8 sps:$4 sm:$0xff]   ;;  %v1477_v36 = vld [vmem:[%s1825_s13 + $0x180] ss:$8 sps:$4 sm:$0xff]  }
  0x5b   : > { %1068 = vmatprep.subr.bf16.mxu1 %v1444_v14  ;;  %v1478_v37 = vld [vmem:[%s1825_s13 + $0x94] ss:$8 sps:$4 sm:$0xff]   ;;  %v1482_v39 = vld [vmem:[%s1825_s13 + $0x90] ss:$8 sps:$4 sm:$0xff]   ;;  %v1484_v41 = vld [vmem:[%s1825_s13 + $0xa4] ss:$8 sps:$4 sm:$0xff]  }
  0x5c   : > { %v1480_v38 = vld [vmem:[%s1825_s13 + $0x194] ss:$8 sps:$4 sm:$0xff]   ;;  %v1483_v40 = vld [vmem:[%s1825_s13 + $0x190] ss:$8 sps:$4 sm:$0xff]   ;;  %v1486_v42 = vld [vmem:[%s1825_s13 + $0x1a4] ss:$8 sps:$4 sm:$0xff]  }
  0x5d   : > { %1028 = vmatpush1.bf16.msra.mxu0 %v1446_v15  ;;  %v1488_v43 = vld [vmem:[%s1825_s13 + $0xa0] ss:$8 sps:$4 sm:$0xff]   ;;  %v1490_v45 = vld [vmem:[%s1825_s13 + $0xb4] ss:$8 sps:$4 sm:$0xff]   ;;  %v1494_v50 = vld [vmem:[%s1825_s13 + $0xb0] ss:$8 sps:$4 sm:$0xff]  }
  0x5e   : > { %1069 = vmatpush1.bf16.msra.mxu1 %v1447_v16  ;;  %1029 = vmatprep.subr.bf16.mxu0 %v1448_v17  ;;  %v1489_v44 = vld [vmem:[%s1825_s13 + $0x1a0] ss:$8 sps:$4 sm:$0xff]   ;;  %v1492_v46 = vld [vmem:[%s1825_s13 + $0x1b4] ss:$8 sps:$4 sm:$0xff]   ;;  %v1495_v51 = vld [vmem:[%s1825_s13 + $0x1b0] ss:$8 sps:$4 sm:$0xff]  }
  0x5f   : > { %1070 = vmatprep.subr.bf16.mxu1 %v1450_v18  ;;  %v621_v47 = vld [vmem:[%s1806_s30] sm:$0xff]  ;;  %v622_v49 = vld [vmem:[%s1806_s30 + $0x8] sm:$0xff]  ;;  %v1496_v53 = vld [vmem:[%s1825_s13 + $0xc4] ss:$8 sps:$4 sm:$0xff]   ;;  %p1363_p13 = scmp.ne.s32.totalorder %s1562_s17, 8 }
  0x60   : > { %v1296_v48 = vcombine.high %v621_v47, %v621_v47  ;;  %v1298_v52 = vcombine.high %v622_v49, %v622_v49  ;;  %v1498_v54 = vld [vmem:[%s1825_s13 + $0x1c4] ss:$8 sps:$4 sm:$0xff]   ;;  %v1500_v55 = vld [vmem:[%s1825_s13 + $0xc0] ss:$8 sps:$4 sm:$0xff]   ;;  %v1502_v57 = vld [vmem:[%s1825_s13 + $0xd4] ss:$8 sps:$4 sm:$0xff]   ;;  %v1295_v5 = vcombine.low %v621_v47, %v621_v47  ;;  %v1297_v6 = vcombine.low %v622_v49, %v622_v49 }
  0x61   : > { %1030 = vmatpush1.bf16.msra.mxu0 %v1452_v19  ;;  %v1501_v56 = vld [vmem:[%s1825_s13 + $0x1c0] ss:$8 sps:$4 sm:$0xff]   ;;  %v1504_v58 = vld [vmem:[%s1825_s13 + $0x1d4] ss:$8 sps:$4 sm:$0xff]   ;;  %v1506_v59 = vld [vmem:[%s1825_s13 + $0xd0] ss:$8 sps:$4 sm:$0xff]  }
  0x62   : > { %1071 = vmatpush1.bf16.msra.mxu1 %v1453_v20  ;;  %1031 = vmatprep.subr.bf16.mxu0 %v1454_v21  ;;  %v1507_v60 = vld [vmem:[%s1825_s13 + $0x1d0] ss:$8 sps:$4 sm:$0xff]   ;;  %v1508_v61 = vld [vmem:[%s1825_s13 + $0xe4] ss:$8 sps:$4 sm:$0xff]   ;;  %v1512_v63 = vld [vmem:[%s1825_s13 + $0xe0] ss:$8 sps:$4 sm:$0xff]   ;;  %v1115_v21 = vlaneseq (!%p1363_p13) }
  0x63   : > { %1072 = vmatprep.subr.bf16.mxu1 %v1456_v22  ;;  %1053 = vmatprep.mubr.bf16.mxu0 %v1296_v48  ;;  %v1510_v62 = vld [vmem:[%s1825_s13 + $0x1e4] ss:$8 sps:$4 sm:$0xff]   ;;  %v1513_v0 = vld [vmem:[%s1825_s13 + $0x1e0] ss:$8 sps:$4 sm:$0xff]   ;;  %v1514_v1 = vld [vmem:[%s1825_s13 + $0xf4] ss:$8 sps:$4 sm:$0xff]  }
  0x64   : > { %1094 = vmatprep.mubr.bf16.mxu1 %v1298_v52  ;;  %v1516_v2 = vld [vmem:[%s1825_s13 + $0x1f4] ss:$8 sps:$4 sm:$0xff]   ;;  %v1518_v3 = vld [vmem:[%s1825_s13 + $0xf0] ss:$8 sps:$4 sm:$0xff]   ;;  %v1116_v22 = vshrl.u32 (!%p1363_p13), %v1115_v21, 7 }
  0x65   : > { %1032 = vmatpush1.bf16.msra.mxu0 %v1458_v23  ;;  %v1519_v4 = vld [vmem:[%s1825_s13 + $0x1f0] ss:$8 sps:$4 sm:$0xff]  }
  0x66   : > { %1073 = vmatpush1.bf16.msra.mxu1 %v1459_v24  ;;  %1033 = vmatprep.subr.bf16.mxu0 %v1460_v25  ;;  %v619_v8 = vld [vmem:[#allocation2] sm:$0xff]  ;;  %v620_v12 = vld [vmem:[#allocation2 + $0x8] sm:$0xff]  ;;  %v1117_v24 = vsub.s32 (!%p1363_p13), 0, %v1116_v22  ;;  %v1121_v25 = vsub.s32 (!%p1363_p13), 1, %v1116_v22 }
  0x67   : > { %1074 = vmatprep.subr.bf16.mxu1 %v1462_v26  ;;  %v1113_v23 = vld [vmem:[%s591_s15] sm:$0x3] (!%p1363_p13) }
  0x69   : > { %1034 = vmatpush1.bf16.msra.mxu0 %v1464_v27 }
  0x6a   : > { %1075 = vmatpush1.bf16.msra.mxu1 %v1465_v28  ;;  %1035 = vmatprep.subr.bf16.mxu0 %v1466_v29  ;;  %v1118_v28 = vrot.slane (!%p1363_p13), %v1113_v23, %v1117_v24  ;;  %v1122_v29 = vrot.slane (!%p1363_p13), %v1113_v23, %v1121_v25 }
  0x6b   : > { %1076 = vmatprep.subr.bf16.mxu1 %v1468_v30  ;;  %v1127_v30 = vld [vmem:[%s1818_s18] sm:$0xff] (!%p1363_p13) }
  0x6d   : > { %1036 = vmatpush1.bf16.msra.mxu0 %v1470_v31  ;;  %v1128_v31 = vld [vmem:[%s1818_s18 + $0x8] sm:$0xff] (!%p1363_p13) }
  0x6e   : > { %1077 = vmatpush1.bf16.msra.mxu1 %v1471_v32  ;;  %1037 = vmatprep.subr.bf16.mxu0 %v1472_v33 }
  0x6f   : > { %1078 = vmatprep.subr.bf16.mxu1 %v1474_v34 }
  0x71   : > { %1038 = vmatpush1.bf16.msra.mxu0 %v1476_v35 }
  0x72   : > { %1079 = vmatpush1.bf16.msra.mxu1 %v1477_v36  ;;  %1039 = vmatprep.subr.bf16.mxu0 %v1478_v37 }
  0x73   : > { %1080 = vmatprep.subr.bf16.mxu1 %v1480_v38 }
  0x75   : > { %1040 = vmatpush1.bf16.msra.mxu0 %v1482_v39 }
  0x76   : > { %1081 = vmatpush1.bf16.msra.mxu1 %v1483_v40  ;;  %1041 = vmatprep.subr.bf16.mxu0 %v1484_v41 }
  0x77   : > { %1082 = vmatprep.subr.bf16.mxu1 %v1486_v42 }
  0x79   : > { %1042 = vmatpush1.bf16.msra.mxu0 %v1488_v43 }
  0x7a   : > { %1083 = vmatpush1.bf16.msra.mxu1 %v1489_v44  ;;  %1043 = vmatprep.subr.bf16.mxu0 %v1490_v45 }
  0x7b   : > { %1084 = vmatprep.subr.bf16.mxu1 %v1492_v46 }
  0x7d   : > { %1044 = vmatpush1.bf16.msra.mxu0 %v1494_v50 }
  0x7e   : > { %1085 = vmatpush1.bf16.msra.mxu1 %v1495_v51  ;;  %1045 = vmatprep.subr.bf16.mxu0 %v1496_v53 }
  0x7f   : > { %1086 = vmatprep.subr.bf16.mxu1 %v1498_v54 }
  0x81   : > { %1046 = vmatpush1.bf16.msra.mxu0 %v1500_v55 }
  0x82   : > { %1087 = vmatpush1.bf16.msra.mxu1 %v1501_v56  ;;  %1047 = vmatprep.subr.bf16.mxu0 %v1502_v57 }
  0x83   : > { %1088 = vmatprep.subr.bf16.mxu1 %v1504_v58 }
  0x85   : > { %1048 = vmatpush1.bf16.msra.mxu0 %v1506_v59 }
  0x86   : > { %1089 = vmatpush1.bf16.msra.mxu1 %v1507_v60  ;;  %1049 = vmatprep.subr.bf16.mxu0 %v1508_v61 }
  0x87   : > { %1090 = vmatprep.subr.bf16.mxu1 %v1510_v62 }
  0x89   : > { %1050 = vmatpush1.bf16.msra.mxu0 %v1512_v63 }
  0x8a   : > { %1091 = vmatpush1.bf16.msra.mxu1 %v1513_v0  ;;  %1051 = vmatprep.subr.bf16.mxu0 %v1514_v1 }
  0x8b   : > { %1092 = vmatprep.subr.bf16.mxu1 %v1516_v2 }
  0x8d   : > { %1052 = vmatpush1.bf16.msra.mxu0 %v1518_v3 }
  0x8e   : > { %1093 = vmatpush1.bf16.msra.mxu1 %v1519_v4 }
  0x90   : > { %1054 = vmatmul.mubr.bf16.vlgmr.msra.gmra.mrb[0].mxu0 %v1295_v5 }
  0x91   : > { %1095 = vmatmul.mubr.bf16.vlgmr.msra.gmra.mrb[0].mxu1 %v1297_v6 }
 0x163   : > { %v1055_v7 = vpop.f32.mrb[0].mxu0 }
 0x164   : > { %v1096_v9 = vpop.f32.mrb[0].mxu1  ;;  %v1057_v11 = vpop.f32.mrb[1].mxu0  ;;  %1110 = sbr.rel (%p1363_p13) target bundleno = 377 (0x179), region = 82 }
 0x165   : > { %v1097_v10 = vadd.f32 %v1096_v9, %v1055_v7  ;;  %v1098_v13 = vpop.f32.mrb[1].mxu1  ;;  %v1059_v15 = vpop.f32.mrb[2].mxu0 }
 0x166   : > { %v1099_v14 = vadd.f32 %v1098_v13, %v1057_v11  ;;  %v1100_v16 = vpop.f32.mrb[2].mxu1  ;;  %v1060_v18 = vpop.f32.mrb[3].mxu0 }
 0x167   : > { %v1103_v17 = vadd.f32 %v1097_v10, %v619_v8  ;;  %v1101_v19 = vpop.f32.mrb[3].mxu1 }
 0x168   : > { %v1104_v20 = vadd.f32 %v1099_v14, %v620_v12 }
 0x169   : > { %1105 = vst [vmem:[#allocation2] sm:$0xff] %v1103_v17 }
 0x16a   : > { %1106 = vst [vmem:[#allocation2 + $0x8] sm:$0xff] %v1104_v20 }
 0x170   : > { %v1111_v26 = vld [vmem:[#allocation2] sm:$0xff] }
 0x171   : > { %v1112_v27 = vld [vmem:[#allocation2 + $0x8] sm:$0xff]  ;;  %v1125_v32 = vadd.f32 %v1118_v28, %v1111_v26 }
 0x172   : > { %v1126_v33 = vadd.f32 %v1122_v29, %v1112_v27 }
 0x173   : > { %v1129_v34 = vadd.f32 %v1127_v30, %v1125_v32 }
 0x174   : > { %v1130_v35 = vadd.f32 %v1128_v31, %v1126_v33 }
 0x175   : > { %v1131_v36 = vmax.f32 %v1129_v34, 0.0 }
 0x176   : > { %v1132_v37 = vmax.f32 %v1130_v35, 0.0 }
 0x177   : > { %1133 = vst [vmem:[%s1823_s12] sm:$0xff] %v1131_v36 }
 0x178   : > { %1134 = vst [vmem:[%s1823_s12 + $0x8] sm:$0xff] %v1132_v37 }
 0x179 PF: > { %s14_s21 = sadd.s32 1, %s1578_s21   ;;  %s1930_s15 = smov %s1558_s16 }
 0x17a   : > { %p11_p0 = scmp.ge.s32.totalorder %s14_s21, 20   ;;  %s1931_s16 = smov %s1657_s28 }
 0x17b   : > { %s1932_s17 = smov %s1570_s19  ;;  %s1933_s18 = smov %s1574_s20 }
 0x17c   : > { %s1934_s19 = smov %s1937_s22  ;;  %s1935_s20 = smov %s1941_s23 }
 0x17d   :  { %13 = sbr.rel (!%p11_p0) target bundleno = 4 (0x4), region = 126 }

// kernel: resnet_forward.43
= control target key start
LH: loop header
LB: loop body
LE: loop exit
PB: predicated region body
PF: predicated region fallthrough
CT: control target
= control target key end

     0   :  { %s1514_s12 = smov 0   ;;  %s1516_s13 = smov 0   ;;  %s1826_s0 = inlined_call_operand.vmem [shape: bf16[8,4608], index: 0, kind: input, shape index: {}]   ;;  %s1827_s1 = inlined_call_operand.vmem [shape: bf16[4608,512], index: 1, kind: input, shape index: {}]   ;;  %s1828_s2 = inlined_call_operand.vmem [shape: f32[1,512], index: 2, kind: input, shape index: {}]   ;;  %s1829_s3 = inlined_call_operand.vmem [shape: f32[8,512], index: 3, kind: output, shape index: {}]  }
   0x1   :  { %s1518_s14 = smov 0   ;;  %s1520_s15 = smov 0  }
   0x2   :  { %s1522_s16 = smov 0   ;;  %s1524_s17 = smov 0  }
   0x3   :  { %s1526_s18 = smov 0  }
   0x4 LB: > { %s25_s19 = sadd.s32 1, %s1483_s16  ;;  %s28_s20 = sadd.s32 1, %s1487_s17  ;;  %s1491_s18 = sphi %s1526_s18, %s13_s18   ;;  %s1487_s17 = sphi %s1524_s17, %s1835_s17   ;;  %s1483_s16 = sphi %s1522_s16, %s1834_s16   ;;  %s1479_s15 = sphi %s1520_s15, %s1833_s15   ;;  %s1475_s14 = sphi %s1518_s14, %s1832_s14   ;;  %s1471_s13 = sphi %s1516_s13, %s1831_s13   ;;  %s1467_s12 = sphi %s1514_s12, %s1830_s12  }
   0x5   : > { %p26_p0 = scmp.ge.s32.totalorder %s25_s19, 9  ;;  %p76_p1 = scmp.ne.s32.totalorder %s1471_s13, %s1467_s12 }
   0x6   : > { %p77_p2 = scmp.eq.s32.totalorder %s1491_s18, 0  ;;  %s69_s24 = sadd.s32 1, %s1471_s13 }
   0x7   : > { %s1837_s19 = smov (%p26_p0, %s25_s19), 0  ;;  %s1839_s20 = smov (!%p26_p0, %s28_s20), %s1487_s17 }
   0x8   : > { %p78_p3 = por %p77_p2, %p76_p1  ;;  %p30_p4 = scmp.ge.s32.totalorder %s1839_s20, 2 }
   0x9   : > { %s64_s21 = ssub.s32 %s1483_s16, %s1837_s19  ;;  %p1194_p6 = scmp.ge.s32.totalorder %s1491_s18, 18 }
   0xa   : > { %s1841_s20 = smov (%p30_p4, %s1839_s20), 0 }
   0xb   : > { %s65_s22 = ssub.s32 %s1487_s17, %s1841_s20  ;;  %156 = sbr.rel (%p1194_p6) target bundleno = 57 (0x39), region = 16 }
   0xc   : > { %s66_s23 = sor.u32 %s65_s22, %s64_s21 }
   0xd   : > { %p67_p5 = scmp.eq.s32.totalorder %s66_s23, 0 }
   0xf   : > { %s1565_s25 = scalar_select %p67_p5, %s1471_s13, %s69_s24  }
  0x12   : > { %172 = sbr.rel (!%p78_p3) target bundleno = 57 (0x39), region = 24  ;;  %s174_s26 = sand.u32 (%p78_p3), 1, %s1471_s13  }
  0x13   : > { %s1197_s27 = sshll.u32 (%p78_p3), %s1487_s17, 1  ;;  %s1195_s28 = sshll.u32 (%p78_p3), %s174_s26, 9 }
  0x14   : > { %s1279_s29 = sshll.u32 (%p78_p3), %s1483_s16, 8  ;;  %s1579_s8 = scalar_lea.vmem (%p78_p3), [#allocation3], %s1195_s28 }
  0x15   : > { %s180_s30 = sadd.s32 (%p78_p3), %s1279_s29, %s1197_s27 }
  0x16   : > { %s1199_s4 = sshll.u32 (%p78_p3), %s180_s30, 2 }
  0x17   : > { %s1574_s7 = scalar_lea.vmem (%p78_p3), %s1827_s1, %s1199_s4 }
  0x18   : > { %v336_v0 = vld [vmem:[%s1574_s7] sm:$0xff] (%p78_p3)  ;;  %v338_v1 = vld [vmem:[%s1574_s7 + $0x10] sm:$0xff] (%p78_p3) }
  0x19   : > { %v340_v2 = vld [vmem:[%s1574_s7 + $0x20] sm:$0xff]  ;;  %337 = vst [vmem:[%s1579_s8] sm:$0xff] %v336_v0  ;;  %339 = vst [vmem:[%s1579_s8 + $0x8] sm:$0xff] %v338_v1  ;;  %v342_v3 = vld [vmem:[%s1574_s7 + $0x30] sm:$0xff] }
  0x1a   : > { %341 = vst [vmem:[%s1579_s8 + $0x10] sm:$0xff] %v340_v2  ;;  %v344_v4 = vld [vmem:[%s1574_s7 + $0x40] sm:$0xff]  ;;  %v346_v5 = vld [vmem:[%s1574_s7 + $0x50] sm:$0xff]  ;;  %343 = vst [vmem:[%s1579_s8 + $0x18] sm:$0xff] %v342_v3 }
  0x1b   : > { %345 = vst [vmem:[%s1579_s8 + $0x20] sm:$0xff] %v344_v4  ;;  %347 = vst [vmem:[%s1579_s8 + $0x28] sm:$0xff] %v346_v5  ;;  %v348_v6 = vld [vmem:[%s1574_s7 + $0x60] sm:$0xff]  ;;  %v350_v7 = vld [vmem:[%s1574_s7 + $0x70] sm:$0xff] }
  0x1c   : > { %v352_v8 = vld [vmem:[%s1574_s7 + $0x80] sm:$0xff]  ;;  %349 = vst [vmem:[%s1579_s8 + $0x30] sm:$0xff] %v348_v6  ;;  %351 = vst [vmem:[%s1579_s8 + $0x38] sm:$0xff] %v350_v7  ;;  %v354_v9 = vld [vmem:[%s1574_s7 + $0x90] sm:$0xff] }
  0x1d   : > { %353 = vst [vmem:[%s1579_s8 + $0x40] sm:$0xff] %v352_v8  ;;  %v356_v10 = vld [vmem:[%s1574_s7 + $0xa0] sm:$0xff]  ;;  %v358_v11 = vld [vmem:[%s1574_s7 + $0xb0] sm:$0xff]  ;;  %355 = vst [vmem:[%s1579_s8 + $0x48] sm:$0xff] %v354_v9 }
  0x1e   : > { %357 = vst [vmem:[%s1579_s8 + $0x50] sm:$0xff] %v356_v10  ;;  %359 = vst [vmem:[%s1579_s8 + $0x58] sm:$0xff] %v358_v11  ;;  %v360_v12 = vld [vmem:[%s1574_s7 + $0xc0] sm:$0xff]  ;;  %v362_v13 = vld [vmem:[%s1574_s7 + $0xd0] sm:$0xff] }
  0x1f   : > { %v364_v14 = vld [vmem:[%s1574_s7 + $0xe0] sm:$0xff]  ;;  %361 = vst [vmem:[%s1579_s8 + $0x60] sm:$0xff] %v360_v12  ;;  %363 = vst [vmem:[%s1579_s8 + $0x68] sm:$0xff] %v362_v13  ;;  %v366_v15 = vld [vmem:[%s1574_s7 + $0xf0] sm:$0xff] }
  0x20   : > { %365 = vst [vmem:[%s1579_s8 + $0x70] sm:$0xff] %v364_v14  ;;  %v368_v16 = vld [vmem:[%s1574_s7 + $0x100] sm:$0xff]  ;;  %v370_v17 = vld [vmem:[%s1574_s7 + $0x110] sm:$0xff]  ;;  %367 = vst [vmem:[%s1579_s8 + $0x78] sm:$0xff] %v366_v15 }
  0x21   : > { %369 = vst [vmem:[%s1579_s8 + $0x80] sm:$0xff] %v368_v16  ;;  %371 = vst [vmem:[%s1579_s8 + $0x88] sm:$0xff] %v370_v17  ;;  %v372_v18 = vld [vmem:[%s1574_s7 + $0x120] sm:$0xff]  ;;  %v374_v19 = vld [vmem:[%s1574_s7 + $0x130] sm:$0xff] }
  0x22   : > { %v376_v20 = vld [vmem:[%s1574_s7 + $0x140] sm:$0xff]  ;;  %373 = vst [vmem:[%s1579_s8 + $0x90] sm:$0xff] %v372_v18  ;;  %375 = vst [vmem:[%s1579_s8 + $0x98] sm:$0xff] %v374_v19  ;;  %v378_v21 = vld [vmem:[%s1574_s7 + $0x150] sm:$0xff] }
  0x23   : > { %377 = vst [vmem:[%s1579_s8 + $0xa0] sm:$0xff] %v376_v20  ;;  %v380_v22 = vld [vmem:[%s1574_s7 + $0x160] sm:$0xff]  ;;  %v382_v23 = vld [vmem:[%s1574_s7 + $0x170] sm:$0xff]  ;;  %379 = vst [vmem:[%s1579_s8 + $0xa8] sm:$0xff] %v378_v21 }
  0x24   : > { %381 = vst [vmem:[%s1579_s8 + $0xb0] sm:$0xff] %v380_v22  ;;  %383 = vst [vmem:[%s1579_s8 + $0xb8] sm:$0xff] %v382_v23  ;;  %v384_v24 = vld [vmem:[%s1574_s7 + $0x180] sm:$0xff]  ;;  %v386_v25 = vld [vmem:[%s1574_s7 + $0x190] sm:$0xff] }
  0x25   : > { %v388_v26 = vld [vmem:[%s1574_s7 + $0x1a0] sm:$0xff]  ;;  %385 = vst [vmem:[%s1579_s8 + $0xc0] sm:$0xff] %v384_v24  ;;  %387 = vst [vmem:[%s1579_s8 + $0xc8] sm:$0xff] %v386_v25  ;;  %v390_v27 = vld [vmem:[%s1574_s7 + $0x1b0] sm:$0xff] }
  0x26   : > { %389 = vst [vmem:[%s1579_s8 + $0xd0] sm:$0xff] %v388_v26  ;;  %v392_v28 = vld [vmem:[%s1574_s7 + $0x1c0] sm:$0xff]  ;;  %v394_v29 = vld [vmem:[%s1574_s7 + $0x1d0] sm:$0xff]  ;;  %391 = vst [vmem:[%s1579_s8 + $0xd8] sm:$0xff] %v390_v27 }
  0x27   : > { %393 = vst [vmem:[%s1579_s8 + $0xe0] sm:$0xff] %v392_v28  ;;  %395 = vst [vmem:[%s1579_s8 + $0xe8] sm:$0xff] %v394_v29  ;;  %v396_v30 = vld [vmem:[%s1574_s7 + $0x1e0] sm:$0xff]  ;;  %v398_v31 = vld [vmem:[%s1574_s7 + $0x1f0] sm:$0xff] }
  0x28   : > { %v400_v32 = vld [vmem:[%s1574_s7 + $0x200] sm:$0xff]  ;;  %397 = vst [vmem:[%s1579_s8 + $0xf0] sm:$0xff] %v396_v30  ;;  %399 = vst [vmem:[%s1579_s8 + $0xf8] sm:$0xff] %v398_v31  ;;  %v402_v33 = vld [vmem:[%s1574_s7 + $0x210] sm:$0xff] }
  0x29   : > { %401 = vst [vmem:[%s1579_s8 + $0x100] sm:$0xff] %v400_v32  ;;  %v404_v34 = vld [vmem:[%s1574_s7 + $0x220] sm:$0xff]  ;;  %v406_v35 = vld [vmem:[%s1574_s7 + $0x230] sm:$0xff]  ;;  %403 = vst [vmem:[%s1579_s8 + $0x108] sm:$0xff] %v402_v33 }
  0x2a   : > { %405 = vst [vmem:[%s1579_s8 + $0x110] sm:$0xff] %v404_v34  ;;  %407 = vst [vmem:[%s1579_s8 + $0x118] sm:$0xff] %v406_v35  ;;  %v408_v36 = vld [vmem:[%s1574_s7 + $0x240] sm:$0xff]  ;;  %v410_v37 = vld [vmem:[%s1574_s7 + $0x250] sm:$0xff] }
  0x2b   : > { %v412_v38 = vld [vmem:[%s1574_s7 + $0x260] sm:$0xff]  ;;  %409 = vst [vmem:[%s1579_s8 + $0x120] sm:$0xff] %v408_v36  ;;  %411 = vst [vmem:[%s1579_s8 + $0x128] sm:$0xff] %v410_v37  ;;  %v414_v39 = vld [vmem:[%s1574_s7 + $0x270] sm:$0xff] }
  0x2c   : > { %413 = vst [vmem:[%s1579_s8 + $0x130] sm:$0xff] %v412_v38  ;;  %v416_v40 = vld [vmem:[%s1574_s7 + $0x280] sm:$0xff]  ;;  %v418_v41 = vld [vmem:[%s1574_s7 + $0x290] sm:$0xff]  ;;  %415 = vst [vmem:[%s1579_s8 + $0x138] sm:$0xff] %v414_v39 }
  0x2d   : > { %417 = vst [vmem:[%s1579_s8 + $0x140] sm:$0xff] %v416_v40  ;;  %419 = vst [vmem:[%s1579_s8 + $0x148] sm:$0xff] %v418_v41  ;;  %v420_v42 = vld [vmem:[%s1574_s7 + $0x2a0] sm:$0xff]  ;;  %v422_v43 = vld [vmem:[%s1574_s7 + $0x2b0] sm:$0xff] }
  0x2e   : > { %v424_v44 = vld [vmem:[%s1574_s7 + $0x2c0] sm:$0xff]  ;;  %421 = vst [vmem:[%s1579_s8 + $0x150] sm:$0xff] %v420_v42  ;;  %423 = vst [vmem:[%s1579_s8 + $0x158] sm:$0xff] %v422_v43  ;;  %v426_v45 = vld [vmem:[%s1574_s7 + $0x2d0] sm:$0xff] }
  0x2f   : > { %425 = vst [vmem:[%s1579_s8 + $0x160] sm:$0xff] %v424_v44  ;;  %v428_v46 = vld [vmem:[%s1574_s7 + $0x2e0] sm:$0xff]  ;;  %v430_v47 = vld [vmem:[%s1574_s7 + $0x2f0] sm:$0xff]  ;;  %427 = vst [vmem:[%s1579_s8 + $0x168] sm:$0xff] %v426_v45 }
  0x30   : > { %429 = vst [vmem:[%s1579_s8 + $0x170] sm:$0xff] %v428_v46  ;;  %431 = vst [vmem:[%s1579_s8 + $0x178] sm:$0xff] %v430_v47  ;;  %v432_v48 = vld [vmem:[%s1574_s7 + $0x300] sm:$0xff]  ;;  %v434_v49 = vld [vmem:[%s1574_s7 + $0x310] sm:$0xff] }
  0x31   : > { %v436_v50 = vld [vmem:[%s1574_s7 + $0x320] sm:$0xff]  ;;  %433 = vst [vmem:[%s1579_s8 + $0x180] sm:$0xff] %v432_v48  ;;  %435 = vst [vmem:[%s1579_s8 + $0x188] sm:$0xff] %v434_v49  ;;  %v438_v51 = vld [vmem:[%s1574_s7 + $0x330] sm:$0xff] }
  0x32   : > { %437 = vst [vmem:[%s1579_s8 + $0x190] sm:$0xff] %v436_v50  ;;  %v440_v52 = vld [vmem:[%s1574_s7 + $0x340] sm:$0xff]  ;;  %v442_v53 = vld [vmem:[%s1574_s7 + $0x350] sm:$0xff]  ;;  %439 = vst [vmem:[%s1579_s8 + $0x198] sm:$0xff] %v438_v51 }
  0x33   : > { %441 = vst [vmem:[%s1579_s8 + $0x1a0] sm:$0xff] %v440_v52  ;;  %443 = vst [vmem:[%s1579_s8 + $0x1a8] sm:$0xff] %v442_v53  ;;  %v444_v54 = vld [vmem:[%s1574_s7 + $0x360] sm:$0xff]  ;;  %v446_v55 = vld [vmem:[%s1574_s7 + $0x370] sm:$0xff] }
  0x34   : > { %v448_v56 = vld [vmem:[%s1574_s7 + $0x380] sm:$0xff]  ;;  %445 = vst [vmem:[%s1579_s8 + $0x1b0] sm:$0xff] %v444_v54  ;;  %447 = vst [vmem:[%s1579_s8 + $0x1b8] sm:$0xff] %v446_v55  ;;  %v450_v57 = vld [vmem:[%s1574_s7 + $0x390] sm:$0xff] }
  0x35   : > { %449 = vst [vmem:[%s1579_s8 + $0x1c0] sm:$0xff] %v448_v56  ;;  %v452_v58 = vld [vmem:[%s1574_s7 + $0x3a0] sm:$0xff]  ;;  %v454_v59 = vld [vmem:[%s1574_s7 + $0x3b0] sm:$0xff]  ;;  %451 = vst [vmem:[%s1579_s8 + $0x1c8] sm:$0xff] %v450_v57 }
  0x36   : > { %453 = vst [vmem:[%s1579_s8 + $0x1d0] sm:$0xff] %v452_v58  ;;  %455 = vst [vmem:[%s1579_s8 + $0x1d8] sm:$0xff] %v454_v59  ;;  %v456_v60 = vld [vmem:[%s1574_s7 + $0x3c0] sm:$0xff]  ;;  %v458_v61 = vld [vmem:[%s1574_s7 + $0x3d0] sm:$0xff] }
  0x37   : > { %v460_v62 = vld [vmem:[%s1574_s7 + $0x3e0] sm:$0xff]  ;;  %457 = vst [vmem:[%s1579_s8 + $0x1e0] sm:$0xff] %v456_v60  ;;  %459 = vst [vmem:[%s1579_s8 + $0x1e8] sm:$0xff] %v458_v61  ;;  %v462_v63 = vld [vmem:[%s1574_s7 + $0x3f0] sm:$0xff] }
  0x38   : > { %461 = vst [vmem:[%s1579_s8 + $0x1f0] sm:$0xff] %v460_v62  ;;  %463 = vst [vmem:[%s1579_s8 + $0x1f8] sm:$0xff] %v462_v63 }
  0x39 PF: > { %p1200_p7 = scmp.ge.s32.totalorder %s1491_s18, 1  ;;  %p476_p8 = scmp.lt.s32.totalorder %s1491_s18, 19 }
  0x3b   : > { %p477_p9 = pnand %p1200_p7, %p476_p8 }
  0x3c   : > { %s483_s9 = sand.u32 (!%p477_p9), 1, %s1467_s12   ;;  %s1202_s10 = sshll.u32 (!%p477_p9), %s1475_s14, 2 }
  0x3d   : > { %480 = sbr.rel (%p477_p9) target bundleno = 374 (0x176), region = 66  ;;  %s1201_s11 = sshll.u32 (!%p477_p9), %s483_s9, 9 }
  0x3e   : > { %p526_p10 = scmp.lt.s32.totalorder (!%p477_p9), %s1202_s10, 35  ;;  %s1204_s21 = sshll.u32 (!%p477_p9), %s1479_s15, 1 }
  0x3f   : > { %p536_p11 = scmp.lt.s32.totalorder (!%p477_p9), %s1204_s21, 3  ;;  %s1728_s5 = scalar_lea.vmem (!%p477_p9), [#allocation3], %s1201_s11 }
  0x40   : > { %p1207_p12 = scmp.ne.s32.totalorder (!%p477_p9), %s1475_s14, 0 }
  0x44   : > { %s1843_s10 = smov (!%p526_p10, %s1202_s10), 35  ;;  %s1845_s21 = smov (!%p536_p11, %s1204_s21), 3 }
  0x45   : > { %s1203_s22 = sshll.u32 %s1843_s10, 2  ;;  %s538_s12 = scalar_lea.vmem %s1828_s2, %s1845_s21  ;;  %v1493_v0 = vmov (!%p1207_p12), 0.0  }
  0x46   : > { %s1714_s26 = scalar_lea.vmem %s1826_s0, %s1203_s22  ;;  %s1206_s29 = sshll.u32 %s1845_s21, 3  ;;  %554 = vst [vmem:[#allocation2] sm:$0xff] (!%p1207_p12), %v1493_v0  ;;  %555 = vst [vmem:[#allocation2 + $0x8] sm:$0xff] (!%p1207_p12), %v1493_v0 }
  0x47   : > { %s1726_s15 = scalar_lea.vmem %s1829_s3, %s1206_s29  ;;  %553 = sbr.rel (%p1207_p12) target bundleno = 78 (0x4e), region = 74 }
  0x4e PF: > { %v1337_v1 = vld [vmem:[%s1728_s5 + $0x4] ss:$8 sps:$4 sm:$0xff]   ;;  %v1341_v3 = vld [vmem:[%s1728_s5] ss:$8 sps:$4 sm:$0xff]   ;;  %v1343_v5 = vld [vmem:[%s1728_s5 + $0x14] ss:$8 sps:$4 sm:$0xff]  }
  0x4f   : > { %v1339_v2 = vld [vmem:[%s1728_s5 + $0x104] ss:$8 sps:$4 sm:$0xff]   ;;  %958 = vmatprep.subr.bf16.mxu0 %v1337_v1  ;;  %v1342_v4 = vld [vmem:[%s1728_s5 + $0x100] ss:$8 sps:$4 sm:$0xff]   ;;  %v1345_v6 = vld [vmem:[%s1728_s5 + $0x114] ss:$8 sps:$4 sm:$0xff]  }
  0x50   : > { %999 = vmatprep.subr.bf16.mxu1 %v1339_v2  ;;  %959 = vmatpush1.bf16.msra.mxu0 %v1341_v3  ;;  %v1347_v7 = vld [vmem:[%s1728_s5 + $0x10] ss:$8 sps:$4 sm:$0xff]   ;;  %v1349_v9 = vld [vmem:[%s1728_s5 + $0x24] ss:$8 sps:$4 sm:$0xff]   ;;  %v1353_v11 = vld [vmem:[%s1728_s5 + $0x20] ss:$8 sps:$4 sm:$0xff]  }
  0x51   : > { %1000 = vmatpush1.bf16.msra.mxu1 %v1342_v4  ;;  %960 = vmatprep.subr.bf16.mxu0 %v1343_v5  ;;  %v1348_v8 = vld [vmem:[%s1728_s5 + $0x110] ss:$8 sps:$4 sm:$0xff]   ;;  %v1351_v10 = vld [vmem:[%s1728_s5 + $0x124] ss:$8 sps:$4 sm:$0xff]   ;;  %v1354_v12 = vld [vmem:[%s1728_s5 + $0x120] ss:$8 sps:$4 sm:$0xff]  }
  0x52   : > { %1001 = vmatprep.subr.bf16.mxu1 %v1345_v6  ;;  %v1355_v13 = vld [vmem:[%s1728_s5 + $0x34] ss:$8 sps:$4 sm:$0xff]   ;;  %v1359_v15 = vld [vmem:[%s1728_s5 + $0x30] ss:$8 sps:$4 sm:$0xff]   ;;  %v1361_v17 = vld [vmem:[%s1728_s5 + $0x44] ss:$8 sps:$4 sm:$0xff]  }
  0x53   : > { %v1357_v14 = vld [vmem:[%s1728_s5 + $0x134] ss:$8 sps:$4 sm:$0xff]   ;;  %v1360_v16 = vld [vmem:[%s1728_s5 + $0x130] ss:$8 sps:$4 sm:$0xff]   ;;  %v1363_v18 = vld [vmem:[%s1728_s5 + $0x144] ss:$8 sps:$4 sm:$0xff]  }
  0x54   : > { %961 = vmatpush1.bf16.msra.mxu0 %v1347_v7  ;;  %v1365_v19 = vld [vmem:[%s1728_s5 + $0x40] ss:$8 sps:$4 sm:$0xff]   ;;  %v1367_v21 = vld [vmem:[%s1728_s5 + $0x54] ss:$8 sps:$4 sm:$0xff]   ;;  %v1371_v23 = vld [vmem:[%s1728_s5 + $0x50] ss:$8 sps:$4 sm:$0xff]  }
  0x55   : > { %1002 = vmatpush1.bf16.msra.mxu1 %v1348_v8  ;;  %962 = vmatprep.subr.bf16.mxu0 %v1349_v9  ;;  %v1366_v20 = vld [vmem:[%s1728_s5 + $0x140] ss:$8 sps:$4 sm:$0xff]   ;;  %v1369_v22 = vld [vmem:[%s1728_s5 + $0x154] ss:$8 sps:$4 sm:$0xff]   ;;  %v1372_v24 = vld [vmem:[%s1728_s5 + $0x150] ss:$8 sps:$4 sm:$0xff]  }
  0x56   : > { %1003 = vmatprep.subr.bf16.mxu1 %v1351_v10  ;;  %v1373_v25 = vld [vmem:[%s1728_s5 + $0x64] ss:$8 sps:$4 sm:$0xff]   ;;  %v1377_v27 = vld [vmem:[%s1728_s5 + $0x60] ss:$8 sps:$4 sm:$0xff]   ;;  %v1379_v29 = vld [vmem:[%s1728_s5 + $0x74] ss:$8 sps:$4 sm:$0xff]  }
  0x57   : > { %v1375_v26 = vld [vmem:[%s1728_s5 + $0x164] ss:$8 sps:$4 sm:$0xff]   ;;  %v1378_v28 = vld [vmem:[%s1728_s5 + $0x160] ss:$8 sps:$4 sm:$0xff]   ;;  %v1381_v30 = vld [vmem:[%s1728_s5 + $0x174] ss:$8 sps:$4 sm:$0xff]  }
  0x58   : > { %963 = vmatpush1.bf16.msra.mxu0 %v1353_v11  ;;  %v1383_v31 = vld [vmem:[%s1728_s5 + $0x70] ss:$8 sps:$4 sm:$0xff]   ;;  %v1385_v33 = vld [vmem:[%s1728_s5 + $0x84] ss:$8 sps:$4 sm:$0xff]   ;;  %v1389_v35 = vld [vmem:[%s1728_s5 + $0x80] ss:$8 sps:$4 sm:$0xff]  }
  0x59   : > { %1004 = vmatpush1.bf16.msra.mxu1 %v1354_v12  ;;  %964 = vmatprep.subr.bf16.mxu0 %v1355_v13  ;;  %v1384_v32 = vld [vmem:[%s1728_s5 + $0x170] ss:$8 sps:$4 sm:$0xff]   ;;  %v1387_v34 = vld [vmem:[%s1728_s5 + $0x184] ss:$8 sps:$4 sm:$0xff]   ;;  %v1390_v36 = vld [vmem:[%s1728_s5 + $0x180] ss:$8 sps:$4 sm:$0xff]  }
  0x5a   : > { %1005 = vmatprep.subr.bf16.mxu1 %v1357_v14  ;;  %v1391_v37 = vld [vmem:[%s1728_s5 + $0x94] ss:$8 sps:$4 sm:$0xff]   ;;  %v1395_v39 = vld [vmem:[%s1728_s5 + $0x90] ss:$8 sps:$4 sm:$0xff]   ;;  %v1397_v41 = vld [vmem:[%s1728_s5 + $0xa4] ss:$8 sps:$4 sm:$0xff]  }
  0x5b   : > { %v1393_v38 = vld [vmem:[%s1728_s5 + $0x194] ss:$8 sps:$4 sm:$0xff]   ;;  %v1396_v40 = vld [vmem:[%s1728_s5 + $0x190] ss:$8 sps:$4 sm:$0xff]   ;;  %v1399_v42 = vld [vmem:[%s1728_s5 + $0x1a4] ss:$8 sps:$4 sm:$0xff]  }
  0x5c   : > { %965 = vmatpush1.bf16.msra.mxu0 %v1359_v15  ;;  %v1401_v43 = vld [vmem:[%s1728_s5 + $0xa0] ss:$8 sps:$4 sm:$0xff]   ;;  %v1403_v45 = vld [vmem:[%s1728_s5 + $0xb4] ss:$8 sps:$4 sm:$0xff]   ;;  %v1407_v50 = vld [vmem:[%s1728_s5 + $0xb0] ss:$8 sps:$4 sm:$0xff]  }
  0x5d   : > { %1006 = vmatpush1.bf16.msra.mxu1 %v1360_v16  ;;  %966 = vmatprep.subr.bf16.mxu0 %v1361_v17  ;;  %v1402_v44 = vld [vmem:[%s1728_s5 + $0x1a0] ss:$8 sps:$4 sm:$0xff]   ;;  %v1405_v46 = vld [vmem:[%s1728_s5 + $0x1b4] ss:$8 sps:$4 sm:$0xff]   ;;  %v1408_v51 = vld [vmem:[%s1728_s5 + $0x1b0] ss:$8 sps:$4 sm:$0xff]  }
  0x5e   : > { %1007 = vmatprep.subr.bf16.mxu1 %v1363_v18  ;;  %v558_v47 = vld [vmem:[%s1714_s26] sm:$0xff]  ;;  %v559_v49 = vld [vmem:[%s1714_s26 + $0x8] sm:$0xff]  ;;  %v1409_v53 = vld [vmem:[%s1728_s5 + $0xc4] ss:$8 sps:$4 sm:$0xff]   ;;  %p1276_p13 = scmp.ne.s32.totalorder %s1475_s14, 8 }
  0x5f   : > { %v1209_v48 = vcombine.high %v558_v47, %v558_v47  ;;  %v1211_v52 = vcombine.high %v559_v49, %v559_v49  ;;  %v1411_v54 = vld [vmem:[%s1728_s5 + $0x1c4] ss:$8 sps:$4 sm:$0xff]   ;;  %v1413_v55 = vld [vmem:[%s1728_s5 + $0xc0] ss:$8 sps:$4 sm:$0xff]   ;;  %v1415_v57 = vld [vmem:[%s1728_s5 + $0xd4] ss:$8 sps:$4 sm:$0xff]   ;;  %v1208_v5 = vcombine.low %v558_v47, %v558_v47  ;;  %v1210_v6 = vcombine.low %v559_v49, %v559_v49 }
  0x60   : > { %967 = vmatpush1.bf16.msra.mxu0 %v1365_v19  ;;  %v1414_v56 = vld [vmem:[%s1728_s5 + $0x1c0] ss:$8 sps:$4 sm:$0xff]   ;;  %v1417_v58 = vld [vmem:[%s1728_s5 + $0x1d4] ss:$8 sps:$4 sm:$0xff]   ;;  %v1419_v59 = vld [vmem:[%s1728_s5 + $0xd0] ss:$8 sps:$4 sm:$0xff]  }
  0x61   : > { %1008 = vmatpush1.bf16.msra.mxu1 %v1366_v20  ;;  %968 = vmatprep.subr.bf16.mxu0 %v1367_v21  ;;  %v1420_v60 = vld [vmem:[%s1728_s5 + $0x1d0] ss:$8 sps:$4 sm:$0xff]   ;;  %v1421_v61 = vld [vmem:[%s1728_s5 + $0xe4] ss:$8 sps:$4 sm:$0xff]   ;;  %v1425_v63 = vld [vmem:[%s1728_s5 + $0xe0] ss:$8 sps:$4 sm:$0xff]   ;;  %v1052_v21 = vlaneseq (!%p1276_p13) }
  0x62   : > { %1009 = vmatprep.subr.bf16.mxu1 %v1369_v22  ;;  %990 = vmatprep.mubr.bf16.mxu0 %v1209_v48  ;;  %v1423_v62 = vld [vmem:[%s1728_s5 + $0x1e4] ss:$8 sps:$4 sm:$0xff]   ;;  %v1426_v0 = vld [vmem:[%s1728_s5 + $0x1e0] ss:$8 sps:$4 sm:$0xff]   ;;  %v1427_v1 = vld [vmem:[%s1728_s5 + $0xf4] ss:$8 sps:$4 sm:$0xff]  }
  0x63   : > { %1031 = vmatprep.mubr.bf16.mxu1 %v1211_v52  ;;  %v1429_v2 = vld [vmem:[%s1728_s5 + $0x1f4] ss:$8 sps:$4 sm:$0xff]   ;;  %v1431_v3 = vld [vmem:[%s1728_s5 + $0xf0] ss:$8 sps:$4 sm:$0xff]   ;;  %v1053_v22 = vshrl.u32 (!%p1276_p13), %v1052_v21, 7 }
  0x64   : > { %969 = vmatpush1.bf16.msra.mxu0 %v1371_v23  ;;  %v1432_v4 = vld [vmem:[%s1728_s5 + $0x1f0] ss:$8 sps:$4 sm:$0xff]  }
  0x65   : > { %1010 = vmatpush1.bf16.msra.mxu1 %v1372_v24  ;;  %970 = vmatprep.subr.bf16.mxu0 %v1373_v25  ;;  %v556_v8 = vld [vmem:[#allocation2] sm:$0xff]  ;;  %v557_v12 = vld [vmem:[#allocation2 + $0x8] sm:$0xff]  ;;  %v1054_v24 = vsub.s32 (!%p1276_p13), 0, %v1053_v22  ;;  %v1058_v25 = vsub.s32 (!%p1276_p13), 1, %v1053_v22 }
  0x66   : > { %1011 = vmatprep.subr.bf16.mxu1 %v1375_v26  ;;  %v1050_v23 = vld [vmem:[%s538_s12] sm:$0x3] (!%p1276_p13) }
  0x68   : > { %971 = vmatpush1.bf16.msra.mxu0 %v1377_v27 }
  0x69   : > { %1012 = vmatpush1.bf16.msra.mxu1 %v1378_v28  ;;  %972 = vmatprep.subr.bf16.mxu0 %v1379_v29  ;;  %v1055_v28 = vrot.slane (!%p1276_p13), %v1050_v23, %v1054_v24  ;;  %v1059_v29 = vrot.slane (!%p1276_p13), %v1050_v23, %v1058_v25 }
  0x6a   : > { %1013 = vmatprep.subr.bf16.mxu1 %v1381_v30 }
  0x6c   : > { %973 = vmatpush1.bf16.msra.mxu0 %v1383_v31 }
  0x6d   : > { %1014 = vmatpush1.bf16.msra.mxu1 %v1384_v32  ;;  %974 = vmatprep.subr.bf16.mxu0 %v1385_v33 }
  0x6e   : > { %1015 = vmatprep.subr.bf16.mxu1 %v1387_v34 }
  0x70   : > { %975 = vmatpush1.bf16.msra.mxu0 %v1389_v35 }
  0x71   : > { %1016 = vmatpush1.bf16.msra.mxu1 %v1390_v36  ;;  %976 = vmatprep.subr.bf16.mxu0 %v1391_v37 }
  0x72   : > { %1017 = vmatprep.subr.bf16.mxu1 %v1393_v38 }
  0x74   : > { %977 = vmatpush1.bf16.msra.mxu0 %v1395_v39 }
  0x75   : > { %1018 = vmatpush1.bf16.msra.mxu1 %v1396_v40  ;;  %978 = vmatprep.subr.bf16.mxu0 %v1397_v41 }
  0x76   : > { %1019 = vmatprep.subr.bf16.mxu1 %v1399_v42 }
  0x78   : > { %979 = vmatpush1.bf16.msra.mxu0 %v1401_v43 }
  0x79   : > { %1020 = vmatpush1.bf16.msra.mxu1 %v1402_v44  ;;  %980 = vmatprep.subr.bf16.mxu0 %v1403_v45 }
  0x7a   : > { %1021 = vmatprep.subr.bf16.mxu1 %v1405_v46 }
  0x7c   : > { %981 = vmatpush1.bf16.msra.mxu0 %v1407_v50 }
  0x7d   : > { %1022 = vmatpush1.bf16.msra.mxu1 %v1408_v51  ;;  %982 = vmatprep.subr.bf16.mxu0 %v1409_v53 }
  0x7e   : > { %1023 = vmatprep.subr.bf16.mxu1 %v1411_v54 }
  0x80   : > { %983 = vmatpush1.bf16.msra.mxu0 %v1413_v55 }
  0x81   : > { %1024 = vmatpush1.bf16.msra.mxu1 %v1414_v56  ;;  %984 = vmatprep.subr.bf16.mxu0 %v1415_v57 }
  0x82   : > { %1025 = vmatprep.subr.bf16.mxu1 %v1417_v58 }
  0x84   : > { %985 = vmatpush1.bf16.msra.mxu0 %v1419_v59 }
  0x85   : > { %1026 = vmatpush1.bf16.msra.mxu1 %v1420_v60  ;;  %986 = vmatprep.subr.bf16.mxu0 %v1421_v61 }
  0x86   : > { %1027 = vmatprep.subr.bf16.mxu1 %v1423_v62 }
  0x88   : > { %987 = vmatpush1.bf16.msra.mxu0 %v1425_v63 }
  0x89   : > { %1028 = vmatpush1.bf16.msra.mxu1 %v1426_v0  ;;  %988 = vmatprep.subr.bf16.mxu0 %v1427_v1 }
  0x8a   : > { %1029 = vmatprep.subr.bf16.mxu1 %v1429_v2 }
  0x8c   : > { %989 = vmatpush1.bf16.msra.mxu0 %v1431_v3 }
  0x8d   : > { %1030 = vmatpush1.bf16.msra.mxu1 %v1432_v4 }
  0x8f   : > { %991 = vmatmul.mubr.bf16.vlgmr.msra.gmra.mrb[0].mxu0 %v1208_v5 }
  0x90   : > { %1032 = vmatmul.mubr.bf16.vlgmr.msra.gmra.mrb[0].mxu1 %v1210_v6 }
 0x162   : > { %v992_v7 = vpop.f32.mrb[0].mxu0 }
 0x163   : > { %v1033_v9 = vpop.f32.mrb[0].mxu1  ;;  %v994_v11 = vpop.f32.mrb[1].mxu0  ;;  %1047 = sbr.rel (%p1276_p13) target bundleno = 374 (0x176), region = 78 }
 0x164   : > { %v1034_v10 = vadd.f32 %v1033_v9, %v992_v7  ;;  %v1035_v13 = vpop.f32.mrb[1].mxu1  ;;  %v996_v15 = vpop.f32.mrb[2].mxu0 }
 0x165   : > { %v1036_v14 = vadd.f32 %v1035_v13, %v994_v11  ;;  %v1037_v16 = vpop.f32.mrb[2].mxu1  ;;  %v997_v18 = vpop.f32.mrb[3].mxu0 }
 0x166   : > { %v1040_v17 = vadd.f32 %v1034_v10, %v556_v8  ;;  %v1038_v19 = vpop.f32.mrb[3].mxu1 }
 0x167   : > { %v1041_v20 = vadd.f32 %v1036_v14, %v557_v12 }
 0x168   : > { %1042 = vst [vmem:[#allocation2] sm:$0xff] %v1040_v17 }
 0x169   : > { %1043 = vst [vmem:[#allocation2 + $0x8] sm:$0xff] %v1041_v20 }
 0x16f   : > { %v1048_v26 = vld [vmem:[#allocation2] sm:$0xff] }
 0x170   : > { %v1049_v27 = vld [vmem:[#allocation2 + $0x8] sm:$0xff]  ;;  %v1062_v30 = vadd.f32 %v1055_v28, %v1048_v26 }
 0x171   : > { %v1063_v31 = vadd.f32 %v1059_v29, %v1049_v27 }
 0x172   : > { %v1064_v32 = vmax.f32 %v1062_v30, 0.0 }
 0x173   : > { %v1065_v33 = vmax.f32 %v1063_v31, 0.0 }
 0x174   : > { %1066 = vst [vmem:[%s1726_s15] sm:$0xff] %v1064_v32 }
 0x175   : > { %1067 = vst [vmem:[%s1726_s15 + $0x8] sm:$0xff] %v1065_v33 }
 0x176 PF: > { %s13_s18 = sadd.s32 1, %s1491_s18   ;;  %s1830_s12 = smov %s1471_s13 }
 0x177   : > { %p10_p0 = scmp.ge.s32.totalorder %s13_s18, 20   ;;  %s1831_s13 = smov %s1565_s25 }
 0x178   : > { %s1832_s14 = smov %s1483_s16  ;;  %s1833_s15 = smov %s1487_s17 }
 0x179   : > { %s1834_s16 = smov %s1837_s19  ;;  %s1835_s17 = smov %s1841_s20 }
 0x17a   :  { %12 = sbr.rel (!%p10_p0) target bundleno = 4 (0x4), region = 119 }

// kernel: resnet_forward.45
= control target key start
LH: loop header
LB: loop body
LE: loop exit
PB: predicated region body
PF: predicated region fallthrough
CT: control target
= control target key end

     0   :  { %v126_v3 = vmov 1983009808   ;;  %v77_v11 = vlaneseq  ;;  %vm111_vm0 = vcmask 1041409   ;;  %vm113_vm1 = vcmask 1043459   ;;  %s164_s0 = inlined_call_operand.vmem [shape: f32[2,8,512], index: 0, kind: input, shape index: {}]   ;;  %s165_s1 = inlined_call_operand.vmem [shape: f32[2,512], index: 1, kind: output, shape index: {}]  }
   0x1   :  { %v8_v0 = vld [vmem:[%s164_s0] sm:$0xff]  ;;  %v9_v1 = vld [vmem:[%s164_s0 + $0x8] sm:$0xff]  ;;  %v10_v2 = vld [vmem:[%s164_s0 + $0x10] sm:$0xff]  ;;  %v75_v4 = vunpack.c.l.s4 %v126_v3  ;;  %vm115_vm2 = vcmask 1045509   ;;  %vm117_vm3 = vcmask 1047559  }
   0x2   :  { %v11_v5 = vld [vmem:[%s164_s0 + $0x18] sm:$0xff]  ;;  %v12_v6 = vld [vmem:[%s164_s0 + $0x20] sm:$0xff]  ;;  %v13_v7 = vld [vmem:[%s164_s0 + $0x28] sm:$0xff]  ;;  %v16_v8 = vrot.slane %v8_v0, 4  ;;  %v22_v9 = vrot.slane %v9_v1, 4  ;;  %v28_v10 = vrot.slane %v10_v2, 4 }
   0x3   :  { %v14_v12 = vld [vmem:[%s164_s0 + $0x30] sm:$0xff]  ;;  %v15_v13 = vld [vmem:[%s164_s0 + $0x38] sm:$0xff]  ;;  %v34_v14 = vrot.slane %v11_v5, 4  ;;  %v40_v15 = vrot.slane %v12_v6, 4  ;;  %v46_v16 = vrot.slane %v13_v7, 4  ;;  %v76_v17 = vunpack.c.0.s8 %v75_v4 }
   0x4   :  { %v17_v18 = vadd.f32 %v16_v8, %v8_v0  ;;  %v23_v19 = vadd.f32 %v22_v9, %v9_v1  ;;  %v29_v20 = vadd.f32 %v28_v10, %v10_v2  ;;  %v52_v21 = vrot.slane %v14_v12, 4 }
   0x5   :  { %v35_v22 = vadd.f32 %v34_v14, %v11_v5  ;;  %v41_v23 = vadd.f32 %v40_v15, %v12_v6  ;;  %v47_v24 = vadd.f32 %v46_v16, %v13_v7  ;;  %v58_v25 = vrot.slane %v15_v13, 4 }
   0x6   :  { %v18_v26 = vrot.slane %v17_v18, 2  ;;  %v24_v27 = vrot.slane %v23_v19, 2  ;;  %v30_v28 = vrot.slane %v29_v20, 2  ;;  %v53_v29 = vadd.f32 %v52_v21, %v14_v12 }
   0x7   :  { %v36_v30 = vrot.slane %v35_v22, 2  ;;  %v42_v31 = vrot.slane %v41_v23, 2  ;;  %v48_v32 = vrot.slane %v47_v24, 2  ;;  %v59_v33 = vadd.f32 %v58_v25, %v15_v13 }
   0x8   :  { %v19_v34 = vadd.f32 %v18_v26, %v17_v18  ;;  %v25_v35 = vadd.f32 %v24_v27, %v23_v19  ;;  %v31_v36 = vadd.f32 %v30_v28, %v29_v20  ;;  %v54_v37 = vrot.slane %v53_v29, 2 }
   0x9   :  { %v37_v38 = vadd.f32 %v36_v30, %v35_v22  ;;  %v43_v39 = vadd.f32 %v42_v31, %v41_v23  ;;  %v49_v40 = vadd.f32 %v48_v32, %v47_v24  ;;  %v60_v41 = vrot.slane %v59_v33, 2 }
   0xa   :  { %v20_v42 = vrot.slane %v19_v34, 1  ;;  %v26_v43 = vrot.slane %v25_v35, 1  ;;  %v32_v44 = vrot.slane %v31_v36, 1  ;;  %v55_v45 = vadd.f32 %v54_v37, %v53_v29 }
   0xb   :  { %v38_v46 = vrot.slane %v37_v38, 1  ;;  %v44_v47 = vrot.slane %v43_v39, 1  ;;  %v50_v48 = vrot.slane %v49_v40, 1  ;;  %v61_v49 = vadd.f32 %v60_v41, %v59_v33 }
   0xc   :  { %v21_v50 = vadd.f32 %v20_v42, %v19_v34  ;;  %v27_v51 = vadd.f32 %v26_v43, %v25_v35  ;;  %v33_v52 = vadd.f32 %v32_v44, %v31_v36  ;;  %v56_v53 = vrot.slane %v55_v45, 1 }
   0xd   :  { %v39_v54 = vadd.f32 %v38_v46, %v37_v38  ;;  %v45_v55 = vadd.f32 %v44_v47, %v43_v39  ;;  %v51_v56 = vadd.f32 %v50_v48, %v49_v40  ;;  %v62_v57 = vrot.slane %v61_v49, 1 }
   0xe   :  { %v57_v58 = vadd.f32 %v56_v53, %v55_v45  ;;  %v72_v59 = vcombine.low %v21_v50, %v27_v51  ;;  %v78_v60 = vshrl.u32 %v77_v11, 7 }
   0xf   :  { %v63_v61 = vadd.f32 %v62_v57, %v61_v49  ;;  %v73_v62 = vcombine.low %v33_v52, %v39_v54  ;;  %v89_v63 = vcombine.low %v45_v55, %v51_v56 }
  0x10   :  { %v79_v0 = vsub.s32 %v76_v17, %v78_v60 }
  0x11   :  { %v90_v1 = vcombine.low %v57_v58, %v63_v61 }
  0x12   :  { %v80_v2 = vrot.slane %v72_v59, %v79_v0  ;;  %v87_v3 = vrot.slane %v73_v62, %v79_v0  ;;  %v97_v4 = vrot.slane %v89_v63, %v79_v0 }
  0x13   :  { %v104_v5 = vrot.slane %v90_v1, %v79_v0 }
  0x14   :  { %v88_v6 = vcombine.low %v80_v2, %v87_v3 }
  0x15   :  { %v105_v7 = vcombine.low %v97_v4, %v104_v5 }
  0x17   :  { %v110_v8 = vrot.slane %v105_v7, 7 }
  0x19   :  { %v112_v9 = vsel %vm111_vm0, %v110_v8, %v88_v6 }
  0x1a   :  { %v114_v10 = vsel %vm113_vm1, %v110_v8, %v112_v9 }
  0x1b   :  { %v116_v12 = vsel %vm115_vm2, %v110_v8, %v114_v10 }
  0x1c   :  { %v118_v11 = vsel %vm117_vm3, %v110_v8, %v116_v12 }
  0x1d   :  { %120 = vst [vmem:[%s165_s1] sm:$0xff] %v118_v11 }

// kernel: resnet_forward.46
= control target key start
LH: loop header
LB: loop body
LE: loop exit
PB: predicated region body
PF: predicated region fallthrough
CT: control target
= control target key end

     0   :  { %s637_s1 = inlined_call_operand.vmem [shape: bf16[512,128], index: 1, kind: input, shape index: {}]   ;;  %s638_s0 = inlined_call_operand.vmem [shape: bf16[8,512], index: 0, kind: input, shape index: {}]   ;;  %s639_s2 = inlined_call_operand.vmem [shape: f32[1,128], index: 2, kind: input, shape index: {}]   ;;  %s640_s3 = inlined_call_operand.vmem [shape: f32[8,128], index: 3, kind: output, shape index: {}]  }
   0x1   :  { %v473_v0 = vld [vmem:[%s637_s1 + $0x40] sm:$0xff]   ;;  %v477_v4 = vld [vmem:[%s637_s1 + $0x48] sm:$0xff]   ;;  %v481_v8 = vld [vmem:[%s637_s1 + $0x50] sm:$0xff]  }
   0x2   :  { %v474_v1 = vld [vmem:[%s637_s1 + $0xc0] sm:$0xff]   ;;  %429 = vmatprep.subr.bf16.mxu0 %v473_v0  ;;  %v478_v5 = vld [vmem:[%s637_s1 + $0xc8] sm:$0xff]   ;;  %v482_v9 = vld [vmem:[%s637_s1 + $0xd0] sm:$0xff]  }
   0x3   :  { %v475_v2 = vld [vmem:[%s637_s1] sm:$0xff]   ;;  %451 = vmatprep.subr.bf16.mxu1 %v474_v1  ;;  %v479_v6 = vld [vmem:[%s637_s1 + $0x8] sm:$0xff]   ;;  %v483_v10 = vld [vmem:[%s637_s1 + $0x10] sm:$0xff]  }
   0x4   :  { %v476_v3 = vld [vmem:[%s637_s1 + $0x80] sm:$0xff]   ;;  %430 = vmatpush3.bf16.msra.mxu0 %v475_v2  ;;  %v480_v7 = vld [vmem:[%s637_s1 + $0x88] sm:$0xff]   ;;  %v484_v11 = vld [vmem:[%s637_s1 + $0x90] sm:$0xff]  }
   0x5   :  { %452 = vmatpush3.bf16.msra.mxu1 %v476_v3  ;;  %431 = vmatprep.subr.bf16.mxu0 %v477_v4  ;;  %v485_v12 = vld [vmem:[%s637_s1 + $0x58] sm:$0xff]   ;;  %v489_v16 = vld [vmem:[%s637_s1 + $0x60] sm:$0xff]   ;;  %v493_v20 = vld [vmem:[%s637_s1 + $0x68] sm:$0xff]  }
   0x6   :  { %453 = vmatprep.subr.bf16.mxu1 %v478_v5  ;;  %v486_v13 = vld [vmem:[%s637_s1 + $0xd8] sm:$0xff]   ;;  %v490_v17 = vld [vmem:[%s637_s1 + $0xe0] sm:$0xff]   ;;  %v494_v21 = vld [vmem:[%s637_s1 + $0xe8] sm:$0xff]  }
   0x7   :  { %v487_v14 = vld [vmem:[%s637_s1 + $0x18] sm:$0xff]   ;;  %v491_v18 = vld [vmem:[%s637_s1 + $0x20] sm:$0xff]   ;;  %v495_v22 = vld [vmem:[%s637_s1 + $0x28] sm:$0xff]  }
   0x8   :  { %432 = vmatpush3.bf16.msra.mxu0 %v479_v6  ;;  %v488_v15 = vld [vmem:[%s637_s1 + $0x98] sm:$0xff]   ;;  %v492_v19 = vld [vmem:[%s637_s1 + $0xa0] sm:$0xff]   ;;  %v496_v23 = vld [vmem:[%s637_s1 + $0xa8] sm:$0xff]  }
   0x9   :  { %454 = vmatpush3.bf16.msra.mxu1 %v480_v7  ;;  %433 = vmatprep.subr.bf16.mxu0 %v481_v8  ;;  %v497_v24 = vld [vmem:[%s637_s1 + $0x70] sm:$0xff]   ;;  %v501_v28 = vld [vmem:[%s637_s1 + $0x78] sm:$0xff]   ;;  %v21_v32 = vld [vmem:[%s638_s0] sm:$0xff] }
   0xa   :  { %455 = vmatprep.subr.bf16.mxu1 %v482_v9  ;;  %v498_v25 = vld [vmem:[%s637_s1 + $0xf0] sm:$0xff]   ;;  %v502_v29 = vld [vmem:[%s637_s1 + $0xf8] sm:$0xff]   ;;  %v22_v33 = vld [vmem:[%s638_s0 + $0x8] sm:$0xff]  ;;  %v392_v34 = vcombine.low %v21_v32, %v21_v32  ;;  %v393_v35 = vcombine.high %v21_v32, %v21_v32 }
   0xb   :  { %v499_v26 = vld [vmem:[%s637_s1 + $0x30] sm:$0xff]   ;;  %v503_v30 = vld [vmem:[%s637_s1 + $0x38] sm:$0xff]   ;;  %v394_v36 = vcombine.low %v22_v33, %v22_v33  ;;  %v395_v37 = vcombine.high %v22_v33, %v22_v33  ;;  %v428_v46 = vld [vmem:[%s639_s2] ss:$0 sm:$0xff] }
   0xc   :  { %434 = vmatpush3.bf16.msra.mxu0 %v483_v10  ;;  %v500_v27 = vld [vmem:[%s637_s1 + $0xb0] sm:$0xff]   ;;  %v504_v31 = vld [vmem:[%s637_s1 + $0xb8] sm:$0xff]   ;;  %325 = vmatprep.mubr.bf16.mxu0 %v393_v35 }
   0xd   :  { %456 = vmatpush3.bf16.msra.mxu1 %v484_v11  ;;  %435 = vmatprep.subr.bf16.mxu0 %v485_v12 }
   0xe   :  { %457 = vmatprep.subr.bf16.mxu1 %v486_v13  ;;  %365 = vmatprep.mubr.bf16.mxu1 %v395_v37 }
  0x10   :  { %436 = vmatpush3.bf16.msra.mxu0 %v487_v14 }
  0x11   :  { %458 = vmatpush3.bf16.msra.mxu1 %v488_v15  ;;  %437 = vmatprep.subr.bf16.mxu0 %v489_v16 }
  0x12   :  { %459 = vmatprep.subr.bf16.mxu1 %v490_v17 }
  0x14   :  { %438 = vmatpush3.bf16.msra.mxu0 %v491_v18 }
  0x15   :  { %460 = vmatpush3.bf16.msra.mxu1 %v492_v19  ;;  %439 = vmatprep.subr.bf16.mxu0 %v493_v20 }
  0x16   :  { %461 = vmatprep.subr.bf16.mxu1 %v494_v21 }
  0x18   :  { %440 = vmatpush3.bf16.msra.mxu0 %v495_v22 }
  0x19   :  { %462 = vmatpush3.bf16.msra.mxu1 %v496_v23  ;;  %441 = vmatprep.subr.bf16.mxu0 %v497_v24 }
  0x1a   :  { %463 = vmatprep.subr.bf16.mxu1 %v498_v25 }
  0x1c   :  { %442 = vmatpush3.bf16.msra.mxu0 %v499_v26 }
  0x1d   :  { %464 = vmatpush3.bf16.msra.mxu1 %v500_v27  ;;  %443 = vmatprep.subr.bf16.mxu0 %v501_v28 }
  0x1e   :  { %465 = vmatprep.subr.bf16.mxu1 %v502_v29 }
  0x20   :  { %444 = vmatpush3.bf16.msra.mxu0 %v503_v30 }
  0x21   :  { %466 = vmatpush3.bf16.msra.mxu1 %v504_v31 }
  0x23   :  { %326 = vmatmul.mubr.bf16.vlgmr.msra.gmra.mrb[0].mxu0 %v392_v34 }
  0x24   :  { %366 = vmatmul.mubr.bf16.vlgmr.msra.gmra.mrb[0].mxu1 %v394_v36 }
  0xf6   :  { %v445_v38 = vpop.f32.mrb[0].mxu0 }
  0xf7   :  { %v467_v39 = vpop.f32.mrb[0].mxu1  ;;  %v446_v40 = vpop.f32.mrb[1].mxu0 }
  0xf8   :  { %v468_v41 = vpop.f32.mrb[1].mxu1  ;;  %v447_v42 = vadd.f32 %v446_v40, %v445_v38  ;;  %v448_v44 = vpop.f32.mrb[2].mxu0 }
  0xf9   :  { %v469_v43 = vadd.f32 %v468_v41, %v467_v39  ;;  %v470_v45 = vpop.f32.mrb[2].mxu1  ;;  %v449_v47 = vpop.f32.mrb[3].mxu0 }
  0xfa   :  { %v471_v48 = vpop.f32.mrb[3].mxu1 }
  0xfb   :  { %v368_v49 = vadd.f32 %v469_v43, %v447_v42 }
  0xfd   :  { %v386_v50 = vadd.f32 %v428_v46, %v368_v49 }
  0xff   :  { %387 = vst [vmem:[%s640_s3] sm:$0xff] %v386_v50 }

// kernel: resnet_forward.47
= control target key start
LH: loop header
LB: loop body
LE: loop exit
PB: predicated region body
PF: predicated region fallthrough
CT: control target
= control target key end

     0   :  { %v193_v0 = vmov 0.0   ;;  %vm194_vm0 = vmmov 0   ;;  %s248_s1 = inlined_call_operand.vmem [shape: bf16[128,128], index: 1, kind: input, shape index: {}]   ;;  %s249_s0 = inlined_call_operand.vmem [shape: bf16[8,128], index: 0, kind: input, shape index: {}]   ;;  %s250_s2 = inlined_call_operand.vmem [shape: f32[1,128], index: 2, kind: input, shape index: {}]   ;;  %s251_s3 = inlined_call_operand.vmem [shape: f32[8,128], index: 3, kind: output, shape index: {}]  }
   0x1   :  { %163 = vmatprep.subr.bf16.mxu0 %v193_v0  ;;  %v185_v1 = vld [vmem:[%s248_s1] sm:$0xff]   ;;  %179 = vmatprep.mubr.msk.bf16.mxu0 %vm194_vm0, %v193_v0  ;;  %v186_v2 = vld [vmem:[%s248_s1 + $0x8] sm:$0xff]   ;;  %v187_v3 = vld [vmem:[%s248_s1 + $0x10] sm:$0xff]  }
   0x2   :  { %164 = vmatpush3.bf16.msra.mxu0 %v185_v1  ;;  %v188_v4 = vld [vmem:[%s248_s1 + $0x18] sm:$0xff]   ;;  %v189_v5 = vld [vmem:[%s248_s1 + $0x20] sm:$0xff]   ;;  %v190_v6 = vld [vmem:[%s248_s1 + $0x28] sm:$0xff]  }
   0x3   :  { %165 = vmatprep.subr.bf16.mxu0 %v193_v0  ;;  %v191_v7 = vld [vmem:[%s248_s1 + $0x30] sm:$0xff]   ;;  %v192_v8 = vld [vmem:[%s248_s1 + $0x38] sm:$0xff]   ;;  %v21_v9 = vld [vmem:[%s249_s0] sm:$0xf] }
   0x4   :  { %v153_v10 = vld [vmem:[%s250_s2] ss:$0 sm:$0xff] }
   0x6   :  { %166 = vmatpush3.bf16.msra.mxu0 %v186_v2 }
   0x7   :  { %167 = vmatprep.subr.bf16.mxu0 %v193_v0 }
   0xa   :  { %168 = vmatpush3.bf16.msra.mxu0 %v187_v3 }
   0xb   :  { %169 = vmatprep.subr.bf16.mxu0 %v193_v0 }
   0xe   :  { %170 = vmatpush3.bf16.msra.mxu0 %v188_v4 }
   0xf   :  { %171 = vmatprep.subr.bf16.mxu0 %v193_v0 }
  0x12   :  { %172 = vmatpush3.bf16.msra.mxu0 %v189_v5 }
  0x13   :  { %173 = vmatprep.subr.bf16.mxu0 %v193_v0 }
  0x16   :  { %174 = vmatpush3.bf16.msra.mxu0 %v190_v6 }
  0x17   :  { %175 = vmatprep.subr.bf16.mxu0 %v193_v0 }
  0x1a   :  { %176 = vmatpush3.bf16.msra.mxu0 %v191_v7 }
  0x1b   :  { %177 = vmatprep.subr.bf16.mxu0 %v193_v0 }
  0x1e   :  { %178 = vmatpush3.bf16.msra.mxu0 %v192_v8 }
  0x21   :  { %180 = vmatmul.mubr.bf16.vlgmr.msra.gmra.mrb[0].mxu0 %v21_v9 }
  0xf4   :  { %v120_v11 = vpop.f32.mrb[0].mxu0 }
  0xf5   :  { %v139_v12 = vadd.f32 %v153_v10, %v120_v11  ;;  %v181_v13 = vpop.f32.mrb[1].mxu0 }
  0xf6   :  { %v123_v14 = vpop.f32.mrb[2].mxu0 }
  0xf7   :  { %140 = vst [vmem:[%s251_s3] sm:$0xff] %v139_v12  ;;  %v182_v15 = vpop.f32.mrb[3].mxu0 }

</bundles_post_ra>
